<compile_context>
chip_gen: v6e
topology: v6e:2x2x1
jax: 0.10.0
libtpu: 0.0.40
codegen_flags: <defaults>
</compile_context>

<pallas_src>
import numpy as np
import jax
import jax.numpy as jnp
from jax.experimental import pallas as pl
from jax.experimental.pallas import tpu as pltpu


def _make_conv_relu_kernel(C_IN, C_OUT, W, TILE_H):
    def kernel(xpad_ref, w_ref, b_ref, out_ref):
        # xpad_ref: [1, H+2, C_IN, W+2]  full zero-padded image (channel in sublanes)
        # w_ref:    [9, C_OUT, C_IN]     taps ordered ky*3 + kx
        # b_ref:    [C_OUT, 1]
        # out_ref:  [1, TILE_H, C_OUT, W]
        t = pl.program_id(1)
        base = pl.multiple_of(t * TILE_H, TILE_H)
        bias = b_ref[...]                                      # [C_OUT, 1]

        for hh in range(TILE_H):                               # static unroll
            acc = jnp.zeros((C_OUT, W), jnp.float32)
            for dy in range(3):
                # Padded input row (base + hh + dy), all channels: [C_IN, W+2].
                row = xpad_ref[0, base + hh + dy]
                for dx in range(3):
                    acc = acc + jnp.dot(
                        w_ref[dy * 3 + dx],                    # [C_OUT, C_IN]
                        row[:, dx:dx + W],                     # [C_IN, W]
                        preferred_element_type=jnp.float32)
            # Bias + ReLU on the MXU result just before the (lane-dense) store.
            out_ref[0, hh] = jnp.maximum(acc + bias, 0.0).astype(out_ref.dtype)

    return kernel


def conv_relu_block_forward(x_nchw, weight_oihw, bias):
    """x: [N, 64, H, W] f32, weight: [64, 64, 3, 3] f32, bias: [64] f32 -> [N, 64, H, W]."""
    N, C_in, H, W = x_nchw.shape
    C_out, C_in_w, kh, kw = weight_oihw.shape
    assert (C_in_w, kh, kw) == (C_in, 3, 3)

    TILE_H = 8 if H % 8 == 0 else H
    assert H % TILE_H == 0
    n_row_tiles = H // TILE_H

    # Layout glue (one XLA copy): NCHW -> [N, H+2, C_in, W+2] with channels in the
    # sublane dim, so each padded row is a ready-made [C_in, W+2] matmul operand.
    x_t = jnp.transpose(x_nchw, (0, 2, 1, 3))                       # [N, H, C, W]
    x_pad = jnp.pad(x_t, ((0, 0), (1, 1), (0, 0), (1, 1)))          # [N, H+2, C, W+2]

    # Weight taps -> [9, C_out, C_in], tap = ky*3 + kx (cross-correlation, same as
    # PyTorch Conv2d / lax.conv_general_dilated).
    w_taps = jnp.transpose(weight_oihw, (2, 3, 0, 1)).reshape(9, C_out, C_in)
    b2 = bias.reshape(C_out, 1).astype(jnp.float32)

    kernel = _make_conv_relu_kernel(C_in, C_out, W, TILE_H)

    out_hcw = pl.pallas_call(
        kernel,
        out_shape=jax.ShapeDtypeStruct((N, H, C_out, W), jnp.float32),
        grid_spec=pltpu.PrefetchScalarGridSpec(
            num_scalar_prefetch=0,
            grid=(N, n_row_tiles),                       # row-tile axis innermost
            in_specs=[
                # Full padded image resident per batch item (only re-DMA'd when n changes).
                pl.BlockSpec((1, H + 2, C_in, W + 2), lambda n, t: (n, 0, 0, 0)),
                pl.BlockSpec((9, C_out, C_in), lambda n, t: (0, 0, 0)),
                pl.BlockSpec((C_out, 1), lambda n, t: (0, 0)),
            ],
            out_specs=pl.BlockSpec((1, TILE_H, C_out, W), lambda n, t: (n, t, 0, 0)),
        ),
        compiler_params=pltpu.CompilerParams(
            dimension_semantics=("parallel", "parallel"),
        ),
    )(x_pad, w_taps, b2)

    # Back to PyTorch NCHW.
    # TODO(synk): emitting [N, C_out, H*W] via an im2col-flattened matmul would turn
    #             this transpose into a free metadata reshape.
    return jnp.transpose(out_hcw, (0, 2, 1, 3))


def _reference_forward(x_nchw, weight_oihw, bias):
    """Pure-JAX reference: conv2d(pad=1) + bias + ReLU."""
    out = jax.lax.conv_general_dilated(
        x_nchw, weight_oihw,
        window_strides=(1, 1), padding=((1, 1), (1, 1)),
        dimension_numbers=("NCHW", "OIHW", "NCHW"),
        precision=jax.lax.Precision.HIGHEST,
    )
    out = out + bias[None, :, None, None]
    return jnp.maximum(out, 0.0)


if __name__ == "__main__":
    key = jax.random.PRNGKey(0)
    k_x, k_w, k_b = jax.random.split(key, 3)

    N, C, H, W = 2, 64, 16, 16

    x = jax.random.normal(k_x, (N, C, H, W), dtype=jnp.float32)
    # PyTorch Conv2d default init bounds: U(-1/sqrt(fan_in), 1/sqrt(fan_in)).
    fan_in = C * 3 * 3
    bound = 1.0 / np.sqrt(fan_in)
    weight = jax.random.uniform(k_w, (C, C, 3, 3), dtype=jnp.float32,
                                minval=-bound, maxval=bound)
    bias = jax.random.uniform(k_b, (C,), dtype=jnp.float32,
                              minval=-bound, maxval=bound)

    out = jax.block_until_ready(conv_relu_block_forward(x, weight, bias))
    ref = jax.block_until_ready(_reference_forward(x, weight, bias))

    assert out.shape == (N, C, H, W)
    np.testing.assert_allclose(np.asarray(out), np.asarray(ref), rtol=1e-4, atol=1e-4)

    print("KERNEL_OK")
</pallas_src>

<mosaic_0001>
module attributes {stable_mosaic.version = 11 : i64} {
  func.func @kernel(%arg0: i32, %arg1: i32, %arg2: memref<1x18x64x18xf32, #tpu.memory_space<vmem>>, %arg3: memref<9x64x64xf32, #tpu.memory_space<vmem>>, %arg4: memref<64x1xf32, #tpu.memory_space<vmem>>, %arg5: memref<1x8x64x16xf32, #tpu.memory_space<vmem>>) attributes {dimension_semantics = [#tpu.dimension_semantics<parallel>, #tpu.dimension_semantics<parallel>], iteration_bounds = array<i64: 2, 2>, scalar_prefetch = 0 : i64, scratch_operands = 0 : i64, tpu.core_type = #tpu.core_type<tc>, window_params = [{transform_indices = @transform_0, window_bounds = array<i64: 1, 18, 64, 18>}, {pipeline_mode = #tpu.pipeline_mode<synchronous>, transform_indices = @transform_1, window_bounds = array<i64: 9, 64, 64>}, {pipeline_mode = #tpu.pipeline_mode<synchronous>, transform_indices = @transform_2, window_bounds = array<i64: 64, 1>}, {transform_indices = @transform_3, window_bounds = array<i64: 1, 8, 64, 16>}]} {
    %c8_i32 = arith.constant 8 : i32
    %0 = arith.muli %arg1, %c8_i32 : i32
    %1 = tpu.assume_multiple %0, 8 : i32
    %c0 = arith.constant 0 : index
    %c0_0 = arith.constant 0 : index
    %2 = vector.load %arg4[%c0, %c0_0] : memref<64x1xf32, #tpu.memory_space<vmem>>, vector<64x1xf32>
    %cst = arith.constant 0.000000e+00 : f32
    %3 = vector.broadcast %cst : f32 to vector<64x16xf32>
    %c0_i32 = arith.constant 0 : i32
    %4 = arith.addi %1, %c0_i32 : i32
    %c0_i32_1 = arith.constant 0 : i32
    %5 = arith.addi %4, %c0_i32_1 : i32
    %c0_2 = arith.constant 0 : index
    %6 = arith.index_cast %5 : i32 to index
    %c0_3 = arith.constant 0 : index
    %c0_4 = arith.constant 0 : index
    %7 = vector.load %arg2[%c0_2, %6, %c0_3, %c0_4] : memref<1x18x64x18xf32, #tpu.memory_space<vmem>>, vector<1x1x64x18xf32>
    %8 = vector.shape_cast %7 : vector<1x1x64x18xf32> to vector<64x18xf32>
    %c0_5 = arith.constant 0 : index
    %c0_6 = arith.constant 0 : index
    %c0_7 = arith.constant 0 : index
    %9 = vector.load %arg3[%c0_5, %c0_6, %c0_7] : memref<9x64x64xf32, #tpu.memory_space<vmem>>, vector<1x64x64xf32>
    %10 = vector.shape_cast %9 : vector<1x64x64xf32> to vector<64x64xf32>
    %11 = vector.extract_strided_slice %8 {offsets = [0, 0], sizes = [64, 16], strides = [1, 1]} : vector<64x18xf32> to vector<64x16xf32>
    %cst_8 = arith.constant dense<0.000000e+00> : vector<64x16xf32>
    %12 = tpu.matmul %10, %11, %cst_8 {dimension_numbers = #tpu.dot_dimension_numbers<[1], [0], [0], [1], [0, 0, 1, 1], [], []>} : vector<64x64xf32>, vector<64x16xf32>, vector<64x16xf32> -> vector<64x16xf32>
    %13 = arith.addf %3, %12 : vector<64x16xf32>
    %c1 = arith.constant 1 : index
    %c0_9 = arith.constant 0 : index
    %c0_10 = arith.constant 0 : index
    %14 = vector.load %arg3[%c1, %c0_9, %c0_10] : memref<9x64x64xf32, #tpu.memory_space<vmem>>, vector<1x64x64xf32>
    %15 = vector.shape_cast %14 : vector<1x64x64xf32> to vector<64x64xf32>
    %16 = vector.extract_strided_slice %8 {offsets = [0, 1], sizes = [64, 16], strides = [1, 1]} : vector<64x18xf32> to vector<64x16xf32>
    %cst_11 = arith.constant dense<0.000000e+00> : vector<64x16xf32>
    %17 = tpu.matmul %15, %16, %cst_11 {dimension_numbers = #tpu.dot_dimension_numbers<[1], [0], [0], [1], [0, 0, 1, 1], [], []>} : vector<64x64xf32>, vector<64x16xf32>, vector<64x16xf32> -> vector<64x16xf32>
    %18 = arith.addf %13, %17 : vector<64x16xf32>
    %c2 = arith.constant 2 : index
    %c0_12 = arith.constant 0 : index
    %c0_13 = arith.constant 0 : index
    %19 = vector.load %arg3[%c2, %c0_12, %c0_13] : memref<9x64x64xf32, #tpu.memory_space<vmem>>, vector<1x64x64xf32>
    %20 = vector.shape_cast %19 : vector<1x64x64xf32> to vector<64x64xf32>
    %21 = vector.extract_strided_slice %8 {offsets = [0, 2], sizes = [64, 16], strides = [1, 1]} : vector<64x18xf32> to vector<64x16xf32>
    %cst_14 = arith.constant dense<0.000000e+00> : vector<64x16xf32>
    %22 = tpu.matmul %20, %21, %cst_14 {dimension_numbers = #tpu.dot_dimension_numbers<[1], [0], [0], [1], [0, 0, 1, 1], [], []>} : vector<64x64xf32>, vector<64x16xf32>, vector<64x16xf32> -> vector<64x16xf32>
    %23 = arith.addf %18, %22 : vector<64x16xf32>
    %c0_i32_15 = arith.constant 0 : i32
    %24 = arith.addi %1, %c0_i32_15 : i32
    %c1_i32 = arith.constant 1 : i32
    %25 = arith.addi %24, %c1_i32 : i32
    %c0_16 = arith.constant 0 : index
    %26 = arith.index_cast %25 : i32 to index
    %c0_17 = arith.constant 0 : index
    %c0_18 = arith.constant 0 : index
    %27 = vector.load %arg2[%c0_16, %26, %c0_17, %c0_18] : memref<1x18x64x18xf32, #tpu.memory_space<vmem>>, vector<1x1x64x18xf32>
    %28 = vector.shape_cast %27 : vector<1x1x64x18xf32> to vector<64x18xf32>
    %c3 = arith.constant 3 : index
    %c0_19 = arith.constant 0 : index
    %c0_20 = arith.constant 0 : index
    %29 = vector.load %arg3[%c3, %c0_19, %c0_20] : memref<9x64x64xf32, #tpu.memory_space<vmem>>, vector<1x64x64xf32>
    %30 = vector.shape_cast %29 : vector<1x64x64xf32> to vector<64x64xf32>
    %31 = vector.extract_strided_slice %28 {offsets = [0, 0], sizes = [64, 16], strides = [1, 1]} : vector<64x18xf32> to vector<64x16xf32>
    %cst_21 = arith.constant dense<0.000000e+00> : vector<64x16xf32>
    %32 = tpu.matmul %30, %31, %cst_21 {dimension_numbers = #tpu.dot_dimension_numbers<[1], [0], [0], [1], [0, 0, 1, 1], [], []>} : vector<64x64xf32>, vector<64x16xf32>, vector<64x16xf32> -> vector<64x16xf32>
    %33 = arith.addf %23, %32 : vector<64x16xf32>
    %c4 = arith.constant 4 : index
    %c0_22 = arith.constant 0 : index
    %c0_23 = arith.constant 0 : index
    %34 = vector.load %arg3[%c4, %c0_22, %c0_23] : memref<9x64x64xf32, #tpu.memory_space<vmem>>, vector<1x64x64xf32>
    %35 = vector.shape_cast %34 : vector<1x64x64xf32> to vector<64x64xf32>
    %36 = vector.extract_strided_slice %28 {offsets = [0, 1], sizes = [64, 16], strides = [1, 1]} : vector<64x18xf32> to vector<64x16xf32>
    %cst_24 = arith.constant dense<0.000000e+00> : vector<64x16xf32>
    %37 = tpu.matmul %35, %36, %cst_24 {dimension_numbers = #tpu.dot_dimension_numbers<[1], [0], [0], [1], [0, 0, 1, 1], [], []>} : vector<64x64xf32>, vector<64x16xf32>, vector<64x16xf32> -> vector<64x16xf32>
    %38 = arith.addf %33, %37 : vector<64x16xf32>
    %c5 = arith.constant 5 : index
    %c0_25 = arith.constant 0 : index
    %c0_26 = arith.constant 0 : index
    %39 = vector.load %arg3[%c5, %c0_25, %c0_26] : memref<9x64x64xf32, #tpu.memory_space<vmem>>, vector<1x64x64xf32>
    %40 = vector.shape_cast %39 : vector<1x64x64xf32> to vector<64x64xf32>
    %41 = vector.extract_strided_slice %28 {offsets = [0, 2], sizes = [64, 16], strides = [1, 1]} : vector<64x18xf32> to vector<64x16xf32>
    %cst_27 = arith.constant dense<0.000000e+00> : vector<64x16xf32>
    %42 = tpu.matmul %40, %41, %cst_27 {dimension_numbers = #tpu.dot_dimension_numbers<[1], [0], [0], [1], [0, 0, 1, 1], [], []>} : vector<64x64xf32>, vector<64x16xf32>, vector<64x16xf32> -> vector<64x16xf32>
    %43 = arith.addf %38, %42 : vector<64x16xf32>
    %c0_i32_28 = arith.constant 0 : i32
    %44 = arith.addi %1, %c0_i32_28 : i32
    %c2_i32 = arith.constant 2 : i32
    %45 = arith.addi %44, %c2_i32 : i32
    %c0_29 = arith.constant 0 : index
    %46 = arith.index_cast %45 : i32 to index
    %c0_30 = arith.constant 0 : index
    %c0_31 = arith.constant 0 : index
    %47 = vector.load %arg2[%c0_29, %46, %c0_30, %c0_31] : memref<1x18x64x18xf32, #tpu.memory_space<vmem>>, vector<1x1x64x18xf32>
    %48 = vector.shape_cast %47 : vector<1x1x64x18xf32> to vector<64x18xf32>
    %c6 = arith.constant 6 : index
    %c0_32 = arith.constant 0 : index
    %c0_33 = arith.constant 0 : index
    %49 = vector.load %arg3[%c6, %c0_32, %c0_33] : memref<9x64x64xf32, #tpu.memory_space<vmem>>, vector<1x64x64xf32>
    %50 = vector.shape_cast %49 : vector<1x64x64xf32> to vector<64x64xf32>
    %51 = vector.extract_strided_slice %48 {offsets = [0, 0], sizes = [64, 16], strides = [1, 1]} : vector<64x18xf32> to vector<64x16xf32>
    %cst_34 = arith.constant dense<0.000000e+00> : vector<64x16xf32>
    %52 = tpu.matmul %50, %51, %cst_34 {dimension_numbers = #tpu.dot_dimension_numbers<[1], [0], [0], [1], [0, 0, 1, 1], [], []>} : vector<64x64xf32>, vector<64x16xf32>, vector<64x16xf32> -> vector<64x16xf32>
    %53 = arith.addf %43, %52 : vector<64x16xf32>
    %c7 = arith.constant 7 : index
    %c0_35 = arith.constant 0 : index
    %c0_36 = arith.constant 0 : index
    %54 = vector.load %arg3[%c7, %c0_35, %c0_36] : memref<9x64x64xf32, #tpu.memory_space<vmem>>, vector<1x64x64xf32>
    %55 = vector.shape_cast %54 : vector<1x64x64xf32> to vector<64x64xf32>
    %56 = vector.extract_strided_slice %48 {offsets = [0, 1], sizes = [64, 16], strides = [1, 1]} : vector<64x18xf32> to vector<64x16xf32>
    %cst_37 = arith.constant dense<0.000000e+00> : vector<64x16xf32>
    %57 = tpu.matmul %55, %56, %cst_37 {dimension_numbers = #tpu.dot_dimension_numbers<[1], [0], [0], [1], [0, 0, 1, 1], [], []>} : vector<64x64xf32>, vector<64x16xf32>, vector<64x16xf32> -> vector<64x16xf32>
    %58 = arith.addf %53, %57 : vector<64x16xf32>
    %c8 = arith.constant 8 : index
    %c0_38 = arith.constant 0 : index
    %c0_39 = arith.constant 0 : index
    %59 = vector.load %arg3[%c8, %c0_38, %c0_39] : memref<9x64x64xf32, #tpu.memory_space<vmem>>, vector<1x64x64xf32>
    %60 = vector.shape_cast %59 : vector<1x64x64xf32> to vector<64x64xf32>
    %61 = vector.extract_strided_slice %48 {offsets = [0, 2], sizes = [64, 16], strides = [1, 1]} : vector<64x18xf32> to vector<64x16xf32>
    %cst_40 = arith.constant dense<0.000000e+00> : vector<64x16xf32>
    %62 = tpu.matmul %60, %61, %cst_40 {dimension_numbers = #tpu.dot_dimension_numbers<[1], [0], [0], [1], [0, 0, 1, 1], [], []>} : vector<64x64xf32>, vector<64x16xf32>, vector<64x16xf32> -> vector<64x16xf32>
    %63 = arith.addf %58, %62 : vector<64x16xf32>
    %64 = vector.broadcast %2 : vector<64x1xf32> to vector<64x16xf32>
    %65 = arith.addf %63, %64 : vector<64x16xf32>
    %cst_41 = arith.constant 0.000000e+00 : f32
    %66 = vector.broadcast %cst_41 : f32 to vector<64x16xf32>
    %67 = arith.maximumf %65, %66 : vector<64x16xf32>
    %c0_42 = arith.constant 0 : index
    %c0_43 = arith.constant 0 : index
    %c0_44 = arith.constant 0 : index
    %c0_45 = arith.constant 0 : index
    %68 = vector.load %arg5[%c0_42, %c0_43, %c0_44, %c0_45] : memref<1x8x64x16xf32, #tpu.memory_space<vmem>>, vector<1x1x64x16xf32>
    %69 = vector.shape_cast %68 : vector<1x1x64x16xf32> to vector<64x16xf32>
    %70 = vector.shape_cast %67 : vector<64x16xf32> to vector<1x1x64x16xf32>
    tpu.vector_store %arg5[%c0_42, %c0_43, %c0_44, %c0_45], %70 {strides = array<i32>} : memref<1x8x64x16xf32, #tpu.memory_space<vmem>>, vector<1x1x64x16xf32>,
    %cst_46 = arith.constant 0.000000e+00 : f32
    %71 = vector.broadcast %cst_46 : f32 to vector<64x16xf32>
    %c1_i32_47 = arith.constant 1 : i32
    %72 = arith.addi %1, %c1_i32_47 : i32
    %c0_i32_48 = arith.constant 0 : i32
    %73 = arith.addi %72, %c0_i32_48 : i32
    %c0_49 = arith.constant 0 : index
    %74 = arith.index_cast %73 : i32 to index
    %c0_50 = arith.constant 0 : index
    %c0_51 = arith.constant 0 : index
    %75 = vector.load %arg2[%c0_49, %74, %c0_50, %c0_51] : memref<1x18x64x18xf32, #tpu.memory_space<vmem>>, vector<1x1x64x18xf32>
    %76 = vector.shape_cast %75 : vector<1x1x64x18xf32> to vector<64x18xf32>
    %c0_52 = arith.constant 0 : index
    %c0_53 = arith.constant 0 : index
    %c0_54 = arith.constant 0 : index
    %77 = vector.load %arg3[%c0_52, %c0_53, %c0_54] : memref<9x64x64xf32, #tpu.memory_space<vmem>>, vector<1x64x64xf32>
    %78 = vector.shape_cast %77 : vector<1x64x64xf32> to vector<64x64xf32>
    %79 = vector.extract_strided_slice %76 {offsets = [0, 0], sizes = [64, 16], strides = [1, 1]} : vector<64x18xf32> to vector<64x16xf32>
    %cst_55 = arith.constant dense<0.000000e+00> : vector<64x16xf32>
    %80 = tpu.matmul %78, %79, %cst_55 {dimension_numbers = #tpu.dot_dimension_numbers<[1], [0], [0], [1], [0, 0, 1, 1], [], []>} : vector<64x64xf32>, vector<64x16xf32>, vector<64x16xf32> -> vector<64x16xf32>
    %81 = arith.addf %71, %80 : vector<64x16xf32>
    %c1_56 = arith.constant 1 : index
    %c0_57 = arith.constant 0 : index
    %c0_58 = arith.constant 0 : index
    %82 = vector.load %arg3[%c1_56, %c0_57, %c0_58] : memref<9x64x64xf32, #tpu.memory_space<vmem>>, vector<1x64x64xf32>
    %83 = vector.shape_cast %82 : vector<1x64x64xf32> to vector<64x64xf32>
    %84 = vector.extract_strided_slice %76 {offsets = [0, 1], sizes = [64, 16], strides = [1, 1]} : vector<64x18xf32> to vector<64x16xf32>
    %cst_59 = arith.constant dense<0.000000e+00> : vector<64x16xf32>
    %85 = tpu.matmul %83, %84, %cst_59 {dimension_numbers = #tpu.dot_dimension_numbers<[1], [0], [0], [1], [0, 0, 1, 1], [], []>} : vector<64x64xf32>, vector<64x16xf32>, vector<64x16xf32> -> vector<64x16xf32>
    %86 = arith.addf %81, %85 : vector<64x16xf32>
    %c2_60 = arith.constant 2 : index
    %c0_61 = arith.constant 0 : index
    %c0_62 = arith.constant 0 : index
    %87 = vector.load %arg3[%c2_60, %c0_61, %c0_62] : memref<9x64x64xf32, #tpu.memory_space<vmem>>, vector<1x64x64xf32>
    %88 = vector.shape_cast %87 : vector<1x64x64xf32> to vector<64x64xf32>
    %89 = vector.extract_strided_slice %76 {offsets = [0, 2], sizes = [64, 16], strides = [1, 1]} : vector<64x18xf32> to vector<64x16xf32>
    %cst_63 = arith.constant dense<0.000000e+00> : vector<64x16xf32>
    %90 = tpu.matmul %88, %89, %cst_63 {dimension_numbers = #tpu.dot_dimension_numbers<[1], [0], [0], [1], [0, 0, 1, 1], [], []>} : vector<64x64xf32>, vector<64x16xf32>, vector<64x16xf32> -> vector<64x16xf32>
    %91 = arith.addf %86, %90 : vector<64x16xf32>
    %c1_i32_64 = arith.constant 1 : i32
    %92 = arith.addi %1, %c1_i32_64 : i32
    %c1_i32_65 = arith.constant 1 : i32
    %93 = arith.addi %92, %c1_i32_65 : i32
    %c0_66 = arith.constant 0 : index
    %94 = arith.index_cast %93 : i32 to index
    %c0_67 = arith.constant 0 : index
    %c0_68 = arith.constant 0 : index
    %95 = vector.load %arg2[%c0_66, %94, %c0_67, %c0_68] : memref<1x18x64x18xf32, #tpu.memory_space<vmem>>, vector<1x1x64x18xf32>
    %96 = vector.shape_cast %95 : vector<1x1x64x18xf32> to vector<64x18xf32>
    %c3_69 = arith.constant 3 : index
    %c0_70 = arith.constant 0 : index
    %c0_71 = arith.constant 0 : index
    %97 = vector.load %arg3[%c3_69, %c0_70, %c0_71] : memref<9x64x64xf32, #tpu.memory_space<vmem>>, vector<1x64x64xf32>
    %98 = vector.shape_cast %97 : vector<1x64x64xf32> to vector<64x64xf32>
    %99 = vector.extract_strided_slice %96 {offsets = [0, 0], sizes = [64, 16], strides = [1, 1]} : vector<64x18xf32> to vector<64x16xf32>
    %cst_72 = arith.constant dense<0.000000e+00> : vector<64x16xf32>
    %100 = tpu.matmul %98, %99, %cst_72 {dimension_numbers = #tpu.dot_dimension_numbers<[1], [0], [0], [1], [0, 0, 1, 1], [], []>} : vector<64x64xf32>, vector<64x16xf32>, vector<64x16xf32> -> vector<64x16xf32>
    %101 = arith.addf %91, %100 : vector<64x16xf32>
    %c4_73 = arith.constant 4 : index
    %c0_74 = arith.constant 0 : index
    %c0_75 = arith.constant 0 : index
    %102 = vector.load %arg3[%c4_73, %c0_74, %c0_75] : memref<9x64x64xf32, #tpu.memory_space<vmem>>, vector<1x64x64xf32>
    %103 = vector.shape_cast %102 : vector<1x64x64xf32> to vector<64x64xf32>
    %104 = vector.extract_strided_slice %96 {offsets = [0, 1], sizes = [64, 16], strides = [1, 1]} : vector<64x18xf32> to vector<64x16xf32>
    %cst_76 = arith.constant dense<0.000000e+00> : vector<64x16xf32>
    %105 = tpu.matmul %103, %104, %cst_76 {dimension_numbers = #tpu.dot_dimension_numbers<[1], [0], [0], [1], [0, 0, 1, 1], [], []>} : vector<64x64xf32>, vector<64x16xf32>, vector<64x16xf32> -> vector<64x16xf32>
    %106 = arith.addf %101, %105 : vector<64x16xf32>
    %c5_77 = arith.constant 5 : index
    %c0_78 = arith.constant 0 : index
    %c0_79 = arith.constant 0 : index
    %107 = vector.load %arg3[%c5_77, %c0_78, %c0_79] : memref<9x64x64xf32, #tpu.memory_space<vmem>>, vector<1x64x64xf32>
    %108 = vector.shape_cast %107 : vector<1x64x64xf32> to vector<64x64xf32>
    %109 = vector.extract_strided_slice %96 {offsets = [0, 2], sizes = [64, 16], strides = [1, 1]} : vector<64x18xf32> to vector<64x16xf32>
    %cst_80 = arith.constant dense<0.000000e+00> : vector<64x16xf32>
    %110 = tpu.matmul %108, %109, %cst_80 {dimension_numbers = #tpu.dot_dimension_numbers<[1], [0], [0], [1], [0, 0, 1, 1], [], []>} : vector<64x64xf32>, vector<64x16xf32>, vector<64x16xf32> -> vector<64x16xf32>
    %111 = arith.addf %106, %110 : vector<64x16xf32>
    %c1_i32_81 = arith.constant 1 : i32
    %112 = arith.addi %1, %c1_i32_81 : i32
    %c2_i32_82 = arith.constant 2 : i32
    %113 = arith.addi %112, %c2_i32_82 : i32
    %c0_83 = arith.constant 0 : index
    %114 = arith.index_cast %113 : i32 to index
    %c0_84 = arith.constant 0 : index
    %c0_85 = arith.constant 0 : index
    %115 = vector.load %arg2[%c0_83, %114, %c0_84, %c0_85] : memref<1x18x64x18xf32, #tpu.memory_space<vmem>>, vector<1x1x64x18xf32>
    %116 = vector.shape_cast %115 : vector<1x1x64x18xf32> to vector<64x18xf32>
    %c6_86 = arith.constant 6 : index
    %c0_87 = arith.constant 0 : index
    %c0_88 = arith.constant 0 : index
    %117 = vector.load %arg3[%c6_86, %c0_87, %c0_88] : memref<9x64x64xf32, #tpu.memory_space<vmem>>, vector<1x64x64xf32>
    %118 = vector.shape_cast %117 : vector<1x64x64xf32> to vector<64x64xf32>
    %119 = vector.extract_strided_slice %116 {offsets = [0, 0], sizes = [64, 16], strides = [1, 1]} : vector<64x18xf32> to vector<64x16xf32>
    %cst_89 = arith.constant dense<0.000000e+00> : vector<64x16xf32>
    %120 = tpu.matmul %118, %119, %cst_89 {dimension_numbers = #tpu.dot_dimension_numbers<[1], [0], [0], [1], [0, 0, 1, 1], [], []>} : vector<64x64xf32>, vector<64x16xf32>, vector<64x16xf32> -> vector<64x16xf32>
    %121 = arith.addf %111, %120 : vector<64x16xf32>
    %c7_90 = arith.constant 7 : index
    %c0_91 = arith.constant 0 : index
    %c0_92 = arith.constant 0 : index
    %122 = vector.load %arg3[%c7_90, %c0_91, %c0_92] : memref<9x64x64xf32, #tpu.memory_space<vmem>>, vector<1x64x64xf32>
    %123 = vector.shape_cast %122 : vector<1x64x64xf32> to vector<64x64xf32>
    %124 = vector.extract_strided_slice %116 {offsets = [0, 1], sizes = [64, 16], strides = [1, 1]} : vector<64x18xf32> to vector<64x16xf32>
    %cst_93 = arith.constant dense<0.000000e+00> : vector<64x16xf32>
    %125 = tpu.matmul %123, %124, %cst_93 {dimension_numbers = #tpu.dot_dimension_numbers<[1], [0], [0], [1], [0, 0, 1, 1], [], []>} : vector<64x64xf32>, vector<64x16xf32>, vector<64x16xf32> -> vector<64x16xf32>
    %126 = arith.addf %121, %125 : vector<64x16xf32>
    %c8_94 = arith.constant 8 : index
    %c0_95 = arith.constant 0 : index
    %c0_96 = arith.constant 0 : index
    %127 = vector.load %arg3[%c8_94, %c0_95, %c0_96] : memref<9x64x64xf32, #tpu.memory_space<vmem>>, vector<1x64x64xf32>
    %128 = vector.shape_cast %127 : vector<1x64x64xf32> to vector<64x64xf32>
    %129 = vector.extract_strided_slice %116 {offsets = [0, 2], sizes = [64, 16], strides = [1, 1]} : vector<64x18xf32> to vector<64x16xf32>
    %cst_97 = arith.constant dense<0.000000e+00> : vector<64x16xf32>
    %130 = tpu.matmul %128, %129, %cst_97 {dimension_numbers = #tpu.dot_dimension_numbers<[1], [0], [0], [1], [0, 0, 1, 1], [], []>} : vector<64x64xf32>, vector<64x16xf32>, vector<64x16xf32> -> vector<64x16xf32>
    %131 = arith.addf %126, %130 : vector<64x16xf32>
    %132 = vector.broadcast %2 : vector<64x1xf32> to vector<64x16xf32>
    %133 = arith.addf %131, %132 : vector<64x16xf32>
    %cst_98 = arith.constant 0.000000e+00 : f32
    %134 = vector.broadcast %cst_98 : f32 to vector<64x16xf32>
    %135 = arith.maximumf %133, %134 : vector<64x16xf32>
    %c0_99 = arith.constant 0 : index
    %c1_100 = arith.constant 1 : index
    %c0_101 = arith.constant 0 : index
    %c0_102 = arith.constant 0 : index
    %136 = vector.load %arg5[%c0_99, %c1_100, %c0_101, %c0_102] : memref<1x8x64x16xf32, #tpu.memory_space<vmem>>, vector<1x1x64x16xf32>
    %137 = vector.shape_cast %136 : vector<1x1x64x16xf32> to vector<64x16xf32>
    %138 = vector.shape_cast %135 : vector<64x16xf32> to vector<1x1x64x16xf32>
    tpu.vector_store %arg5[%c0_99, %c1_100, %c0_101, %c0_102], %138 {strides = array<i32>} : memref<1x8x64x16xf32, #tpu.memory_space<vmem>>, vector<1x1x64x16xf32>,
    %cst_103 = arith.constant 0.000000e+00 : f32
    %139 = vector.broadcast %cst_103 : f32 to vector<64x16xf32>
    %c2_i32_104 = arith.constant 2 : i32
    %140 = arith.addi %1, %c2_i32_104 : i32
    %c0_i32_105 = arith.constant 0 : i32
    %141 = arith.addi %140, %c0_i32_105 : i32
    %c0_106 = arith.constant 0 : index
    %142 = arith.index_cast %141 : i32 to index
    %c0_107 = arith.constant 0 : index
    %c0_108 = arith.constant 0 : index
    %143 = vector.load %arg2[%c0_106, %142, %c0_107, %c0_108] : memref<1x18x64x18xf32, #tpu.memory_space<vmem>>, vector<1x1x64x18xf32>
    %144 = vector.shape_cast %143 : vector<1x1x64x18xf32> to vector<64x18xf32>
    %c0_109 = arith.constant 0 : index
    %c0_110 = arith.constant 0 : index
    %c0_111 = arith.constant 0 : index
    %145 = vector.load %arg3[%c0_109, %c0_110, %c0_111] : memref<9x64x64xf32, #tpu.memory_space<vmem>>, vector<1x64x64xf32>
    %146 = vector.shape_cast %145 : vector<1x64x64xf32> to vector<64x64xf32>
    %147 = vector.extract_strided_slice %144 {offsets = [0, 0], sizes = [64, 16], strides = [1, 1]} : vector<64x18xf32> to vector<64x16xf32>
    %cst_112 = arith.constant dense<0.000000e+00> : vector<64x16xf32>
    %148 = tpu.matmul %146, %147, %cst_112 {dimension_numbers = #tpu.dot_dimension_numbers<[1], [0], [0], [1], [0, 0, 1, 1], [], []>} : vector<64x64xf32>, vector<64x16xf32>, vector<64x16xf32> -> vector<64x16xf32>
    %149 = arith.addf %139, %148 : vector<64x16xf32>
    %c1_113 = arith.constant 1 : index
    %c0_114 = arith.constant 0 : index
    %c0_115 = arith.constant 0 : index
    %150 = vector.load %arg3[%c1_113, %c0_114, %c0_115] : memref<9x64x64xf32, #tpu.memory_space<vmem>>, vector<1x64x64xf32>
    %151 = vector.shape_cast %150 : vector<1x64x64xf32> to vector<64x64xf32>
    %152 = vector.extract_strided_slice %144 {offsets = [0, 1], sizes = [64, 16], strides = [1, 1]} : vector<64x18xf32> to vector<64x16xf32>
    %cst_116 = arith.constant dense<0.000000e+00> : vector<64x16xf32>
    %153 = tpu.matmul %151, %152, %cst_116 {dimension_numbers = #tpu.dot_dimension_numbers<[1], [0], [0], [1], [0, 0, 1, 1], [], []>} : vector<64x64xf32>, vector<64x16xf32>, vector<64x16xf32> -> vector<64x16xf32>
    %154 = arith.addf %149, %153 : vector<64x16xf32>
    %c2_117 = arith.constant 2 : index
    %c0_118 = arith.constant 0 : index
    %c0_119 = arith.constant 0 : index
    %155 = vector.load %arg3[%c2_117, %c0_118, %c0_119] : memref<9x64x64xf32, #tpu.memory_space<vmem>>, vector<1x64x64xf32>
    %156 = vector.shape_cast %155 : vector<1x64x64xf32> to vector<64x64xf32>
    %157 = vector.extract_strided_slice %144 {offsets = [0, 2], sizes = [64, 16], strides = [1, 1]} : vector<64x18xf32> to vector<64x16xf32>
    %cst_120 = arith.constant dense<0.000000e+00> : vector<64x16xf32>
    %158 = tpu.matmul %156, %157, %cst_120 {dimension_numbers = #tpu.dot_dimension_numbers<[1], [0], [0], [1], [0, 0, 1, 1], [], []>} : vector<64x64xf32>, vector<64x16xf32>, vector<64x16xf32> -> vector<64x16xf32>
    %159 = arith.addf %154, %158 : vector<64x16xf32>
    %c2_i32_121 = arith.constant 2 : i32
    %160 = arith.addi %1, %c2_i32_121 : i32
    %c1_i32_122 = arith.constant 1 : i32
    %161 = arith.addi %160, %c1_i32_122 : i32
    %c0_123 = arith.constant 0 : index
    %162 = arith.index_cast %161 : i32 to index
    %c0_124 = arith.constant 0 : index
    %c0_125 = arith.constant 0 : index
    %163 = vector.load %arg2[%c0_123, %162, %c0_124, %c0_125] : memref<1x18x64x18xf32, #tpu.memory_space<vmem>>, vector<1x1x64x18xf32>
    %164 = vector.shape_cast %163 : vector<1x1x64x18xf32> to vector<64x18xf32>
    %c3_126 = arith.constant 3 : index
    %c0_127 = arith.constant 0 : index
    %c0_128 = arith.constant 0 : index
    %165 = vector.load %arg3[%c3_126, %c0_127, %c0_128] : memref<9x64x64xf32, #tpu.memory_space<vmem>>, vector<1x64x64xf32>
    %166 = vector.shape_cast %165 : vector<1x64x64xf32> to vector<64x64xf32>
    %167 = vector.extract_strided_slice %164 {offsets = [0, 0], sizes = [64, 16], strides = [1, 1]} : vector<64x18xf32> to vector<64x16xf32>
    %cst_129 = arith.constant dense<0.000000e+00> : vector<64x16xf32>
    %168 = tpu.matmul %166, %167, %cst_129 {dimension_numbers = #tpu.dot_dimension_numbers<[1], [0], [0], [1], [0, 0, 1, 1], [], []>} : vector<64x64xf32>, vector<64x16xf32>, vector<64x16xf32> -> vector<64x16xf32>
    %169 = arith.addf %159, %168 : vector<64x16xf32>
    %c4_130 = arith.constant 4 : index
    %c0_131 = arith.constant 0 : index
    %c0_132 = arith.constant 0 : index
    %170 = vector.load %arg3[%c4_130, %c0_131, %c0_132] : memref<9x64x64xf32, #tpu.memory_space<vmem>>, vector<1x64x64xf32>
    %171 = vector.shape_cast %170 : vector<1x64x64xf32> to vector<64x64xf32>
    %172 = vector.extract_strided_slice %164 {offsets = [0, 1], sizes = [64, 16], strides = [1, 1]} : vector<64x18xf32> to vector<64x16xf32>
    %cst_133 = arith.constant dense<0.000000e+00> : vector<64x16xf32>
    %173 = tpu.matmul %171, %172, %cst_133 {dimension_numbers = #tpu.dot_dimension_numbers<[1], [0], [0], [1], [0, 0, 1, 1], [], []>} : vector<64x64xf32>, vector<64x16xf32>, vector<64x16xf32> -> vector<64x16xf32>
    %174 = arith.addf %169, %173 : vector<64x16xf32>
    %c5_134 = arith.constant 5 : index
    %c0_135 = arith.constant 0 : index
    %c0_136 = arith.constant 0 : index
    %175 = vector.load %arg3[%c5_134, %c0_135, %c0_136] : memref<9x64x64xf32, #tpu.memory_space<vmem>>, vector<1x64x64xf32>
    %176 = vector.shape_cast %175 : vector<1x64x64xf32> to vector<64x64xf32>
    %177 = vector.extract_strided_slice %164 {offsets = [0, 2], sizes = [64, 16], strides = [1, 1]} : vector<64x18xf32> to vector<64x16xf32>
    %cst_137 = arith.constant dense<0.000000e+00> : vector<64x16xf32>
    %178 = tpu.matmul %176, %177, %cst_137 {dimension_numbers = #tpu.dot_dimension_numbers<[1], [0], [0], [1], [0, 0, 1, 1], [], []>} : vector<64x64xf32>, vector<64x16xf32>, vector<64x16xf32> -> vector<64x16xf32>
    %179 = arith.addf %174, %178 : vector<64x16xf32>
    %c2_i32_138 = arith.constant 2 : i32
    %180 = arith.addi %1, %c2_i32_138 : i32
    %c2_i32_139 = arith.constant 2 : i32
    %181 = arith.addi %180, %c2_i32_139 : i32
    %c0_140 = arith.constant 0 : index
    %182 = arith.index_cast %181 : i32 to index
    %c0_141 = arith.constant 0 : index
    %c0_142 = arith.constant 0 : index
    %183 = vector.load %arg2[%c0_140, %182, %c0_141, %c0_142] : memref<1x18x64x18xf32, #tpu.memory_space<vmem>>, vector<1x1x64x18xf32>
    %184 = vector.shape_cast %183 : vector<1x1x64x18xf32> to vector<64x18xf32>
    %c6_143 = arith.constant 6 : index
    %c0_144 = arith.constant 0 : index
    %c0_145 = arith.constant 0 : index
    %185 = vector.load %arg3[%c6_143, %c0_144, %c0_145] : memref<9x64x64xf32, #tpu.memory_space<vmem>>, vector<1x64x64xf32>
    %186 = vector.shape_cast %185 : vector<1x64x64xf32> to vector<64x64xf32>
    %187 = vector.extract_strided_slice %184 {offsets = [0, 0], sizes = [64, 16], strides = [1, 1]} : vector<64x18xf32> to vector<64x16xf32>
    %cst_146 = arith.constant dense<0.000000e+00> : vector<64x16xf32>
    %188 = tpu.matmul %186, %187, %cst_146 {dimension_numbers = #tpu.dot_dimension_numbers<[1], [0], [0], [1], [0, 0, 1, 1], [], []>} : vector<64x64xf32>, vector<64x16xf32>, vector<64x16xf32> -> vector<64x16xf32>
    %189 = arith.addf %179, %188 : vector<64x16xf32>
    %c7_147 = arith.constant 7 : index
    %c0_148 = arith.constant 0 : index
    %c0_149 = arith.constant 0 : index
    %190 = vector.load %arg3[%c7_147, %c0_148, %c0_149] : memref<9x64x64xf32, #tpu.memory_space<vmem>>, vector<1x64x64xf32>
    %191 = vector.shape_cast %190 : vector<1x64x64xf32> to vector<64x64xf32>
    %192 = vector.extract_strided_slice %184 {offsets = [0, 1], sizes = [64, 16], strides = [1, 1]} : vector<64x18xf32> to vector<64x16xf32>
    %cst_150 = arith.constant dense<0.000000e+00> : vector<64x16xf32>
    %193 = tpu.matmul %191, %192, %cst_150 {dimension_numbers = #tpu.dot_dimension_numbers<[1], [0], [0], [1], [0, 0, 1, 1], [], []>} : vector<64x64xf32>, vector<64x16xf32>, vector<64x16xf32> -> vector<64x16xf32>
    %194 = arith.addf %189, %193 : vector<64x16xf32>
    %c8_151 = arith.constant 8 : index
    %c0_152 = arith.constant 0 : index
    %c0_153 = arith.constant 0 : index
    %195 = vector.load %arg3[%c8_151, %c0_152, %c0_153] : memref<9x64x64xf32, #tpu.memory_space<vmem>>, vector<1x64x64xf32>
    %196 = vector.shape_cast %195 : vector<1x64x64xf32> to vector<64x64xf32>
    %197 = vector.extract_strided_slice %184 {offsets = [0, 2], sizes = [64, 16], strides = [1, 1]} : vector<64x18xf32> to vector<64x16xf32>
    %cst_154 = arith.constant dense<0.000000e+00> : vector<64x16xf32>
    %198 = tpu.matmul %196, %197, %cst_154 {dimension_numbers = #tpu.dot_dimension_numbers<[1], [0], [0], [1], [0, 0, 1, 1], [], []>} : vector<64x64xf32>, vector<64x16xf32>, vector<64x16xf32> -> vector<64x16xf32>
    %199 = arith.addf %194, %198 : vector<64x16xf32>
    %200 = vector.broadcast %2 : vector<64x1xf32> to vector<64x16xf32>
    %201 = arith.addf %199, %200 : vector<64x16xf32>
    %cst_155 = arith.constant 0.000000e+00 : f32
    %202 = vector.broadcast %cst_155 : f32 to vector<64x16xf32>
    %203 = arith.maximumf %201, %202 : vector<64x16xf32>
    %c0_156 = arith.constant 0 : index
    %c2_157 = arith.constant 2 : index
    %c0_158 = arith.constant 0 : index
    %c0_159 = arith.constant 0 : index
    %204 = vector.load %arg5[%c0_156, %c2_157, %c0_158, %c0_159] : memref<1x8x64x16xf32, #tpu.memory_space<vmem>>, vector<1x1x64x16xf32>
    %205 = vector.shape_cast %204 : vector<1x1x64x16xf32> to vector<64x16xf32>
    %206 = vector.shape_cast %203 : vector<64x16xf32> to vector<1x1x64x16xf32>
    tpu.vector_store %arg5[%c0_156, %c2_157, %c0_158, %c0_159], %206 {strides = array<i32>} : memref<1x8x64x16xf32, #tpu.memory_space<vmem>>, vector<1x1x64x16xf32>,
    %cst_160 = arith.constant 0.000000e+00 : f32
    %207 = vector.broadcast %cst_160 : f32 to vector<64x16xf32>
    %c3_i32 = arith.constant 3 : i32
    %208 = arith.addi %1, %c3_i32 : i32
    %c0_i32_161 = arith.constant 0 : i32
    %209 = arith.addi %208, %c0_i32_161 : i32
    %c0_162 = arith.constant 0 : index
    %210 = arith.index_cast %209 : i32 to index
    %c0_163 = arith.constant 0 : index
    %c0_164 = arith.constant 0 : index
    %211 = vector.load %arg2[%c0_162, %210, %c0_163, %c0_164] : memref<1x18x64x18xf32, #tpu.memory_space<vmem>>, vector<1x1x64x18xf32>
    %212 = vector.shape_cast %211 : vector<1x1x64x18xf32> to vector<64x18xf32>
    %c0_165 = arith.constant 0 : index
    %c0_166 = arith.constant 0 : index
    %c0_167 = arith.constant 0 : index
    %213 = vector.load %arg3[%c0_165, %c0_166, %c0_167] : memref<9x64x64xf32, #tpu.memory_space<vmem>>, vector<1x64x64xf32>
    %214 = vector.shape_cast %213 : vector<1x64x64xf32> to vector<64x64xf32>
    %215 = vector.extract_strided_slice %212 {offsets = [0, 0], sizes = [64, 16], strides = [1, 1]} : vector<64x18xf32> to vector<64x16xf32>
    %cst_168 = arith.constant dense<0.000000e+00> : vector<64x16xf32>
    %216 = tpu.matmul %214, %215, %cst_168 {dimension_numbers = #tpu.dot_dimension_numbers<[1], [0], [0], [1], [0, 0, 1, 1], [], []>} : vector<64x64xf32>, vector<64x16xf32>, vector<64x16xf32> -> vector<64x16xf32>
    %217 = arith.addf %207, %216 : vector<64x16xf32>
    %c1_169 = arith.constant 1 : index
    %c0_170 = arith.constant 0 : index
    %c0_171 = arith.constant 0 : index
    %218 = vector.load %arg3[%c1_169, %c0_170, %c0_171] : memref<9x64x64xf32, #tpu.memory_space<vmem>>, vector<1x64x64xf32>
    %219 = vector.shape_cast %218 : vector<1x64x64xf32> to vector<64x64xf32>
    %220 = vector.extract_strided_slice %212 {offsets = [0, 1], sizes = [64, 16], strides = [1, 1]} : vector<64x18xf32> to vector<64x16xf32>
    %cst_172 = arith.constant dense<0.000000e+00> : vector<64x16xf32>
    %221 = tpu.matmul %219, %220, %cst_172 {dimension_numbers = #tpu.dot_dimension_numbers<[1], [0], [0], [1], [0, 0, 1, 1], [], []>} : vector<64x64xf32>, vector<64x16xf32>, vector<64x16xf32> -> vector<64x16xf32>
    %222 = arith.addf %217, %221 : vector<64x16xf32>
    %c2_173 = arith.constant 2 : index
    %c0_174 = arith.constant 0 : index
    %c0_175 = arith.constant 0 : index
    %223 = vector.load %arg3[%c2_173, %c0_174, %c0_175] : memref<9x64x64xf32, #tpu.memory_space<vmem>>, vector<1x64x64xf32>
    %224 = vector.shape_cast %223 : vector<1x64x64xf32> to vector<64x64xf32>
    %225 = vector.extract_strided_slice %212 {offsets = [0, 2], sizes = [64, 16], strides = [1, 1]} : vector<64x18xf32> to vector<64x16xf32>
    %cst_176 = arith.constant dense<0.000000e+00> : vector<64x16xf32>
    %226 = tpu.matmul %224, %225, %cst_176 {dimension_numbers = #tpu.dot_dimension_numbers<[1], [0], [0], [1], [0, 0, 1, 1], [], []>} : vector<64x64xf32>, vector<64x16xf32>, vector<64x16xf32> -> vector<64x16xf32>
    %227 = arith.addf %222, %226 : vector<64x16xf32>
    %c3_i32_177 = arith.constant 3 : i32
    %228 = arith.addi %1, %c3_i32_177 : i32
    %c1_i32_178 = arith.constant 1 : i32
    %229 = arith.addi %228, %c1_i32_178 : i32
    %c0_179 = arith.constant 0 : index
    %230 = arith.index_cast %229 : i32 to index
    %c0_180 = arith.constant 0 : index
    %c0_181 = arith.constant 0 : index
    %231 = vector.load %arg2[%c0_179, %230, %c0_180, %c0_181] : memref<1x18x64x18xf32, #tpu.memory_space<vmem>>, vector<1x1x64x18xf32>
    %232 = vector.shape_cast %231 : vector<1x1x64x18xf32> to vector<64x18xf32>
    %c3_182 = arith.constant 3 : index
    %c0_183 = arith.constant 0 : index
    %c0_184 = arith.constant 0 : index
    %233 = vector.load %arg3[%c3_182, %c0_183, %c0_184] : memref<9x64x64xf32, #tpu.memory_space<vmem>>, vector<1x64x64xf32>
    %234 = vector.shape_cast %233 : vector<1x64x64xf32> to vector<64x64xf32>
    %235 = vector.extract_strided_slice %232 {offsets = [0, 0], sizes = [64, 16], strides = [1, 1]} : vector<64x18xf32> to vector<64x16xf32>
    %cst_185 = arith.constant dense<0.000000e+00> : vector<64x16xf32>
    %236 = tpu.matmul %234, %235, %cst_185 {dimension_numbers = #tpu.dot_dimension_numbers<[1], [0], [0], [1], [0, 0, 1, 1], [], []>} : vector<64x64xf32>, vector<64x16xf32>, vector<64x16xf32> -> vector<64x16xf32>
    %237 = arith.addf %227, %236 : vector<64x16xf32>
    %c4_186 = arith.constant 4 : index
    %c0_187 = arith.constant 0 : index
    %c0_188 = arith.constant 0 : index
    %238 = vector.load %arg3[%c4_186, %c0_187, %c0_188] : memref<9x64x64xf32, #tpu.memory_space<vmem>>, vector<1x64x64xf32>
    %239 = vector.shape_cast %238 : vector<1x64x64xf32> to vector<64x64xf32>
    %240 = vector.extract_strided_slice %232 {offsets = [0, 1], sizes = [64, 16], strides = [1, 1]} : vector<64x18xf32> to vector<64x16xf32>
    %cst_189 = arith.constant dense<0.000000e+00> : vector<64x16xf32>
    %241 = tpu.matmul %239, %240, %cst_189 {dimension_numbers = #tpu.dot_dimension_numbers<[1], [0], [0], [1], [0, 0, 1, 1], [], []>} : vector<64x64xf32>, vector<64x16xf32>, vector<64x16xf32> -> vector<64x16xf32>
    %242 = arith.addf %237, %241 : vector<64x16xf32>
    %c5_190 = arith.constant 5 : index
    %c0_191 = arith.constant 0 : index
    %c0_192 = arith.constant 0 : index
    %243 = vector.load %arg3[%c5_190, %c0_191, %c0_192] : memref<9x64x64xf32, #tpu.memory_space<vmem>>, vector<1x64x64xf32>
    %244 = vector.shape_cast %243 : vector<1x64x64xf32> to vector<64x64xf32>
    %245 = vector.extract_strided_slice %232 {offsets = [0, 2], sizes = [64, 16], strides = [1, 1]} : vector<64x18xf32> to vector<64x16xf32>
    %cst_193 = arith.constant dense<0.000000e+00> : vector<64x16xf32>
    %246 = tpu.matmul %244, %245, %cst_193 {dimension_numbers = #tpu.dot_dimension_numbers<[1], [0], [0], [1], [0, 0, 1, 1], [], []>} : vector<64x64xf32>, vector<64x16xf32>, vector<64x16xf32> -> vector<64x16xf32>
    %247 = arith.addf %242, %246 : vector<64x16xf32>
    %c3_i32_194 = arith.constant 3 : i32
    %248 = arith.addi %1, %c3_i32_194 : i32
    %c2_i32_195 = arith.constant 2 : i32
    %249 = arith.addi %248, %c2_i32_195 : i32
    %c0_196 = arith.constant 0 : index
    %250 = arith.index_cast %249 : i32 to index
    %c0_197 = arith.constant 0 : index
    %c0_198 = arith.constant 0 : index
    %251 = vector.load %arg2[%c0_196, %250, %c0_197, %c0_198] : memref<1x18x64x18xf32, #tpu.memory_space<vmem>>, vector<1x1x64x18xf32>
    %252 = vector.shape_cast %251 : vector<1x1x64x18xf32> to vector<64x18xf32>
    %c6_199 = arith.constant 6 : index
    %c0_200 = arith.constant 0 : index
    %c0_201 = arith.constant 0 : index
    %253 = vector.load %arg3[%c6_199, %c0_200, %c0_201] : memref<9x64x64xf32, #tpu.memory_space<vmem>>, vector<1x64x64xf32>
    %254 = vector.shape_cast %253 : vector<1x64x64xf32> to vector<64x64xf32>
    %255 = vector.extract_strided_slice %252 {offsets = [0, 0], sizes = [64, 16], strides = [1, 1]} : vector<64x18xf32> to vector<64x16xf32>
    %cst_202 = arith.constant dense<0.000000e+00> : vector<64x16xf32>
    %256 = tpu.matmul %254, %255, %cst_202 {dimension_numbers = #tpu.dot_dimension_numbers<[1], [0], [0], [1], [0, 0, 1, 1], [], []>} : vector<64x64xf32>, vector<64x16xf32>, vector<64x16xf32> -> vector<64x16xf32>
    %257 = arith.addf %247, %256 : vector<64x16xf32>
    %c7_203 = arith.constant 7 : index
    %c0_204 = arith.constant 0 : index
    %c0_205 = arith.constant 0 : index
    %258 = vector.load %arg3[%c7_203, %c0_204, %c0_205] : memref<9x64x64xf32, #tpu.memory_space<vmem>>, vector<1x64x64xf32>
    %259 = vector.shape_cast %258 : vector<1x64x64xf32> to vector<64x64xf32>
    %260 = vector.extract_strided_slice %252 {offsets = [0, 1], sizes = [64, 16], strides = [1, 1]} : vector<64x18xf32> to vector<64x16xf32>
    %cst_206 = arith.constant dense<0.000000e+00> : vector<64x16xf32>
    %261 = tpu.matmul %259, %260, %cst_206 {dimension_numbers = #tpu.dot_dimension_numbers<[1], [0], [0], [1], [0, 0, 1, 1], [], []>} : vector<64x64xf32>, vector<64x16xf32>, vector<64x16xf32> -> vector<64x16xf32>
    %262 = arith.addf %257, %261 : vector<64x16xf32>
    %c8_207 = arith.constant 8 : index
    %c0_208 = arith.constant 0 : index
    %c0_209 = arith.constant 0 : index
    %263 = vector.load %arg3[%c8_207, %c0_208, %c0_209] : memref<9x64x64xf32, #tpu.memory_space<vmem>>, vector<1x64x64xf32>
    %264 = vector.shape_cast %263 : vector<1x64x64xf32> to vector<64x64xf32>
    %265 = vector.extract_strided_slice %252 {offsets = [0, 2], sizes = [64, 16], strides = [1, 1]} : vector<64x18xf32> to vector<64x16xf32>
    %cst_210 = arith.constant dense<0.000000e+00> : vector<64x16xf32>
    %266 = tpu.matmul %264, %265, %cst_210 {dimension_numbers = #tpu.dot_dimension_numbers<[1], [0], [0], [1], [0, 0, 1, 1], [], []>} : vector<64x64xf32>, vector<64x16xf32>, vector<64x16xf32> -> vector<64x16xf32>
    %267 = arith.addf %262, %266 : vector<64x16xf32>
    %268 = vector.broadcast %2 : vector<64x1xf32> to vector<64x16xf32>
    %269 = arith.addf %267, %268 : vector<64x16xf32>
    %cst_211 = arith.constant 0.000000e+00 : f32
    %270 = vector.broadcast %cst_211 : f32 to vector<64x16xf32>
    %271 = arith.maximumf %269, %270 : vector<64x16xf32>
    %c0_212 = arith.constant 0 : index
    %c3_213 = arith.constant 3 : index
    %c0_214 = arith.constant 0 : index
    %c0_215 = arith.constant 0 : index
    %272 = vector.load %arg5[%c0_212, %c3_213, %c0_214, %c0_215] : memref<1x8x64x16xf32, #tpu.memory_space<vmem>>, vector<1x1x64x16xf32>
    %273 = vector.shape_cast %272 : vector<1x1x64x16xf32> to vector<64x16xf32>
    %274 = vector.shape_cast %271 : vector<64x16xf32> to vector<1x1x64x16xf32>
    tpu.vector_store %arg5[%c0_212, %c3_213, %c0_214, %c0_215], %274 {strides = array<i32>} : memref<1x8x64x16xf32, #tpu.memory_space<vmem>>, vector<1x1x64x16xf32>,
    %cst_216 = arith.constant 0.000000e+00 : f32
    %275 = vector.broadcast %cst_216 : f32 to vector<64x16xf32>
    %c4_i32 = arith.constant 4 : i32
    %276 = arith.addi %1, %c4_i32 : i32
    %c0_i32_217 = arith.constant 0 : i32
    %277 = arith.addi %276, %c0_i32_217 : i32
    %c0_218 = arith.constant 0 : index
    %278 = arith.index_cast %277 : i32 to index
    %c0_219 = arith.constant 0 : index
    %c0_220 = arith.constant 0 : index
    %279 = vector.load %arg2[%c0_218, %278, %c0_219, %c0_220] : memref<1x18x64x18xf32, #tpu.memory_space<vmem>>, vector<1x1x64x18xf32>
    %280 = vector.shape_cast %279 : vector<1x1x64x18xf32> to vector<64x18xf32>
    %c0_221 = arith.constant 0 : index
    %c0_222 = arith.constant 0 : index
    %c0_223 = arith.constant 0 : index
    %281 = vector.load %arg3[%c0_221, %c0_222, %c0_223] : memref<9x64x64xf32, #tpu.memory_space<vmem>>, vector<1x64x64xf32>
    %282 = vector.shape_cast %281 : vector<1x64x64xf32> to vector<64x64xf32>
    %283 = vector.extract_strided_slice %280 {offsets = [0, 0], sizes = [64, 16], strides = [1, 1]} : vector<64x18xf32> to vector<64x16xf32>
    %cst_224 = arith.constant dense<0.000000e+00> : vector<64x16xf32>
    %284 = tpu.matmul %282, %283, %cst_224 {dimension_numbers = #tpu.dot_dimension_numbers<[1], [0], [0], [1], [0, 0, 1, 1], [], []>} : vector<64x64xf32>, vector<64x16xf32>, vector<64x16xf32> -> vector<64x16xf32>
    %285 = arith.addf %275, %284 : vector<64x16xf32>
    %c1_225 = arith.constant 1 : index
    %c0_226 = arith.constant 0 : index
    %c0_227 = arith.constant 0 : index
    %286 = vector.load %arg3[%c1_225, %c0_226, %c0_227] : memref<9x64x64xf32, #tpu.memory_space<vmem>>, vector<1x64x64xf32>
    %287 = vector.shape_cast %286 : vector<1x64x64xf32> to vector<64x64xf32>
    %288 = vector.extract_strided_slice %280 {offsets = [0, 1], sizes = [64, 16], strides = [1, 1]} : vector<64x18xf32> to vector<64x16xf32>
    %cst_228 = arith.constant dense<0.000000e+00> : vector<64x16xf32>
    %289 = tpu.matmul %287, %288, %cst_228 {dimension_numbers = #tpu.dot_dimension_numbers<[1], [0], [0], [1], [0, 0, 1, 1], [], []>} : vector<64x64xf32>, vector<64x16xf32>, vector<64x16xf32> -> vector<64x16xf32>
    %290 = arith.addf %285, %289 : vector<64x16xf32>
    %c2_229 = arith.constant 2 : index
    %c0_230 = arith.constant 0 : index
    %c0_231 = arith.constant 0 : index
    %291 = vector.load %arg3[%c2_229, %c0_230, %c0_231] : memref<9x64x64xf32, #tpu.memory_space<vmem>>, vector<1x64x64xf32>
    %292 = vector.shape_cast %291 : vector<1x64x64xf32> to vector<64x64xf32>
    %293 = vector.extract_strided_slice %280 {offsets = [0, 2], sizes = [64, 16], strides = [1, 1]} : vector<64x18xf32> to vector<64x16xf32>
    %cst_232 = arith.constant dense<0.000000e+00> : vector<64x16xf32>
    %294 = tpu.matmul %292, %293, %cst_232 {dimension_numbers = #tpu.dot_dimension_numbers<[1], [0], [0], [1], [0, 0, 1, 1], [], []>} : vector<64x64xf32>, vector<64x16xf32>, vector<64x16xf32> -> vector<64x16xf32>
    %295 = arith.addf %290, %294 : vector<64x16xf32>
    %c4_i32_233 = arith.constant 4 : i32
    %296 = arith.addi %1, %c4_i32_233 : i32
    %c1_i32_234 = arith.constant 1 : i32
    %297 = arith.addi %296, %c1_i32_234 : i32
    %c0_235 = arith.constant 0 : index
    %298 = arith.index_cast %297 : i32 to index
    %c0_236 = arith.constant 0 : index
    %c0_237 = arith.constant 0 : index
    %299 = vector.load %arg2[%c0_235, %298, %c0_236, %c0_237] : memref<1x18x64x18xf32, #tpu.memory_space<vmem>>, vector<1x1x64x18xf32>
    %300 = vector.shape_cast %299 : vector<1x1x64x18xf32> to vector<64x18xf32>
    %c3_238 = arith.constant 3 : index
    %c0_239 = arith.constant 0 : index
    %c0_240 = arith.constant 0 : index
    %301 = vector.load %arg3[%c3_238, %c0_239, %c0_240] : memref<9x64x64xf32, #tpu.memory_space<vmem>>, vector<1x64x64xf32>
    %302 = vector.shape_cast %301 : vector<1x64x64xf32> to vector<64x64xf32>
    %303 = vector.extract_strided_slice %300 {offsets = [0, 0], sizes = [64, 16], strides = [1, 1]} : vector<64x18xf32> to vector<64x16xf32>
    %cst_241 = arith.constant dense<0.000000e+00> : vector<64x16xf32>
    %304 = tpu.matmul %302, %303, %cst_241 {dimension_numbers = #tpu.dot_dimension_numbers<[1], [0], [0], [1], [0, 0, 1, 1], [], []>} : vector<64x64xf32>, vector<64x16xf32>, vector<64x16xf32> -> vector<64x16xf32>
    %305 = arith.addf %295, %304 : vector<64x16xf32>
    %c4_242 = arith.constant 4 : index
    %c0_243 = arith.constant 0 : index
    %c0_244 = arith.constant 0 : index
    %306 = vector.load %arg3[%c4_242, %c0_243, %c0_244] : memref<9x64x64xf32, #tpu.memory_space<vmem>>, vector<1x64x64xf32>
    %307 = vector.shape_cast %306 : vector<1x64x64xf32> to vector<64x64xf32>
    %308 = vector.extract_strided_slice %300 {offsets = [0, 1], sizes = [64, 16], strides = [1, 1]} : vector<64x18xf32> to vector<64x16xf32>
    %cst_245 = arith.constant dense<0.000000e+00> : vector<64x16xf32>
    %309 = tpu.matmul %307, %308, %cst_245 {dimension_numbers = #tpu.dot_dimension_numbers<[1], [0], [0], [1], [0, 0, 1, 1], [], []>} : vector<64x64xf32>, vector<64x16xf32>, vector<64x16xf32> -> vector<64x16xf32>
    %310 = arith.addf %305, %309 : vector<64x16xf32>
    %c5_246 = arith.constant 5 : index
    %c0_247 = arith.constant 0 : index
    %c0_248 = arith.constant 0 : index
    %311 = vector.load %arg3[%c5_246, %c0_247, %c0_248] : memref<9x64x64xf32, #tpu.memory_space<vmem>>, vector<1x64x64xf32>
    %312 = vector.shape_cast %311 : vector<1x64x64xf32> to vector<64x64xf32>
    %313 = vector.extract_strided_slice %300 {offsets = [0, 2], sizes = [64, 16], strides = [1, 1]} : vector<64x18xf32> to vector<64x16xf32>
    %cst_249 = arith.constant dense<0.000000e+00> : vector<64x16xf32>
    %314 = tpu.matmul %312, %313, %cst_249 {dimension_numbers = #tpu.dot_dimension_numbers<[1], [0], [0], [1], [0, 0, 1, 1], [], []>} : vector<64x64xf32>, vector<64x16xf32>, vector<64x16xf32> -> vector<64x16xf32>
    %315 = arith.addf %310, %314 : vector<64x16xf32>
    %c4_i32_250 = arith.constant 4 : i32
    %316 = arith.addi %1, %c4_i32_250 : i32
    %c2_i32_251 = arith.constant 2 : i32
    %317 = arith.addi %316, %c2_i32_251 : i32
    %c0_252 = arith.constant 0 : index
    %318 = arith.index_cast %317 : i32 to index
    %c0_253 = arith.constant 0 : index
    %c0_254 = arith.constant 0 : index
    %319 = vector.load %arg2[%c0_252, %318, %c0_253, %c0_254] : memref<1x18x64x18xf32, #tpu.memory_space<vmem>>, vector<1x1x64x18xf32>
    %320 = vector.shape_cast %319 : vector<1x1x64x18xf32> to vector<64x18xf32>
    %c6_255 = arith.constant 6 : index
    %c0_256 = arith.constant 0 : index
    %c0_257 = arith.constant 0 : index
    %321 = vector.load %arg3[%c6_255, %c0_256, %c0_257] : memref<9x64x64xf32, #tpu.memory_space<vmem>>, vector<1x64x64xf32>
    %322 = vector.shape_cast %321 : vector<1x64x64xf32> to vector<64x64xf32>
    %323 = vector.extract_strided_slice %320 {offsets = [0, 0], sizes = [64, 16], strides = [1, 1]} : vector<64x18xf32> to vector<64x16xf32>
    %cst_258 = arith.constant dense<0.000000e+00> : vector<64x16xf32>
    %324 = tpu.matmul %322, %323, %cst_258 {dimension_numbers = #tpu.dot_dimension_numbers<[1], [0], [0], [1], [0, 0, 1, 1], [], []>} : vector<64x64xf32>, vector<64x16xf32>, vector<64x16xf32> -> vector<64x16xf32>
    %325 = arith.addf %315, %324 : vector<64x16xf32>
    %c7_259 = arith.constant 7 : index
    %c0_260 = arith.constant 0 : index
    %c0_261 = arith.constant 0 : index
    %326 = vector.load %arg3[%c7_259, %c0_260, %c0_261] : memref<9x64x64xf32, #tpu.memory_space<vmem>>, vector<1x64x64xf32>
    %327 = vector.shape_cast %326 : vector<1x64x64xf32> to vector<64x64xf32>
    %328 = vector.extract_strided_slice %320 {offsets = [0, 1], sizes = [64, 16], strides = [1, 1]} : vector<64x18xf32> to vector<64x16xf32>
    %cst_262 = arith.constant dense<0.000000e+00> : vector<64x16xf32>
    %329 = tpu.matmul %327, %328, %cst_262 {dimension_numbers = #tpu.dot_dimension_numbers<[1], [0], [0], [1], [0, 0, 1, 1], [], []>} : vector<64x64xf32>, vector<64x16xf32>, vector<64x16xf32> -> vector<64x16xf32>
    %330 = arith.addf %325, %329 : vector<64x16xf32>
    %c8_263 = arith.constant 8 : index
    %c0_264 = arith.constant 0 : index
    %c0_265 = arith.constant 0 : index
    %331 = vector.load %arg3[%c8_263, %c0_264, %c0_265] : memref<9x64x64xf32, #tpu.memory_space<vmem>>, vector<1x64x64xf32>
    %332 = vector.shape_cast %331 : vector<1x64x64xf32> to vector<64x64xf32>
    %333 = vector.extract_strided_slice %320 {offsets = [0, 2], sizes = [64, 16], strides = [1, 1]} : vector<64x18xf32> to vector<64x16xf32>
    %cst_266 = arith.constant dense<0.000000e+00> : vector<64x16xf32>
    %334 = tpu.matmul %332, %333, %cst_266 {dimension_numbers = #tpu.dot_dimension_numbers<[1], [0], [0], [1], [0, 0, 1, 1], [], []>} : vector<64x64xf32>, vector<64x16xf32>, vector<64x16xf32> -> vector<64x16xf32>
    %335 = arith.addf %330, %334 : vector<64x16xf32>
    %336 = vector.broadcast %2 : vector<64x1xf32> to vector<64x16xf32>
    %337 = arith.addf %335, %336 : vector<64x16xf32>
    %cst_267 = arith.constant 0.000000e+00 : f32
    %338 = vector.broadcast %cst_267 : f32 to vector<64x16xf32>
    %339 = arith.maximumf %337, %338 : vector<64x16xf32>
    %c0_268 = arith.constant 0 : index
    %c4_269 = arith.constant 4 : index
    %c0_270 = arith.constant 0 : index
    %c0_271 = arith.constant 0 : index
    %340 = vector.load %arg5[%c0_268, %c4_269, %c0_270, %c0_271] : memref<1x8x64x16xf32, #tpu.memory_space<vmem>>, vector<1x1x64x16xf32>
    %341 = vector.shape_cast %340 : vector<1x1x64x16xf32> to vector<64x16xf32>
    %342 = vector.shape_cast %339 : vector<64x16xf32> to vector<1x1x64x16xf32>
    tpu.vector_store %arg5[%c0_268, %c4_269, %c0_270, %c0_271], %342 {strides = array<i32>} : memref<1x8x64x16xf32, #tpu.memory_space<vmem>>, vector<1x1x64x16xf32>,
    %cst_272 = arith.constant 0.000000e+00 : f32
    %343 = vector.broadcast %cst_272 : f32 to vector<64x16xf32>
    %c5_i32 = arith.constant 5 : i32
    %344 = arith.addi %1, %c5_i32 : i32
    %c0_i32_273 = arith.constant 0 : i32
    %345 = arith.addi %344, %c0_i32_273 : i32
    %c0_274 = arith.constant 0 : index
    %346 = arith.index_cast %345 : i32 to index
    %c0_275 = arith.constant 0 : index
    %c0_276 = arith.constant 0 : index
    %347 = vector.load %arg2[%c0_274, %346, %c0_275, %c0_276] : memref<1x18x64x18xf32, #tpu.memory_space<vmem>>, vector<1x1x64x18xf32>
    %348 = vector.shape_cast %347 : vector<1x1x64x18xf32> to vector<64x18xf32>
    %c0_277 = arith.constant 0 : index
    %c0_278 = arith.constant 0 : index
    %c0_279 = arith.constant 0 : index
    %349 = vector.load %arg3[%c0_277, %c0_278, %c0_279] : memref<9x64x64xf32, #tpu.memory_space<vmem>>, vector<1x64x64xf32>
    %350 = vector.shape_cast %349 : vector<1x64x64xf32> to vector<64x64xf32>
    %351 = vector.extract_strided_slice %348 {offsets = [0, 0], sizes = [64, 16], strides = [1, 1]} : vector<64x18xf32> to vector<64x16xf32>
    %cst_280 = arith.constant dense<0.000000e+00> : vector<64x16xf32>
    %352 = tpu.matmul %350, %351, %cst_280 {dimension_numbers = #tpu.dot_dimension_numbers<[1], [0], [0], [1], [0, 0, 1, 1], [], []>} : vector<64x64xf32>, vector<64x16xf32>, vector<64x16xf32> -> vector<64x16xf32>
    %353 = arith.addf %343, %352 : vector<64x16xf32>
    %c1_281 = arith.constant 1 : index
    %c0_282 = arith.constant 0 : index
    %c0_283 = arith.constant 0 : index
    %354 = vector.load %arg3[%c1_281, %c0_282, %c0_283] : memref<9x64x64xf32, #tpu.memory_space<vmem>>, vector<1x64x64xf32>
    %355 = vector.shape_cast %354 : vector<1x64x64xf32> to vector<64x64xf32>
    %356 = vector.extract_strided_slice %348 {offsets = [0, 1], sizes = [64, 16], strides = [1, 1]} : vector<64x18xf32> to vector<64x16xf32>
    %cst_284 = arith.constant dense<0.000000e+00> : vector<64x16xf32>
    %357 = tpu.matmul %355, %356, %cst_284 {dimension_numbers = #tpu.dot_dimension_numbers<[1], [0], [0], [1], [0, 0, 1, 1], [], []>} : vector<64x64xf32>, vector<64x16xf32>, vector<64x16xf32> -> vector<64x16xf32>
    %358 = arith.addf %353, %357 : vector<64x16xf32>
    %c2_285 = arith.constant 2 : index
    %c0_286 = arith.constant 0 : index
    %c0_287 = arith.constant 0 : index
    %359 = vector.load %arg3[%c2_285, %c0_286, %c0_287] : memref<9x64x64xf32, #tpu.memory_space<vmem>>, vector<1x64x64xf32>
    %360 = vector.shape_cast %359 : vector<1x64x64xf32> to vector<64x64xf32>
    %361 = vector.extract_strided_slice %348 {offsets = [0, 2], sizes = [64, 16], strides = [1, 1]} : vector<64x18xf32> to vector<64x16xf32>
    %cst_288 = arith.constant dense<0.000000e+00> : vector<64x16xf32>
    %362 = tpu.matmul %360, %361, %cst_288 {dimension_numbers = #tpu.dot_dimension_numbers<[1], [0], [0], [1], [0, 0, 1, 1], [], []>} : vector<64x64xf32>, vector<64x16xf32>, vector<64x16xf32> -> vector<64x16xf32>
    %363 = arith.addf %358, %362 : vector<64x16xf32>
    %c5_i32_289 = arith.constant 5 : i32
    %364 = arith.addi %1, %c5_i32_289 : i32
    %c1_i32_290 = arith.constant 1 : i32
    %365 = arith.addi %364, %c1_i32_290 : i32
    %c0_291 = arith.constant 0 : index
    %366 = arith.index_cast %365 : i32 to index
    %c0_292 = arith.constant 0 : index
    %c0_293 = arith.constant 0 : index
    %367 = vector.load %arg2[%c0_291, %366, %c0_292, %c0_293] : memref<1x18x64x18xf32, #tpu.memory_space<vmem>>, vector<1x1x64x18xf32>
    %368 = vector.shape_cast %367 : vector<1x1x64x18xf32> to vector<64x18xf32>
    %c3_294 = arith.constant 3 : index
    %c0_295 = arith.constant 0 : index
    %c0_296 = arith.constant 0 : index
    %369 = vector.load %arg3[%c3_294, %c0_295, %c0_296] : memref<9x64x64xf32, #tpu.memory_space<vmem>>, vector<1x64x64xf32>
    %370 = vector.shape_cast %369 : vector<1x64x64xf32> to vector<64x64xf32>
    %371 = vector.extract_strided_slice %368 {offsets = [0, 0], sizes = [64, 16], strides = [1, 1]} : vector<64x18xf32> to vector<64x16xf32>
    %cst_297 = arith.constant dense<0.000000e+00> : vector<64x16xf32>
    %372 = tpu.matmul %370, %371, %cst_297 {dimension_numbers = #tpu.dot_dimension_numbers<[1], [0], [0], [1], [0, 0, 1, 1], [], []>} : vector<64x64xf32>, vector<64x16xf32>, vector<64x16xf32> -> vector<64x16xf32>
    %373 = arith.addf %363, %372 : vector<64x16xf32>
    %c4_298 = arith.constant 4 : index
    %c0_299 = arith.constant 0 : index
    %c0_300 = arith.constant 0 : index
    %374 = vector.load %arg3[%c4_298, %c0_299, %c0_300] : memref<9x64x64xf32, #tpu.memory_space<vmem>>, vector<1x64x64xf32>
    %375 = vector.shape_cast %374 : vector<1x64x64xf32> to vector<64x64xf32>
    %376 = vector.extract_strided_slice %368 {offsets = [0, 1], sizes = [64, 16], strides = [1, 1]} : vector<64x18xf32> to vector<64x16xf32>
    %cst_301 = arith.constant dense<0.000000e+00> : vector<64x16xf32>
    %377 = tpu.matmul %375, %376, %cst_301 {dimension_numbers = #tpu.dot_dimension_numbers<[1], [0], [0], [1], [0, 0, 1, 1], [], []>} : vector<64x64xf32>, vector<64x16xf32>, vector<64x16xf32> -> vector<64x16xf32>
    %378 = arith.addf %373, %377 : vector<64x16xf32>
    %c5_302 = arith.constant 5 : index
    %c0_303 = arith.constant 0 : index
    %c0_304 = arith.constant 0 : index
    %379 = vector.load %arg3[%c5_302, %c0_303, %c0_304] : memref<9x64x64xf32, #tpu.memory_space<vmem>>, vector<1x64x64xf32>
    %380 = vector.shape_cast %379 : vector<1x64x64xf32> to vector<64x64xf32>
    %381 = vector.extract_strided_slice %368 {offsets = [0, 2], sizes = [64, 16], strides = [1, 1]} : vector<64x18xf32> to vector<64x16xf32>
    %cst_305 = arith.constant dense<0.000000e+00> : vector<64x16xf32>
    %382 = tpu.matmul %380, %381, %cst_305 {dimension_numbers = #tpu.dot_dimension_numbers<[1], [0], [0], [1], [0, 0, 1, 1], [], []>} : vector<64x64xf32>, vector<64x16xf32>, vector<64x16xf32> -> vector<64x16xf32>
    %383 = arith.addf %378, %382 : vector<64x16xf32>
    %c5_i32_306 = arith.constant 5 : i32
    %384 = arith.addi %1, %c5_i32_306 : i32
    %c2_i32_307 = arith.constant 2 : i32
    %385 = arith.addi %384, %c2_i32_307 : i32
    %c0_308 = arith.constant 0 : index
    %386 = arith.index_cast %385 : i32 to index
    %c0_309 = arith.constant 0 : index
    %c0_310 = arith.constant 0 : index
    %387 = vector.load %arg2[%c0_308, %386, %c0_309, %c0_310] : memref<1x18x64x18xf32, #tpu.memory_space<vmem>>, vector<1x1x64x18xf32>
    %388 = vector.shape_cast %387 : vector<1x1x64x18xf32> to vector<64x18xf32>
    %c6_311 = arith.constant 6 : index
    %c0_312 = arith.constant 0 : index
    %c0_313 = arith.constant 0 : index
    %389 = vector.load %arg3[%c6_311, %c0_312, %c0_313] : memref<9x64x64xf32, #tpu.memory_space<vmem>>, vector<1x64x64xf32>
    %390 = vector.shape_cast %389 : vector<1x64x64xf32> to vector<64x64xf32>
    %391 = vector.extract_strided_slice %388 {offsets = [0, 0], sizes = [64, 16], strides = [1, 1]} : vector<64x18xf32> to vector<64x16xf32>
    %cst_314 = arith.constant dense<0.000000e+00> : vector<64x16xf32>
    %392 = tpu.matmul %390, %391, %cst_314 {dimension_numbers = #tpu.dot_dimension_numbers<[1], [0], [0], [1], [0, 0, 1, 1], [], []>} : vector<64x64xf32>, vector<64x16xf32>, vector<64x16xf32> -> vector<64x16xf32>
    %393 = arith.addf %383, %392 : vector<64x16xf32>
    %c7_315 = arith.constant 7 : index
    %c0_316 = arith.constant 0 : index
    %c0_317 = arith.constant 0 : index
    %394 = vector.load %arg3[%c7_315, %c0_316, %c0_317] : memref<9x64x64xf32, #tpu.memory_space<vmem>>, vector<1x64x64xf32>
    %395 = vector.shape_cast %394 : vector<1x64x64xf32> to vector<64x64xf32>
    %396 = vector.extract_strided_slice %388 {offsets = [0, 1], sizes = [64, 16], strides = [1, 1]} : vector<64x18xf32> to vector<64x16xf32>
    %cst_318 = arith.constant dense<0.000000e+00> : vector<64x16xf32>
    %397 = tpu.matmul %395, %396, %cst_318 {dimension_numbers = #tpu.dot_dimension_numbers<[1], [0], [0], [1], [0, 0, 1, 1], [], []>} : vector<64x64xf32>, vector<64x16xf32>, vector<64x16xf32> -> vector<64x16xf32>
    %398 = arith.addf %393, %397 : vector<64x16xf32>
    %c8_319 = arith.constant 8 : index
    %c0_320 = arith.constant 0 : index
    %c0_321 = arith.constant 0 : index
    %399 = vector.load %arg3[%c8_319, %c0_320, %c0_321] : memref<9x64x64xf32, #tpu.memory_space<vmem>>, vector<1x64x64xf32>
    %400 = vector.shape_cast %399 : vector<1x64x64xf32> to vector<64x64xf32>
    %401 = vector.extract_strided_slice %388 {offsets = [0, 2], sizes = [64, 16], strides = [1, 1]} : vector<64x18xf32> to vector<64x16xf32>
    %cst_322 = arith.constant dense<0.000000e+00> : vector<64x16xf32>
    %402 = tpu.matmul %400, %401, %cst_322 {dimension_numbers = #tpu.dot_dimension_numbers<[1], [0], [0], [1], [0, 0, 1, 1], [], []>} : vector<64x64xf32>, vector<64x16xf32>, vector<64x16xf32> -> vector<64x16xf32>
    %403 = arith.addf %398, %402 : vector<64x16xf32>
    %404 = vector.broadcast %2 : vector<64x1xf32> to vector<64x16xf32>
    %405 = arith.addf %403, %404 : vector<64x16xf32>
    %cst_323 = arith.constant 0.000000e+00 : f32
    %406 = vector.broadcast %cst_323 : f32 to vector<64x16xf32>
    %407 = arith.maximumf %405, %406 : vector<64x16xf32>
    %c0_324 = arith.constant 0 : index
    %c5_325 = arith.constant 5 : index
    %c0_326 = arith.constant 0 : index
    %c0_327 = arith.constant 0 : index
    %408 = vector.load %arg5[%c0_324, %c5_325, %c0_326, %c0_327] : memref<1x8x64x16xf32, #tpu.memory_space<vmem>>, vector<1x1x64x16xf32>
    %409 = vector.shape_cast %408 : vector<1x1x64x16xf32> to vector<64x16xf32>
    %410 = vector.shape_cast %407 : vector<64x16xf32> to vector<1x1x64x16xf32>
    tpu.vector_store %arg5[%c0_324, %c5_325, %c0_326, %c0_327], %410 {strides = array<i32>} : memref<1x8x64x16xf32, #tpu.memory_space<vmem>>, vector<1x1x64x16xf32>,
    %cst_328 = arith.constant 0.000000e+00 : f32
    %411 = vector.broadcast %cst_328 : f32 to vector<64x16xf32>
    %c6_i32 = arith.constant 6 : i32
    %412 = arith.addi %1, %c6_i32 : i32
    %c0_i32_329 = arith.constant 0 : i32
    %413 = arith.addi %412, %c0_i32_329 : i32
    %c0_330 = arith.constant 0 : index
    %414 = arith.index_cast %413 : i32 to index
    %c0_331 = arith.constant 0 : index
    %c0_332 = arith.constant 0 : index
    %415 = vector.load %arg2[%c0_330, %414, %c0_331, %c0_332] : memref<1x18x64x18xf32, #tpu.memory_space<vmem>>, vector<1x1x64x18xf32>
    %416 = vector.shape_cast %415 : vector<1x1x64x18xf32> to vector<64x18xf32>
    %c0_333 = arith.constant 0 : index
    %c0_334 = arith.constant 0 : index
    %c0_335 = arith.constant 0 : index
    %417 = vector.load %arg3[%c0_333, %c0_334, %c0_335] : memref<9x64x64xf32, #tpu.memory_space<vmem>>, vector<1x64x64xf32>
    %418 = vector.shape_cast %417 : vector<1x64x64xf32> to vector<64x64xf32>
    %419 = vector.extract_strided_slice %416 {offsets = [0, 0], sizes = [64, 16], strides = [1, 1]} : vector<64x18xf32> to vector<64x16xf32>
    %cst_336 = arith.constant dense<0.000000e+00> : vector<64x16xf32>
    %420 = tpu.matmul %418, %419, %cst_336 {dimension_numbers = #tpu.dot_dimension_numbers<[1], [0], [0], [1], [0, 0, 1, 1], [], []>} : vector<64x64xf32>, vector<64x16xf32>, vector<64x16xf32> -> vector<64x16xf32>
    %421 = arith.addf %411, %420 : vector<64x16xf32>
    %c1_337 = arith.constant 1 : index
    %c0_338 = arith.constant 0 : index
    %c0_339 = arith.constant 0 : index
    %422 = vector.load %arg3[%c1_337, %c0_338, %c0_339] : memref<9x64x64xf32, #tpu.memory_space<vmem>>, vector<1x64x64xf32>
    %423 = vector.shape_cast %422 : vector<1x64x64xf32> to vector<64x64xf32>
    %424 = vector.extract_strided_slice %416 {offsets = [0, 1], sizes = [64, 16], strides = [1, 1]} : vector<64x18xf32> to vector<64x16xf32>
    %cst_340 = arith.constant dense<0.000000e+00> : vector<64x16xf32>
    %425 = tpu.matmul %423, %424, %cst_340 {dimension_numbers = #tpu.dot_dimension_numbers<[1], [0], [0], [1], [0, 0, 1, 1], [], []>} : vector<64x64xf32>, vector<64x16xf32>, vector<64x16xf32> -> vector<64x16xf32>
    %426 = arith.addf %421, %425 : vector<64x16xf32>
    %c2_341 = arith.constant 2 : index
    %c0_342 = arith.constant 0 : index
    %c0_343 = arith.constant 0 : index
    %427 = vector.load %arg3[%c2_341, %c0_342, %c0_343] : memref<9x64x64xf32, #tpu.memory_space<vmem>>, vector<1x64x64xf32>
    %428 = vector.shape_cast %427 : vector<1x64x64xf32> to vector<64x64xf32>
    %429 = vector.extract_strided_slice %416 {offsets = [0, 2], sizes = [64, 16], strides = [1, 1]} : vector<64x18xf32> to vector<64x16xf32>
    %cst_344 = arith.constant dense<0.000000e+00> : vector<64x16xf32>
    %430 = tpu.matmul %428, %429, %cst_344 {dimension_numbers = #tpu.dot_dimension_numbers<[1], [0], [0], [1], [0, 0, 1, 1], [], []>} : vector<64x64xf32>, vector<64x16xf32>, vector<64x16xf32> -> vector<64x16xf32>
    %431 = arith.addf %426, %430 : vector<64x16xf32>
    %c6_i32_345 = arith.constant 6 : i32
    %432 = arith.addi %1, %c6_i32_345 : i32
    %c1_i32_346 = arith.constant 1 : i32
    %433 = arith.addi %432, %c1_i32_346 : i32
    %c0_347 = arith.constant 0 : index
    %434 = arith.index_cast %433 : i32 to index
    %c0_348 = arith.constant 0 : index
    %c0_349 = arith.constant 0 : index
    %435 = vector.load %arg2[%c0_347, %434, %c0_348, %c0_349] : memref<1x18x64x18xf32, #tpu.memory_space<vmem>>, vector<1x1x64x18xf32>
    %436 = vector.shape_cast %435 : vector<1x1x64x18xf32> to vector<64x18xf32>
    %c3_350 = arith.constant 3 : index
    %c0_351 = arith.constant 0 : index
    %c0_352 = arith.constant 0 : index
    %437 = vector.load %arg3[%c3_350, %c0_351, %c0_352] : memref<9x64x64xf32, #tpu.memory_space<vmem>>, vector<1x64x64xf32>
    %438 = vector.shape_cast %437 : vector<1x64x64xf32> to vector<64x64xf32>
    %439 = vector.extract_strided_slice %436 {offsets = [0, 0], sizes = [64, 16], strides = [1, 1]} : vector<64x18xf32> to vector<64x16xf32>
    %cst_353 = arith.constant dense<0.000000e+00> : vector<64x16xf32>
    %440 = tpu.matmul %438, %439, %cst_353 {dimension_numbers = #tpu.dot_dimension_numbers<[1], [0], [0], [1], [0, 0, 1, 1], [], []>} : vector<64x64xf32>, vector<64x16xf32>, vector<64x16xf32> -> vector<64x16xf32>
    %441 = arith.addf %431, %440 : vector<64x16xf32>
    %c4_354 = arith.constant 4 : index
    %c0_355 = arith.constant 0 : index
    %c0_356 = arith.constant 0 : index
    %442 = vector.load %arg3[%c4_354, %c0_355, %c0_356] : memref<9x64x64xf32, #tpu.memory_space<vmem>>, vector<1x64x64xf32>
    %443 = vector.shape_cast %442 : vector<1x64x64xf32> to vector<64x64xf32>
    %444 = vector.extract_strided_slice %436 {offsets = [0, 1], sizes = [64, 16], strides = [1, 1]} : vector<64x18xf32> to vector<64x16xf32>
    %cst_357 = arith.constant dense<0.000000e+00> : vector<64x16xf32>
    %445 = tpu.matmul %443, %444, %cst_357 {dimension_numbers = #tpu.dot_dimension_numbers<[1], [0], [0], [1], [0, 0, 1, 1], [], []>} : vector<64x64xf32>, vector<64x16xf32>, vector<64x16xf32> -> vector<64x16xf32>
    %446 = arith.addf %441, %445 : vector<64x16xf32>
    %c5_358 = arith.constant 5 : index
    %c0_359 = arith.constant 0 : index
    %c0_360 = arith.constant 0 : index
    %447 = vector.load %arg3[%c5_358, %c0_359, %c0_360] : memref<9x64x64xf32, #tpu.memory_space<vmem>>, vector<1x64x64xf32>
    %448 = vector.shape_cast %447 : vector<1x64x64xf32> to vector<64x64xf32>
    %449 = vector.extract_strided_slice %436 {offsets = [0, 2], sizes = [64, 16], strides = [1, 1]} : vector<64x18xf32> to vector<64x16xf32>
    %cst_361 = arith.constant dense<0.000000e+00> : vector<64x16xf32>
    %450 = tpu.matmul %448, %449, %cst_361 {dimension_numbers = #tpu.dot_dimension_numbers<[1], [0], [0], [1], [0, 0, 1, 1], [], []>} : vector<64x64xf32>, vector<64x16xf32>, vector<64x16xf32> -> vector<64x16xf32>
    %451 = arith.addf %446, %450 : vector<64x16xf32>
    %c6_i32_362 = arith.constant 6 : i32
    %452 = arith.addi %1, %c6_i32_362 : i32
    %c2_i32_363 = arith.constant 2 : i32
    %453 = arith.addi %452, %c2_i32_363 : i32
    %c0_364 = arith.constant 0 : index
    %454 = arith.index_cast %453 : i32 to index
    %c0_365 = arith.constant 0 : index
    %c0_366 = arith.constant 0 : index
    %455 = vector.load %arg2[%c0_364, %454, %c0_365, %c0_366] : memref<1x18x64x18xf32, #tpu.memory_space<vmem>>, vector<1x1x64x18xf32>
    %456 = vector.shape_cast %455 : vector<1x1x64x18xf32> to vector<64x18xf32>
    %c6_367 = arith.constant 6 : index
    %c0_368 = arith.constant 0 : index
    %c0_369 = arith.constant 0 : index
    %457 = vector.load %arg3[%c6_367, %c0_368, %c0_369] : memref<9x64x64xf32, #tpu.memory_space<vmem>>, vector<1x64x64xf32>
    %458 = vector.shape_cast %457 : vector<1x64x64xf32> to vector<64x64xf32>
    %459 = vector.extract_strided_slice %456 {offsets = [0, 0], sizes = [64, 16], strides = [1, 1]} : vector<64x18xf32> to vector<64x16xf32>
    %cst_370 = arith.constant dense<0.000000e+00> : vector<64x16xf32>
    %460 = tpu.matmul %458, %459, %cst_370 {dimension_numbers = #tpu.dot_dimension_numbers<[1], [0], [0], [1], [0, 0, 1, 1], [], []>} : vector<64x64xf32>, vector<64x16xf32>, vector<64x16xf32> -> vector<64x16xf32>
    %461 = arith.addf %451, %460 : vector<64x16xf32>
    %c7_371 = arith.constant 7 : index
    %c0_372 = arith.constant 0 : index
    %c0_373 = arith.constant 0 : index
    %462 = vector.load %arg3[%c7_371, %c0_372, %c0_373] : memref<9x64x64xf32, #tpu.memory_space<vmem>>, vector<1x64x64xf32>
    %463 = vector.shape_cast %462 : vector<1x64x64xf32> to vector<64x64xf32>
    %464 = vector.extract_strided_slice %456 {offsets = [0, 1], sizes = [64, 16], strides = [1, 1]} : vector<64x18xf32> to vector<64x16xf32>
    %cst_374 = arith.constant dense<0.000000e+00> : vector<64x16xf32>
    %465 = tpu.matmul %463, %464, %cst_374 {dimension_numbers = #tpu.dot_dimension_numbers<[1], [0], [0], [1], [0, 0, 1, 1], [], []>} : vector<64x64xf32>, vector<64x16xf32>, vector<64x16xf32> -> vector<64x16xf32>
    %466 = arith.addf %461, %465 : vector<64x16xf32>
    %c8_375 = arith.constant 8 : index
    %c0_376 = arith.constant 0 : index
    %c0_377 = arith.constant 0 : index
    %467 = vector.load %arg3[%c8_375, %c0_376, %c0_377] : memref<9x64x64xf32, #tpu.memory_space<vmem>>, vector<1x64x64xf32>
    %468 = vector.shape_cast %467 : vector<1x64x64xf32> to vector<64x64xf32>
    %469 = vector.extract_strided_slice %456 {offsets = [0, 2], sizes = [64, 16], strides = [1, 1]} : vector<64x18xf32> to vector<64x16xf32>
    %cst_378 = arith.constant dense<0.000000e+00> : vector<64x16xf32>
    %470 = tpu.matmul %468, %469, %cst_378 {dimension_numbers = #tpu.dot_dimension_numbers<[1], [0], [0], [1], [0, 0, 1, 1], [], []>} : vector<64x64xf32>, vector<64x16xf32>, vector<64x16xf32> -> vector<64x16xf32>
    %471 = arith.addf %466, %470 : vector<64x16xf32>
    %472 = vector.broadcast %2 : vector<64x1xf32> to vector<64x16xf32>
    %473 = arith.addf %471, %472 : vector<64x16xf32>
    %cst_379 = arith.constant 0.000000e+00 : f32
    %474 = vector.broadcast %cst_379 : f32 to vector<64x16xf32>
    %475 = arith.maximumf %473, %474 : vector<64x16xf32>
    %c0_380 = arith.constant 0 : index
    %c6_381 = arith.constant 6 : index
    %c0_382 = arith.constant 0 : index
    %c0_383 = arith.constant 0 : index
    %476 = vector.load %arg5[%c0_380, %c6_381, %c0_382, %c0_383] : memref<1x8x64x16xf32, #tpu.memory_space<vmem>>, vector<1x1x64x16xf32>
    %477 = vector.shape_cast %476 : vector<1x1x64x16xf32> to vector<64x16xf32>
    %478 = vector.shape_cast %475 : vector<64x16xf32> to vector<1x1x64x16xf32>
    tpu.vector_store %arg5[%c0_380, %c6_381, %c0_382, %c0_383], %478 {strides = array<i32>} : memref<1x8x64x16xf32, #tpu.memory_space<vmem>>, vector<1x1x64x16xf32>,
    %cst_384 = arith.constant 0.000000e+00 : f32
    %479 = vector.broadcast %cst_384 : f32 to vector<64x16xf32>
    %c7_i32 = arith.constant 7 : i32
    %480 = arith.addi %1, %c7_i32 : i32
    %c0_i32_385 = arith.constant 0 : i32
    %481 = arith.addi %480, %c0_i32_385 : i32
    %c0_386 = arith.constant 0 : index
    %482 = arith.index_cast %481 : i32 to index
    %c0_387 = arith.constant 0 : index
    %c0_388 = arith.constant 0 : index
    %483 = vector.load %arg2[%c0_386, %482, %c0_387, %c0_388] : memref<1x18x64x18xf32, #tpu.memory_space<vmem>>, vector<1x1x64x18xf32>
    %484 = vector.shape_cast %483 : vector<1x1x64x18xf32> to vector<64x18xf32>
    %c0_389 = arith.constant 0 : index
    %c0_390 = arith.constant 0 : index
    %c0_391 = arith.constant 0 : index
    %485 = vector.load %arg3[%c0_389, %c0_390, %c0_391] : memref<9x64x64xf32, #tpu.memory_space<vmem>>, vector<1x64x64xf32>
    %486 = vector.shape_cast %485 : vector<1x64x64xf32> to vector<64x64xf32>
    %487 = vector.extract_strided_slice %484 {offsets = [0, 0], sizes = [64, 16], strides = [1, 1]} : vector<64x18xf32> to vector<64x16xf32>
    %cst_392 = arith.constant dense<0.000000e+00> : vector<64x16xf32>
    %488 = tpu.matmul %486, %487, %cst_392 {dimension_numbers = #tpu.dot_dimension_numbers<[1], [0], [0], [1], [0, 0, 1, 1], [], []>} : vector<64x64xf32>, vector<64x16xf32>, vector<64x16xf32> -> vector<64x16xf32>
    %489 = arith.addf %479, %488 : vector<64x16xf32>
    %c1_393 = arith.constant 1 : index
    %c0_394 = arith.constant 0 : index
    %c0_395 = arith.constant 0 : index
    %490 = vector.load %arg3[%c1_393, %c0_394, %c0_395] : memref<9x64x64xf32, #tpu.memory_space<vmem>>, vector<1x64x64xf32>
    %491 = vector.shape_cast %490 : vector<1x64x64xf32> to vector<64x64xf32>
    %492 = vector.extract_strided_slice %484 {offsets = [0, 1], sizes = [64, 16], strides = [1, 1]} : vector<64x18xf32> to vector<64x16xf32>
    %cst_396 = arith.constant dense<0.000000e+00> : vector<64x16xf32>
    %493 = tpu.matmul %491, %492, %cst_396 {dimension_numbers = #tpu.dot_dimension_numbers<[1], [0], [0], [1], [0, 0, 1, 1], [], []>} : vector<64x64xf32>, vector<64x16xf32>, vector<64x16xf32> -> vector<64x16xf32>
    %494 = arith.addf %489, %493 : vector<64x16xf32>
    %c2_397 = arith.constant 2 : index
    %c0_398 = arith.constant 0 : index
    %c0_399 = arith.constant 0 : index
    %495 = vector.load %arg3[%c2_397, %c0_398, %c0_399] : memref<9x64x64xf32, #tpu.memory_space<vmem>>, vector<1x64x64xf32>
    %496 = vector.shape_cast %495 : vector<1x64x64xf32> to vector<64x64xf32>
    %497 = vector.extract_strided_slice %484 {offsets = [0, 2], sizes = [64, 16], strides = [1, 1]} : vector<64x18xf32> to vector<64x16xf32>
    %cst_400 = arith.constant dense<0.000000e+00> : vector<64x16xf32>
    %498 = tpu.matmul %496, %497, %cst_400 {dimension_numbers = #tpu.dot_dimension_numbers<[1], [0], [0], [1], [0, 0, 1, 1], [], []>} : vector<64x64xf32>, vector<64x16xf32>, vector<64x16xf32> -> vector<64x16xf32>
    %499 = arith.addf %494, %498 : vector<64x16xf32>
    %c7_i32_401 = arith.constant 7 : i32
    %500 = arith.addi %1, %c7_i32_401 : i32
    %c1_i32_402 = arith.constant 1 : i32
    %501 = arith.addi %500, %c1_i32_402 : i32
    %c0_403 = arith.constant 0 : index
    %502 = arith.index_cast %501 : i32 to index
    %c0_404 = arith.constant 0 : index
    %c0_405 = arith.constant 0 : index
    %503 = vector.load %arg2[%c0_403, %502, %c0_404, %c0_405] : memref<1x18x64x18xf32, #tpu.memory_space<vmem>>, vector<1x1x64x18xf32>
    %504 = vector.shape_cast %503 : vector<1x1x64x18xf32> to vector<64x18xf32>
    %c3_406 = arith.constant 3 : index
    %c0_407 = arith.constant 0 : index
    %c0_408 = arith.constant 0 : index
    %505 = vector.load %arg3[%c3_406, %c0_407, %c0_408] : memref<9x64x64xf32, #tpu.memory_space<vmem>>, vector<1x64x64xf32>
    %506 = vector.shape_cast %505 : vector<1x64x64xf32> to vector<64x64xf32>
    %507 = vector.extract_strided_slice %504 {offsets = [0, 0], sizes = [64, 16], strides = [1, 1]} : vector<64x18xf32> to vector<64x16xf32>
    %cst_409 = arith.constant dense<0.000000e+00> : vector<64x16xf32>
    %508 = tpu.matmul %506, %507, %cst_409 {dimension_numbers = #tpu.dot_dimension_numbers<[1], [0], [0], [1], [0, 0, 1, 1], [], []>} : vector<64x64xf32>, vector<64x16xf32>, vector<64x16xf32> -> vector<64x16xf32>
    %509 = arith.addf %499, %508 : vector<64x16xf32>
    %c4_410 = arith.constant 4 : index
    %c0_411 = arith.constant 0 : index
    %c0_412 = arith.constant 0 : index
    %510 = vector.load %arg3[%c4_410, %c0_411, %c0_412] : memref<9x64x64xf32, #tpu.memory_space<vmem>>, vector<1x64x64xf32>
    %511 = vector.shape_cast %510 : vector<1x64x64xf32> to vector<64x64xf32>
    %512 = vector.extract_strided_slice %504 {offsets = [0, 1], sizes = [64, 16], strides = [1, 1]} : vector<64x18xf32> to vector<64x16xf32>
    %cst_413 = arith.constant dense<0.000000e+00> : vector<64x16xf32>
    %513 = tpu.matmul %511, %512, %cst_413 {dimension_numbers = #tpu.dot_dimension_numbers<[1], [0], [0], [1], [0, 0, 1, 1], [], []>} : vector<64x64xf32>, vector<64x16xf32>, vector<64x16xf32> -> vector<64x16xf32>
    %514 = arith.addf %509, %513 : vector<64x16xf32>
    %c5_414 = arith.constant 5 : index
    %c0_415 = arith.constant 0 : index
    %c0_416 = arith.constant 0 : index
    %515 = vector.load %arg3[%c5_414, %c0_415, %c0_416] : memref<9x64x64xf32, #tpu.memory_space<vmem>>, vector<1x64x64xf32>
    %516 = vector.shape_cast %515 : vector<1x64x64xf32> to vector<64x64xf32>
    %517 = vector.extract_strided_slice %504 {offsets = [0, 2], sizes = [64, 16], strides = [1, 1]} : vector<64x18xf32> to vector<64x16xf32>
    %cst_417 = arith.constant dense<0.000000e+00> : vector<64x16xf32>
    %518 = tpu.matmul %516, %517, %cst_417 {dimension_numbers = #tpu.dot_dimension_numbers<[1], [0], [0], [1], [0, 0, 1, 1], [], []>} : vector<64x64xf32>, vector<64x16xf32>, vector<64x16xf32> -> vector<64x16xf32>
    %519 = arith.addf %514, %518 : vector<64x16xf32>
    %c7_i32_418 = arith.constant 7 : i32
    %520 = arith.addi %1, %c7_i32_418 : i32
    %c2_i32_419 = arith.constant 2 : i32
    %521 = arith.addi %520, %c2_i32_419 : i32
    %c0_420 = arith.constant 0 : index
    %522 = arith.index_cast %521 : i32 to index
    %c0_421 = arith.constant 0 : index
    %c0_422 = arith.constant 0 : index
    %523 = vector.load %arg2[%c0_420, %522, %c0_421, %c0_422] : memref<1x18x64x18xf32, #tpu.memory_space<vmem>>, vector<1x1x64x18xf32>
    %524 = vector.shape_cast %523 : vector<1x1x64x18xf32> to vector<64x18xf32>
    %c6_423 = arith.constant 6 : index
    %c0_424 = arith.constant 0 : index
    %c0_425 = arith.constant 0 : index
    %525 = vector.load %arg3[%c6_423, %c0_424, %c0_425] : memref<9x64x64xf32, #tpu.memory_space<vmem>>, vector<1x64x64xf32>
    %526 = vector.shape_cast %525 : vector<1x64x64xf32> to vector<64x64xf32>
    %527 = vector.extract_strided_slice %524 {offsets = [0, 0], sizes = [64, 16], strides = [1, 1]} : vector<64x18xf32> to vector<64x16xf32>
    %cst_426 = arith.constant dense<0.000000e+00> : vector<64x16xf32>
    %528 = tpu.matmul %526, %527, %cst_426 {dimension_numbers = #tpu.dot_dimension_numbers<[1], [0], [0], [1], [0, 0, 1, 1], [], []>} : vector<64x64xf32>, vector<64x16xf32>, vector<64x16xf32> -> vector<64x16xf32>
    %529 = arith.addf %519, %528 : vector<64x16xf32>
    %c7_427 = arith.constant 7 : index
    %c0_428 = arith.constant 0 : index
    %c0_429 = arith.constant 0 : index
    %530 = vector.load %arg3[%c7_427, %c0_428, %c0_429] : memref<9x64x64xf32, #tpu.memory_space<vmem>>, vector<1x64x64xf32>
    %531 = vector.shape_cast %530 : vector<1x64x64xf32> to vector<64x64xf32>
    %532 = vector.extract_strided_slice %524 {offsets = [0, 1], sizes = [64, 16], strides = [1, 1]} : vector<64x18xf32> to vector<64x16xf32>
    %cst_430 = arith.constant dense<0.000000e+00> : vector<64x16xf32>
    %533 = tpu.matmul %531, %532, %cst_430 {dimension_numbers = #tpu.dot_dimension_numbers<[1], [0], [0], [1], [0, 0, 1, 1], [], []>} : vector<64x64xf32>, vector<64x16xf32>, vector<64x16xf32> -> vector<64x16xf32>
    %534 = arith.addf %529, %533 : vector<64x16xf32>
    %c8_431 = arith.constant 8 : index
    %c0_432 = arith.constant 0 : index
    %c0_433 = arith.constant 0 : index
    %535 = vector.load %arg3[%c8_431, %c0_432, %c0_433] : memref<9x64x64xf32, #tpu.memory_space<vmem>>, vector<1x64x64xf32>
    %536 = vector.shape_cast %535 : vector<1x64x64xf32> to vector<64x64xf32>
    %537 = vector.extract_strided_slice %524 {offsets = [0, 2], sizes = [64, 16], strides = [1, 1]} : vector<64x18xf32> to vector<64x16xf32>
    %cst_434 = arith.constant dense<0.000000e+00> : vector<64x16xf32>
    %538 = tpu.matmul %536, %537, %cst_434 {dimension_numbers = #tpu.dot_dimension_numbers<[1], [0], [0], [1], [0, 0, 1, 1], [], []>} : vector<64x64xf32>, vector<64x16xf32>, vector<64x16xf32> -> vector<64x16xf32>
    %539 = arith.addf %534, %538 : vector<64x16xf32>
    %540 = vector.broadcast %2 : vector<64x1xf32> to vector<64x16xf32>
    %541 = arith.addf %539, %540 : vector<64x16xf32>
    %cst_435 = arith.constant 0.000000e+00 : f32
    %542 = vector.broadcast %cst_435 : f32 to vector<64x16xf32>
    %543 = arith.maximumf %541, %542 : vector<64x16xf32>
    %c0_436 = arith.constant 0 : index
    %c7_437 = arith.constant 7 : index
    %c0_438 = arith.constant 0 : index
    %c0_439 = arith.constant 0 : index
    %544 = vector.load %arg5[%c0_436, %c7_437, %c0_438, %c0_439] : memref<1x8x64x16xf32, #tpu.memory_space<vmem>>, vector<1x1x64x16xf32>
    %545 = vector.shape_cast %544 : vector<1x1x64x16xf32> to vector<64x16xf32>
    %546 = vector.shape_cast %543 : vector<64x16xf32> to vector<1x1x64x16xf32>
    tpu.vector_store %arg5[%c0_436, %c7_437, %c0_438, %c0_439], %546 {strides = array<i32>} : memref<1x8x64x16xf32, #tpu.memory_space<vmem>>, vector<1x1x64x16xf32>,
    return
  }
  func.func @transform_0(%arg0: i32, %arg1: i32) -> (i32, i32, i32, i32) {
    %c0_i32 = arith.constant 0 : i32
    %c0_i32_0 = arith.constant 0 : i32
    %c0_i32_1 = arith.constant 0 : i32
    %c0_i32_2 = arith.constant 0 : i32
    return %arg0, %c0_i32, %c0_i32_0, %c0_i32_1 : i32, i32, i32, i32
  }
  func.func @transform_1(%arg0: i32, %arg1: i32) -> (i32, i32, i32) {
    %c0_i32 = arith.constant 0 : i32
    %c0_i32_0 = arith.constant 0 : i32
    %c0_i32_1 = arith.constant 0 : i32
    %c0_i32_2 = arith.constant 0 : i32
    return %c0_i32, %c0_i32_0, %c0_i32_1 : i32, i32, i32
  }
  func.func @transform_2(%arg0: i32, %arg1: i32) -> (i32, i32) {
    %c0_i32 = arith.constant 0 : i32
    %c0_i32_0 = arith.constant 0 : i32
    %c0_i32_1 = arith.constant 0 : i32
    return %c0_i32, %c0_i32_0 : i32, i32
  }
  func.func @transform_3(%arg0: i32, %arg1: i32) -> (i32, i32, i32, i32) {
    %c0_i32 = arith.constant 0 : i32
    %c0_i32_0 = arith.constant 0 : i32
    %c0_i32_1 = arith.constant 0 : i32
    return %arg0, %arg1, %c0_i32, %c0_i32_0 : i32, i32, i32, i32
  }
}

</mosaic_0001>

<bundles_post_ra>
// kernel: tpu_custom_call.1
= control target key start
LH: loop header
LB: loop body
LE: loop exit
PB: predicated region body
PF: predicated region fallthrough
CT: control target
= control target key end

     0   :  { %s17255_s12 = smov 0   ;;  %s17257_s13 = smov 0   ;;  %s23952_s0 = inlined_call_operand.vmem [shape: f32[2,18,64,18], index: 0, kind: input, shape index: {}]   ;;  %s23953_s1 = inlined_call_operand.vmem [shape: f32[9,64,64], index: 1, kind: input, shape index: {}]   ;;  %s23954_s2 = inlined_call_operand.vmem [shape: f32[64,1], index: 2, kind: input, shape index: {}]   ;;  %s23955_s3 = inlined_call_operand.vmem [shape: f32[2,16,64,16], index: 3, kind: output, shape index: {}]  }
   0x1   :  { %s17259_s14 = smov 0   ;;  %s17261_s15 = smov 0  }
   0x2   :  { %s17263_s16 = smov 0  }
   0x3 LB: > { %s22_s17 = sadd.s32 1, %s17222_s14  ;;  %s25_s18 = sadd.s32 1, %s17226_s15  ;;  %s17230_s16 = sphi %s17263_s16, %s13_s16   ;;  %s17226_s15 = sphi %s17261_s15, %s24600_s15   ;;  %s17222_s14 = sphi %s17259_s14, %s24599_s14   ;;  %s17218_s13 = sphi %s17257_s13, %s24598_s13   ;;  %s17214_s12 = sphi %s17255_s12, %s24597_s12  }
   0x4   : > { %p23_p0 = scmp.ge.s32.totalorder %s22_s17, 2  ;;  %p12463_p1 = scmp.ge.s32.totalorder %s17230_s16, 1 }
   0x5   : > { %p151_p2 = scmp.lt.s32.totalorder %s17230_s16, 5 }
   0x6   : > { %s24602_s17 = smov (%p23_p0, %s22_s17), 0  ;;  %s24604_s18 = smov (!%p23_p0, %s25_s18), %s17226_s15 }
   0x7   : > { %p152_p3 = pnand %p12463_p1, %p151_p2  ;;  %p27_p4 = scmp.ge.s32.totalorder %s24604_s18, 2 }
   0x9   : > { %s24606_s18 = smov (%p27_p4, %s24604_s18), 0  ;;  %155 = sbr.rel (%p152_p3) target bundleno = 1370 (0x55a), region = 32 }
   0xe   : > { %p180_p5 = scmp.lt.s32.totalorder %s17218_s13, 1  ;;  %s13819_s20 = sshll.u32 %s17214_s12, 9  ;;  %vm264_vm0 = vcmask 523264   ;;  %v17309_v6 = vld [vmem:[%s23953_s1 + $0x40] sm:$0xff]  ;;  %v216_v10 = vld [vmem:[%s23953_s1 + $0x8] sm:$0xff]  ;;  %v217_v11 = vld [vmem:[%s23953_s1 + $0x10] sm:$0xff] }
   0xf   : > { %s17232_s25 = smov 127   ;;  %v215_v7 = vld [vmem:[%s23953_s1] sm:$0xff]  ;;  %14997 = vmatprep.mubr.msk.f32.mxu0 %vm264_vm0, %v17309_v6  ;;  %s17233_s30 = smov 126   ;;  %v218_v14 = vld [vmem:[%s23953_s1 + $0x18] sm:$0xff]  ;;  %v220_v18 = vld [vmem:[%s23953_s1 + $0x28] sm:$0xff]  ;;  %vm1759_vm1 = vcmask 130048  }
  0x10   : > { %s24608_s13 = smov (!%p180_p5, %s17218_s13), 1  ;;  %15025 = vmatprep.mubr.msk.f32.mxu1 %vm264_vm0, %v215_v7  ;;  %v219_v16 = vld [vmem:[%s23953_s1 + $0x20] sm:$0xff]  ;;  %v221_v19 = vld [vmem:[%s23953_s1 + $0x30] sm:$0xff]  ;;  %v222_v22 = vld [vmem:[%s23953_s1 + $0x38] sm:$0xff]  ;;  %s12465_s8 = sshll.u32 %s17214_s12, 3 }
  0x11   : > { %s16997_s19 = smul.u32 1152, %s24608_s13  ;;  %v12521_v23 = vld [vmem:[%s23953_s1 + $0xc0] sm:$0xff]  ;;  %v12522_v26 = vld [vmem:[%s23953_s1 + $0xc8] sm:$0xff]  ;;  %v12523_v27 = vld [vmem:[%s23953_s1 + $0xd0] sm:$0xff]  ;;  %p23377_p6 = scmp.lt.s32.totalorder %s12465_s8, 15 }
  0x12   : > { %v12524_v28 = vld [vmem:[%s23953_s1 + $0xd8] sm:$0xff]  ;;  %v12525_v29 = vld [vmem:[%s23953_s1 + $0xe0] sm:$0xff]  ;;  %v12526_v30 = vld [vmem:[%s23953_s1 + $0xe8] sm:$0xff]  ;;  %s12467_s9 = sshll.u32 %s24608_s13, 7 }
  0x13   : > { %s184_s23 = scalar_lea.vmem %s23952_s0, %s16997_s19  ;;  %v12527_v31 = vld [vmem:[%s23953_s1 + $0xf0] sm:$0xff]  ;;  %v12528_v32 = vld [vmem:[%s23953_s1 + $0xf8] sm:$0xff]  ;;  %v12553_v33 = vld [vmem:[%s23953_s1 + $0x140] sm:$0xff]  ;;  %s24610_s8 = smov (!%p23377_p6, %s12465_s8), 15 }
  0x14   : > { %s17294_s24 = scalar_lea.vmem %s184_s23, %s13819_s20  ;;  %v17562_v52 = vld [vmem:[%s23953_s1 + $0x48] sm:$0xff]  ;;  %v17569_v53 = vld [vmem:[%s23953_s1 + $0x50] sm:$0xff]  ;;  %v17580_v56 = vld [vmem:[%s23953_s1 + $0x58] sm:$0xff] }
  0x15   : > { %v214_v0 = vld [vmem:[%s17294_s24 + $0x38] sm:$0xff]  ;;  %v212_v1 = vld [vmem:[%s17294_s24 + $0x28] sm:$0xff]  ;;  %v213_v2 = vld [vmem:[%s17294_s24 + $0x30] sm:$0xff] }
  0x16   : > { %254 = vrot.lane.b32.xlu0 %v214_v0, %s17232_s25  ;;  %250 = vrot.lane.b32.xlu1 %v212_v1, %s17232_s25  ;;  %v211_v3 = vld [vmem:[%s17294_s24 + $0x20] sm:$0xff]  ;;  %v210_v4 = vld [vmem:[%s17294_s24 + $0x18] sm:$0xff] }
  0x17   : > { %15009 = vmatprep.subr.mxu1 %v214_v0  ;;  %v209_v5 = vld [vmem:[%s17294_s24 + $0x10] sm:$0xff]  ;;  %v208_v8 = vld [vmem:[%s17294_s24 + $0x8] sm:$0xff]  ;;  %v207_v9 = vld [vmem:[%s17294_s24] sm:$0xff] }
  0x18   : > { %15010 = vmatpush3.msra.mxu1 %v214_v0  ;;  %v17334_v12 = vld [vmem:[%s17294_s24 + $0x78] sm:$0xff]  ;;  %v17343_v13 = vld [vmem:[%s17294_s24 + $0x70] sm:$0xff]  ;;  %v17350_v15 = vld [vmem:[%s17294_s24 + $0x68] sm:$0xff] }
  0x19   : > { %15011 = vmatprep.subr.mxu1 %v213_v2  ;;  %v17361_v17 = vld [vmem:[%s17294_s24 + $0x60] sm:$0xff]  ;;  %v17378_v20 = vld [vmem:[%s17294_s24 + $0x58] sm:$0xff]  ;;  %v17383_v21 = vld [vmem:[%s17294_s24 + $0x50] sm:$0xff] }
  0x1a   : > { %252 = vrot.lane.b32.xlu0 %v213_v2, %s17232_s25  ;;  %248 = vrot.lane.b32.xlu1 %v211_v3, %s17232_s25  ;;  %v17399_v24 = vld [vmem:[%s17294_s24 + $0x48] sm:$0xff]  ;;  %v17411_v25 = vld [vmem:[%s17294_s24 + $0x40] sm:$0xff] }
  0x1b   : > { %15012 = vmatpush3.msra.mxu1 %v213_v2  ;;  %v17468_v34 = vld [vmem:[%s17294_s24 + $0xb8] sm:$0xff]  ;;  %v17471_v35 = vld [vmem:[%s17294_s24 + $0xb0] sm:$0xff]  ;;  %v17478_v36 = vld [vmem:[%s17294_s24 + $0xa8] sm:$0xff] }
  0x1c   : > { %15013 = vmatprep.subr.mxu1 %v212_v1  ;;  %v17481_v37 = vld [vmem:[%s17294_s24 + $0xa0] sm:$0xff]  ;;  %v17488_v38 = vld [vmem:[%s17294_s24 + $0x98] sm:$0xff]  ;;  %v17491_v39 = vld [vmem:[%s17294_s24 + $0x90] sm:$0xff] }
  0x1d   : > { %15014 = vmatpush3.msra.mxu1 %v212_v1  ;;  %v17498_v40 = vld [vmem:[%s17294_s24 + $0x88] sm:$0xff]  ;;  %v17501_v41 = vld [vmem:[%s17294_s24 + $0x80] sm:$0xff]  ;;  %v17605_v61 = vld [vmem:[%s23953_s1 + $0x70] sm:$0xff] }
  0x1e   : > { %246 = vrot.lane.b32.xlu0 %v210_v4, %s17232_s25  ;;  %244 = vrot.lane.b32.xlu1 %v209_v5, %s17232_s25  ;;  %v17587_v57 = vld [vmem:[%s23953_s1 + $0x60] sm:$0xff]  ;;  %v17598_v60 = vld [vmem:[%s23953_s1 + $0x68] sm:$0xff] }
  0x1f   : > { %15015 = vmatprep.subr.mxu1 %v211_v3 }
  0x20   : > { %15016 = vmatpush3.msra.mxu1 %v211_v3 }
  0x21   : > { %15017 = vmatprep.subr.mxu1 %v210_v4 }
  0x22   : > { %242 = vrot.lane.b32.xlu0 %v208_v8, %s17232_s25  ;;  %240 = vrot.lane.b32.xlu1 %v207_v9, %s17232_s25 }
  0x23   : > { %15018 = vmatpush3.msra.mxu1 %v210_v4 }
  0x24   : > { %15019 = vmatprep.subr.mxu1 %v209_v5 }
  0x25   : > { %15020 = vmatpush3.msra.mxu1 %v209_v5 }
  0x26   : > { %546 = vrot.lane.b32.xlu0 %v214_v0, %s17233_s30  ;;  %544 = vrot.lane.b32.xlu1 %v213_v2, %s17233_s30  ;;  %v17616_v0 = vld [vmem:[%s23953_s1 + $0x78] sm:$0xff] }
  0x27   : > { %15021 = vmatprep.subr.mxu1 %v208_v8 }
  0x28   : > { %15022 = vmatpush3.msra.mxu1 %v208_v8 }
  0x29   : > { %15023 = vmatprep.subr.mxu1 %v207_v9 }
  0x2a   : > { %542 = vrot.lane.b32.xlu0 %v212_v1, %s17233_s30  ;;  %540 = vrot.lane.b32.xlu1 %v211_v3, %s17233_s30  ;;  %v17623_v1 = vld [vmem:[%s23953_s1 + $0x80] sm:$0xff] }
  0x2b   : > { %15024 = vmatpush3.msra.mxu1 %v207_v9 }
  0x2c   : > { %15065 = vmatprep.subr.mxu1 %v17334_v12  ;;  %15026 = vmatmul.mubr.msk.f32.vlgmr.msra.gmra.mxu1 %vm264_vm0, %v216_v10  ;;  %v17649_v10 = vld [vmem:[%s23953_s1 + $0x90] sm:$0xff] }
  0x2d   : > { %15066 = vmatpush3.msra.mxu1 %v17334_v12  ;;  %15028 = vmatprep.mubr.msk.f32.mxu1 %vm264_vm0, %v217_v11  ;;  %v17656_v11 = vld [vmem:[%s17294_s24 + $0xf8] sm:$0xff] }
  0x2e   : > { %538 = vrot.lane.b32.xlu0 %v210_v4, %s17233_s30  ;;  %536 = vrot.lane.b32.xlu1 %v209_v5, %s17233_s30  ;;  %v17634_v4 = vld [vmem:[%s23953_s1 + $0x88] sm:$0xff] }
  0x2f   : > { %15067 = vmatprep.subr.mxu1 %v17343_v13 }
  0x30   : > { %15068 = vmatpush3.msra.mxu1 %v17343_v13 }
  0x31   : > { %15069 = vmatprep.subr.mxu1 %v17350_v15  ;;  %15029 = vmatmul.mubr.msk.f32.gmra.mxu1 %vm264_vm0, %v218_v14 }
  0x32   : > { %534 = vrot.lane.b32.xlu0 %v208_v8, %s17233_s30  ;;  %532 = vrot.lane.b32.xlu1 %v207_v9, %s17233_s30 }
  0x33   : > { %15070 = vmatpush3.msra.mxu1 %v17350_v15  ;;  %15031 = vmatprep.mubr.msk.f32.mxu1 %vm264_vm0, %v219_v16 }
  0x34   : > { %15071 = vmatprep.subr.mxu1 %v17361_v17 }
  0x35   : > { %15072 = vmatpush3.msra.mxu1 %v17361_v17 }
  0x36   : > { %881 = vrot.lane.b32.xlu0 %v17334_v12, %s17232_s25  ;;  %879 = vrot.lane.b32.xlu1 %v17343_v13, %s17232_s25 }
  0x37   : > { %15073 = vmatprep.subr.mxu1 %v17378_v20  ;;  %15032 = vmatmul.mubr.msk.f32.gmra.mxu1 %vm264_vm0, %v220_v18  ;;  %v17659_v18 = vld [vmem:[%s17294_s24 + $0xf0] sm:$0xff] }
  0x38   : > { %15074 = vmatpush3.msra.mxu1 %v17378_v20  ;;  %15034 = vmatprep.mubr.msk.f32.mxu1 %vm264_vm0, %v221_v19  ;;  %v17666_v19 = vld [vmem:[%s23953_s1 + $0x98] sm:$0xff] }
  0x39   : > { %15075 = vmatprep.subr.mxu1 %v17383_v21 }
  0x3a   : > { %1051 = vrot.lane.b32.xlu0 %v17334_v12, %s17233_s30  ;;  %877 = vrot.lane.b32.xlu1 %v17350_v15, %s17232_s25 }
  0x3b   : > { %15076 = vmatpush3.msra.mxu1 %v17383_v21 }
  0x3c   : > { %15077 = vmatprep.subr.mxu1 %v17399_v24  ;;  %15035 = vmatmul.mubr.msk.f32.gmra.mxu1 %vm264_vm0, %v222_v22 }
  0x3d   : > { %15078 = vmatpush3.msra.mxu1 %v17399_v24  ;;  %15081 = vmatprep.mubr.msk.f32.mxu1 %vm264_vm0, %v12521_v23 }
  0x3e   : > { %1049 = vrot.lane.b32.xlu0 %v17343_v13, %s17233_s30  ;;  %875 = vrot.lane.b32.xlu1 %v17361_v17, %s17232_s25 }
  0x3f   : > { %15079 = vmatprep.subr.mxu1 %v17411_v25 }
  0x40   : > { %15080 = vmatpush3.msra.mxu1 %v17411_v25 }
  0x41   : > { %15082 = vmatmul.mubr.msk.f32.vlgmr.msra.gmra.mxu1 %vm264_vm0, %v12522_v26  ;;  %v17673_v26 = vld [vmem:[%s17294_s24 + $0xe8] sm:$0xff] }
  0x42   : > { %1047 = vrot.lane.b32.xlu0 %v17350_v15, %s17233_s30  ;;  %873 = vrot.lane.b32.xlu1 %v17378_v20, %s17232_s25 }
  0x43   : > { %15084 = vmatprep.mubr.msk.f32.mxu1 %vm264_vm0, %v12523_v27  ;;  %v17680_v27 = vld [vmem:[%s23953_s1 + $0xa0] sm:$0xff] }
  0x45   : > { %15085 = vmatmul.mubr.msk.f32.gmra.mxu1 %vm264_vm0, %v12524_v28 }
  0x46   : > { %1045 = vrot.lane.b32.xlu0 %v17361_v17, %s17233_s30  ;;  %871 = vrot.lane.b32.xlu1 %v17383_v21, %s17232_s25 }
  0x47   : > { %15087 = vmatprep.mubr.msk.f32.mxu1 %vm264_vm0, %v12525_v29 }
  0x49   : > { %15088 = vmatmul.mubr.msk.f32.gmra.mxu1 %vm264_vm0, %v12526_v30  ;;  %v17687_v30 = vld [vmem:[%s17294_s24 + $0xe0] sm:$0xff] }
  0x4a   : > { %1043 = vrot.lane.b32.xlu0 %v17378_v20, %s17233_s30  ;;  %869 = vrot.lane.b32.xlu1 %v17399_v24, %s17232_s25 }
  0x4b   : > { %15090 = vmatprep.mubr.msk.f32.mxu1 %vm264_vm0, %v12527_v31  ;;  %v17694_v31 = vld [vmem:[%s23953_s1 + $0xa8] sm:$0xff] }
  0x4d   : > { %15091 = vmatmul.mubr.msk.f32.gmra.mxu1 %vm264_vm0, %v12528_v32 }
  0x4e   : > { %1041 = vrot.lane.b32.xlu0 %v17383_v21, %s17233_s30  ;;  %867 = vrot.lane.b32.xlu1 %v17411_v25, %s17232_s25 }
  0x4f   : > { %15137 = vmatprep.mubr.msk.f32.mxu1 %vm264_vm0, %v12553_v33 }
  0x52   : > { %1039 = vrot.lane.b32.xlu0 %v17399_v24, %s17233_s30  ;;  %1037 = vrot.lane.b32.xlu1 %v17411_v25, %s17233_s30 }
  0x56   : > { %1386 = vrot.lane.b32.xlu0 %v17468_v34, %s17232_s25  ;;  %1384 = vrot.lane.b32.xlu1 %v17471_v35, %s17232_s25 }
  0x5a   : > { %1382 = vrot.lane.b32.xlu0 %v17478_v36, %s17232_s25  ;;  %1380 = vrot.lane.b32.xlu1 %v17481_v37, %s17232_s25 }
  0x5e   : > { %1378 = vrot.lane.b32.xlu0 %v17488_v38, %s17232_s25  ;;  %1376 = vrot.lane.b32.xlu1 %v17491_v39, %s17232_s25 }
  0x62   : > { %1374 = vrot.lane.b32.xlu0 %v17498_v40, %s17232_s25  ;;  %1372 = vrot.lane.b32.xlu1 %v17501_v41, %s17232_s25 }
  0x66   : > { %1556 = vrot.lane.b32.xlu0 %v17468_v34, %s17233_s30  ;;  %1554 = vrot.lane.b32.xlu1 %v17471_v35, %s17233_s30 }
  0x6a   : > { %1814 = vrot.lane.b32.xlu0 %v17334_v12, %s17232_s25  ;;  %1552 = vrot.lane.b32.xlu1 %v17478_v36, %s17233_s30 }
  0x6e   : > { %1812 = vrot.lane.b32.xlu0 %v17343_v13, %s17232_s25  ;;  %1550 = vrot.lane.b32.xlu1 %v17481_v37, %s17233_s30 }
  0x72   : > { %1810 = vrot.lane.b32.xlu0 %v17350_v15, %s17232_s25  ;;  %1548 = vrot.lane.b32.xlu1 %v17488_v38, %s17233_s30 }
  0x76   : > { %1808 = vrot.lane.b32.xlu0 %v17361_v17, %s17232_s25  ;;  %1546 = vrot.lane.b32.xlu1 %v17491_v39, %s17233_s30 }
  0x7a   : > { %1806 = vrot.lane.b32.xlu0 %v17378_v20, %s17232_s25  ;;  %1544 = vrot.lane.b32.xlu1 %v17498_v40, %s17233_s30 }
  0x7e   : > { %1804 = vrot.lane.b32.xlu0 %v17383_v21, %s17232_s25  ;;  %1542 = vrot.lane.b32.xlu1 %v17501_v41, %s17233_s30 }
  0x82   : > { %1802 = vrot.lane.b32.xlu0 %v17399_v24, %s17232_s25  ;;  %1800 = vrot.lane.b32.xlu1 %v17411_v25, %s17232_s25 }
  0x86   : > { %2104 = vrot.lane.b32.xlu0 %v17334_v12, %s17233_s30  ;;  %2102 = vrot.lane.b32.xlu1 %v17343_v13, %s17233_s30 }
  0x88   : > { %v255_v42 = vpop.permute.xlu0 %254  ;;  %v251_v43 = vpop.permute.xlu1 %250 }
  0x89   : > { %14981 = vmatprep.subr.mxu0 %v255_v42 }
  0x8a   : > { %14982 = vmatpush3.msra.mxu0 %v255_v42  ;;  %2100 = vrot.lane.b32.xlu0 %v17350_v15, %s17233_s30  ;;  %v17701_v42 = vld [vmem:[%s17294_s24 + $0xd8] sm:$0xff] }
  0x8b   : > { %2098 = vrot.lane.b32.xlu1 %v17361_v17, %s17233_s30 }
  0x8c   : > { %v253_v44 = vpop.permute.xlu0 %252  ;;  %v249_v45 = vpop.permute.xlu1 %248 }
  0x8d   : > { %14983 = vmatprep.subr.mxu0 %v253_v44 }
  0x8e   : > { %14984 = vmatpush3.msra.mxu0 %v253_v44  ;;  %2096 = vrot.lane.b32.xlu0 %v17378_v20, %s17233_s30  ;;  %v17715_v44 = vld [vmem:[%s23953_s1 + $0xb8] sm:$0xff] }
  0x8f   : > { %2094 = vrot.lane.b32.xlu1 %v17383_v21, %s17233_s30  ;;  %14985 = vmatprep.subr.mxu0 %v251_v43 }
  0x90   : > { %14986 = vmatpush3.msra.mxu0 %v251_v43  ;;  %v247_v46 = vpop.permute.xlu0 %246  ;;  %v245_v47 = vpop.permute.xlu1 %244  ;;  %v17708_v43 = vld [vmem:[%s23953_s1 + $0xb0] sm:$0xff] }
  0x91   : > { %14987 = vmatprep.subr.mxu0 %v249_v45 }
  0x92   : > { %14988 = vmatpush3.msra.mxu0 %v249_v45  ;;  %2092 = vrot.lane.b32.xlu0 %v17399_v24, %s17233_s30 }
  0x93   : > { %2090 = vrot.lane.b32.xlu1 %v17411_v25, %s17233_s30  ;;  %14989 = vmatprep.subr.mxu0 %v247_v46 }
  0x94   : > { %14990 = vmatpush3.msra.mxu0 %v247_v46  ;;  %v243_v48 = vpop.permute.xlu0 %242  ;;  %v241_v49 = vpop.permute.xlu1 %240 }
  0x95   : > { %14991 = vmatprep.subr.mxu0 %v245_v47 }
  0x96   : > { %14992 = vmatpush3.msra.mxu0 %v245_v47  ;;  %2434 = vrot.lane.b32.xlu0 %v17468_v34, %s17232_s25  ;;  %v17722_v47 = vld [vmem:[%s17294_s24 + $0xd0] sm:$0xff] }
  0x97   : > { %2432 = vrot.lane.b32.xlu1 %v17471_v35, %s17232_s25  ;;  %14993 = vmatprep.subr.mxu0 %v243_v48 }
  0x98   : > { %14994 = vmatpush3.msra.mxu0 %v243_v48  ;;  %v547_v50 = vpop.permute.xlu0 %546  ;;  %v545_v51 = vpop.permute.xlu1 %544  ;;  %v17730_v48 = vld [vmem:[%s23953_s1 + $0x100] sm:$0xff] }
  0x99   : > { %14995 = vmatprep.subr.mxu0 %v241_v49 }
  0x9a   : > { %2430 = vrot.lane.b32.xlu0 %v17478_v36, %s17232_s25  ;;  %14996 = vmatpush3.msra.mxu0 %v241_v49  ;;  %v17737_v49 = vld [vmem:[%s23953_s1 + $0x108] sm:$0xff] }
  0x9b   : > { %2428 = vrot.lane.b32.xlu1 %v17481_v37, %s17232_s25  ;;  %15037 = vmatprep.subr.mxu0 %v547_v50 }
  0x9c   : > { %v543_v54 = vpop.permute.xlu0 %542  ;;  %14998 = vmatmul.mubr.msk.f32.vlgmr.msra.gmra.mxu0 %vm264_vm0, %v17562_v52  ;;  %v541_v55 = vpop.permute.xlu1 %540 }
  0x9d   : > { %15038 = vmatpush3.msra.mxu0 %v547_v50  ;;  %15000 = vmatprep.mubr.msk.f32.mxu0 %vm264_vm0, %v17569_v53  ;;  %v17744_v50 = vld [vmem:[%s23953_s1 + $0x148] sm:$0xff] }
  0x9e   : > { %15039 = vmatprep.subr.mxu0 %v545_v51  ;;  %2426 = vrot.lane.b32.xlu0 %v17488_v38, %s17232_s25 }
  0x9f   : > { %2424 = vrot.lane.b32.xlu1 %v17491_v39, %s17232_s25  ;;  %15040 = vmatpush3.msra.mxu0 %v545_v51 }
  0xa0   : > { %15041 = vmatprep.subr.mxu0 %v543_v54  ;;  %v539_v58 = vpop.permute.xlu0 %538  ;;  %15001 = vmatmul.mubr.msk.f32.gmra.mxu0 %vm264_vm0, %v17580_v56  ;;  %v537_v59 = vpop.permute.xlu1 %536 }
  0xa1   : > { %15042 = vmatpush3.msra.mxu0 %v543_v54  ;;  %15003 = vmatprep.mubr.msk.f32.mxu0 %vm264_vm0, %v17587_v57 }
  0xa2   : > { %15043 = vmatprep.subr.mxu0 %v541_v55  ;;  %2422 = vrot.lane.b32.xlu0 %v17498_v40, %s17232_s25 }
  0xa3   : > { %2420 = vrot.lane.b32.xlu1 %v17501_v41, %s17232_s25  ;;  %15044 = vmatpush3.msra.mxu0 %v541_v55  ;;  %v17749_v55 = vld [vmem:[%s17294_s24 + $0xc8] sm:$0xff] }
  0xa4   : > { %15045 = vmatprep.subr.mxu0 %v539_v58  ;;  %v535_v62 = vpop.permute.xlu0 %534  ;;  %15004 = vmatmul.mubr.msk.f32.gmra.mxu0 %vm264_vm0, %v17598_v60  ;;  %v533_v63 = vpop.permute.xlu1 %532 }
  0xa5   : > { %15046 = vmatpush3.msra.mxu0 %v539_v58  ;;  %15006 = vmatprep.mubr.msk.f32.mxu0 %vm264_vm0, %v17605_v61  ;;  %v17763_v58 = vld [vmem:[%s23953_s1 + $0x110] sm:$0xff] }
  0xa6   : > { %15047 = vmatprep.subr.mxu0 %v537_v59  ;;  %2603 = vrot.lane.b32.xlu0 %v17468_v34, %s17233_s30 }
  0xa7   : > { %2601 = vrot.lane.b32.xlu1 %v17471_v35, %s17233_s30  ;;  %15048 = vmatpush3.msra.mxu0 %v537_v59 }
  0xa8   : > { %15049 = vmatprep.subr.mxu0 %v535_v62  ;;  %v882_v2 = vpop.permute.xlu0 %881  ;;  %15007 = vmatmul.mubr.msk.f32.gmra.mxu0 %vm264_vm0, %v17616_v0  ;;  %v880_v3 = vpop.permute.xlu1 %879 }
  0xa9   : > { %15050 = vmatpush3.msra.mxu0 %v535_v62  ;;  %15053 = vmatprep.mubr.msk.f32.mxu0 %vm264_vm0, %v17623_v1 }
  0xaa   : > { %15051 = vmatprep.subr.mxu0 %v533_v63  ;;  %2599 = vrot.lane.b32.xlu0 %v17478_v36, %s17233_s30 }
  0xab   : > { %2597 = vrot.lane.b32.xlu1 %v17481_v37, %s17233_s30  ;;  %15052 = vmatpush3.msra.mxu0 %v533_v63  ;;  %v17768_v63 = vld [vmem:[%s17294_s24 + $0xc0] sm:$0xff] }
  0xac   : > { %15093 = vmatprep.subr.mxu0 %v882_v2  ;;  %v1052_v5 = vpop.permute.xlu0 %1051  ;;  %15054 = vmatmul.mubr.msk.f32.vlgmr.msra.gmra.mxu0 %vm264_vm0, %v17634_v4  ;;  %v878_v7 = vpop.permute.xlu1 %877 }
  0xad   : > { %15094 = vmatpush3.msra.mxu0 %v882_v2  ;;  %15121 = vmatprep.subr.mxu1 %v1052_v5  ;;  %v17775_v2 = vld [vmem:[%s23953_s1 + $0x118] sm:$0xff] }
  0xae   : > { %15095 = vmatprep.subr.mxu0 %v880_v3  ;;  %2595 = vrot.lane.b32.xlu0 %v17488_v38, %s17233_s30 }
  0xaf   : > { %2593 = vrot.lane.b32.xlu1 %v17491_v39, %s17233_s30  ;;  %15096 = vmatpush3.msra.mxu0 %v880_v3 }
  0xb0   : > { %15122 = vmatpush3.msra.mxu1 %v1052_v5  ;;  %15097 = vmatprep.subr.mxu0 %v878_v7  ;;  %v1050_v8 = vpop.permute.xlu0 %1049  ;;  %v876_v9 = vpop.permute.xlu1 %875 }
  0xb1   : > { %15098 = vmatpush3.msra.mxu0 %v878_v7  ;;  %15123 = vmatprep.subr.mxu1 %v1050_v8  ;;  %v17787_v7 = vld [vmem:[%s23953_s1 + $0x120] sm:$0xff] }
  0xb2   : > { %2591 = vrot.lane.b32.xlu0 %v17498_v40, %s17233_s30  ;;  %15099 = vmatprep.subr.mxu0 %v876_v9 }
  0xb3   : > { %2589 = vrot.lane.b32.xlu1 %v17501_v41, %s17233_s30  ;;  %15124 = vmatpush3.msra.mxu1 %v1050_v8  ;;  %v17793_v8 = vld [vmem:[%s23953_s1 + $0x150] sm:$0xff] }
  0xb4   : > { %15100 = vmatpush3.msra.mxu0 %v876_v9  ;;  %v1048_v14 = vpop.permute.xlu0 %1047  ;;  %v874_v16 = vpop.permute.xlu1 %873  ;;  %15056 = vmatprep.mubr.msk.f32.mxu0 %vm264_vm0, %v17649_v10  ;;  %v17802_v9 = vld [vmem:[%s23953_s1 + $0x128] sm:$0xff] }
  0xb5   : > { %15125 = vmatprep.subr.mxu1 %v1048_v14  ;;  %15101 = vmatprep.subr.mxu0 %v874_v16 }
  0xb6   : > { %2936 = vrot.lane.b32.xlu0 %v17656_v11, %s17232_s25  ;;  %15126 = vmatpush3.msra.mxu1 %v1048_v14 }
  0xb7   : > { %2934 = vrot.lane.b32.xlu1 %v17659_v18, %s17232_s25  ;;  %15102 = vmatpush3.msra.mxu0 %v874_v16 }
  0xb8   : > { %v1046_v22 = vpop.permute.xlu0 %1045  ;;  %v872_v23 = vpop.permute.xlu1 %871  ;;  %15057 = vmatmul.mubr.msk.f32.gmra.mxu0 %vm264_vm0, %v17666_v19 }
  0xb9   : > { %15127 = vmatprep.subr.mxu1 %v1046_v22  ;;  %15103 = vmatprep.subr.mxu0 %v872_v23 }
  0xba   : > { %3105 = vrot.lane.b32.xlu0 %v17656_v11, %s17233_s30  ;;  %15128 = vmatpush3.msra.mxu1 %v1046_v22  ;;  %v17810_v22 = vld [vmem:[%s23953_s1 + $0x158] sm:$0xff] }
  0xbb   : > { %2932 = vrot.lane.b32.xlu1 %v17673_v26, %s17232_s25  ;;  %15104 = vmatpush3.msra.mxu0 %v872_v23  ;;  %24005 = vst [vmem:[#allocation2_spill] sm:$0xff] %v17810_v22  ;;  %v17824_v23 = vld [vmem:[%s23953_s1 + $0x130] sm:$0xff] }
  0xbc   : > { %v1044_v28 = vpop.permute.xlu0 %1043  ;;  %v870_v29 = vpop.permute.xlu1 %869  ;;  %15059 = vmatprep.mubr.msk.f32.mxu0 %vm264_vm0, %v17680_v27 }
  0xbd   : > { %15129 = vmatprep.subr.mxu1 %v1044_v28  ;;  %15105 = vmatprep.subr.mxu0 %v870_v29 }
  0xbe   : > { %3103 = vrot.lane.b32.xlu0 %v17659_v18, %s17233_s30  ;;  %15130 = vmatpush3.msra.mxu1 %v1044_v28 }
  0xbf   : > { %2930 = vrot.lane.b32.xlu1 %v17687_v30, %s17232_s25  ;;  %15106 = vmatpush3.msra.mxu0 %v870_v29 }
  0xc0   : > { %v1042_v32 = vpop.permute.xlu0 %1041  ;;  %v868_v33 = vpop.permute.xlu1 %867  ;;  %15060 = vmatmul.mubr.msk.f32.gmra.mxu0 %vm264_vm0, %v17694_v31 }
  0xc1   : > { %15131 = vmatprep.subr.mxu1 %v1042_v32  ;;  %15107 = vmatprep.subr.mxu0 %v868_v33 }
  0xc2   : > { %3101 = vrot.lane.b32.xlu0 %v17673_v26, %s17233_s30  ;;  %15132 = vmatpush3.msra.mxu1 %v1042_v32  ;;  %v17830_v32 = vld [vmem:[%s23953_s1 + $0x160] sm:$0xff] }
  0xc3   : > { %2928 = vrot.lane.b32.xlu1 %v17701_v42, %s17232_s25  ;;  %15108 = vmatpush3.msra.mxu0 %v868_v33  ;;  %24006 = vst [vmem:[#allocation3_spill] sm:$0xff] %v17830_v32  ;;  %v17838_v33 = vld [vmem:[%s23953_s1 + $0x138] sm:$0xff] }
  0xc4   : > { %v1040_v45 = vpop.permute.xlu0 %1039  ;;  %v1038_v46 = vpop.permute.xlu1 %1037  ;;  %15062 = vmatprep.mubr.msk.f32.mxu0 %vm264_vm0, %v17708_v43  ;;  %15149 = vmatprep.subr.mxu0 %v17468_v34 }
  0xc5   : > { %15133 = vmatprep.subr.mxu1 %v1040_v45  ;;  %15063 = vmatmul.mubr.msk.f32.gmra.mxu0 %vm264_vm0, %v17715_v44 }
  0xc6   : > { %3099 = vrot.lane.b32.xlu0 %v17687_v30, %s17233_s30  ;;  %15134 = vmatpush3.msra.mxu1 %v1040_v45  ;;  %v17846_v45 = vld [vmem:[%s23953_s1 + $0x168] sm:$0xff] }
  0xc7   : > { %2926 = vrot.lane.b32.xlu1 %v17722_v47, %s17232_s25  ;;  %15135 = vmatprep.subr.mxu1 %v1038_v46  ;;  %24007 = vst [vmem:[#allocation4_spill] sm:$0xff] %v17846_v45 }
  0xc8   : > { %v1387_v51 = vpop.permute.xlu0 %1386  ;;  %v1385_v54 = vpop.permute.xlu1 %1384  ;;  %15136 = vmatpush3.msra.mxu1 %v1038_v46  ;;  %15109 = vmatprep.mubr.msk.f32.mxu0 %vm264_vm0, %v17730_v48 }
  0xc9   : > { %15177 = vmatprep.subr.mxu1 %v1387_v51  ;;  %15110 = vmatmul.mubr.msk.f32.vlgmr.msra.gmra.mxu0 %vm264_vm0, %v17737_v49 }
  0xca   : > { %3097 = vrot.lane.b32.xlu0 %v17701_v42, %s17233_s30  ;;  %15138 = vmatmul.mubr.msk.f32.vlgmr.msra.gmra.mxu1 %vm264_vm0, %v17744_v50 }
  0xcb   : > { %2924 = vrot.lane.b32.xlu1 %v17749_v55, %s17232_s25  ;;  %15150 = vmatpush3.msra.mxu0 %v17468_v34 }
  0xcc   : > { %15178 = vmatpush3.msra.mxu1 %v1387_v51  ;;  %15151 = vmatprep.subr.mxu0 %v17471_v35  ;;  %v1383_v59 = vpop.permute.xlu0 %1382  ;;  %v1381_v62 = vpop.permute.xlu1 %1380 }
  0xcd   : > { %15179 = vmatprep.subr.mxu1 %v1385_v54  ;;  %15152 = vmatpush3.msra.mxu0 %v17471_v35 }
  0xce   : > { %15180 = vmatpush3.msra.mxu1 %v1385_v54  ;;  %15112 = vmatprep.mubr.msk.f32.mxu0 %vm264_vm0, %v17763_v58  ;;  %v17860_v54 = vld [vmem:[%s23953_s1 + $0x170] sm:$0xff] }
  0xcf   : > { %15153 = vmatprep.subr.mxu0 %v17478_v36  ;;  %15181 = vmatprep.subr.mxu1 %v1383_v59  ;;  %24008 = vst [vmem:[#allocation5_spill] sm:$0xff] %v17860_v54 }
  0xd0   : > { %3095 = vrot.lane.b32.xlu0 %v17722_v47, %s17233_s30  ;;  %2922 = vrot.lane.b32.xlu1 %v17768_v63, %s17232_s25  ;;  %v1379_v3 = vpop.permute.xlu0 %1378  ;;  %v1377_v5 = vpop.permute.xlu1 %1376 }
  0xd1   : > { %15113 = vmatmul.mubr.msk.f32.gmra.mxu0 %vm264_vm0, %v17775_v2  ;;  %15182 = vmatpush3.msra.mxu1 %v1383_v59  ;;  %v17866_v59 = vld [vmem:[%s23953_s1 + $0x180] sm:$0xff] }
  0xd2   : > { %15154 = vmatpush3.msra.mxu0 %v17478_v36  ;;  %15183 = vmatprep.subr.mxu1 %v1381_v62 }
  0xd3   : > { %15155 = vmatprep.subr.mxu0 %v17481_v37  ;;  %15184 = vmatpush3.msra.mxu1 %v1381_v62 }
  0xd4   : > { %15156 = vmatpush3.msra.mxu0 %v17481_v37  ;;  %15115 = vmatprep.mubr.msk.f32.mxu0 %vm264_vm0, %v17787_v7  ;;  %v1375_v14 = vpop.permute.xlu0 %1374  ;;  %v1373_v16 = vpop.permute.xlu1 %1372 }
  0xd5   : > { %15140 = vmatprep.mubr.msk.f32.mxu1 %vm264_vm0, %v17793_v8  ;;  %15157 = vmatprep.subr.mxu0 %v17488_v38 }
  0xd6   : > { %15185 = vmatprep.subr.mxu1 %v1379_v3  ;;  %3093 = vrot.lane.b32.xlu0 %v17749_v55, %s17233_s30 }
  0xd7   : > { %3091 = vrot.lane.b32.xlu1 %v17768_v63, %s17233_s30  ;;  %15116 = vmatmul.mubr.msk.f32.gmra.mxu0 %vm264_vm0, %v17802_v9 }
  0xd8   : > { %15141 = vmatmul.mubr.msk.f32.gmra.mxu1 %vm264_vm0, %v17810_v22  ;;  %15158 = vmatpush3.msra.mxu0 %v17488_v38  ;;  %v1557_v28 = vpop.permute.xlu0 %1556  ;;  %v1555_v29 = vpop.permute.xlu1 %1554 }
  0xd9   : > { %15186 = vmatpush3.msra.mxu1 %v1379_v3  ;;  %15159 = vmatprep.subr.mxu0 %v17491_v39 }
  0xda   : > { %15187 = vmatprep.subr.mxu1 %v1377_v5  ;;  %15160 = vmatpush3.msra.mxu0 %v17491_v39 }
  0xdb   : > { %15188 = vmatpush3.msra.mxu1 %v1377_v5  ;;  %15118 = vmatprep.mubr.msk.f32.mxu0 %vm264_vm0, %v17824_v23  ;;  %v17874_v5 = vld [vmem:[%s23953_s1 + $0x178] sm:$0xff] }
  0xdc   : > { %15143 = vmatprep.mubr.msk.f32.mxu1 %vm264_vm0, %v17830_v32  ;;  %15161 = vmatprep.subr.mxu0 %v17498_v40  ;;  %v1815_v46 = vpop.permute.xlu0 %1814  ;;  %v1553_v51 = vpop.permute.xlu1 %1552  ;;  %24009 = vst [vmem:[#allocation6_spill] sm:$0xff] %v17874_v5  ;;  %v17901_v32 = vld [vmem:[%s23953_s1 + $0x1c8] sm:$0xff] }
  0xdd   : > { %15189 = vmatprep.subr.mxu1 %v1375_v14  ;;  %3323 = vrot.lane.b32.xlu0 %v17468_v34, %s17232_s25  ;;  %24011 = vst [vmem:[#allocation8_spill] sm:$0xff] %v17901_v32 }
  0xde   : > { %3321 = vrot.lane.b32.xlu1 %v17471_v35, %s17232_s25  ;;  %15119 = vmatmul.mubr.msk.f32.gmra.mxu0 %vm264_vm0, %v17838_v33 }
  0xdf   : > { %15144 = vmatmul.mubr.msk.f32.gmra.mxu1 %vm264_vm0, %v17846_v45  ;;  %15162 = vmatpush3.msra.mxu0 %v17498_v40 }
  0xe0   : > { %15190 = vmatpush3.msra.mxu1 %v1375_v14  ;;  %15163 = vmatprep.subr.mxu0 %v17501_v41  ;;  %v1813_v62 = vpop.permute.xlu0 %1812  ;;  %v1551_v3 = vpop.permute.xlu1 %1550  ;;  %v17879_v14 = vld [vmem:[%s23953_s1 + $0x188] sm:$0xff] }
  0xe1   : > { %15191 = vmatprep.subr.mxu1 %v1373_v16  ;;  %15164 = vmatpush3.msra.mxu0 %v17501_v41 }
  0xe2   : > { %15192 = vmatpush3.msra.mxu1 %v1373_v16  ;;  %15146 = vmatprep.mubr.msk.f32.mxu1 %vm264_vm0, %v17860_v54  ;;  %v17886_v16 = vld [vmem:[%s23953_s1 + $0x1c0] sm:$0xff] }
  0xe3   : > { %15165 = vmatprep.mubr.msk.f32.mxu0 %vm264_vm0, %v17866_v59  ;;  %15205 = vmatprep.subr.mxu0 %v1557_v28  ;;  %24010 = vst [vmem:[#allocation7_spill] sm:$0xff] %v17886_v16 }
  0xe4   : > { %3319 = vrot.lane.b32.xlu0 %v17478_v36, %s17232_s25  ;;  %3317 = vrot.lane.b32.xlu1 %v17481_v37, %s17232_s25  ;;  %v1811_v54 = vpop.permute.xlu0 %1810  ;;  %v1549_v45 = vpop.permute.xlu1 %1548 }
  0xe5   : > { %15147 = vmatmul.mubr.msk.f32.gmra.mxu1 %vm264_vm0, %v17874_v5  ;;  %15166 = vmatmul.mubr.msk.f32.vlgmr.msra.gmra.mxu0 %vm264_vm0, %v17879_v14 }
  0xe6   : > { %15206 = vmatpush3.msra.mxu0 %v1557_v28  ;;  %15193 = vmatprep.mubr.msk.f32.mxu1 %vm264_vm0, %v17886_v16  ;;  %v17969_v16 = vld [vmem:[%s23953_s1 + $0x1e8] sm:$0xff] }
  0xe7   : > { %15207 = vmatprep.subr.mxu0 %v1555_v29  ;;  %15233 = vmatprep.subr.mxu1 %v1815_v46  ;;  %24019 = vst [vmem:[#allocation16_spill] sm:$0xff] %v17969_v16 }
  0xe8   : > { %15208 = vmatpush3.msra.mxu0 %v1555_v29  ;;  %3315 = vrot.lane.b32.xlu0 %v17488_v38, %s17232_s25  ;;  %v1809_v22 = vpop.permute.xlu0 %1808  ;;  %v1547_v5 = vpop.permute.xlu1 %1546 }
  0xe9   : > { %3313 = vrot.lane.b32.xlu1 %v17491_v39, %s17232_s25  ;;  %15194 = vmatmul.mubr.msk.f32.vlgmr.msra.gmra.mxu1 %vm264_vm0, %v17901_v32 }
  0xea   : > { %15209 = vmatprep.subr.mxu0 %v1553_v51  ;;  %15234 = vmatpush3.msra.mxu1 %v1815_v46  ;;  %v17918_v46 = vld [vmem:[%s23953_s1 + $0x190] sm:$0xff] }
  0xeb   : > { %15210 = vmatpush3.msra.mxu0 %v1553_v51  ;;  %15235 = vmatprep.subr.mxu1 %v1813_v62  ;;  %24012 = vst [vmem:[#allocation9_spill] sm:$0xff] %v17918_v46 }
  0xec   : > { %3311 = vrot.lane.b32.xlu0 %v17498_v40, %s17232_s25  ;;  %15211 = vmatprep.subr.mxu0 %v1551_v3  ;;  %v1807_v28 = vpop.permute.xlu0 %1806  ;;  %v1545_v29 = vpop.permute.xlu1 %1544 }
  0xed   : > { %3309 = vrot.lane.b32.xlu1 %v17501_v41, %s17232_s25  ;;  %15236 = vmatpush3.msra.mxu1 %v1813_v62  ;;  %v17925_v62 = vld [vmem:[%s23953_s1 + $0x1d0] sm:$0xff] }
  0xee   : > { %15212 = vmatpush3.msra.mxu0 %v1551_v3  ;;  %15237 = vmatprep.subr.mxu1 %v1811_v54  ;;  %24013 = vst [vmem:[#allocation10_spill] sm:$0xff] %v17925_v62 }
  0xef   : > { %15213 = vmatprep.subr.mxu0 %v1549_v45  ;;  %15238 = vmatpush3.msra.mxu1 %v1811_v54  ;;  %v17937_v54 = vld [vmem:[%s23953_s1 + $0x1d8] sm:$0xff] }
  0xf0   : > { %3613 = vrot.lane.b32.xlu0 %v17468_v34, %s17233_s30  ;;  %15214 = vmatpush3.msra.mxu0 %v1549_v45  ;;  %v1805_v51 = vpop.permute.xlu0 %1804  ;;  %v1543_v32 = vpop.permute.xlu1 %1542  ;;  %v17932_v45 = vld [vmem:[%s23953_s1 + $0x198] sm:$0xff]  ;;  %24015 = vst [vmem:[#allocation12_spill] sm:$0xff] %v17937_v54 }
  0xf1   : > { %3611 = vrot.lane.b32.xlu1 %v17471_v35, %s17233_s30  ;;  %15239 = vmatprep.subr.mxu1 %v1809_v22  ;;  %24014 = vst [vmem:[#allocation11_spill] sm:$0xff] %v17932_v45 }
  0xf2   : > { %15215 = vmatprep.subr.mxu0 %v1547_v5  ;;  %15240 = vmatpush3.msra.mxu1 %v1809_v22 }
  0xf3   : > { %15216 = vmatpush3.msra.mxu0 %v1547_v5  ;;  %15168 = vmatprep.mubr.msk.f32.mxu0 %vm264_vm0, %v17918_v46  ;;  %v17952_v5 = vld [vmem:[%s23953_s1 + $0x1a0] sm:$0xff]  ;;  %v18005_v46 = vld [vmem:[%s23953_s1 + $0x1f8] sm:$0xff] }
  0xf4   : > { %3609 = vrot.lane.b32.xlu0 %v17478_v36, %s17233_s30  ;;  %15196 = vmatprep.mubr.msk.f32.mxu1 %vm264_vm0, %v17925_v62  ;;  %v1803_v22 = vpop.permute.xlu0 %1802  ;;  %v1801_v3 = vpop.permute.xlu1 %1800  ;;  %24016 = vst [vmem:[#allocation13_spill] sm:$0xff] %v17952_v5  ;;  %v17957_v62 = vld [vmem:[%s23953_s1 + $0x1e0] sm:$0xff]  ;;  %24023 = vst [vmem:[#allocation20_spill] sm:$0xff] %v18005_v46 }
  0xf5   : > { %3607 = vrot.lane.b32.xlu1 %v17481_v37, %s17233_s30  ;;  %15241 = vmatprep.subr.mxu1 %v1807_v28  ;;  %24017 = vst [vmem:[#allocation14_spill] sm:$0xff] %v17957_v62 }
  0xf6   : > { %15169 = vmatmul.mubr.msk.f32.gmra.mxu0 %vm264_vm0, %v17932_v45  ;;  %15197 = vmatmul.mubr.msk.f32.gmra.mxu1 %vm264_vm0, %v17937_v54  ;;  %v17964_v54 = vld [vmem:[%s23953_s1 + $0x1a8] sm:$0xff] }
  0xf7   : > { %15217 = vmatprep.subr.mxu0 %v1545_v29  ;;  %15242 = vmatpush3.msra.mxu1 %v1807_v28  ;;  %24018 = vst [vmem:[#allocation15_spill] sm:$0xff] %v17964_v54 }
  0xf8   : > { %3605 = vrot.lane.b32.xlu0 %v17488_v38, %s17233_s30  ;;  %15218 = vmatpush3.msra.mxu0 %v1545_v29  ;;  %v2105_v28 = vpop.permute.xlu0 %2104  ;;  %v2103_v45 = vpop.permute.xlu1 %2102  ;;  %v17984_v29 = vld [vmem:[%s23953_s1 + $0x1b0] sm:$0xff] }
  0xf9   : > { %3603 = vrot.lane.b32.xlu1 %v17491_v39, %s17233_s30  ;;  %15171 = vmatprep.mubr.msk.f32.mxu0 %vm264_vm0, %v17952_v5  ;;  %24020 = vst [vmem:[#allocation17_spill] sm:$0xff] %v17984_v29 }
  0xfa   : > { %15199 = vmatprep.mubr.msk.f32.mxu1 %vm264_vm0, %v17957_v62  ;;  %15243 = vmatprep.subr.mxu1 %v1805_v51  ;;  %v17991_v62 = vld [vmem:[%s23953_s1 + $0x1f0] sm:$0xff] }
  0xfb   : > { %15172 = vmatmul.mubr.msk.f32.gmra.mxu0 %vm264_vm0, %v17964_v54  ;;  %15200 = vmatmul.mubr.msk.f32.gmra.mxu1 %vm264_vm0, %v17969_v16  ;;  %24021 = vst [vmem:[#allocation18_spill] sm:$0xff] %v17991_v62  ;;  %v17998_v16 = vld [vmem:[%s23953_s1 + $0x1b8] sm:$0xff] }
  0xfc   : > { %3601 = vrot.lane.b32.xlu0 %v17498_v40, %s17233_s30  ;;  %15219 = vmatprep.subr.mxu0 %v1543_v32  ;;  %v2101_v5 = vpop.permute.xlu0 %2100  ;;  %24022 = vst [vmem:[#allocation19_spill] sm:$0xff] %v17998_v16 }
  0xfd   : > { %3599 = vrot.lane.b32.xlu1 %v17501_v41, %s17233_s30  ;;  %15244 = vmatpush3.msra.mxu1 %v1805_v51  ;;  %v2099_v54 = vpop.permute.xlu1 %2098  ;;  %v18012_v51 = vld [vmem:[%s23953_s1 + $0x200] sm:$0xff] }
  0xfe   : > { %15220 = vmatpush3.msra.mxu0 %v1543_v32  ;;  %15174 = vmatprep.mubr.msk.f32.mxu0 %vm264_vm0, %v17984_v29 }
  0xff   : > { %15202 = vmatprep.mubr.msk.f32.mxu1 %vm264_vm0, %v17991_v62  ;;  %15245 = vmatprep.subr.mxu1 %v1803_v22 }
 0x100   : > { %3943 = vrot.lane.b32.xlu0 %v17656_v11, %s17232_s25  ;;  %15175 = vmatmul.mubr.msk.f32.gmra.mxu0 %vm264_vm0, %v17998_v16  ;;  %v2097_v32 = vpop.permute.xlu0 %2096  ;;  %v18029_v16 = vld [vmem:[%s23953_s1 + $0x208] sm:$0xff] }
 0x101   : > { %3941 = vrot.lane.b32.xlu1 %v17659_v18, %s17232_s25  ;;  %15203 = vmatmul.mubr.msk.f32.gmra.mxu1 %vm264_vm0, %v18005_v46  ;;  %v2095_v62 = vpop.permute.xlu1 %2094 }
 0x102   : > { %15246 = vmatpush3.msra.mxu1 %v1803_v22  ;;  %15221 = vmatprep.mubr.msk.f32.mxu0 %vm264_vm0, %v18012_v51 }
 0x103   : > { %15247 = vmatprep.subr.mxu1 %v1801_v3  ;;  %15249 = vmatprep.mubr.msk.f32.mxu1 %vm264_vm0, %v17309_v6  ;;  %v18048_v6 = vld [vmem:[%s23953_s1 + $0x210] sm:$0xff] }
 0x104   : > { %15248 = vmatpush3.msra.mxu1 %v1801_v3  ;;  %15261 = vmatprep.subr.mxu0 %v17334_v12  ;;  %v18032_v29 = vpop.permute.xlu0 %2092 }
 0x105   : > { %15289 = vmatprep.subr.mxu1 %v2105_v28  ;;  %4112 = vrot.lane.b32.xlu0 %v17656_v11, %s17233_s30  ;;  %v18036_v22 = vpop.permute.xlu1 %2090 }
 0x106   : > { %3939 = vrot.lane.b32.xlu1 %v17673_v26, %s17232_s25  ;;  %15222 = vmatmul.mubr.msk.f32.vlgmr.msra.gmra.mxu0 %vm264_vm0, %v18029_v16 }
 0x107   : > { %15250 = vmatmul.mubr.msk.f32.vlgmr.msra.gmra.mxu1 %vm264_vm0, %v17562_v52  ;;  %15262 = vmatpush3.msra.mxu0 %v17334_v12  ;;  %v18061_v12 = vld [vmem:[%s23953_s1 + $0x218] sm:$0xff] }
 0x108   : > { %15290 = vmatpush3.msra.mxu1 %v2105_v28  ;;  %15263 = vmatprep.subr.mxu0 %v17343_v13  ;;  %v18051_v3 = vpop.permute.xlu0 %2434 }
 0x109   : > { %15291 = vmatprep.subr.mxu1 %v2103_v45  ;;  %15264 = vmatpush3.msra.mxu0 %v17343_v13  ;;  %v18054_v46 = vpop.permute.xlu1 %2432 }
 0x10a   : > { %15292 = vmatpush3.msra.mxu1 %v2103_v45  ;;  %15224 = vmatprep.mubr.msk.f32.mxu0 %vm264_vm0, %v18048_v6 }
 0x10b   : > { %15252 = vmatprep.mubr.msk.f32.mxu1 %vm264_vm0, %v17569_v53  ;;  %15265 = vmatprep.subr.mxu0 %v17350_v15  ;;  %v18082_v53 = vld [vmem:[%s23953_s1 + $0x220] sm:$0xff] }
 0x10c   : > { %15293 = vmatprep.subr.mxu1 %v2101_v5  ;;  %4110 = vrot.lane.b32.xlu0 %v17659_v18, %s17233_s30  ;;  %v18068_v13 = vpop.permute.xlu0 %2430 }
 0x10d   : > { %3937 = vrot.lane.b32.xlu1 %v17687_v30, %s17232_s25  ;;  %15225 = vmatmul.mubr.msk.f32.gmra.mxu0 %vm264_vm0, %v18061_v12  ;;  %v18074_v52 = vpop.permute.xlu1 %2428 }
 0x10e   : > { %15253 = vmatmul.mubr.msk.f32.gmra.mxu1 %vm264_vm0, %v17580_v56  ;;  %15266 = vmatpush3.msra.mxu0 %v17350_v15  ;;  %v18093_v15 = vld [vmem:[%s23953_s1 + $0x228] sm:$0xff] }
 0x10f   : > { %15294 = vmatpush3.msra.mxu1 %v2101_v5  ;;  %15267 = vmatprep.subr.mxu0 %v17361_v17 }
 0x110   : > { %15295 = vmatprep.subr.mxu1 %v2099_v54  ;;  %15268 = vmatpush3.msra.mxu0 %v17361_v17  ;;  %v18086_v45 = vpop.permute.xlu0 %2426 }
 0x111   : > { %15296 = vmatpush3.msra.mxu1 %v2099_v54  ;;  %15227 = vmatprep.mubr.msk.f32.mxu0 %vm264_vm0, %v18082_v53  ;;  %v18095_v56 = vpop.permute.xlu1 %2424 }
 0x112   : > { %15255 = vmatprep.mubr.msk.f32.mxu1 %vm264_vm0, %v17587_v57  ;;  %15269 = vmatprep.subr.mxu0 %v17378_v20  ;;  %v18114_v57 = vld [vmem:[%s23953_s1 + $0x230] sm:$0xff] }
 0x113   : > { %15297 = vmatprep.subr.mxu1 %v2097_v32  ;;  %4108 = vrot.lane.b32.xlu0 %v17673_v26, %s17233_s30 }
 0x114   : > { %3935 = vrot.lane.b32.xlu1 %v17701_v42, %s17232_s25  ;;  %15228 = vmatmul.mubr.msk.f32.gmra.mxu0 %vm264_vm0, %v18093_v15  ;;  %v18106_v17 = vpop.permute.xlu0 %2422 }
 0x115   : > { %15256 = vmatmul.mubr.msk.f32.gmra.mxu1 %vm264_vm0, %v17598_v60  ;;  %15270 = vmatpush3.msra.mxu0 %v17378_v20  ;;  %v18116_v54 = vpop.permute.xlu1 %2420  ;;  %v18125_v20 = vld [vmem:[%s23953_s1 + $0x238] sm:$0xff] }
 0x116   : > { %15298 = vmatpush3.msra.mxu1 %v2097_v32  ;;  %15271 = vmatprep.subr.mxu0 %v17383_v21 }
 0x117   : > { %15299 = vmatprep.subr.mxu1 %v2095_v62  ;;  %15272 = vmatpush3.msra.mxu0 %v17383_v21 }
 0x118   : > { %15300 = vmatpush3.msra.mxu1 %v2095_v62  ;;  %15230 = vmatprep.mubr.msk.f32.mxu0 %vm264_vm0, %v18114_v57  ;;  %v18127_v60 = vpop.permute.xlu0 %2603  ;;  %v17044_v62 = vld [vmem:[%s23953_s1 + $0x8] sm:$0xff] }
 0x119   : > { %15258 = vmatprep.mubr.msk.f32.mxu1 %vm264_vm0, %v17605_v61  ;;  %15273 = vmatprep.subr.mxu0 %v17399_v24  ;;  %v18132_v5 = vpop.permute.xlu1 %2601 }
 0x11a   : > { %15301 = vmatprep.subr.mxu1 %v18032_v29  ;;  %4106 = vrot.lane.b32.xlu0 %v17687_v30, %s17233_s30 }
 0x11b   : > { %3933 = vrot.lane.b32.xlu1 %v17722_v47, %s17232_s25  ;;  %15231 = vmatmul.mubr.msk.f32.gmra.mxu0 %vm264_vm0, %v18125_v20 }
 0x11c   : > { %15259 = vmatmul.mubr.msk.f32.gmra.mxu1 %vm264_vm0, %v17616_v0  ;;  %15274 = vmatpush3.msra.mxu0 %v17399_v24  ;;  %v18144_v21 = vpop.permute.xlu0 %2599  ;;  %v17043_v0 = vld [vmem:[%s23953_s1] sm:$0xff] }
 0x11d   : > { %15302 = vmatpush3.msra.mxu1 %v18032_v29  ;;  %15275 = vmatprep.subr.mxu0 %v17411_v25  ;;  %v18148_v61 = vpop.permute.xlu1 %2597  ;;  %v17047_v29 = vld [vmem:[%s23953_s1 + $0x20] sm:$0xff] }
 0x11e   : > { %15303 = vmatprep.subr.mxu1 %v18036_v22  ;;  %15276 = vmatpush3.msra.mxu0 %v17411_v25 }
 0x11f   : > { %15304 = vmatpush3.msra.mxu1 %v18036_v22  ;;  %15277 = vmatprep.mubr.msk.f32.mxu0 %vm264_vm0, %v17043_v0  ;;  %v18283_v0 = vld [vmem:[%s17294_s24 + $0x120] sm:$0xff] }
 0x120   : > { %15305 = vmatprep.mubr.msk.f32.mxu1 %vm264_vm0, %v17623_v1  ;;  %15317 = vmatprep.subr.mxu0 %v17468_v34  ;;  %v18160_v24 = vpop.permute.xlu0 %2595 }
 0x121   : > { %15345 = vmatprep.subr.mxu1 %v18051_v3  ;;  %4104 = vrot.lane.b32.xlu0 %v17701_v42, %s17233_s30  ;;  %v18165_v25 = vpop.permute.xlu1 %2593 }
 0x122   : > { %3931 = vrot.lane.b32.xlu1 %v17749_v55, %s17232_s25  ;;  %15278 = vmatmul.mubr.msk.f32.vlgmr.msra.gmra.mxu0 %vm264_vm0, %v17044_v62 }
 0x123   : > { %15306 = vmatmul.mubr.msk.f32.vlgmr.msra.gmra.mxu1 %vm264_vm0, %v17634_v4  ;;  %15318 = vmatpush3.msra.mxu0 %v17468_v34  ;;  %v17045_v4 = vld [vmem:[%s23953_s1 + $0x10] sm:$0xff] }
 0x124   : > { %15346 = vmatpush3.msra.mxu1 %v18051_v3  ;;  %15319 = vmatprep.subr.mxu0 %v17471_v35  ;;  %v18178_v1 = vpop.permute.xlu0 %2591  ;;  %v18241_v3 = vld [vmem:[%s17294_s24 + $0x138] sm:$0xff] }
 0x125   : > { %15347 = vmatprep.subr.mxu1 %v18054_v46  ;;  %15320 = vmatpush3.msra.mxu0 %v17471_v35  ;;  %v18182_v28 = vpop.permute.xlu1 %2589  ;;  %v17046_v35 = vld [vmem:[%s23953_s1 + $0x18] sm:$0xff] }
 0x126   : > { %15348 = vmatpush3.msra.mxu1 %v18054_v46  ;;  %15280 = vmatprep.mubr.msk.f32.mxu0 %vm264_vm0, %v17045_v4  ;;  %v18346_v4 = vld [vmem:[%s17294_s24 + $0x108] sm:$0xff] }
 0x127   : > { %15321 = vmatprep.subr.mxu0 %v17478_v36  ;;  %15349 = vmatprep.subr.mxu1 %v18068_v13 }
 0x128   : > { %4102 = vrot.lane.b32.xlu0 %v17722_v47, %s17233_s30  ;;  %3929 = vrot.lane.b32.xlu1 %v17768_v63, %s17232_s25  ;;  %v18195_v34 = vpop.permute.xlu0 %2936 }
 0x129   : > { %15281 = vmatmul.mubr.msk.f32.gmra.mxu0 %vm264_vm0, %v17046_v35  ;;  %15350 = vmatpush3.msra.mxu1 %v18068_v13  ;;  %v18202_v46 = vpop.permute.xlu1 %2934 }
 0x12a   : > { %15322 = vmatpush3.msra.mxu0 %v17478_v36  ;;  %15351 = vmatprep.subr.mxu1 %v18074_v52 }
 0x12b   : > { %15323 = vmatprep.subr.mxu0 %v17481_v37  ;;  %15352 = vmatpush3.msra.mxu1 %v18074_v52 }
 0x12c   : > { %15324 = vmatpush3.msra.mxu0 %v17481_v37  ;;  %15283 = vmatprep.mubr.msk.f32.mxu0 %vm264_vm0, %v17047_v29  ;;  %v18213_v32 = vpop.permute.xlu0 %3105  ;;  %v17048_v37 = vld [vmem:[%s23953_s1 + $0x28] sm:$0xff] }
 0x12d   : > { %15308 = vmatprep.mubr.msk.f32.mxu1 %vm264_vm0, %v17649_v10  ;;  %15325 = vmatprep.subr.mxu0 %v17488_v38  ;;  %v18218_v36 = vpop.permute.xlu1 %2932 }
 0x12e   : > { %15353 = vmatprep.subr.mxu1 %v18086_v45  ;;  %4100 = vrot.lane.b32.xlu0 %v17749_v55, %s17233_s30 }
 0x12f   : > { %4098 = vrot.lane.b32.xlu1 %v17768_v63, %s17233_s30  ;;  %15284 = vmatmul.mubr.msk.f32.gmra.mxu0 %vm264_vm0, %v17048_v37  ;;  %v24028_v37 = vld [vmem:[#allocation11_spill] sm:$0xff] }
 0x130   : > { %15309 = vmatmul.mubr.msk.f32.gmra.mxu1 %vm264_vm0, %v17666_v19  ;;  %15326 = vmatpush3.msra.mxu0 %v17488_v38  ;;  %v18232_v10 = vpop.permute.xlu0 %3103  ;;  %v17049_v38 = vld [vmem:[%s23953_s1 + $0x30] sm:$0xff] }
 0x131   : > { %15354 = vmatpush3.msra.mxu1 %v18086_v45  ;;  %15327 = vmatprep.subr.mxu0 %v17491_v39  ;;  %v18236_v22 = vpop.permute.xlu1 %2930  ;;  %v18249_v19 = vld [vmem:[%s17294_s24 + $0x130] sm:$0xff]  ;;  %v18276_v45 = vld [vmem:[%s17294_s24 + $0x80] sm:$0xff] }
 0x132   : > { %15355 = vmatprep.subr.mxu1 %v18095_v56  ;;  %15328 = vmatpush3.msra.mxu0 %v17491_v39 }
 0x133   : > { %15356 = vmatpush3.msra.mxu1 %v18095_v56  ;;  %15286 = vmatprep.mubr.msk.f32.mxu0 %vm264_vm0, %v17049_v38  ;;  %v18280_v56 = vld [vmem:[%s17294_s24 + $0x128] sm:$0xff]  ;;  %v24029_v38 = vld [vmem:[#allocation5_spill] sm:$0xff] }
 0x134   : > { %15311 = vmatprep.mubr.msk.f32.mxu1 %vm264_vm0, %v17680_v27  ;;  %15329 = vmatprep.subr.mxu0 %v17498_v40  ;;  %v18254_v39 = vpop.permute.xlu0 %3101  ;;  %v17050_v27 = vld [vmem:[%s23953_s1 + $0x38] sm:$0xff] }
 0x135   : > { %15357 = vmatprep.subr.mxu1 %v18106_v17  ;;  %4445 = vrot.lane.b32.xlu0 %v18241_v3, %s17232_s25  ;;  %v18259_v13 = vpop.permute.xlu1 %2928 }
 0x136   : > { %4443 = vrot.lane.b32.xlu1 %v18249_v19, %s17232_s25  ;;  %15287 = vmatmul.mubr.msk.f32.gmra.mxu0 %vm264_vm0, %v17050_v27  ;;  %v24032_v27 = vld [vmem:[#allocation15_spill] sm:$0xff] }
 0x137   : > { %15312 = vmatmul.mubr.msk.f32.gmra.mxu1 %vm264_vm0, %v17694_v31  ;;  %15330 = vmatpush3.msra.mxu0 %v17498_v40  ;;  %v17052_v40 = vld [vmem:[%s23953_s1 + $0xc0] sm:$0xff] }
 0x138   : > { %15358 = vmatpush3.msra.mxu1 %v18106_v17  ;;  %15331 = vmatprep.subr.mxu0 %v17501_v41  ;;  %v18272_v52 = vpop.permute.xlu0 %3099  ;;  %v17053_v41 = vld [vmem:[%s23953_s1 + $0xc8] sm:$0xff]  ;;  %v18311_v17 = vld [vmem:[%s17294_s24 + $0x118] sm:$0xff] }
 0x139   : > { %15359 = vmatprep.subr.mxu1 %v18116_v54  ;;  %15332 = vmatpush3.msra.mxu0 %v18276_v45  ;;  %v18285_v31 = vpop.permute.xlu1 %2926 }
 0x13a   : > { %15360 = vmatpush3.msra.mxu1 %v18116_v54  ;;  %15314 = vmatprep.mubr.msk.f32.mxu1 %vm264_vm0, %v17708_v43  ;;  %v17054_v43 = vld [vmem:[%s23953_s1 + $0xd0] sm:$0xff] }
 0x13b   : > { %15333 = vmatprep.mubr.msk.f32.mxu0 %vm264_vm0, %v17052_v40  ;;  %15373 = vmatprep.subr.mxu0 %v18127_v60 }
 0x13c   : > { %4441 = vrot.lane.b32.xlu0 %v18280_v56, %s17232_s25  ;;  %4439 = vrot.lane.b32.xlu1 %v18283_v0, %s17232_s25  ;;  %v18313_v54 = vpop.permute.xlu0 %3097 }
 0x13d   : > { %15315 = vmatmul.mubr.msk.f32.gmra.mxu1 %vm264_vm0, %v17715_v44  ;;  %15334 = vmatmul.mubr.msk.f32.vlgmr.msra.gmra.mxu0 %vm264_vm0, %v17053_v41  ;;  %v18315_v62 = vpop.permute.xlu1 %2924  ;;  %v18321_v44 = vld [vmem:[%s17294_s24 + $0x110] sm:$0xff]  ;;  %v24033_v41 = vld [vmem:[#allocation17_spill] sm:$0xff] }
 0x13e   : > { %15374 = vmatpush3.msra.mxu0 %v18127_v60  ;;  %15336 = vmatprep.mubr.msk.f32.mxu0 %vm264_vm0, %v17054_v43  ;;  %v24034_v43 = vld [vmem:[#allocation7_spill] sm:$0xff] }
 0x13f   : > { %15375 = vmatprep.subr.mxu0 %v18132_v5  ;;  %15361 = vmatprep.mubr.msk.f32.mxu1 %vm264_vm0, %v17730_v48  ;;  %v17055_v48 = vld [vmem:[%s23953_s1 + $0xd8] sm:$0xff] }
 0x140   : > { %15376 = vmatpush3.msra.mxu0 %v18132_v5  ;;  %15401 = vmatprep.subr.mxu1 %v17656_v11 }
 0x141   : > { %15377 = vmatprep.subr.mxu0 %v18144_v21  ;;  %4437 = vrot.lane.b32.xlu0 %v18311_v17, %s17232_s25 }
 0x142   : > { %4435 = vrot.lane.b32.xlu1 %v18321_v44, %s17232_s25  ;;  %15337 = vmatmul.mubr.msk.f32.gmra.mxu0 %vm264_vm0, %v17055_v48  ;;  %v18339_v60 = vpop.permute.xlu0 %3095  ;;  %v18341_v5 = vpop.permute.xlu1 %2922  ;;  %v24037_v48 = vld [vmem:[#allocation10_spill] sm:$0xff] }
 0x143   : > { %15362 = vmatmul.mubr.msk.f32.vlgmr.msra.gmra.mxu1 %vm264_vm0, %v17737_v49  ;;  %15378 = vmatpush3.msra.mxu0 %v18144_v21  ;;  %v17056_v49 = vld [vmem:[%s23953_s1 + $0xe0] sm:$0xff] }
 0x144   : > { %15402 = vmatpush3.msra.mxu1 %v17656_v11  ;;  %15379 = vmatprep.subr.mxu0 %v18148_v61  ;;  %v18354_v21 = vld [vmem:[%s17294_s24 + $0x100] sm:$0xff] }
 0x145   : > { %15403 = vmatprep.subr.mxu1 %v17659_v18  ;;  %15380 = vmatpush3.msra.mxu0 %v18148_v61 }
 0x146   : > { %15404 = vmatpush3.msra.mxu1 %v17659_v18  ;;  %15339 = vmatprep.mubr.msk.f32.mxu0 %vm264_vm0, %v17056_v49  ;;  %v17057_v18 = vld [vmem:[%s23953_s1 + $0xe8] sm:$0xff]  ;;  %v17062_v49 = vld [vmem:[%s17294_s24 + $0xb8] sm:$0xff] }
 0x147   : > { %15364 = vmatprep.mubr.msk.f32.mxu1 %vm264_vm0, %v17763_v58  ;;  %15381 = vmatprep.subr.mxu0 %v18160_v24 }
 0x148   : > { %15405 = vmatprep.subr.mxu1 %v17673_v26  ;;  %4433 = vrot.lane.b32.xlu0 %v18346_v4, %s17232_s25  ;;  %v18371_v58 = vpop.permute.xlu0 %3093 }
 0x149   : > { %4431 = vrot.lane.b32.xlu1 %v18354_v21, %s17232_s25  ;;  %15340 = vmatmul.mubr.msk.f32.gmra.mxu0 %vm264_vm0, %v17057_v18  ;;  %v18373_v61 = vpop.permute.xlu1 %3091  ;;  %v24038_v18 = vld [vmem:[#allocation12_spill] sm:$0xff] }
 0x14a   : > { %15365 = vmatmul.mubr.msk.f32.gmra.mxu1 %vm264_vm0, %v17775_v2  ;;  %15382 = vmatpush3.msra.mxu0 %v18160_v24  ;;  %v17058_v2 = vld [vmem:[%s23953_s1 + $0xf0] sm:$0xff] }
 0x14b   : > { %15406 = vmatpush3.msra.mxu1 %v17673_v26  ;;  %15383 = vmatprep.subr.mxu0 %v18165_v25  ;;  %v17059_v26 = vld [vmem:[%s23953_s1 + $0xf8] sm:$0xff] }
 0x14c   : > { %15407 = vmatprep.subr.mxu1 %v17687_v30  ;;  %15384 = vmatpush3.msra.mxu0 %v18165_v25 }
 0x14d   : > { %15408 = vmatpush3.msra.mxu1 %v17687_v30  ;;  %15342 = vmatprep.mubr.msk.f32.mxu0 %vm264_vm0, %v17058_v2  ;;  %v24040_v2 = vld [vmem:[#allocation16_spill] sm:$0xff] }
 0x14e   : > { %15367 = vmatprep.mubr.msk.f32.mxu1 %vm264_vm0, %v17787_v7  ;;  %15385 = vmatprep.subr.mxu0 %v18178_v1  ;;  %v17060_v7 = vld [vmem:[%s23953_s1 + $0x140] sm:$0xff] }
 0x14f   : > { %15409 = vmatprep.subr.mxu1 %v17701_v42  ;;  %4614 = vrot.lane.b32.xlu0 %v18241_v3, %s17233_s30  ;;  %v18396_v30 = vpop.permute.xlu0 %3323 }
 0x150   : > { %4612 = vrot.lane.b32.xlu1 %v18249_v19, %s17233_s30  ;;  %15343 = vmatmul.mubr.msk.f32.gmra.mxu0 %vm264_vm0, %v17059_v26  ;;  %v18398_v24 = vpop.permute.xlu1 %3321 }
 0x151   : > { %15368 = vmatmul.mubr.msk.f32.gmra.mxu1 %vm264_vm0, %v17802_v9  ;;  %15386 = vmatpush3.msra.mxu0 %v18178_v1 }
 0x152   : > { %15410 = vmatpush3.msra.mxu1 %v17701_v42  ;;  %15387 = vmatprep.subr.mxu0 %v18182_v28 }
 0x153   : > { %15411 = vmatprep.subr.mxu1 %v17722_v47  ;;  %15388 = vmatpush3.msra.mxu0 %v18182_v28 }
 0x154   : > { %15412 = vmatpush3.msra.mxu1 %v17722_v47  ;;  %15370 = vmatprep.mubr.msk.f32.mxu1 %vm264_vm0, %v17824_v23 }
 0x155   : > { %15389 = vmatprep.mubr.msk.f32.mxu0 %vm264_vm0, %v17060_v7  ;;  %15413 = vmatprep.subr.mxu1 %v17749_v55  ;;  %v18632_v7 = vld [vmem:[%s23953_s1 + $0x40] sm:$0xff] }
 0x156   : > { %15429 = vmatprep.subr.mxu0 %v18195_v34  ;;  %4832 = vrot.lane.b32.xlu0 %v17656_v11, %s17232_s25  ;;  %v18418_v42 = vpop.permute.xlu0 %3319  ;;  %v18420_v9 = vpop.permute.xlu1 %3317  ;;  %v18432_v11 = vld [vmem:[%s17294_s24 + $0xf0] sm:$0xff] }
 0x157   : > { %4610 = vrot.lane.b32.xlu1 %v18280_v56, %s17233_s30  ;;  %15371 = vmatmul.mubr.msk.f32.gmra.mxu1 %vm264_vm0, %v17838_v33  ;;  %v18451_v33 = vld [vmem:[%s17294_s24 + $0xe8] sm:$0xff] }
 0x158   : > { %15390 = vmatmul.mubr.msk.f32.vlgmr.msra.gmra.mxu0 %vm264_vm0, %v17744_v50  ;;  %15414 = vmatpush3.msra.mxu1 %v17749_v55 }
 0x159   : > { %15430 = vmatpush3.msra.mxu0 %v18195_v34  ;;  %15415 = vmatprep.subr.mxu1 %v17768_v63  ;;  %v12970_v34 = vld [vmem:[%s17294_s24 + $0xd8] sm:$0xff] }
 0x15a   : > { %15431 = vmatprep.subr.mxu0 %v18202_v46  ;;  %15416 = vmatpush3.msra.mxu1 %v17768_v63  ;;  %v18436_v23 = vpop.permute.xlu0 %3315 }
 0x15b   : > { %15432 = vmatpush3.msra.mxu0 %v18202_v46  ;;  %15417 = vmatprep.mubr.msk.f32.mxu1 %vm264_vm0, %v17866_v59  ;;  %v18441_v50 = vpop.permute.xlu1 %3313  ;;  %v24024_v46 = vld [vmem:[#allocation2_spill] sm:$0xff] }
 0x15c   : > { %15457 = vmatprep.subr.mxu1 %v18213_v32  ;;  %4830 = vrot.lane.b32.xlu0 %v18432_v11, %s17232_s25 }
 0x15d   : > { %4608 = vrot.lane.b32.xlu1 %v18283_v0, %s17233_s30  ;;  %15418 = vmatmul.mubr.msk.f32.vlgmr.msra.gmra.mxu1 %vm264_vm0, %v17879_v14  ;;  %v12971_v14 = vld [vmem:[%s17294_s24 + $0xe0] sm:$0xff] }
 0x15e   : > { %15433 = vmatprep.subr.mxu0 %v18218_v36  ;;  %15458 = vmatpush3.msra.mxu1 %v18213_v32  ;;  %v18455_v59 = vpop.permute.xlu0 %3311  ;;  %v24026_v32 = vld [vmem:[#allocation9_spill] sm:$0xff] }
 0x15f   : > { %15434 = vmatpush3.msra.mxu0 %v18218_v36  ;;  %15459 = vmatprep.subr.mxu1 %v18232_v10  ;;  %v18459_v25 = vpop.permute.xlu1 %3309  ;;  %v24027_v36 = vld [vmem:[#allocation4_spill] sm:$0xff] }
 0x160   : > { %4828 = vrot.lane.b32.xlu0 %v18451_v33, %s17232_s25  ;;  %15435 = vmatprep.subr.mxu0 %v18236_v22 }
 0x161   : > { %4606 = vrot.lane.b32.xlu1 %v18311_v17, %s17233_s30  ;;  %15460 = vmatpush3.msra.mxu1 %v18232_v10 }
 0x162   : > { %15436 = vmatpush3.msra.mxu0 %v18236_v22  ;;  %15461 = vmatprep.subr.mxu1 %v18254_v39  ;;  %v18470_v1 = vpop.permute.xlu0 %3613 }
 0x163   : > { %15437 = vmatprep.subr.mxu0 %v18259_v13  ;;  %15462 = vmatpush3.msra.mxu1 %v18254_v39  ;;  %v18474_v28 = vpop.permute.xlu1 %3611  ;;  %v24030_v39 = vld [vmem:[#allocation13_spill] sm:$0xff] }
 0x164   : > { %4826 = vrot.lane.b32.xlu0 %v12971_v14, %s17232_s25  ;;  %15438 = vmatpush3.msra.mxu0 %v18259_v13  ;;  %v24031_v13 = vld [vmem:[#allocation6_spill] sm:$0xff] }
 0x165   : > { %4604 = vrot.lane.b32.xlu1 %v18321_v44, %s17233_s30  ;;  %15463 = vmatprep.subr.mxu1 %v18272_v52 }
 0x166   : > { %15439 = vmatprep.subr.mxu0 %v18285_v31  ;;  %15464 = vmatpush3.msra.mxu1 %v18272_v52  ;;  %v18489_v35 = vpop.permute.xlu0 %3609  ;;  %v18534_v52 = vld [vmem:[%s17294_s24 + $0xf8] sm:$0xff] }
 0x167   : > { %15440 = vmatpush3.msra.mxu0 %v18285_v31  ;;  %15392 = vmatprep.mubr.msk.f32.mxu0 %vm264_vm0, %v17793_v8  ;;  %v18495_v29 = vpop.permute.xlu1 %3607  ;;  %v24025_v8 = vld [vmem:[#allocation3_spill] sm:$0xff] }
 0x168   : > { %4824 = vrot.lane.b32.xlu0 %v12970_v34, %s17232_s25  ;;  %15465 = vmatprep.subr.mxu1 %v18313_v54 }
 0x169   : > { %4602 = vrot.lane.b32.xlu1 %v18346_v4, %s17233_s30  ;;  %15393 = vmatmul.mubr.msk.f32.gmra.mxu0 %vm264_vm0, %v24024_v46 }
 0x16a   : > { %15441 = vmatprep.subr.mxu0 %v18315_v62  ;;  %15466 = vmatpush3.msra.mxu1 %v18313_v54  ;;  %v18513_v10 = vpop.permute.xlu0 %3605  ;;  %v24035_v54 = vld [vmem:[#allocation19_spill] sm:$0xff] }
 0x16b   : > { %15442 = vmatpush3.msra.mxu0 %v18315_v62  ;;  %15395 = vmatprep.mubr.msk.f32.mxu0 %vm264_vm0, %v24025_v8  ;;  %v18517_v22 = vpop.permute.xlu1 %3603  ;;  %v24036_v62 = vld [vmem:[#allocation8_spill] sm:$0xff] }
 0x16c   : > { %4822 = vrot.lane.b32.xlu0 %v17722_v47, %s17232_s25  ;;  %15420 = vmatprep.mubr.msk.f32.mxu1 %vm264_vm0, %v24026_v32  ;;  %v18737_v8 = vld [vmem:[%s23953_s1 + $0x70] sm:$0xff]  ;;  %v3289_v32 = vld [vmem:[%s23953_s1 + $0x20] sm:$0xff] }
 0x16d   : > { %4600 = vrot.lane.b32.xlu1 %v18354_v21, %s17233_s30  ;;  %15467 = vmatprep.subr.mxu1 %v18339_v60 }
 0x16e   : > { %15396 = vmatmul.mubr.msk.f32.gmra.mxu0 %vm264_vm0, %v24027_v36  ;;  %15421 = vmatmul.mubr.msk.f32.gmra.mxu1 %vm264_vm0, %v24028_v37  ;;  %v18539_v31 = vpop.permute.xlu0 %3601  ;;  %v17071_v36 = vld [vmem:[%s17294_s24 + $0xe0] sm:$0xff] }
 0x16f   : > { %15443 = vmatprep.subr.mxu0 %v18341_v5  ;;  %15468 = vmatpush3.msra.mxu1 %v18339_v60  ;;  %v18544_v40 = vpop.permute.xlu1 %3599 }
 0x170   : > { %4820 = vrot.lane.b32.xlu0 %v17749_v55, %s17232_s25  ;;  %15444 = vmatpush3.msra.mxu0 %v18341_v5 }
 0x171   : > { %4818 = vrot.lane.b32.xlu1 %v17768_v63, %s17232_s25  ;;  %15398 = vmatprep.mubr.msk.f32.mxu0 %vm264_vm0, %v24029_v38 }
 0x172   : > { %15423 = vmatprep.mubr.msk.f32.mxu1 %vm264_vm0, %v24030_v39  ;;  %15469 = vmatprep.subr.mxu1 %v18371_v58  ;;  %v18562_v60 = vpop.permute.xlu0 %3943  ;;  %v14999_v39 = vpop.f32.mrf.mxu0 }
 0x173   : > { %15399 = vmatmul.mubr.msk.f32.gmra.mxu0 %vm264_vm0, %v24031_v13  ;;  %15424 = vmatmul.mubr.msk.f32.gmra.mxu1 %vm264_vm0, %v24032_v27  ;;  %v18567_v5 = vpop.permute.xlu1 %3941  ;;  %v15027_v13 = vpop.f32.mrf.mxu1  ;;  %v17072_v27 = vld [vmem:[%s17294_s24 + $0xd8] sm:$0xff] }
 0x174   : > { %5122 = vrot.lane.b32.xlu0 %v18534_v52, %s17233_s30  ;;  %15470 = vmatpush3.msra.mxu1 %v18371_v58  ;;  %v17063_v58 = vld [vmem:[%s17294_s24 + $0xb0] sm:$0xff] }
 0x175   : > { %5120 = vrot.lane.b32.xlu1 %v18432_v11, %s17233_s30  ;;  %15471 = vmatprep.subr.mxu1 %v18373_v61 }
 0x176   : > { %15472 = vmatpush3.msra.mxu1 %v18373_v61  ;;  %15426 = vmatprep.mubr.msk.f32.mxu1 %vm264_vm0, %v24033_v41  ;;  %v3291_v41 = vld [vmem:[%s23953_s1 + $0x30] sm:$0xff] }
 0x177   : > { %15445 = vmatprep.mubr.msk.f32.mxu0 %vm264_vm0, %v24034_v43  ;;  %15485 = vmatprep.subr.mxu0 %v18396_v30  ;;  %v18775_v43 = vpop.f32.mrf.mxu0 }
 0x178   : > { %5118 = vrot.lane.b32.xlu0 %v18451_v33, %s17233_s30  ;;  %15427 = vmatmul.mubr.msk.f32.gmra.mxu1 %vm264_vm0, %v24035_v54  ;;  %v18585_v61 = vpop.permute.xlu1 %3939  ;;  %v3286_v33 = vld [vmem:[%s23953_s1 + $0x8] sm:$0xff]  ;;  %24043 = vst [vmem:[#allocation2_spill] sm:$0xff] %v18775_v43  ;;  %v18781_v54 = vld [vmem:[%s23953_s1 + $0x80] sm:$0xff] }
 0x179   : > { %5116 = vrot.lane.b32.xlu1 %v12971_v14, %s17233_s30  ;;  %15446 = vmatmul.mubr.msk.f32.vlgmr.msra.gmra.mxu0 %vm264_vm0, %v24036_v62  ;;  %v3287_v14 = vld [vmem:[%s23953_s1 + $0x10] sm:$0xff] }
 0x17a   : > { %15486 = vmatpush3.msra.mxu0 %v18396_v30  ;;  %15448 = vmatprep.mubr.msk.f32.mxu0 %vm264_vm0, %v24037_v48  ;;  %v24042_v30 = vld [vmem:[#allocation20_spill] sm:$0xff] }
 0x17b   : > { %15487 = vmatprep.subr.mxu0 %v18398_v24  ;;  %15473 = vmatprep.mubr.msk.f32.mxu1 %vm264_vm0, %v18012_v51  ;;  %v18581_v51 = vpop.permute.xlu0 %4112  ;;  %v18786_v48 = vld [vmem:[%s17294_s24 + $0xd0] sm:$0xff] }
 0x17c   : > { %15488 = vmatpush3.msra.mxu0 %v18398_v24  ;;  %15513 = vmatprep.subr.mxu1 %v17062_v49 }
 0x17d   : > { %15489 = vmatprep.subr.mxu0 %v18418_v42  ;;  %5114 = vrot.lane.b32.xlu0 %v12970_v34, %s17233_s30 }
 0x17e   : > { %5112 = vrot.lane.b32.xlu1 %v17722_v47, %s17233_s30  ;;  %15449 = vmatmul.mubr.msk.f32.gmra.mxu0 %vm264_vm0, %v24038_v18  ;;  %v24039_v47 = vld [vmem:[#allocation14_spill] sm:$0xff]  ;;  %v18800_v18 = vld [vmem:[%s17294_s24 + $0xc8] sm:$0xff] }
 0x17f   : > { %15474 = vmatmul.mubr.msk.f32.vlgmr.msra.gmra.mxu1 %vm264_vm0, %v18029_v16  ;;  %15490 = vmatpush3.msra.mxu0 %v18418_v42  ;;  %v17064_v16 = vld [vmem:[%s17294_s24 + $0xa8] sm:$0xff]  ;;  %v18605_v26 = vpop.permute.xlu1 %3937  ;;  %v17067_v42 = vld [vmem:[%s17294_s24 + $0x90] sm:$0xff] }
 0x180   : > { %15514 = vmatpush3.msra.mxu1 %v17062_v49  ;;  %15491 = vmatprep.subr.mxu0 %v18420_v9  ;;  %v3292_v49 = vld [vmem:[%s23953_s1 + $0x38] sm:$0xff] }
 0x181   : > { %15515 = vmatprep.subr.mxu1 %v17063_v58  ;;  %15492 = vmatpush3.msra.mxu0 %v18420_v9  ;;  %v18644_v9 = vld [vmem:[%s23953_s1 + $0x48] sm:$0xff] }
 0x182   : > { %15516 = vmatpush3.msra.mxu1 %v17063_v58  ;;  %15451 = vmatprep.mubr.msk.f32.mxu0 %vm264_vm0, %v24039_v47  ;;  %v15002_v58 = vpop.f32.mrf.mxu0  ;;  %v12853_v47 = vld [vmem:[%s23953_s1 + $0xc0] sm:$0xff] }
 0x183   : > { %15476 = vmatprep.mubr.msk.f32.mxu1 %vm264_vm0, %v18048_v6  ;;  %15493 = vmatprep.subr.mxu0 %v18436_v23  ;;  %v18602_v6 = vpop.permute.xlu0 %4110 }
 0x184   : > { %15517 = vmatprep.subr.mxu1 %v17064_v16  ;;  %5110 = vrot.lane.b32.xlu0 %v17749_v55, %s17233_s30  ;;  %v17065_v55 = vld [vmem:[%s17294_s24 + $0xa0] sm:$0xff] }
 0x185   : > { %5108 = vrot.lane.b32.xlu1 %v17768_v63, %s17233_s30  ;;  %15452 = vmatmul.mubr.msk.f32.gmra.mxu0 %vm264_vm0, %v24040_v2  ;;  %v24041_v63 = vld [vmem:[#allocation18_spill] sm:$0xff]  ;;  %v18822_v2 = vpop.f32.mrf.mxu0 }
 0x186   : > { %15477 = vmatmul.mubr.msk.f32.gmra.mxu1 %vm264_vm0, %v18061_v12  ;;  %15494 = vmatpush3.msra.mxu0 %v18436_v23  ;;  %v17066_v12 = vld [vmem:[%s17294_s24 + $0x98] sm:$0xff]  ;;  %v18662_v23 = vld [vmem:[%s23953_s1 + $0x50] sm:$0xff]  ;;  %24044 = vst [vmem:[#allocation3_spill] sm:$0xff] %v18822_v2 }
 0x187   : > { %15518 = vmatpush3.msra.mxu1 %v17064_v16  ;;  %15495 = vmatprep.subr.mxu0 %v18441_v50  ;;  %v18621_v24 = vpop.permute.xlu0 %4108 }
 0x188   : > { %15519 = vmatprep.subr.mxu1 %v17065_v55  ;;  %15496 = vmatpush3.msra.mxu0 %v18441_v50  ;;  %v3285_v50 = vld [vmem:[%s23953_s1] sm:$0xff] }
 0x189   : > { %15520 = vmatpush3.msra.mxu1 %v17065_v55  ;;  %15454 = vmatprep.mubr.msk.f32.mxu0 %vm264_vm0, %v24041_v63  ;;  %v18826_v55 = vld [vmem:[%s17294_s24 + $0xc0] sm:$0xff] }
 0x18a   : > { %15479 = vmatprep.mubr.msk.f32.mxu1 %vm264_vm0, %v18082_v53  ;;  %15497 = vmatprep.subr.mxu0 %v18455_v59  ;;  %v18626_v53 = vpop.permute.xlu1 %3935 }
 0x18b   : > { %15521 = vmatprep.subr.mxu1 %v17066_v12  ;;  %5452 = vrot.lane.b32.xlu0 %v18241_v3, %s17232_s25 }
 0x18c   : > { %5450 = vrot.lane.b32.xlu1 %v18249_v19, %s17232_s25  ;;  %15455 = vmatmul.mubr.msk.f32.gmra.mxu0 %vm264_vm0, %v24042_v30  ;;  %v18649_v11 = vpop.permute.xlu0 %4106  ;;  %v18836_v30 = vpop.f32.mrf.mxu1 }
 0x18d   : > { %15480 = vmatmul.mubr.msk.f32.gmra.mxu1 %vm264_vm0, %v18093_v15  ;;  %15498 = vmatpush3.msra.mxu0 %v18455_v59  ;;  %v17068_v15 = vld [vmem:[%s17294_s24 + $0x88] sm:$0xff]  ;;  %24045 = vst [vmem:[#allocation9_spill] sm:$0xff] %v18836_v30 }
 0x18e   : > { %15522 = vmatpush3.msra.mxu1 %v17066_v12  ;;  %15499 = vmatprep.subr.mxu0 %v18459_v25  ;;  %v12854_v12 = vld [vmem:[%s23953_s1 + $0xc8] sm:$0xff] }
 0x18f   : > { %15523 = vmatprep.subr.mxu1 %v17067_v42  ;;  %15500 = vmatpush3.msra.mxu0 %v18459_v25  ;;  %v18700_v25 = vld [vmem:[%s23953_s1 + $0x60] sm:$0xff] }
 0x190   : > { %15524 = vmatpush3.msra.mxu1 %v17067_v42  ;;  %15482 = vmatprep.mubr.msk.f32.mxu1 %vm264_vm0, %v18114_v57  ;;  %v18655_v57 = vpop.permute.xlu1 %3933  ;;  %v15030_v42 = vpop.f32.mrf.mxu1 }
 0x191   : > { %15501 = vmatprep.mubr.msk.f32.mxu0 %vm264_vm0, %v18632_v7  ;;  %15525 = vmatprep.subr.mxu1 %v17068_v15 }
 0x192   : > { %15541 = vmatprep.subr.mxu0 %v18470_v1  ;;  %5448 = vrot.lane.b32.xlu0 %v18280_v56, %s17232_s25 }
 0x193   : > { %5446 = vrot.lane.b32.xlu1 %v18283_v0, %s17232_s25  ;;  %15483 = vmatmul.mubr.msk.f32.gmra.mxu1 %vm264_vm0, %v18125_v20  ;;  %v18677_v20 = vld [vmem:[%s23953_s1 + $0x58] sm:$0xff] }
 0x194   : > { %15502 = vmatmul.mubr.msk.f32.vlgmr.msra.gmra.mxu0 %vm264_vm0, %v18644_v9  ;;  %15526 = vmatpush3.msra.mxu1 %v17068_v15  ;;  %v18689_v59 = vpop.permute.xlu1 %3931  ;;  %v18846_v15 = vadd.f32 %v15030_v42, %v15002_v58 }
 0x195   : > { %15542 = vmatpush3.msra.mxu0 %v18470_v1  ;;  %15527 = vmatprep.subr.mxu1 %v18276_v45  ;;  %v17069_v1 = vld [vmem:[%s17294_s24 + $0xf0] sm:$0xff] }
 0x196   : > { %15543 = vmatprep.subr.mxu0 %v18474_v28  ;;  %15528 = vmatpush3.msra.mxu1 %v18276_v45  ;;  %v18684_v45 = vpop.permute.xlu0 %4104 }
 0x197   : > { %15544 = vmatpush3.msra.mxu0 %v18474_v28  ;;  %15504 = vmatprep.mubr.msk.f32.mxu0 %vm264_vm0, %v18662_v23  ;;  %v18714_v28 = vld [vmem:[%s23953_s1 + $0x68] sm:$0xff] }
 0x198   : > { %15529 = vmatprep.mubr.msk.f32.mxu1 %vm264_vm0, %v3285_v50  ;;  %15545 = vmatprep.subr.mxu0 %v18489_v35 }
 0x199   : > { %15569 = vmatprep.subr.mxu1 %v18534_v52  ;;  %5444 = vrot.lane.b32.xlu0 %v18311_v17, %s17232_s25 }
 0x19a   : > { %5442 = vrot.lane.b32.xlu1 %v18321_v44, %s17232_s25  ;;  %15505 = vmatmul.mubr.msk.f32.gmra.mxu0 %vm264_vm0, %v18677_v20  ;;  %v18716_v34 = vpop.permute.xlu0 %4102  ;;  %v18723_v46 = vpop.permute.xlu1 %3929 }
 0x19b   : > { %15530 = vmatmul.mubr.msk.f32.vlgmr.msra.gmra.mxu1 %vm264_vm0, %v3286_v33  ;;  %15546 = vmatpush3.msra.mxu0 %v18489_v35  ;;  %v3288_v35 = vld [vmem:[%s23953_s1 + $0x18] sm:$0xff] }
 0x19c   : > { %15570 = vmatpush3.msra.mxu1 %v18534_v52  ;;  %15547 = vmatprep.subr.mxu0 %v18495_v29  ;;  %v18764_v52 = vadd.f32 %v15027_v13, %v14999_v39  ;;  %v18913_v39 = vld [vmem:[%s23953_s1 + $0x98] sm:$0xff] }
 0x19d   : > { %15571 = vmatprep.subr.mxu1 %v17069_v1  ;;  %15548 = vmatpush3.msra.mxu0 %v18495_v29  ;;  %v17070_v29 = vld [vmem:[%s17294_s24 + $0xe8] sm:$0xff]  ;;  %v18918_v13 = vld [vmem:[%s23953_s1 + $0xd8] sm:$0xff] }
 0x19e   : > { %15572 = vmatpush3.msra.mxu1 %v17069_v1  ;;  %15507 = vmatprep.mubr.msk.f32.mxu0 %vm264_vm0, %v18700_v25 }
 0x19f   : > { %15532 = vmatprep.mubr.msk.f32.mxu1 %vm264_vm0, %v3287_v14  ;;  %15549 = vmatprep.subr.mxu0 %v18513_v10  ;;  %v18858_v14 = vpop.f32.mrf.mxu1 }
 0x1a0   : > { %15573 = vmatprep.subr.mxu1 %v17070_v29  ;;  %5440 = vrot.lane.b32.xlu0 %v18346_v4, %s17232_s25  ;;  %v18745_v37 = vpop.permute.xlu0 %4100  ;;  %24047 = vst [vmem:[#allocation11_spill] sm:$0xff] %v18858_v14 }
 0x1a1   : > { %5438 = vrot.lane.b32.xlu1 %v18354_v21, %s17232_s25  ;;  %15508 = vmatmul.mubr.msk.f32.gmra.mxu0 %vm264_vm0, %v18714_v28  ;;  %v18754_v38 = vpop.permute.xlu1 %4098 }
 0x1a2   : > { %15533 = vmatmul.mubr.msk.f32.gmra.mxu1 %vm264_vm0, %v3288_v35  ;;  %15550 = vmatpush3.msra.mxu0 %v18513_v10  ;;  %v18752_v10 = vld [vmem:[%s23953_s1 + $0x78] sm:$0xff]  ;;  %v15033_v35 = vpop.f32.mrf.mxu1 }
 0x1a3   : > { %15574 = vmatpush3.msra.mxu1 %v17070_v29  ;;  %15551 = vmatprep.subr.mxu0 %v18517_v22 }
 0x1a4   : > { %15575 = vmatprep.subr.mxu1 %v17071_v36  ;;  %15552 = vmatpush3.msra.mxu0 %v18517_v22  ;;  %v3290_v22 = vld [vmem:[%s23953_s1 + $0x28] sm:$0xff] }
 0x1a5   : > { %15576 = vmatpush3.msra.mxu1 %v17071_v36  ;;  %15510 = vmatprep.mubr.msk.f32.mxu0 %vm264_vm0, %v18737_v8  ;;  %v18901_v36 = vld [vmem:[%s17294_s24 + $0x168] sm:$0xff] }
 0x1a6   : > { %15535 = vmatprep.mubr.msk.f32.mxu1 %vm264_vm0, %v3289_v32  ;;  %15553 = vmatprep.subr.mxu0 %v18539_v31 }
 0x1a7   : > { %15577 = vmatprep.subr.mxu1 %v17072_v27  ;;  %5621 = vrot.lane.b32.xlu0 %v18241_v3, %s17233_s30  ;;  %v18783_v62 = vpop.permute.xlu0 %4445 }
 0x1a8   : > { %5619 = vrot.lane.b32.xlu1 %v18249_v19, %s17233_s30  ;;  %15511 = vmatmul.mubr.msk.f32.gmra.mxu0 %vm264_vm0, %v18752_v10 }
 0x1a9   : > { %15536 = vmatmul.mubr.msk.f32.gmra.mxu1 %vm264_vm0, %v3290_v22  ;;  %15554 = vmatpush3.msra.mxu0 %v18539_v31  ;;  %v18790_v31 = vpop.permute.xlu1 %4443  ;;  %v18905_v22 = vpop.f32.mrf.mxu1 }
 0x1aa   : > { %15578 = vmatpush3.msra.mxu1 %v17072_v27  ;;  %15555 = vmatprep.subr.mxu0 %v18544_v40  ;;  %24049 = vst [vmem:[#allocation13_spill] sm:$0xff] %v18905_v22  ;;  %v18937_v27 = vld [vmem:[%s23953_s1 + $0xa0] sm:$0xff]  ;;  %v19006_v22 = vld [vmem:[%s23953_s1 + $0xb8] sm:$0xff] }
 0x1ab   : > { %15579 = vmatprep.subr.mxu1 %v18786_v48  ;;  %15556 = vmatpush3.msra.mxu0 %v18544_v40  ;;  %v18806_v40 = vld [vmem:[%s23953_s1 + $0x88] sm:$0xff]  ;;  %v15036_v58 = vpop.f32.mrf.mxu1 }
 0x1ac   : > { %15580 = vmatpush3.msra.mxu1 %v18786_v48  ;;  %15538 = vmatprep.mubr.msk.f32.mxu1 %vm264_vm0, %v3291_v41 }
 0x1ad   : > { %15557 = vmatprep.mubr.msk.f32.mxu0 %vm264_vm0, %v18781_v54  ;;  %15581 = vmatprep.subr.mxu1 %v18800_v18 }
 0x1ae   : > { %15597 = vmatprep.subr.mxu0 %v18562_v60  ;;  %5617 = vrot.lane.b32.xlu0 %v18280_v56, %s17233_s30  ;;  %v18820_v16 = vpop.permute.xlu0 %4441  ;;  %v18829_v63 = vpop.permute.xlu1 %4439 }
 0x1af   : > { %5615 = vrot.lane.b32.xlu1 %v18283_v0, %s17233_s30  ;;  %15539 = vmatmul.mubr.msk.f32.gmra.mxu1 %vm264_vm0, %v3292_v49 }
 0x1b0   : > { %15558 = vmatmul.mubr.msk.f32.vlgmr.msra.gmra.mxu0 %vm264_vm0, %v18806_v40  ;;  %15582 = vmatpush3.msra.mxu1 %v18800_v18 }
 0x1b1   : > { %15598 = vmatpush3.msra.mxu0 %v18562_v60  ;;  %15583 = vmatprep.subr.mxu1 %v18826_v55  ;;  %v15005_v60 = vpop.f32.mrf.mxu0 }
 0x1b2   : > { %15599 = vmatprep.subr.mxu0 %v18567_v5  ;;  %15584 = vmatpush3.msra.mxu1 %v18826_v55  ;;  %v18886_v29 = vadd.f32 %v15033_v35, %v15005_v60  ;;  %v18968_v35 = vpop.f32.mrf.mxu1 }
 0x1b3   : > { %15600 = vmatpush3.msra.mxu0 %v18567_v5  ;;  %15585 = vmatprep.mubr.msk.f32.mxu1 %vm264_vm0, %v12853_v47  ;;  %v18850_v5 = vpop.permute.xlu0 %4437  ;;  %v18852_v50 = vpop.f32.mrf.mxu0  ;;  %v18947_v47 = vld [vmem:[%s23953_s1 + $0xe0] sm:$0xff]  ;;  %24053 = vst [vmem:[#allocation7_spill] sm:$0xff] %v18968_v35 }
 0x1b4   : > { %15625 = vmatprep.subr.mxu1 %v18581_v51  ;;  %5613 = vrot.lane.b32.xlu0 %v18311_v17, %s17233_s30  ;;  %24046 = vst [vmem:[#allocation4_spill] sm:$0xff] %v18852_v50  ;;  %v18856_v33 = vpop.permute.xlu1 %4435  ;;  %24050 = vst [vmem:[#allocation6_spill] sm:$0xff] %v18947_v47 }
 0x1b5   : > { %5611 = vrot.lane.b32.xlu1 %v18321_v44, %s17233_s30  ;;  %15586 = vmatmul.mubr.msk.f32.vlgmr.msra.gmra.mxu1 %vm264_vm0, %v12854_v12  ;;  %v15008_v1 = vpop.f32.mrf.mxu0 }
 0x1b6   : > { %15601 = vmatprep.subr.mxu0 %v18585_v61  ;;  %15626 = vmatpush3.msra.mxu1 %v18581_v51  ;;  %v18867_v51 = vld [vmem:[%s17294_s24 + $0x178] sm:$0xff]  ;;  %v18951_v60 = vadd.f32 %v15036_v58, %v15008_v1  ;;  %v18987_v1 = vld [vmem:[%s23953_s1 + $0xb0] sm:$0xff] }
 0x1b7   : > { %15602 = vmatpush3.msra.mxu0 %v18585_v61  ;;  %15627 = vmatprep.subr.mxu1 %v18602_v6  ;;  %v18872_v61 = vld [vmem:[%s17294_s24 + $0x170] sm:$0xff]  ;;  %v18898_v32 = vpop.f32.mrf.mxu0 }
 0x1b8   : > { %5609 = vrot.lane.b32.xlu0 %v18346_v4, %s17233_s30  ;;  %15603 = vmatprep.subr.mxu0 %v18605_v26  ;;  %24048 = vst [vmem:[#allocation5_spill] sm:$0xff] %v18898_v32  ;;  %v18995_v58 = vld [vmem:[%s23953_s1 + $0xf0] sm:$0xff]  ;;  %v15083_v32 = vpop.f32.mrf.mxu1 }
 0x1b9   : > { %5607 = vrot.lane.b32.xlu1 %v18354_v21, %s17233_s30  ;;  %15628 = vmatpush3.msra.mxu1 %v18602_v6  ;;  %v18882_v6 = vld [vmem:[%s23953_s1 + $0x90] sm:$0xff]  ;;  %24054 = vst [vmem:[#allocation19_spill] sm:$0xff] %v18995_v58 }
 0x1ba   : > { %15604 = vmatpush3.msra.mxu0 %v18605_v26  ;;  %15629 = vmatprep.subr.mxu1 %v18621_v24  ;;  %v18884_v26 = vpop.permute.xlu0 %4433 }
 0x1bb   : > { %15605 = vmatprep.subr.mxu0 %v18626_v53  ;;  %15630 = vmatpush3.msra.mxu1 %v18621_v24  ;;  %v18894_v24 = vld [vmem:[%s23953_s1 + $0xd0] sm:$0xff] }
 0x1bc   : > { %5954 = vrot.lane.b32.xlu0 %v18867_v51, %s17232_s25  ;;  %15606 = vmatpush3.msra.mxu0 %v18626_v53  ;;  %v18896_v53 = vpop.permute.xlu1 %4431 }
 0x1bd   : > { %5952 = vrot.lane.b32.xlu1 %v18872_v61, %s17232_s25  ;;  %15631 = vmatprep.subr.mxu1 %v18649_v11 }
 0x1be   : > { %15607 = vmatprep.subr.mxu0 %v18655_v57  ;;  %15632 = vmatpush3.msra.mxu1 %v18649_v11  ;;  %v15055_v11 = vpop.f32.mrf.mxu0 }
 0x1bf   : > { %15608 = vmatpush3.msra.mxu0 %v18655_v57  ;;  %15560 = vmatprep.mubr.msk.f32.mxu0 %vm264_vm0, %v18882_v6  ;;  %v18928_v57 = vld [vmem:[%s17294_s24 + $0x160] sm:$0xff]  ;;  %v686_v49 = vadd.f32 %v15055_v11, %v18764_v52  ;;  %v18959_v52 = vld [vmem:[%s23953_s1 + $0xa8] sm:$0xff] }
 0x1c0   : > { %6123 = vrot.lane.b32.xlu0 %v18867_v51, %s17233_s30  ;;  %15588 = vmatprep.mubr.msk.f32.mxu1 %vm264_vm0, %v18894_v24  ;;  %v18966_v42 = vpop.f32.mrf.mxu0 }
 0x1c1   : > { %5950 = vrot.lane.b32.xlu1 %v18901_v36, %s17232_s25  ;;  %15633 = vmatprep.subr.mxu1 %v18684_v45  ;;  %v18939_v41 = vpop.permute.xlu0 %4614  ;;  %24052 = vst [vmem:[#allocation17_spill] sm:$0xff] %v18966_v42  ;;  %v19010_v14 = vadd.f32 %v15083_v32, %v686_v49  ;;  %v12885_v32 = vld [vmem:[%s23953_s1 + $0x140] sm:$0xff] }
 0x1c2   : > { %15561 = vmatmul.mubr.msk.f32.gmra.mxu0 %vm264_vm0, %v18913_v39  ;;  %15589 = vmatmul.mubr.msk.f32.gmra.mxu1 %vm264_vm0, %v18918_v13  ;;  %v18949_v12 = vpop.permute.xlu1 %4612  ;;  %v15058_v11 = vpop.f32.mrf.mxu0 }
 0x1c3   : > { %15609 = vmatprep.subr.mxu0 %v18689_v59  ;;  %15634 = vmatpush3.msra.mxu1 %v18684_v45  ;;  %v18964_v45 = vld [vmem:[%s23953_s1 + $0xe8] sm:$0xff]  ;;  %v688_v35 = vadd.f32 %v15058_v11, %v18846_v15  ;;  %v19018_v15 = vld [vmem:[%s17294_s24 + $0x150] sm:$0xff]  ;;  %v19025_v11 = vpop.f32.mrf.mxu1 }
 0x1c4   : > { %6121 = vrot.lane.b32.xlu0 %v18872_v61, %s17233_s30  ;;  %15610 = vmatpush3.msra.mxu0 %v18689_v59  ;;  %24051 = vst [vmem:[#allocation15_spill] sm:$0xff] %v18964_v45  ;;  %v18978_v59 = vld [vmem:[%s17294_s24 + $0x158] sm:$0xff]  ;;  %v19012_v2 = vpop.f32.mrf.mxu0  ;;  %24057 = vst [vmem:[#allocation12_spill] sm:$0xff] %v19025_v11 }
 0x1c5   : > { %5948 = vrot.lane.b32.xlu1 %v18928_v57, %s17232_s25  ;;  %15563 = vmatprep.mubr.msk.f32.mxu0 %vm264_vm0, %v18937_v27  ;;  %24055 = vst [vmem:[#allocation8_spill] sm:$0xff] %v19012_v2  ;;  %v15086_v11 = vpop.f32.mrf.mxu1 }
 0x1c6   : > { %15591 = vmatprep.mubr.msk.f32.mxu1 %vm264_vm0, %v18947_v47  ;;  %15635 = vmatprep.subr.mxu1 %v18716_v34  ;;  %v15061_v49 = vpop.f32.mrf.mxu0  ;;  %v19052_v43 = vadd.f32 %v15086_v11, %v688_v35 }
 0x1c7   : > { %15564 = vmatmul.mubr.msk.f32.gmra.mxu0 %vm264_vm0, %v18959_v52  ;;  %15592 = vmatmul.mubr.msk.f32.gmra.mxu1 %vm264_vm0, %v18964_v45  ;;  %v690_v30 = vadd.f32 %v15061_v49, %v18886_v29  ;;  %v12886_v29 = vld [vmem:[%s23953_s1 + $0x148] sm:$0xff]  ;;  %v19076_v11 = vpop.f32.mrf.mxu1 }
 0x1c8   : > { %6119 = vrot.lane.b32.xlu0 %v18901_v36, %s17233_s30  ;;  %15611 = vmatprep.subr.mxu0 %v18723_v46  ;;  %v18997_v42 = vpop.permute.xlu0 %4832  ;;  %v19071_v35 = vpop.f32.mrf.mxu0  ;;  %24060 = vst [vmem:[#allocation18_spill] sm:$0xff] %v19076_v11 }
 0x1c9   : > { %5946 = vrot.lane.b32.xlu1 %v18978_v59, %s17232_s25  ;;  %15636 = vmatpush3.msra.mxu1 %v18716_v34  ;;  %v19008_v50 = vpop.permute.xlu1 %4610  ;;  %v19023_v34 = vld [vmem:[%s23953_s1 + $0xf8] sm:$0xff]  ;;  %24059 = vst [vmem:[#allocation16_spill] sm:$0xff] %v19071_v35  ;;  %v15089_v35 = vpop.f32.mrf.mxu1 }
 0x1ca   : > { %15612 = vmatpush3.msra.mxu0 %v18723_v46  ;;  %15566 = vmatprep.mubr.msk.f32.mxu0 %vm264_vm0, %v18987_v1  ;;  %24056 = vst [vmem:[#allocation10_spill] sm:$0xff] %v19023_v34  ;;  %v19033_v46 = vld [vmem:[%s23953_s1 + $0x100] sm:$0xff]  ;;  %v15064_v11 = vpop.f32.mrf.mxu0  ;;  %v19101_v45 = vadd.f32 %v15089_v35, %v690_v30  ;;  %v12887_v35 = vld [vmem:[%s23953_s1 + $0x150] sm:$0xff] }
 0x1cb   : > { %15594 = vmatprep.mubr.msk.f32.mxu1 %vm264_vm0, %v18995_v58  ;;  %15637 = vmatprep.subr.mxu1 %v18745_v37  ;;  %v19057_v58 = vld [vmem:[%s17294_s24 + $0x148] sm:$0xff] }
 0x1cc   : > { %6117 = vrot.lane.b32.xlu0 %v18928_v57, %s17233_s30  ;;  %15567 = vmatmul.mubr.msk.f32.gmra.mxu0 %vm264_vm0, %v19006_v22  ;;  %v19117_v30 = vpop.f32.mrf.mxu0 }
 0x1cd   : > { %5944 = vrot.lane.b32.xlu1 %v19018_v15, %s17232_s25  ;;  %15595 = vmatmul.mubr.msk.f32.gmra.mxu1 %vm264_vm0, %v19023_v34  ;;  %v19062_v34 = vld [vmem:[%s23953_s1 + $0x108] sm:$0xff]  ;;  %24063 = vst [vmem:[#allocation22_spill] sm:$0xff] %v19117_v30 }
 0x1ce   : > { %15638 = vmatpush3.msra.mxu1 %v18745_v37  ;;  %15613 = vmatprep.mubr.msk.f32.mxu0 %vm264_vm0, %v19033_v46  ;;  %v19049_v2 = vpop.permute.xlu0 %4830  ;;  %24058 = vst [vmem:[#allocation14_spill] sm:$0xff] %v19062_v34 }
 0x1cf   : > { %15639 = vmatprep.subr.mxu1 %v18754_v38  ;;  %15641 = vmatprep.mubr.msk.f32.mxu1 %vm264_vm0, %v12885_v32  ;;  %v19064_v37 = vpop.permute.xlu1 %4608  ;;  %v19089_v32 = vld [vmem:[%s23953_s1 + $0x110] sm:$0xff] }
 0x1d0   : > { %15640 = vmatpush3.msra.mxu1 %v18754_v38  ;;  %15653 = vmatprep.subr.mxu0 %v18241_v3  ;;  %24061 = vst [vmem:[#allocation20_spill] sm:$0xff] %v19089_v32 }
 0x1d1   : > { %15681 = vmatprep.subr.mxu1 %v18783_v62  ;;  %6115 = vrot.lane.b32.xlu0 %v18978_v59, %s17233_s30 }
 0x1d2   : > { %5942 = vrot.lane.b32.xlu1 %v19057_v58, %s17232_s25  ;;  %15614 = vmatmul.mubr.msk.f32.vlgmr.msra.gmra.mxu0 %vm264_vm0, %v19062_v34  ;;  %v19082_v38 = vpop.permute.xlu0 %4828 }
 0x1d3   : > { %15642 = vmatmul.mubr.msk.f32.vlgmr.msra.gmra.mxu1 %vm264_vm0, %v12886_v29  ;;  %15654 = vmatpush3.msra.mxu0 %v18241_v3  ;;  %v19091_v49 = vpop.permute.xlu1 %4606  ;;  %v19098_v29 = vld [vmem:[%s17294_s24 + $0x140] sm:$0xff]  ;;  %v692_v3 = vadd.f32 %v15064_v11, %v18951_v60 }
 0x1d4   : > { %15682 = vmatpush3.msra.mxu1 %v18783_v62  ;;  %15655 = vmatprep.subr.mxu0 %v18249_v19  ;;  %v19109_v62 = vld [vmem:[%s23953_s1 + $0x118] sm:$0xff]  ;;  %v19131_v60 = vld [vmem:[%s23953_s1 + $0x120] sm:$0xff] }
 0x1d5   : > { %15683 = vmatprep.subr.mxu1 %v18790_v31  ;;  %15656 = vmatpush3.msra.mxu0 %v18249_v19  ;;  %24062 = vst [vmem:[#allocation21_spill] sm:$0xff] %v19109_v62  ;;  %24065 = vst [vmem:[#allocation24_spill] sm:$0xff] %v19131_v60 }
 0x1d6   : > { %15684 = vmatpush3.msra.mxu1 %v18790_v31  ;;  %15616 = vmatprep.mubr.msk.f32.mxu0 %vm264_vm0, %v19089_v32  ;;  %v19111_v47 = vpop.permute.xlu0 %4826  ;;  %v19123_v31 = vpop.f32.mrf.mxu1 }
 0x1d7   : > { %15657 = vmatprep.subr.mxu0 %v18280_v56  ;;  %15685 = vmatprep.subr.mxu1 %v18820_v16  ;;  %v19115_v19 = vpop.permute.xlu1 %4604  ;;  %24064 = vst [vmem:[#allocation23_spill] sm:$0xff] %v19123_v31  ;;  %v15111_v31 = vpop.f32.mrf.mxu0 }
 0x1d8   : > { %6113 = vrot.lane.b32.xlu0 %v19018_v15, %s17233_s30  ;;  %5940 = vrot.lane.b32.xlu1 %v19098_v29, %s17232_s25  ;;  %v1021_v30 = vadd.f32 %v15111_v31, %v19010_v14 }
 0x1d9   : > { %15617 = vmatmul.mubr.msk.f32.gmra.mxu0 %vm264_vm0, %v19109_v62  ;;  %15686 = vmatpush3.msra.mxu1 %v18820_v16  ;;  %v15092_v62 = vpop.f32.mrf.mxu1 }
 0x1da   : > { %15658 = vmatpush3.msra.mxu0 %v18280_v56  ;;  %15687 = vmatprep.subr.mxu1 %v18829_v63  ;;  %v19138_v11 = vpop.permute.xlu0 %4824  ;;  %v19150_v56 = vld [vmem:[%s23953_s1 + $0x128] sm:$0xff] }
 0x1db   : > { %15659 = vmatprep.subr.mxu0 %v18283_v0  ;;  %15688 = vmatpush3.msra.mxu1 %v18829_v63  ;;  %v19142_v16 = vpop.permute.xlu1 %4602  ;;  %24066 = vst [vmem:[#allocation25_spill] sm:$0xff] %v19150_v56  ;;  %v12888_v63 = vld [vmem:[%s23953_s1 + $0x158] sm:$0xff]  ;;  %v19171_v31 = vpop.f32.mrf.mxu1 }
 0x1dc   : > { %15660 = vmatpush3.msra.mxu0 %v18283_v0  ;;  %15619 = vmatprep.mubr.msk.f32.mxu0 %vm264_vm0, %v19131_v60  ;;  %v19158_v0 = vadd.f32 %v15092_v62, %v692_v3  ;;  %24067 = vst [vmem:[#allocation26_spill] sm:$0xff] %v19171_v31  ;;  %v19178_v3 = vld [vmem:[%s23953_s1 + $0x130] sm:$0xff]  ;;  %v12889_v62 = vld [vmem:[%s23953_s1 + $0x160] sm:$0xff] }
 0x1dd   : > { %15644 = vmatprep.mubr.msk.f32.mxu1 %vm264_vm0, %v12887_v35  ;;  %15661 = vmatprep.subr.mxu0 %v18311_v17  ;;  %24068 = vst [vmem:[#allocation27_spill] sm:$0xff] %v19178_v3  ;;  %v19188_v35 = vld [vmem:[%s17294_s24 + $0x138] sm:$0xff]  ;;  %v15139_v31 = vpop.f32.mrf.mxu1 }
 0x1de   : > { %15689 = vmatprep.subr.mxu1 %v18850_v5  ;;  %6111 = vrot.lane.b32.xlu0 %v19057_v58, %s17233_s30  ;;  %v19163_v60 = vpop.permute.xlu0 %4822 }
 0x1df   : > { %6109 = vrot.lane.b32.xlu1 %v19098_v29, %s17233_s30  ;;  %15620 = vmatmul.mubr.msk.f32.gmra.mxu0 %vm264_vm0, %v19150_v56  ;;  %v19169_v14 = vpop.permute.xlu1 %4600  ;;  %v12928_v56 = vld [vmem:[%s23953_s1 + $0x1c8] sm:$0xff]  ;;  %v19302_v34 = vpop.f32.mrf.mxu1 }
 0x1e0   : > { %15645 = vmatmul.mubr.msk.f32.gmra.mxu1 %vm264_vm0, %v12888_v63  ;;  %15662 = vmatpush3.msra.mxu0 %v18311_v17  ;;  %v19194_v17 = vld [vmem:[%s17294_s24 + $0x130] sm:$0xff]  ;;  %24073 = vst [vmem:[#allocation32_spill] sm:$0xff] %v19302_v34 }
 0x1e1   : > { %15690 = vmatpush3.msra.mxu1 %v18850_v5  ;;  %15663 = vmatprep.subr.mxu0 %v18321_v44  ;;  %v19199_v5 = vld [vmem:[%s23953_s1 + $0x138] sm:$0xff] }
 0x1e2   : > { %15691 = vmatprep.subr.mxu1 %v18856_v33  ;;  %15664 = vmatpush3.msra.mxu0 %v18321_v44  ;;  %24069 = vst [vmem:[#allocation28_spill] sm:$0xff] %v19199_v5  ;;  %v19201_v63 = vpop.permute.xlu0 %4820  ;;  %v12890_v44 = vld [vmem:[%s23953_s1 + $0x168] sm:$0xff] }
 0x1e3   : > { %15692 = vmatpush3.msra.mxu1 %v18856_v33  ;;  %15622 = vmatprep.mubr.msk.f32.mxu0 %vm264_vm0, %v19178_v3  ;;  %v19208_v33 = vpop.permute.xlu1 %4818  ;;  %v19210_v3 = vadd.f32 %v15139_v31, %v1021_v30  ;;  %v12891_v30 = vld [vmem:[%s23953_s1 + $0x170] sm:$0xff]  ;;  %v19229_v31 = vld [vmem:[%s23953_s1 + $0x180] sm:$0xff] }
 0x1e4   : > { %15647 = vmatprep.mubr.msk.f32.mxu1 %vm264_vm0, %v12889_v62  ;;  %15665 = vmatprep.subr.mxu0 %v18346_v4  ;;  %24070 = vst [vmem:[#allocation29_spill] sm:$0xff] %v19229_v31  ;;  %v19234_v62 = vld [vmem:[%s17294_s24 + $0x128] sm:$0xff] }
 0x1e5   : > { %15693 = vmatprep.subr.mxu1 %v18884_v26  ;;  %6341 = vrot.lane.b32.xlu0 %v19188_v35, %s17232_s25 }
 0x1e6   : > { %6339 = vrot.lane.b32.xlu1 %v19194_v17, %s17232_s25  ;;  %15623 = vmatmul.mubr.msk.f32.gmra.mxu0 %vm264_vm0, %v19199_v5 }
 0x1e7   : > { %15648 = vmatmul.mubr.msk.f32.gmra.mxu1 %vm264_vm0, %v12890_v44  ;;  %15666 = vmatpush3.msra.mxu0 %v18346_v4  ;;  %v19237_v4 = vld [vmem:[%s17294_s24 + $0x120] sm:$0xff]  ;;  %v19239_v44 = vpop.permute.xlu0 %5122  ;;  %v19251_v5 = vpop.permute.xlu1 %5120 }
 0x1e8   : > { %15694 = vmatpush3.msra.mxu1 %v18884_v26  ;;  %15667 = vmatprep.subr.mxu0 %v18354_v21  ;;  %v12892_v26 = vld [vmem:[%s23953_s1 + $0x178] sm:$0xff] }
 0x1e9   : > { %15695 = vmatprep.subr.mxu1 %v18896_v53  ;;  %15668 = vmatpush3.msra.mxu0 %v18354_v21  ;;  %v19249_v21 = vld [vmem:[%s23953_s1 + $0x188] sm:$0xff] }
 0x1ea   : > { %15696 = vmatpush3.msra.mxu1 %v18896_v53  ;;  %15650 = vmatprep.mubr.msk.f32.mxu1 %vm264_vm0, %v12891_v30  ;;  %24071 = vst [vmem:[#allocation30_spill] sm:$0xff] %v19249_v21  ;;  %v12927_v53 = vld [vmem:[%s23953_s1 + $0x1c0] sm:$0xff]  ;;  %v19267_v30 = vld [vmem:[%s17294_s24 + $0x118] sm:$0xff] }
 0x1eb   : > { %15669 = vmatprep.mubr.msk.f32.mxu0 %vm264_vm0, %v19229_v31  ;;  %15709 = vmatprep.subr.mxu0 %v18939_v41  ;;  %v19272_v31 = vld [vmem:[%s17294_s24 + $0x110] sm:$0xff] }
 0x1ec   : > { %6337 = vrot.lane.b32.xlu0 %v19234_v62, %s17232_s25  ;;  %6335 = vrot.lane.b32.xlu1 %v19237_v4, %s17232_s25 }
 0x1ed   : > { %15651 = vmatmul.mubr.msk.f32.gmra.mxu1 %vm264_vm0, %v12892_v26  ;;  %15670 = vmatmul.mubr.msk.f32.vlgmr.msra.gmra.mxu0 %vm264_vm0, %v19249_v21  ;;  %v19279_v26 = vpop.permute.xlu0 %5118  ;;  %v19281_v21 = vpop.f32.mrf.mxu0 }
 0x1ee   : > { %15710 = vmatpush3.msra.mxu0 %v18939_v41  ;;  %15697 = vmatprep.mubr.msk.f32.mxu1 %vm264_vm0, %v12927_v53  ;;  %24072 = vst [vmem:[#allocation31_spill] sm:$0xff] %v19281_v21  ;;  %v19286_v41 = vpop.permute.xlu1 %5116  ;;  %v19292_v53 = vld [vmem:[%s17294_s24 + $0x108] sm:$0xff]  ;;  %v19297_v21 = vld [vmem:[%s17294_s24 + $0x100] sm:$0xff] }
 0x1ef   : > { %15711 = vmatprep.subr.mxu0 %v18949_v12  ;;  %15737 = vmatprep.subr.mxu1 %v18997_v42  ;;  %v15114_v32 = vpop.f32.mrf.mxu0 }
 0x1f0   : > { %15712 = vmatpush3.msra.mxu0 %v18949_v12  ;;  %6333 = vrot.lane.b32.xlu0 %v19267_v30, %s17232_s25  ;;  %v1023_v12 = vadd.f32 %v15114_v32, %v19052_v43  ;;  %v15142_v43 = vpop.f32.mrf.mxu1 }
 0x1f1   : > { %6331 = vrot.lane.b32.xlu1 %v19272_v31, %s17232_s25  ;;  %15698 = vmatmul.mubr.msk.f32.vlgmr.msra.gmra.mxu1 %vm264_vm0, %v12928_v56  ;;  %v19307_v56 = vpop.f32.mrf.mxu0 }
 0x1f2   : > { %15713 = vmatprep.subr.mxu0 %v19008_v50  ;;  %15738 = vmatpush3.msra.mxu1 %v18997_v42  ;;  %24074 = vst [vmem:[#allocation33_spill] sm:$0xff] %v19307_v56  ;;  %v19312_v42 = vpop.permute.xlu0 %5114  ;;  %v1193_v34 = vadd.f32 %v15142_v43, %v1023_v12 }
 0x1f3   : > { %15714 = vmatpush3.msra.mxu0 %v19008_v50  ;;  %15739 = vmatprep.subr.mxu1 %v19049_v2  ;;  %v19316_v50 = vpop.permute.xlu1 %5112  ;;  %v15117_v32 = vpop.f32.mrf.mxu0 }
 0x1f4   : > { %6329 = vrot.lane.b32.xlu0 %v19292_v53, %s17232_s25  ;;  %15715 = vmatprep.subr.mxu0 %v19064_v37  ;;  %v1025_v56 = vadd.f32 %v15117_v32, %v19101_v45  ;;  %v12929_v45 = vld [vmem:[%s23953_s1 + $0x1d0] sm:$0xff] }
 0x1f5   : > { %6327 = vrot.lane.b32.xlu1 %v19297_v21, %s17232_s25  ;;  %15740 = vmatpush3.msra.mxu1 %v19049_v2  ;;  %v19327_v2 = vld [vmem:[%s23953_s1 + $0x190] sm:$0xff] }
 0x1f6   : > { %15716 = vmatpush3.msra.mxu0 %v19064_v37  ;;  %15741 = vmatprep.subr.mxu1 %v19082_v38  ;;  %v19329_v37 = vpop.f32.mrf.mxu0  ;;  %v19352_v12 = vpop.permute.xlu0 %5110 }
 0x1f7   : > { %15717 = vmatprep.subr.mxu0 %v19091_v49  ;;  %15742 = vmatpush3.msra.mxu1 %v19082_v38  ;;  %24075 = vst [vmem:[#allocation34_spill] sm:$0xff] %v19329_v37  ;;  %v19337_v38 = vpop.f32.mrf.mxu1 }
 0x1f8   : > { %6631 = vrot.lane.b32.xlu0 %v19188_v35, %s17233_s30  ;;  %15718 = vmatpush3.msra.mxu0 %v19091_v49  ;;  %24076 = vst [vmem:[#allocation35_spill] sm:$0xff] %v19337_v38  ;;  %v15120_v49 = vpop.f32.mrf.mxu0  ;;  %v19347_v35 = vld [vmem:[%s23953_s1 + $0x198] sm:$0xff] }
 0x1f9   : > { %6629 = vrot.lane.b32.xlu1 %v19194_v17, %s17233_s30  ;;  %15743 = vmatprep.subr.mxu1 %v19111_v47  ;;  %v12930_v17 = vld [vmem:[%s23953_s1 + $0x1d8] sm:$0xff]  ;;  %v1027_v43 = vadd.f32 %v15120_v49, %v19158_v0  ;;  %v19373_v0 = vld [vmem:[%s23953_s1 + $0x1a0] sm:$0xff]  ;;  %v19387_v49 = vld [vmem:[%s23953_s1 + $0x1a8] sm:$0xff] }
 0x1fa   : > { %15719 = vmatprep.subr.mxu0 %v19115_v19  ;;  %15744 = vmatpush3.msra.mxu1 %v19111_v47  ;;  %v15145_v47 = vpop.f32.mrf.mxu1  ;;  %v19360_v38 = vpop.f32.mrf.mxu0 }
 0x1fb   : > { %15720 = vmatpush3.msra.mxu0 %v19115_v19  ;;  %15672 = vmatprep.mubr.msk.f32.mxu0 %vm264_vm0, %v19327_v2  ;;  %v19358_v19 = vpop.permute.xlu1 %5108  ;;  %v1195_v32 = vadd.f32 %v15145_v47, %v1025_v56  ;;  %24077 = vst [vmem:[#allocation36_spill] sm:$0xff] %v19360_v38 }
 0x1fc   : > { %6627 = vrot.lane.b32.xlu0 %v19234_v62, %s17233_s30  ;;  %15700 = vmatprep.mubr.msk.f32.mxu1 %vm264_vm0, %v12929_v45  ;;  %v19365_v37 = vpop.f32.mrf.mxu1  ;;  %v15167_v62 = vpop.f32.mrf.mxu0 }
 0x1fd   : > { %6625 = vrot.lane.b32.xlu1 %v19237_v4, %s17233_s30  ;;  %15745 = vmatprep.subr.mxu1 %v19138_v11  ;;  %24078 = vst [vmem:[#allocation37_spill] sm:$0xff] %v19365_v37  ;;  %v12931_v4 = vld [vmem:[%s23953_s1 + $0x1e0] sm:$0xff]  ;;  %v1348_v56 = vadd.f32 %v15167_v62, %v19210_v3  ;;  %v19404_v3 = vpop.permute.xlu0 %5452  ;;  %v12933_v62 = vld [vmem:[%s23953_s1 + $0x1f0] sm:$0xff] }
 0x1fe   : > { %15673 = vmatmul.mubr.msk.f32.gmra.mxu0 %vm264_vm0, %v19347_v35  ;;  %15701 = vmatmul.mubr.msk.f32.gmra.mxu1 %vm264_vm0, %v12930_v17  ;;  %v15148_v45 = vpop.f32.mrf.mxu1  ;;  %v19394_v47 = vpop.f32.mrf.mxu0 }
 0x1ff   : > { %15721 = vmatprep.subr.mxu0 %v19142_v16  ;;  %15746 = vmatpush3.msra.mxu1 %v19138_v11  ;;  %v12932_v11 = vld [vmem:[%s23953_s1 + $0x1e8] sm:$0xff]  ;;  %v19392_v17 = vadd.f32 %v15148_v45, %v1027_v43  ;;  %24079 = vst [vmem:[#allocation38_spill] sm:$0xff] %v19394_v47 }
 0x200   : > { %6623 = vrot.lane.b32.xlu0 %v19267_v30, %s17233_s30  ;;  %15722 = vmatpush3.msra.mxu0 %v19142_v16  ;;  %v19400_v16 = vpop.f32.mrf.mxu1  ;;  %v19406_v30 = vpop.permute.xlu1 %5450 }
 0x201   : > { %6621 = vrot.lane.b32.xlu1 %v19272_v31, %s17233_s30  ;;  %15675 = vmatprep.mubr.msk.f32.mxu0 %vm264_vm0, %v19373_v0  ;;  %24080 = vst [vmem:[#allocation39_spill] sm:$0xff] %v19400_v16  ;;  %v19414_v31 = vld [vmem:[%s23953_s1 + $0x1b0] sm:$0xff]  ;;  %v15170_v43 = vpop.f32.mrf.mxu0 }
 0x202   : > { %15703 = vmatprep.mubr.msk.f32.mxu1 %vm264_vm0, %v12931_v4  ;;  %15747 = vmatprep.subr.mxu1 %v19163_v60  ;;  %v1350_v4 = vadd.f32 %v15170_v43, %v1193_v34  ;;  %v15195_v45 = vpop.f32.mrf.mxu1  ;;  %v12934_v34 = vld [vmem:[%s23953_s1 + $0x1f8] sm:$0xff] }
 0x203   : > { %15676 = vmatmul.mubr.msk.f32.gmra.mxu0 %vm264_vm0, %v19387_v49  ;;  %15704 = vmatmul.mubr.msk.f32.gmra.mxu1 %vm264_vm0, %v12932_v11  ;;  %v19428_v11 = vld [vmem:[%s23953_s1 + $0x1b8] sm:$0xff]  ;;  %v19430_v47 = vadd.f32 %v15195_v45, %v1348_v56 }
 0x204   : > { %6619 = vrot.lane.b32.xlu0 %v19292_v53, %s17233_s30  ;;  %15723 = vmatprep.subr.mxu0 %v19169_v14  ;;  %v19432_v53 = vpop.f32.mrf.mxu0 }
 0x205   : > { %6617 = vrot.lane.b32.xlu1 %v19297_v21, %s17233_s30  ;;  %15748 = vmatpush3.msra.mxu1 %v19163_v60  ;;  %24081 = vst [vmem:[#allocation40_spill] sm:$0xff] %v19432_v53  ;;  %v19440_v21 = vpop.f32.mrf.mxu1  ;;  %v19447_v60 = vld [vmem:[%s23953_s1 + $0x200] sm:$0xff]  ;;  %v19455_v56 = vpop.permute.xlu1 %5446  ;;  %v19471_v53 = vld [vmem:[%s23953_s1 + $0x208] sm:$0xff] }
 0x206   : > { %15724 = vmatpush3.msra.mxu0 %v19169_v14  ;;  %15678 = vmatprep.mubr.msk.f32.mxu0 %vm264_vm0, %v19414_v31  ;;  %24082 = vst [vmem:[#allocation41_spill] sm:$0xff] %v19440_v21  ;;  %v19453_v14 = vpop.permute.xlu0 %5448  ;;  %v15173_v43 = vpop.f32.mrf.mxu0 }
 0x207   : > { %15706 = vmatprep.mubr.msk.f32.mxu1 %vm264_vm0, %v12933_v62  ;;  %15749 = vmatprep.subr.mxu1 %v19201_v63  ;;  %v15198_v62 = vpop.f32.mrf.mxu1  ;;  %v1352_v45 = vadd.f32 %v15173_v43, %v1195_v32 }
 0x208   : > { %6961 = vrot.lane.b32.xlu0 %v18867_v51, %s17232_s25  ;;  %15679 = vmatmul.mubr.msk.f32.gmra.mxu0 %vm264_vm0, %v19428_v11  ;;  %v19463_v21 = vadd.f32 %v15198_v62, %v1350_v4  ;;  %v17077_v4 = vld [vmem:[%s17294_s24 + $0xf0] sm:$0xff] }
 0x209   : > { %6959 = vrot.lane.b32.xlu1 %v18872_v61, %s17232_s25  ;;  %15707 = vmatmul.mubr.msk.f32.gmra.mxu1 %vm264_vm0, %v12934_v34  ;;  %v19475_v34 = vpop.f32.mrf.mxu0  ;;  %v19480_v32 = vpop.f32.mrf.mxu1 }
 0x20a   : > { %15750 = vmatpush3.msra.mxu1 %v19201_v63  ;;  %15725 = vmatprep.mubr.msk.f32.mxu0 %vm264_vm0, %v19447_v60  ;;  %v17076_v63 = vld [vmem:[%s17294_s24 + $0xf8] sm:$0xff]  ;;  %24083 = vst [vmem:[#allocation42_spill] sm:$0xff] %v19475_v34  ;;  %24084 = vst [vmem:[#allocation43_spill] sm:$0xff] %v19480_v32  ;;  %v17078_v32 = vld [vmem:[%s17294_s24 + $0xe8] sm:$0xff] }
 0x20b   : > { %15751 = vmatprep.subr.mxu1 %v19208_v33  ;;  %15753 = vmatprep.mubr.msk.f32.mxu1 %vm264_vm0, %v18632_v7  ;;  %v19486_v7 = vpop.permute.xlu0 %5444  ;;  %v15176_v43 = vpop.f32.mrf.mxu0  ;;  %v19922_v34 = vld [vmem:[%s17294_s24 + $0x150] sm:$0xff] }
 0x20c   : > { %15752 = vmatpush3.msra.mxu1 %v19208_v33  ;;  %15765 = vmatprep.subr.mxu0 %v17076_v63  ;;  %v19493_v33 = vld [vmem:[%s23953_s1 + $0x210] sm:$0xff]  ;;  %v15201_v62 = vpop.f32.mrf.mxu1 }
 0x20d   : > { %15793 = vmatprep.subr.mxu1 %v19239_v44  ;;  %7130 = vrot.lane.b32.xlu0 %v18867_v51, %s17233_s30  ;;  %v19495_v51 = vpop.permute.xlu1 %5442 }
 0x20e   : > { %6957 = vrot.lane.b32.xlu1 %v18901_v36, %s17232_s25  ;;  %15726 = vmatmul.mubr.msk.f32.vlgmr.msra.gmra.mxu0 %vm264_vm0, %v19471_v53 }
 0x20f   : > { %15754 = vmatmul.mubr.msk.f32.vlgmr.msra.gmra.mxu1 %vm264_vm0, %v18644_v9  ;;  %15766 = vmatpush3.msra.mxu0 %v17076_v63  ;;  %v1354_v9 = vadd.f32 %v15176_v43, %v19392_v17  ;;  %v19501_v63 = vadd.f32 %v15201_v62, %v1352_v45  ;;  %v19521_v17 = vpop.f32.mrf.mxu1  ;;  %v17079_v45 = vld [vmem:[%s17294_s24 + $0xe0] sm:$0xff] }
 0x210   : > { %15794 = vmatpush3.msra.mxu1 %v19239_v44  ;;  %15767 = vmatprep.subr.mxu0 %v17077_v4  ;;  %v19509_v44 = vld [vmem:[%s23953_s1 + $0x218] sm:$0xff]  ;;  %24086 = vst [vmem:[#allocation45_spill] sm:$0xff] %v19521_v17 }
 0x211   : > { %15795 = vmatprep.subr.mxu1 %v19251_v5  ;;  %15768 = vmatpush3.msra.mxu0 %v17077_v4  ;;  %v19514_v4 = vpop.f32.mrf.mxu0  ;;  %v15204_v62 = vpop.f32.mrf.mxu1 }
 0x212   : > { %15796 = vmatpush3.msra.mxu1 %v19251_v5  ;;  %15728 = vmatprep.mubr.msk.f32.mxu0 %vm264_vm0, %v19493_v33  ;;  %24085 = vst [vmem:[#allocation44_spill] sm:$0xff] %v19514_v4  ;;  %v19519_v5 = vpop.permute.xlu0 %5440  ;;  %v24118_v4 = vld [vmem:[#allocation25_spill] sm:$0xff] }
 0x213   : > { %15756 = vmatprep.mubr.msk.f32.mxu1 %vm264_vm0, %v18662_v23  ;;  %15769 = vmatprep.subr.mxu0 %v17078_v32  ;;  %v19527_v23 = vpop.permute.xlu1 %5438  ;;  %v15223_v43 = vpop.f32.mrf.mxu0 }
 0x214   : > { %15797 = vmatprep.subr.mxu1 %v19279_v26  ;;  %7128 = vrot.lane.b32.xlu0 %v18872_v61, %s17233_s30  ;;  %v19534_v61 = vld [vmem:[%s23953_s1 + $0x220] sm:$0xff]  ;;  %v19540_v17 = vadd.f32 %v15223_v43, %v19430_v47 }
 0x215   : > { %6955 = vrot.lane.b32.xlu1 %v18928_v57, %s17232_s25  ;;  %15729 = vmatmul.mubr.msk.f32.gmra.mxu0 %vm264_vm0, %v19509_v44  ;;  %v19557_v47 = vpop.f32.mrf.mxu0 }
 0x216   : > { %15757 = vmatmul.mubr.msk.f32.gmra.mxu1 %vm264_vm0, %v18677_v20  ;;  %15770 = vmatpush3.msra.mxu0 %v17078_v32  ;;  %24087 = vst [vmem:[#allocation46_spill] sm:$0xff] %v19540_v17  ;;  %v19542_v20 = vadd.f32 %v15204_v62, %v1354_v9  ;;  %v17080_v32 = vld [vmem:[%s17294_s24 + $0xd8] sm:$0xff]  ;;  %24088 = vst [vmem:[#allocation47_spill] sm:$0xff] %v19557_v47  ;;  %v19564_v9 = vpop.f32.mrf.mxu1 }
 0x217   : > { %15798 = vmatpush3.msra.mxu1 %v19279_v26  ;;  %15771 = vmatprep.subr.mxu0 %v17079_v45  ;;  %v19550_v26 = vld [vmem:[%s23953_s1 + $0x228] sm:$0xff]  ;;  %24089 = vst [vmem:[#allocation48_spill] sm:$0xff] %v19564_v9  ;;  %v17090_v17 = vld [vmem:[%s17294_s24 + $0x118] sm:$0xff] }
 0x218   : > { %15799 = vmatprep.subr.mxu1 %v19286_v41  ;;  %15772 = vmatpush3.msra.mxu0 %v17079_v45  ;;  %v19584_v62 = vpop.f32.mrf.mxu1 }
 0x219   : > { %15800 = vmatpush3.msra.mxu1 %v19286_v41  ;;  %15731 = vmatprep.mubr.msk.f32.mxu0 %vm264_vm0, %v19534_v61  ;;  %v19555_v45 = vpop.permute.xlu0 %5621 }
 0x21a   : > { %15759 = vmatprep.mubr.msk.f32.mxu1 %vm264_vm0, %v18700_v25  ;;  %15773 = vmatprep.subr.mxu0 %v17080_v32  ;;  %v19562_v41 = vpop.permute.xlu1 %5619  ;;  %v19575_v25 = vld [vmem:[%s23953_s1 + $0x230] sm:$0xff] }
 0x21b   : > { %15801 = vmatprep.subr.mxu1 %v19312_v42  ;;  %7126 = vrot.lane.b32.xlu0 %v18901_v36, %s17233_s30  ;;  %v15226_v36 = vpop.f32.mrf.mxu0 }
 0x21c   : > { %6953 = vrot.lane.b32.xlu1 %v18978_v59, %s17232_s25  ;;  %15732 = vmatmul.mubr.msk.f32.gmra.mxu0 %vm264_vm0, %v19550_v26  ;;  %v19582_v43 = vadd.f32 %v15226_v36, %v19463_v21 }
 0x21d   : > { %15760 = vmatmul.mubr.msk.f32.gmra.mxu1 %vm264_vm0, %v18714_v28  ;;  %15774 = vmatpush3.msra.mxu0 %v17080_v32  ;;  %v19592_v28 = vld [vmem:[%s23953_s1 + $0x238] sm:$0xff]  ;;  %v19601_v21 = vpop.f32.mrf.mxu0 }
 0x21e   : > { %15802 = vmatpush3.msra.mxu1 %v19312_v42  ;;  %15775 = vmatprep.subr.mxu0 %v18786_v48  ;;  %24090 = vst [vmem:[#allocation49_spill] sm:$0xff] %v19582_v43  ;;  %24091 = vst [vmem:[#allocation50_spill] sm:$0xff] %v19601_v21  ;;  %v19766_v21 = vld [vmem:[%s17294_s24 + $0x1a0] sm:$0xff] }
 0x21f   : > { %15803 = vmatprep.subr.mxu1 %v19316_v50  ;;  %15776 = vmatpush3.msra.mxu0 %v18786_v48 }
 0x220   : > { %15804 = vmatpush3.msra.mxu1 %v19316_v50  ;;  %15734 = vmatprep.mubr.msk.f32.mxu0 %vm264_vm0, %v19575_v25  ;;  %v19594_v42 = vpop.permute.xlu0 %5617  ;;  %v19606_v50 = vpop.f32.mrf.mxu1 }
 0x221   : > { %15762 = vmatprep.mubr.msk.f32.mxu1 %vm264_vm0, %v18737_v8  ;;  %15777 = vmatprep.subr.mxu0 %v18800_v18  ;;  %v19599_v48 = vpop.permute.xlu1 %5615  ;;  %24092 = vst [vmem:[#allocation51_spill] sm:$0xff] %v19606_v50  ;;  %v15229_v8 = vpop.f32.mrf.mxu0  ;;  %v19897_v50 = vld [vmem:[%s17294_s24 + $0x158] sm:$0xff] }
 0x222   : > { %15805 = vmatprep.subr.mxu1 %v19352_v12  ;;  %7124 = vrot.lane.b32.xlu0 %v18928_v57, %s17233_s30  ;;  %v19617_v57 = vpop.f32.mrf.mxu1  ;;  %v19624_v36 = vadd.f32 %v15229_v8, %v19501_v63  ;;  %v17083_v63 = vld [vmem:[%s23953_s1 + $0x8] sm:$0xff] }
 0x223   : > { %6951 = vrot.lane.b32.xlu1 %v19018_v15, %s17232_s25  ;;  %15735 = vmatmul.mubr.msk.f32.gmra.mxu0 %vm264_vm0, %v19592_v28 }
 0x224   : > { %15763 = vmatmul.mubr.msk.f32.gmra.mxu1 %vm264_vm0, %v18752_v10  ;;  %15778 = vmatpush3.msra.mxu0 %v18800_v18  ;;  %24093 = vst [vmem:[#allocation52_spill] sm:$0xff] %v19624_v36  ;;  %v17081_v10 = vld [vmem:[%s23953_s1] sm:$0xff] }
 0x225   : > { %15806 = vmatpush3.msra.mxu1 %v19352_v12  ;;  %15779 = vmatprep.subr.mxu0 %v18826_v55  ;;  %v19636_v12 = vpop.f32.mrf.mxu0 }
 0x226   : > { %15807 = vmatprep.subr.mxu1 %v19358_v19  ;;  %15780 = vmatpush3.msra.mxu0 %v18826_v55  ;;  %v19621_v32 = vpop.permute.xlu0 %5613  ;;  %v17082_v55 = vld [vmem:[%s17294_s24 + $0x138] sm:$0xff]  ;;  %24094 = vst [vmem:[#allocation53_spill] sm:$0xff] %v19636_v12 }
 0x227   : > { %15808 = vmatpush3.msra.mxu1 %v19358_v19  ;;  %15781 = vmatprep.mubr.msk.f32.mxu0 %vm264_vm0, %v17081_v10  ;;  %v19631_v18 = vpop.permute.xlu1 %5611  ;;  %v19641_v19 = vpop.f32.mrf.mxu1 }
 0x228   : > { %15809 = vmatprep.mubr.msk.f32.mxu1 %vm264_vm0, %v18781_v54  ;;  %15821 = vmatprep.subr.mxu0 %v17082_v55  ;;  %24095 = vst [vmem:[#allocation54_spill] sm:$0xff] %v19641_v19  ;;  %v15232_v10 = vpop.f32.mrf.mxu0  ;;  %v19857_v19 = vld [vmem:[%s17294_s24 + $0x168] sm:$0xff] }
 0x229   : > { %15849 = vmatprep.subr.mxu1 %v19404_v3  ;;  %7122 = vrot.lane.b32.xlu0 %v18978_v59, %s17233_s30  ;;  %v17084_v59 = vld [vmem:[%s17294_s24 + $0x130] sm:$0xff]  ;;  %v19657_v36 = vpop.f32.mrf.mxu1 }
 0x22a   : > { %6949 = vrot.lane.b32.xlu1 %v19057_v58, %s17232_s25  ;;  %15782 = vmatmul.mubr.msk.f32.vlgmr.msra.gmra.mxu0 %vm264_vm0, %v17083_v63  ;;  %v19649_v54 = vpop.permute.xlu0 %5609  ;;  %v19661_v63 = vadd.f32 %v15232_v10, %v19542_v20  ;;  %v17087_v20 = vld [vmem:[%s23953_s1 + $0x18] sm:$0xff] }
 0x22b   : > { %15810 = vmatmul.mubr.msk.f32.vlgmr.msra.gmra.mxu1 %vm264_vm0, %v18806_v40  ;;  %15822 = vmatpush3.msra.mxu0 %v17082_v55  ;;  %v19653_v8 = vpop.permute.xlu1 %5607  ;;  %v17085_v40 = vld [vmem:[%s23953_s1 + $0x10] sm:$0xff]  ;;  %v17086_v55 = vld [vmem:[%s17294_s24 + $0x128] sm:$0xff] }
 0x22c   : > { %15850 = vmatpush3.msra.mxu1 %v19404_v3  ;;  %15823 = vmatprep.subr.mxu0 %v17084_v59  ;;  %24096 = vst [vmem:[#allocation55_spill] sm:$0xff] %v19661_v63 }
 0x22d   : > { %15851 = vmatprep.subr.mxu1 %v19406_v30  ;;  %15824 = vmatpush3.msra.mxu0 %v17084_v59  ;;  %v19674_v59 = vpop.f32.mrf.mxu0 }
 0x22e   : > { %15852 = vmatpush3.msra.mxu1 %v19406_v30  ;;  %15784 = vmatprep.mubr.msk.f32.mxu0 %vm264_vm0, %v17085_v40  ;;  %v19668_v3 = vpop.permute.xlu0 %5954  ;;  %24097 = vst [vmem:[#allocation56_spill] sm:$0xff] %v19674_v59  ;;  %v19680_v30 = vpop.f32.mrf.mxu1 }
 0x22f   : > { %15825 = vmatprep.subr.mxu0 %v17086_v55  ;;  %15853 = vmatprep.subr.mxu1 %v19453_v14  ;;  %v19672_v43 = vpop.permute.xlu1 %5952  ;;  %24098 = vst [vmem:[#allocation57_spill] sm:$0xff] %v19680_v30  ;;  %v15279_v63 = vpop.f32.mrf.mxu0  ;;  %v19834_v30 = vld [vmem:[%s17294_s24 + $0x170] sm:$0xff] }
 0x230   : > { %7120 = vrot.lane.b32.xlu0 %v19018_v15, %s17233_s30  ;;  %6947 = vrot.lane.b32.xlu1 %v19098_v29, %s17232_s25  ;;  %v17088_v15 = vld [vmem:[%s17294_s24 + $0x120] sm:$0xff] }
 0x231   : > { %15785 = vmatmul.mubr.msk.f32.gmra.mxu0 %vm264_vm0, %v17087_v20  ;;  %15854 = vmatpush3.msra.mxu1 %v19453_v14  ;;  %v17089_v20 = vld [vmem:[%s23953_s1 + $0x20] sm:$0xff]  ;;  %v2049_v14 = vadd.f32 %v15279_v63, %v19584_v62  ;;  %v17091_v62 = vld [vmem:[%s23953_s1 + $0x28] sm:$0xff] }
 0x232   : > { %15826 = vmatpush3.msra.mxu0 %v17086_v55  ;;  %15855 = vmatprep.subr.mxu1 %v19455_v56  ;;  %v19688_v10 = vpop.permute.xlu0 %6123  ;;  %v19699_v55 = vpop.f32.mrf.mxu1 }
 0x233   : > { %15827 = vmatprep.subr.mxu0 %v17088_v15  ;;  %15856 = vmatpush3.msra.mxu1 %v19455_v56  ;;  %v19692_v40 = vpop.permute.xlu1 %5950 }
 0x234   : > { %15828 = vmatpush3.msra.mxu0 %v17088_v15  ;;  %15787 = vmatprep.mubr.msk.f32.mxu0 %vm264_vm0, %v17089_v20  ;;  %v19717_v63 = vpop.f32.mrf.mxu1  ;;  %v17092_v15 = vld [vmem:[%s17294_s24 + $0x110] sm:$0xff]  ;;  %v19725_v20 = vld [vmem:[%s17294_s24 + $0x1b8] sm:$0xff] }
 0x235   : > { %15812 = vmatprep.mubr.msk.f32.mxu1 %vm264_vm0, %v18882_v6  ;;  %15829 = vmatprep.subr.mxu0 %v17090_v17  ;;  %24099 = vst [vmem:[#allocation58_spill] sm:$0xff] %v19717_v63 }
 0x236   : > { %15857 = vmatprep.subr.mxu1 %v19486_v7  ;;  %7118 = vrot.lane.b32.xlu0 %v19057_v58, %s17233_s30  ;;  %v19707_v56 = vpop.permute.xlu0 %6121 }
 0x237   : > { %7116 = vrot.lane.b32.xlu1 %v19098_v29, %s17233_s30  ;;  %15788 = vmatmul.mubr.msk.f32.gmra.mxu0 %vm264_vm0, %v17091_v62  ;;  %v19715_v6 = vpop.permute.xlu1 %5948  ;;  %v17093_v62 = vld [vmem:[%s23953_s1 + $0x30] sm:$0xff] }
 0x238   : > { %15813 = vmatmul.mubr.msk.f32.gmra.mxu1 %vm264_vm0, %v18913_v39  ;;  %15830 = vmatpush3.msra.mxu0 %v17090_v17  ;;  %v19735_v39 = vld [vmem:[%s17294_s24 + $0x1b0] sm:$0xff]  ;;  %v15307_v17 = vpop.f32.mrf.mxu1 }
 0x239   : > { %15858 = vmatpush3.msra.mxu1 %v19486_v7  ;;  %15831 = vmatprep.subr.mxu0 %v17092_v15  ;;  %v19742_v12 = vadd.f32 %v15307_v17, %v2049_v14  ;;  %v17096_v14 = vld [vmem:[%s17294_s24 + $0x100] sm:$0xff]  ;;  %v19763_v17 = vld [vmem:[%s17294_s24 + $0x1a8] sm:$0xff] }
 0x23a   : > { %15859 = vmatprep.subr.mxu1 %v19495_v51  ;;  %15832 = vmatpush3.msra.mxu0 %v17092_v15  ;;  %v19727_v59 = vpop.permute.xlu0 %6119  ;;  %v17094_v15 = vld [vmem:[%s17294_s24 + $0x108] sm:$0xff] }
 0x23b   : > { %15860 = vmatpush3.msra.mxu1 %v19495_v51  ;;  %15790 = vmatprep.mubr.msk.f32.mxu0 %vm264_vm0, %v17093_v62  ;;  %v19737_v7 = vpop.permute.xlu1 %5946  ;;  %v17095_v51 = vld [vmem:[%s23953_s1 + $0x38] sm:$0xff] }
 0x23c   : > { %15815 = vmatprep.mubr.msk.f32.mxu1 %vm264_vm0, %v18937_v27  ;;  %15833 = vmatprep.subr.mxu0 %v17094_v15 }
 0x23d   : > { %15861 = vmatprep.subr.mxu1 %v19519_v5  ;;  %7463 = vrot.lane.b32.xlu0 %v19725_v20, %s17232_s25 }
 0x23e   : > { %7461 = vrot.lane.b32.xlu1 %v19735_v39, %s17232_s25  ;;  %15791 = vmatmul.mubr.msk.f32.gmra.mxu0 %vm264_vm0, %v17095_v51  ;;  %v19753_v27 = vpop.permute.xlu0 %6117  ;;  %v19794_v51 = vld [vmem:[%s17294_s24 + $0x198] sm:$0xff] }
 0x23f   : > { %15816 = vmatmul.mubr.msk.f32.gmra.mxu1 %vm264_vm0, %v18959_v52  ;;  %15834 = vmatpush3.msra.mxu0 %v17094_v15  ;;  %v19759_v62 = vpop.permute.xlu1 %5944  ;;  %v17097_v52 = vld [vmem:[%s23953_s1 + $0xc0] sm:$0xff] }
 0x240   : > { %15862 = vmatpush3.msra.mxu1 %v19519_v5  ;;  %15835 = vmatprep.subr.mxu0 %v17096_v14  ;;  %v19776_v5 = vpop.f32.mrf.mxu0 }
 0x241   : > { %15863 = vmatprep.subr.mxu1 %v19527_v23  ;;  %15836 = vmatpush3.msra.mxu0 %v17096_v14  ;;  %24100 = vst [vmem:[#allocation59_spill] sm:$0xff] %v19776_v5 }
 0x242   : > { %15864 = vmatpush3.msra.mxu1 %v19527_v23  ;;  %15818 = vmatprep.mubr.msk.f32.mxu1 %vm264_vm0, %v18987_v1  ;;  %v17098_v1 = vld [vmem:[%s23953_s1 + $0xc8] sm:$0xff]  ;;  %v15282_v15 = vpop.f32.mrf.mxu0 }
 0x243   : > { %15837 = vmatprep.mubr.msk.f32.mxu0 %vm264_vm0, %v17097_v52  ;;  %15877 = vmatprep.subr.mxu0 %v19555_v45  ;;  %v19782_v23 = vpop.permute.xlu0 %6115  ;;  %v2059_v52 = vadd.f32 %v15282_v15, %v19617_v57  ;;  %v24103_v15 = vld [vmem:[#allocation14_spill] sm:$0xff] }
 0x244   : > { %7459 = vrot.lane.b32.xlu0 %v19763_v17, %s17232_s25  ;;  %7457 = vrot.lane.b32.xlu1 %v19766_v21, %s17232_s25  ;;  %v19796_v14 = vpop.permute.xlu1 %5942 }
 0x245   : > { %15819 = vmatmul.mubr.msk.f32.gmra.mxu1 %vm264_vm0, %v19006_v22  ;;  %15838 = vmatmul.mubr.msk.f32.vlgmr.msra.gmra.mxu0 %vm264_vm0, %v17098_v1  ;;  %v19803_v22 = vld [vmem:[%s17294_s24 + $0x190] sm:$0xff]  ;;  %v19805_v1 = vpop.f32.mrf.mxu1 }
 0x246   : > { %15878 = vmatpush3.msra.mxu0 %v19555_v45  ;;  %15840 = vmatprep.mubr.msk.f32.mxu0 %vm264_vm0, %v18894_v24  ;;  %24101 = vst [vmem:[#allocation60_spill] sm:$0xff] %v19805_v1  ;;  %v19809_v45 = vld [vmem:[%s17294_s24 + $0x178] sm:$0xff]  ;;  %v19812_v24 = vpop.f32.mrf.mxu0 }
 0x247   : > { %15879 = vmatprep.subr.mxu0 %v19562_v41  ;;  %15865 = vmatprep.mubr.msk.f32.mxu1 %vm264_vm0, %v19033_v46  ;;  %24102 = vst [vmem:[#allocation61_spill] sm:$0xff] %v19812_v24  ;;  %v15310_v57 = vpop.f32.mrf.mxu1 }
 0x248   : > { %15880 = vmatpush3.msra.mxu0 %v19562_v41  ;;  %15905 = vmatprep.subr.mxu1 %v19809_v45  ;;  %v2246_v41 = vadd.f32 %v15310_v57, %v2059_v52  ;;  %v15285_v47 = vpop.f32.mrf.mxu0  ;;  %v19839_v52 = vld [vmem:[%s17294_s24 + $0x188] sm:$0xff] }
 0x249   : > { %15881 = vmatprep.subr.mxu0 %v19594_v42  ;;  %7455 = vrot.lane.b32.xlu0 %v19794_v51, %s17232_s25  ;;  %v19826_v63 = vpop.f32.mrf.mxu1 }
 0x24a   : > { %7453 = vrot.lane.b32.xlu1 %v19803_v22, %s17232_s25  ;;  %15841 = vmatmul.mubr.msk.f32.gmra.mxu0 %vm264_vm0, %v18918_v13  ;;  %v19821_v46 = vpop.permute.xlu0 %6113  ;;  %24104 = vst [vmem:[#allocation14_spill] sm:$0xff] %v19826_v63  ;;  %v19830_v1 = vpop.permute.xlu1 %5940  ;;  %v2069_v13 = vadd.f32 %v15285_v47, %v19657_v36  ;;  %v19847_v63 = vld [vmem:[%s17294_s24 + $0x180] sm:$0xff]  ;;  %v24107_v47 = vld [vmem:[#allocation20_spill] sm:$0xff] }
 0x24b   : > { %15866 = vmatmul.mubr.msk.f32.vlgmr.msra.gmra.mxu1 %vm264_vm0, %v24103_v15  ;;  %15882 = vmatpush3.msra.mxu0 %v19594_v42  ;;  %v19841_v42 = vpop.f32.mrf.mxu0  ;;  %v15313_v57 = vpop.f32.mrf.mxu1  ;;  %v24106_v15 = vld [vmem:[#allocation6_spill] sm:$0xff] }
 0x24c   : > { %15906 = vmatpush3.msra.mxu1 %v19809_v45  ;;  %15883 = vmatprep.subr.mxu0 %v19599_v48  ;;  %24105 = vst [vmem:[#allocation62_spill] sm:$0xff] %v19841_v42  ;;  %v19849_v24 = vadd.f32 %v15313_v57, %v2069_v13  ;;  %v24109_v13 = vld [vmem:[#allocation15_spill] sm:$0xff] }
 0x24d   : > { %15907 = vmatprep.subr.mxu1 %v19834_v30  ;;  %15884 = vmatpush3.msra.mxu0 %v19599_v48  ;;  %v15288_v48 = vpop.f32.mrf.mxu0  ;;  %v19854_v36 = vpop.f32.mrf.mxu1 }
 0x24e   : > { %15908 = vmatpush3.msra.mxu1 %v19834_v30  ;;  %15843 = vmatprep.mubr.msk.f32.mxu0 %vm264_vm0, %v24106_v15  ;;  %24108 = vst [vmem:[#allocation6_spill] sm:$0xff] %v19854_v36  ;;  %v2079_v15 = vadd.f32 %v15288_v48, %v19699_v55  ;;  %v24111_v36 = vld [vmem:[#allocation21_spill] sm:$0xff] }
 0x24f   : > { %15868 = vmatprep.mubr.msk.f32.mxu1 %vm264_vm0, %v24107_v47  ;;  %15885 = vmatprep.subr.mxu0 %v19621_v32  ;;  %v19869_v47 = vpop.f32.mrf.mxu0  ;;  %v15316_v9 = vpop.f32.mrf.mxu1 }
 0x250   : > { %15909 = vmatprep.subr.mxu1 %v19857_v19  ;;  %7451 = vrot.lane.b32.xlu0 %v19839_v52, %s17232_s25  ;;  %v19867_v57 = vpop.permute.xlu0 %6111  ;;  %24110 = vst [vmem:[#allocation20_spill] sm:$0xff] %v19869_v47  ;;  %v19878_v55 = vadd.f32 %v15316_v9, %v2079_v15  ;;  %v24113_v47 = vld [vmem:[#allocation19_spill] sm:$0xff]  ;;  %v24115_v9 = vld [vmem:[#allocation24_spill] sm:$0xff] }
 0x251   : > { %7449 = vrot.lane.b32.xlu1 %v19847_v63, %s17232_s25  ;;  %15844 = vmatmul.mubr.msk.f32.gmra.mxu0 %vm264_vm0, %v24109_v13  ;;  %v19874_v42 = vpop.permute.xlu1 %6109  ;;  %v15335_v48 = vpop.f32.mrf.mxu0  ;;  %v19881_v13 = vld [vmem:[%s17294_s24 + $0x160] sm:$0xff] }
 0x252   : > { %15869 = vmatmul.mubr.msk.f32.gmra.mxu1 %vm264_vm0, %v24111_v36  ;;  %15886 = vmatpush3.msra.mxu0 %v19621_v32  ;;  %v2397_v36 = vadd.f32 %v15335_v48, %v19742_v12  ;;  %v19886_v32 = vpop.f32.mrf.mxu1  ;;  %v24116_v48 = vld [vmem:[#allocation10_spill] sm:$0xff] }
 0x253   : > { %15910 = vmatpush3.msra.mxu1 %v19857_v19  ;;  %15887 = vmatprep.subr.mxu0 %v19631_v18  ;;  %24112 = vst [vmem:[#allocation15_spill] sm:$0xff] %v19886_v32  ;;  %v19891_v5 = vpop.f32.mrf.mxu0 }
 0x254   : > { %15911 = vmatprep.subr.mxu1 %v19881_v13  ;;  %15888 = vmatpush3.msra.mxu0 %v19631_v18  ;;  %24114 = vst [vmem:[#allocation21_spill] sm:$0xff] %v19891_v5  ;;  %v15363_v15 = vpop.f32.mrf.mxu1 }
 0x255   : > { %15912 = vmatpush3.msra.mxu1 %v19881_v13  ;;  %15846 = vmatprep.mubr.msk.f32.mxu0 %vm264_vm0, %v24113_v47  ;;  %v19904_v12 = vadd.f32 %v15363_v15, %v2397_v36  ;;  %v15338_v47 = vpop.f32.mrf.mxu0 }
 0x256   : > { %15871 = vmatprep.mubr.msk.f32.mxu1 %vm264_vm0, %v24115_v9  ;;  %15889 = vmatprep.subr.mxu0 %v19649_v54  ;;  %v2399_v5 = vadd.f32 %v15338_v47, %v2246_v41  ;;  %v19912_v32 = vpop.f32.mrf.mxu1  ;;  %v19927_v41 = vld [vmem:[%s17294_s24 + $0x178] sm:$0xff] }
 0x257   : > { %15913 = vmatprep.subr.mxu1 %v19897_v50  ;;  %7632 = vrot.lane.b32.xlu0 %v19725_v20, %s17233_s30  ;;  %v19902_v18 = vpop.permute.xlu0 %6341  ;;  %24117 = vst [vmem:[#allocation19_spill] sm:$0xff] %v19912_v32  ;;  %v19917_v36 = vpop.f32.mrf.mxu0  ;;  %v17106_v32 = vld [vmem:[%s23953_s1 + $0x148] sm:$0xff] }
 0x258   : > { %7630 = vrot.lane.b32.xlu1 %v19735_v39, %s17233_s30  ;;  %15847 = vmatmul.mubr.msk.f32.gmra.mxu0 %vm264_vm0, %v24116_v48  ;;  %v19910_v9 = vpop.permute.xlu1 %6339  ;;  %24119 = vst [vmem:[#allocation24_spill] sm:$0xff] %v19917_v36  ;;  %v15366_v15 = vpop.f32.mrf.mxu1  ;;  %v19960_v36 = vld [vmem:[%s17294_s24 + $0x148] sm:$0xff] }
 0x259   : > { %15872 = vmatmul.mubr.msk.f32.gmra.mxu1 %vm264_vm0, %v24118_v4  ;;  %15890 = vmatpush3.msra.mxu0 %v19649_v54  ;;  %v19929_v47 = vadd.f32 %v15366_v15, %v2399_v5  ;;  %v24120_v4 = vld [vmem:[#allocation27_spill] sm:$0xff]  ;;  %v17105_v54 = vld [vmem:[%s23953_s1 + $0x140] sm:$0xff]  ;;  %v15341_v48 = vpop.f32.mrf.mxu0 }
 0x25a   : > { %15914 = vmatpush3.msra.mxu1 %v19897_v50  ;;  %15891 = vmatprep.subr.mxu0 %v19653_v8 }
 0x25b   : > { %15915 = vmatprep.subr.mxu1 %v19922_v34  ;;  %15892 = vmatpush3.msra.mxu0 %v19653_v8  ;;  %v19939_v8 = vpop.f32.mrf.mxu1 }
 0x25c   : > { %15916 = vmatpush3.msra.mxu1 %v19922_v34  ;;  %15874 = vmatprep.mubr.msk.f32.mxu1 %vm264_vm0, %v24120_v4  ;;  %24121 = vst [vmem:[#allocation10_spill] sm:$0xff] %v19939_v8  ;;  %v2401_v4 = vadd.f32 %v15341_v48, %v19849_v24  ;;  %v19968_v48 = vld [vmem:[%s17294_s24 + $0x170] sm:$0xff] }
 0x25d   : > { %15893 = vmatprep.mubr.msk.f32.mxu0 %vm264_vm0, %v17105_v54  ;;  %15917 = vmatprep.subr.mxu1 %v19057_v58  ;;  %v24122_v54 = vld [vmem:[#allocation28_spill] sm:$0xff]  ;;  %v19953_v58 = vpop.f32.mrf.mxu0  ;;  %v15369_v8 = vpop.f32.mrf.mxu1 }
 0x25e   : > { %15933 = vmatprep.subr.mxu0 %v19668_v3  ;;  %7850 = vrot.lane.b32.xlu0 %v19927_v41, %s17232_s25  ;;  %v19944_v5 = vpop.permute.xlu0 %6337  ;;  %v19946_v15 = vpop.permute.xlu1 %6335  ;;  %24123 = vst [vmem:[#allocation25_spill] sm:$0xff] %v19953_v58  ;;  %v19963_v24 = vadd.f32 %v15369_v8, %v2401_v4 }
 0x25f   : > { %7628 = vrot.lane.b32.xlu1 %v19763_v17, %s17233_s30  ;;  %15875 = vmatmul.mubr.msk.f32.gmra.mxu1 %vm264_vm0, %v24122_v54  ;;  %v15344_v4 = vpop.f32.mrf.mxu0  ;;  %v19983_v58 = vpop.f32.mrf.mxu1 }
 0x260   : > { %15894 = vmatmul.mubr.msk.f32.vlgmr.msra.gmra.mxu0 %vm264_vm0, %v17106_v32  ;;  %15918 = vmatpush3.msra.mxu1 %v19960_v36  ;;  %v24124_v32 = vld [vmem:[#allocation29_spill] sm:$0xff]  ;;  %24125 = vst [vmem:[#allocation27_spill] sm:$0xff] %v19983_v58 }
 0x261   : > { %15934 = vmatpush3.msra.mxu0 %v19668_v3  ;;  %15919 = vmatprep.subr.mxu1 %v19098_v29  ;;  %v2403_v3 = vadd.f32 %v15344_v4, %v19878_v55  ;;  %v19996_v16 = vpop.f32.mrf.mxu0  ;;  %v15372_v4 = vpop.f32.mrf.mxu1 }
 0x262   : > { %15935 = vmatprep.subr.mxu0 %v19672_v43  ;;  %15920 = vmatpush3.msra.mxu1 %v19098_v29  ;;  %v19972_v54 = vpop.permute.xlu0 %6333  ;;  %v24126_v29 = vld [vmem:[#allocation30_spill] sm:$0xff]  ;;  %24127 = vst [vmem:[#allocation28_spill] sm:$0xff] %v19996_v16 }
 0x263   : > { %15936 = vmatpush3.msra.mxu0 %v19672_v43  ;;  %15921 = vmatprep.mubr.msk.f32.mxu1 %vm264_vm0, %v24124_v32  ;;  %v19977_v8 = vpop.permute.xlu1 %6331  ;;  %v19990_v43 = vld [vmem:[%s17294_s24 + $0x168] sm:$0xff]  ;;  %v15391_v58 = vpop.f32.mrf.mxu0 }
 0x264   : > { %15961 = vmatprep.subr.mxu1 %v19688_v10  ;;  %7848 = vrot.lane.b32.xlu0 %v19968_v48, %s17232_s25  ;;  %v20022_v16 = vpop.f32.mrf.mxu1 }
 0x265   : > { %7626 = vrot.lane.b32.xlu1 %v19766_v21, %s17233_s30  ;;  %15922 = vmatmul.mubr.msk.f32.vlgmr.msra.gmra.mxu1 %vm264_vm0, %v24126_v29  ;;  %v20005_v29 = vadd.f32 %v15372_v4, %v2403_v3  ;;  %v2743_v4 = vadd.f32 %v15391_v58, %v19904_v12  ;;  %24128 = vst [vmem:[#allocation29_spill] sm:$0xff] %v20022_v16 }
 0x266   : > { %15937 = vmatprep.subr.mxu0 %v19692_v40  ;;  %15962 = vmatpush3.msra.mxu1 %v19688_v10  ;;  %v19994_v32 = vpop.permute.xlu0 %6329  ;;  %v20011_v10 = vld [vmem:[%s17294_s24 + $0x160] sm:$0xff]  ;;  %v15419_v12 = vpop.f32.mrf.mxu1 }
 0x267   : > { %15938 = vmatpush3.msra.mxu0 %v19692_v40  ;;  %15963 = vmatprep.subr.mxu1 %v19707_v56  ;;  %v20000_v55 = vpop.permute.xlu1 %6327  ;;  %v20049_v16 = vadd.f32 %v15419_v12, %v2743_v4  ;;  %v20067_v4 = vld [vmem:[%s17294_s24 + $0x150] sm:$0xff] }
 0x268   : > { %7846 = vrot.lane.b32.xlu0 %v19990_v43, %s17232_s25  ;;  %15939 = vmatprep.subr.mxu0 %v19715_v6  ;;  %v20071_v12 = vpop.f32.mrf.mxu1 }
 0x269   : > { %7624 = vrot.lane.b32.xlu1 %v19794_v51, %s17233_s30  ;;  %15964 = vmatpush3.msra.mxu1 %v19707_v56  ;;  %v20030_v56 = vld [vmem:[%s23953_s1 + $0x150] sm:$0xff]  ;;  %24133 = vst [vmem:[#allocation66_spill] sm:$0xff] %v20071_v12 }
 0x26a   : > { %15940 = vmatpush3.msra.mxu0 %v19715_v6  ;;  %15965 = vmatprep.subr.mxu1 %v19727_v59  ;;  %v20015_v40 = vpop.permute.xlu0 %6631  ;;  %24129 = vst [vmem:[#allocation30_spill] sm:$0xff] %v20030_v56  ;;  %v20038_v6 = vpop.f32.mrf.mxu0 }
 0x26b   : > { %15941 = vmatprep.subr.mxu0 %v19737_v7  ;;  %15966 = vmatpush3.msra.mxu1 %v19727_v59  ;;  %v20019_v3 = vpop.permute.xlu1 %6629  ;;  %v20036_v59 = vld [vmem:[%s17294_s24 + $0x158] sm:$0xff]  ;;  %24130 = vst [vmem:[#allocation63_spill] sm:$0xff] %v20038_v6 }
 0x26c   : > { %7844 = vrot.lane.b32.xlu0 %v20011_v10, %s17232_s25  ;;  %15942 = vmatpush3.msra.mxu0 %v19737_v7  ;;  %v20045_v7 = vld [vmem:[%s23953_s1 + $0x158] sm:$0xff] }
 0x26d   : > { %7622 = vrot.lane.b32.xlu1 %v19803_v22, %s17233_s30  ;;  %15967 = vmatprep.subr.mxu1 %v19753_v27  ;;  %24131 = vst [vmem:[#allocation64_spill] sm:$0xff] %v20045_v7 }
 0x26e   : > { %15943 = vmatprep.subr.mxu0 %v19759_v62  ;;  %15968 = vmatpush3.msra.mxu1 %v19753_v27  ;;  %v20047_v58 = vpop.permute.xlu0 %6627  ;;  %v20062_v27 = vld [vmem:[%s23953_s1 + $0x160] sm:$0xff] }
 0x26f   : > { %15944 = vmatpush3.msra.mxu0 %v19759_v62  ;;  %15896 = vmatprep.mubr.msk.f32.mxu0 %vm264_vm0, %v20030_v56  ;;  %v20054_v6 = vpop.permute.xlu1 %6625  ;;  %24132 = vst [vmem:[#allocation65_spill] sm:$0xff] %v20062_v27  ;;  %v15394_v62 = vpop.f32.mrf.mxu0 }
 0x270   : > { %7842 = vrot.lane.b32.xlu0 %v20036_v59, %s17232_s25  ;;  %15969 = vmatprep.subr.mxu1 %v19782_v23  ;;  %v2745_v38 = vadd.f32 %v15394_v62, %v19929_v47  ;;  %v20103_v62 = vld [vmem:[%s17294_s24 + $0x140] sm:$0xff] }
 0x271   : > { %7620 = vrot.lane.b32.xlu1 %v19839_v52, %s17233_s30  ;;  %15897 = vmatmul.mubr.msk.f32.gmra.mxu0 %vm264_vm0, %v20045_v7  ;;  %v20084_v7 = vld [vmem:[%s23953_s1 + $0x168] sm:$0xff]  ;;  %v20088_v56 = vpop.f32.mrf.mxu0 }
 0x272   : > { %15945 = vmatprep.subr.mxu0 %v19796_v14  ;;  %15970 = vmatpush3.msra.mxu1 %v19782_v23  ;;  %v20075_v37 = vpop.permute.xlu0 %6623  ;;  %24134 = vst [vmem:[#allocation67_spill] sm:$0xff] %v20084_v7  ;;  %24135 = vst [vmem:[#allocation68_spill] sm:$0xff] %v20088_v56  ;;  %v15422_v23 = vpop.f32.mrf.mxu1 }
 0x273   : > { %15946 = vmatpush3.msra.mxu0 %v19796_v14  ;;  %15899 = vmatprep.mubr.msk.f32.mxu0 %vm264_vm0, %v20062_v27  ;;  %v20086_v12 = vpop.permute.xlu1 %6621  ;;  %v20098_v14 = vld [vmem:[%s17294_s24 + $0x148] sm:$0xff]  ;;  %v20100_v47 = vadd.f32 %v15422_v23, %v2745_v38  ;;  %v15397_v38 = vpop.f32.mrf.mxu0 }
 0x274   : > { %7840 = vrot.lane.b32.xlu0 %v20067_v4, %s17232_s25  ;;  %15924 = vmatprep.mubr.msk.f32.mxu1 %vm264_vm0, %v19327_v2  ;;  %v20112_v2 = vld [vmem:[%s23953_s1 + $0x170] sm:$0xff]  ;;  %v20129_v27 = vpop.f32.mrf.mxu1 }
 0x275   : > { %7618 = vrot.lane.b32.xlu1 %v19847_v63, %s17233_s30  ;;  %15971 = vmatprep.subr.mxu1 %v19821_v46  ;;  %24136 = vst [vmem:[#allocation69_spill] sm:$0xff] %v20129_v27 }
 0x276   : > { %15900 = vmatmul.mubr.msk.f32.gmra.mxu0 %vm264_vm0, %v20084_v7  ;;  %15925 = vmatmul.mubr.msk.f32.gmra.mxu1 %vm264_vm0, %v19347_v35  ;;  %v20116_v56 = vpop.permute.xlu0 %6619  ;;  %v20124_v35 = vld [vmem:[%s23953_s1 + $0x178] sm:$0xff]  ;;  %v2747_v7 = vadd.f32 %v15397_v38, %v19963_v24 }
 0x277   : > { %15947 = vmatprep.subr.mxu0 %v19830_v1  ;;  %15972 = vmatpush3.msra.mxu1 %v19821_v46  ;;  %v20126_v23 = vpop.permute.xlu1 %6617  ;;  %v20135_v46 = vpop.f32.mrf.mxu0 }
 0x278   : > { %7838 = vrot.lane.b32.xlu0 %v20098_v14, %s17232_s25  ;;  %15948 = vmatpush3.msra.mxu0 %v19830_v1  ;;  %24137 = vst [vmem:[#allocation70_spill] sm:$0xff] %v20135_v46  ;;  %v15425_v1 = vpop.f32.mrf.mxu1 }
 0x279   : > { %7836 = vrot.lane.b32.xlu1 %v20103_v62, %s17232_s25  ;;  %15902 = vmatprep.mubr.msk.f32.mxu0 %vm264_vm0, %v20112_v2  ;;  %v2903_v24 = vadd.f32 %v15425_v1, %v2747_v7  ;;  %v15400_v38 = vpop.f32.mrf.mxu0 }
 0x27a   : > { %15927 = vmatprep.mubr.msk.f32.mxu1 %vm264_vm0, %v19373_v0  ;;  %15973 = vmatprep.subr.mxu1 %v19867_v57  ;;  %v20150_v0 = vld [vmem:[%s23953_s1 + $0x1c0] sm:$0xff]  ;;  %v2749_v27 = vadd.f32 %v15400_v38, %v20005_v29  ;;  %v20153_v46 = vpop.f32.mrf.mxu1 }
 0x27b   : > { %15903 = vmatmul.mubr.msk.f32.gmra.mxu0 %vm264_vm0, %v20124_v35  ;;  %15928 = vmatmul.mubr.msk.f32.gmra.mxu1 %vm264_vm0, %v19387_v49  ;;  %24138 = vst [vmem:[#allocation71_spill] sm:$0xff] %v20153_v46  ;;  %v20158_v49 = vpop.permute.xlu0 %6961  ;;  %v20160_v7 = vpop.f32.mrf.mxu0 }
 0x27c   : > { %8140 = vrot.lane.b32.xlu0 %v19927_v41, %s17233_s30  ;;  %15974 = vmatpush3.msra.mxu1 %v19867_v57  ;;  %24139 = vst [vmem:[#allocation72_spill] sm:$0xff] %v20160_v7  ;;  %v20168_v57 = vld [vmem:[%s23953_s1 + $0x1c8] sm:$0xff]  ;;  %v20170_v41 = vpop.permute.xlu1 %6959  ;;  %v15428_v29 = vpop.f32.mrf.mxu1 }
 0x27d   : > { %8138 = vrot.lane.b32.xlu1 %v19968_v48, %s17233_s30  ;;  %15975 = vmatprep.subr.mxu1 %v19874_v42  ;;  %v2905_v48 = vadd.f32 %v15428_v29, %v2749_v27  ;;  %v15447_v1 = vpop.f32.mrf.mxu0 }
 0x27e   : > { %15976 = vmatpush3.msra.mxu1 %v19874_v42  ;;  %15930 = vmatprep.mubr.msk.f32.mxu1 %vm264_vm0, %v19414_v31  ;;  %v13099_v42 = vld [vmem:[%s23953_s1 + $0x1d0] sm:$0xff]  ;;  %v3076_v31 = vadd.f32 %v15447_v1, %v20049_v16  ;;  %v20183_v38 = vpop.f32.mrf.mxu1  ;;  %v13100_v16 = vld [vmem:[%s23953_s1 + $0x1d8] sm:$0xff] }
 0x27f   : > { %15949 = vmatprep.mubr.msk.f32.mxu0 %vm264_vm0, %v20150_v0  ;;  %15989 = vmatprep.subr.mxu0 %v19902_v18  ;;  %24140 = vst [vmem:[#allocation73_spill] sm:$0xff] %v20183_v38  ;;  %v20189_v46 = vpop.f32.mrf.mxu0  ;;  %v20758_v38 = vld [vmem:[%s17294_s24 + $0x1a0] sm:$0xff] }
 0x280   : > { %8136 = vrot.lane.b32.xlu0 %v19990_v43, %s17233_s30  ;;  %15931 = vmatmul.mubr.msk.f32.gmra.mxu1 %vm264_vm0, %v19428_v11  ;;  %24141 = vst [vmem:[#allocation74_spill] sm:$0xff] %v20189_v46  ;;  %v15475_v43 = vpop.f32.mrf.mxu1  ;;  %v20199_v11 = vpop.permute.xlu0 %7130 }
 0x281   : > { %8134 = vrot.lane.b32.xlu1 %v20011_v10, %s17233_s30  ;;  %15950 = vmatmul.mubr.msk.f32.vlgmr.msra.gmra.mxu0 %vm264_vm0, %v20168_v57  ;;  %v20201_v10 = vadd.f32 %v15475_v43, %v3076_v31  ;;  %v15450_v27 = vpop.f32.mrf.mxu0  ;;  %v20205_v29 = vpop.permute.xlu1 %6957 }
 0x282   : > { %15990 = vmatpush3.msra.mxu0 %v19902_v18  ;;  %15952 = vmatprep.mubr.msk.f32.mxu0 %vm264_vm0, %v13099_v42  ;;  %v17108_v18 = vld [vmem:[%s17294_s24 + $0x138] sm:$0xff]  ;;  %v3078_v42 = vadd.f32 %v15450_v27, %v20100_v47  ;;  %v20208_v1 = vpop.f32.mrf.mxu1  ;;  %v13101_v47 = vld [vmem:[%s23953_s1 + $0x1e0] sm:$0xff]  ;;  %v13102_v27 = vld [vmem:[%s23953_s1 + $0x1e8] sm:$0xff] }
 0x283   : > { %15991 = vmatprep.subr.mxu0 %v19910_v9  ;;  %15977 = vmatprep.mubr.msk.f32.mxu1 %vm264_vm0, %v19447_v60  ;;  %24142 = vst [vmem:[#allocation75_spill] sm:$0xff] %v20201_v10  ;;  %24143 = vst [vmem:[#allocation76_spill] sm:$0xff] %v20208_v1  ;;  %v20213_v60 = vpop.f32.mrf.mxu0  ;;  %v13211_v1 = vld [vmem:[%s23953_s1 + $0x110] sm:$0xff] }
 0x284   : > { %15992 = vmatpush3.msra.mxu0 %v19910_v9  ;;  %16017 = vmatprep.subr.mxu1 %v17108_v18  ;;  %24144 = vst [vmem:[#allocation77_spill] sm:$0xff] %v20213_v60  ;;  %v15478_v9 = vpop.f32.mrf.mxu1 }
 0x285   : > { %15993 = vmatprep.subr.mxu0 %v19944_v5  ;;  %8132 = vrot.lane.b32.xlu0 %v20036_v59, %s17233_s30  ;;  %v20224_v31 = vadd.f32 %v15478_v9, %v3078_v42  ;;  %v15453_v59 = vpop.f32.mrf.mxu0  ;;  %v17110_v9 = vld [vmem:[%s17294_s24 + $0x128] sm:$0xff] }
 0x286   : > { %8130 = vrot.lane.b32.xlu1 %v20067_v4, %s17233_s30  ;;  %15953 = vmatmul.mubr.msk.f32.gmra.mxu0 %vm264_vm0, %v13100_v16  ;;  %v3080_v43 = vadd.f32 %v15453_v59, %v2903_v24  ;;  %v20227_v4 = vpop.f32.mrf.mxu1  ;;  %v17109_v16 = vld [vmem:[%s17294_s24 + $0x130] sm:$0xff] }
 0x287   : > { %15978 = vmatmul.mubr.msk.f32.vlgmr.msra.gmra.mxu1 %vm264_vm0, %v19471_v53  ;;  %15994 = vmatpush3.msra.mxu0 %v19944_v5  ;;  %24145 = vst [vmem:[#allocation78_spill] sm:$0xff] %v20224_v31  ;;  %24146 = vst [vmem:[#allocation79_spill] sm:$0xff] %v20227_v4  ;;  %v20231_v53 = vpop.permute.xlu0 %7128  ;;  %v20233_v5 = vpop.f32.mrf.mxu0 }
 0x288   : > { %16018 = vmatpush3.msra.mxu1 %v17108_v18  ;;  %15995 = vmatprep.subr.mxu0 %v19946_v15  ;;  %24147 = vst [vmem:[#allocation80_spill] sm:$0xff] %v20233_v5  ;;  %v20239_v18 = vpop.permute.xlu1 %6955  ;;  %v15481_v24 = vpop.f32.mrf.mxu1 }
 0x289   : > { %16019 = vmatprep.subr.mxu1 %v17109_v16  ;;  %15996 = vmatpush3.msra.mxu0 %v19946_v15  ;;  %v20244_v15 = vadd.f32 %v15481_v24, %v3080_v43  ;;  %v15456_v42 = vpop.f32.mrf.mxu0  ;;  %v13103_v43 = vld [vmem:[%s23953_s1 + $0x1f0] sm:$0xff]  ;;  %v13104_v24 = vld [vmem:[%s23953_s1 + $0x1f8] sm:$0xff] }
 0x28a   : > { %16020 = vmatpush3.msra.mxu1 %v17109_v16  ;;  %15955 = vmatprep.mubr.msk.f32.mxu0 %vm264_vm0, %v13101_v47  ;;  %v3082_v47 = vadd.f32 %v15456_v42, %v2905_v48  ;;  %v20249_v59 = vpop.f32.mrf.mxu1 }
 0x28b   : > { %15980 = vmatprep.mubr.msk.f32.mxu1 %vm264_vm0, %v19493_v33  ;;  %15997 = vmatprep.subr.mxu0 %v19972_v54  ;;  %24148 = vst [vmem:[#allocation81_spill] sm:$0xff] %v20244_v15  ;;  %24149 = vst [vmem:[#allocation82_spill] sm:$0xff] %v20249_v59  ;;  %v20254_v33 = vpop.f32.mrf.mxu0  ;;  %v20648_v59 = vld [vmem:[%s17294_s24 + $0x1d0] sm:$0xff] }
 0x28c   : > { %16021 = vmatprep.subr.mxu1 %v17110_v9  ;;  %8128 = vrot.lane.b32.xlu0 %v20098_v14, %s17233_s30  ;;  %24150 = vst [vmem:[#allocation83_spill] sm:$0xff] %v20254_v33  ;;  %v15484_v14 = vpop.f32.mrf.mxu1 }
 0x28d   : > { %8126 = vrot.lane.b32.xlu1 %v20103_v62, %s17233_s30  ;;  %15956 = vmatmul.mubr.msk.f32.gmra.mxu0 %vm264_vm0, %v13102_v27  ;;  %v20263_v48 = vpop.permute.xlu0 %7126  ;;  %v20265_v62 = vadd.f32 %v15484_v14, %v3082_v47  ;;  %v15503_v16 = vpop.f32.mrf.mxu0  ;;  %v17111_v27 = vld [vmem:[%s17294_s24 + $0x120] sm:$0xff] }
 0x28e   : > { %15981 = vmatmul.mubr.msk.f32.gmra.mxu1 %vm264_vm0, %v19509_v44  ;;  %15998 = vmatpush3.msra.mxu0 %v19972_v54  ;;  %v20269_v44 = vpop.permute.xlu1 %6953  ;;  %v20271_v54 = vpop.f32.mrf.mxu1 }
 0x28f   : > { %16022 = vmatpush3.msra.mxu1 %v17110_v9  ;;  %15999 = vmatprep.subr.mxu0 %v19977_v8  ;;  %24151 = vst [vmem:[#allocation84_spill] sm:$0xff] %v20265_v62  ;;  %24152 = vst [vmem:[#allocation85_spill] sm:$0xff] %v20271_v54  ;;  %v20277_v42 = vpop.f32.mrf.mxu0  ;;  %v17113_v62 = vld [vmem:[%s17294_s24 + $0x110] sm:$0xff] }
 0x290   : > { %16023 = vmatprep.subr.mxu1 %v17111_v27  ;;  %16000 = vmatpush3.msra.mxu0 %v19977_v8  ;;  %v15531_v9 = vpop.f32.mrf.mxu1  ;;  %v17112_v8 = vld [vmem:[%s17294_s24 + $0x118] sm:$0xff] }
 0x291   : > { %16024 = vmatpush3.msra.mxu1 %v17111_v27  ;;  %15958 = vmatprep.mubr.msk.f32.mxu0 %vm264_vm0, %v13103_v43  ;;  %v20285_v47 = vadd.f32 %v15531_v9, %v15503_v16  ;;  %v15506_v43 = vpop.f32.mrf.mxu0  ;;  %v13145_v16 = vld [vmem:[%s23953_s1 + $0x40] sm:$0xff] }
 0x292   : > { %15983 = vmatprep.mubr.msk.f32.mxu1 %vm264_vm0, %v19534_v61  ;;  %16001 = vmatprep.subr.mxu0 %v19994_v32  ;;  %v20290_v14 = vpop.f32.mrf.mxu1 }
 0x293   : > { %16025 = vmatprep.subr.mxu1 %v17112_v8  ;;  %8470 = vrot.lane.b32.xlu0 %v19725_v20, %s17232_s25  ;;  %24153 = vst [vmem:[#allocation86_spill] sm:$0xff] %v20290_v14  ;;  %v20297_v27 = vpop.f32.mrf.mxu0 }
 0x294   : > { %8468 = vrot.lane.b32.xlu1 %v19735_v39, %s17232_s25  ;;  %15959 = vmatmul.mubr.msk.f32.gmra.mxu0 %vm264_vm0, %v13104_v24  ;;  %v20295_v61 = vpop.permute.xlu0 %7124  ;;  %24154 = vst [vmem:[#allocation87_spill] sm:$0xff] %v20297_v27  ;;  %v15534_v9 = vpop.f32.mrf.mxu1 }
 0x295   : > { %15984 = vmatmul.mubr.msk.f32.gmra.mxu1 %vm264_vm0, %v19550_v26  ;;  %16002 = vmatpush3.msra.mxu0 %v19994_v32  ;;  %v20303_v24 = vpop.permute.xlu1 %6951  ;;  %v20307_v26 = vadd.f32 %v15534_v9, %v15506_v43  ;;  %v17114_v32 = vld [vmem:[%s17294_s24 + $0x108] sm:$0xff]  ;;  %v15509_v15 = vpop.f32.mrf.mxu0 }
 0x296   : > { %16026 = vmatpush3.msra.mxu1 %v17112_v8  ;;  %16003 = vmatprep.subr.mxu0 %v20000_v55  ;;  %v13146_v8 = vld [vmem:[%s23953_s1 + $0x48] sm:$0xff]  ;;  %v20316_v31 = vpop.f32.mrf.mxu1 }
 0x297   : > { %16027 = vmatprep.subr.mxu1 %v17113_v62  ;;  %16004 = vmatpush3.msra.mxu0 %v20000_v55  ;;  %24155 = vst [vmem:[#allocation88_spill] sm:$0xff] %v20316_v31  ;;  %v13147_v55 = vld [vmem:[%s23953_s1 + $0x50] sm:$0xff]  ;;  %v20333_v43 = vpop.f32.mrf.mxu0 }
 0x298   : > { %16028 = vmatpush3.msra.mxu1 %v17113_v62  ;;  %15986 = vmatprep.mubr.msk.f32.mxu1 %vm264_vm0, %v19575_v25  ;;  %24156 = vst [vmem:[#allocation89_spill] sm:$0xff] %v20333_v43  ;;  %v15537_v9 = vpop.f32.mrf.mxu1 }
 0x299   : > { %16005 = vmatprep.mubr.msk.f32.mxu0 %vm264_vm0, %v13145_v16  ;;  %16029 = vmatprep.subr.mxu1 %v17114_v32  ;;  %v17115_v16 = vld [vmem:[%s17294_s24 + $0x100] sm:$0xff]  ;;  %v15512_v10 = vpop.f32.mrf.mxu0 }
 0x29a   : > { %16045 = vmatprep.subr.mxu0 %v20015_v40  ;;  %8466 = vrot.lane.b32.xlu0 %v19763_v17, %s17232_s25 }
 0x29b   : > { %8464 = vrot.lane.b32.xlu1 %v19766_v21, %s17232_s25  ;;  %15987 = vmatmul.mubr.msk.f32.gmra.mxu1 %vm264_vm0, %v19592_v28  ;;  %v20325_v25 = vpop.permute.xlu0 %7122  ;;  %v6303_v28 = vld [vmem:[%s23953_s1] sm:$0xff] }
 0x29c   : > { %16006 = vmatmul.mubr.msk.f32.vlgmr.msra.gmra.mxu0 %vm264_vm0, %v13146_v8  ;;  %16030 = vmatpush3.msra.mxu1 %v17114_v32  ;;  %v20331_v62 = vpop.permute.xlu1 %6949  ;;  %v20341_v32 = vadd.f32 %v15537_v9, %v15509_v15  ;;  %v6304_v8 = vld [vmem:[%s23953_s1 + $0x8] sm:$0xff] }
 0x29d   : > { %16046 = vmatpush3.msra.mxu0 %v20015_v40  ;;  %16031 = vmatprep.subr.mxu1 %v17115_v16  ;;  %v13148_v40 = vld [vmem:[%s23953_s1 + $0x58] sm:$0xff] }
 0x29e   : > { %16047 = vmatprep.subr.mxu0 %v20019_v3  ;;  %16032 = vmatpush3.msra.mxu1 %v17115_v16  ;;  %v20353_v16 = vpop.f32.mrf.mxu1 }
 0x29f   : > { %16048 = vmatpush3.msra.mxu0 %v20019_v3  ;;  %16008 = vmatprep.mubr.msk.f32.mxu0 %vm264_vm0, %v13147_v55  ;;  %24157 = vst [vmem:[#allocation90_spill] sm:$0xff] %v20353_v16  ;;  %v13149_v55 = vld [vmem:[%s23953_s1 + $0x60] sm:$0xff] }
 0x2a0   : > { %16033 = vmatprep.mubr.msk.f32.mxu1 %vm264_vm0, %v6303_v28  ;;  %16049 = vmatprep.subr.mxu0 %v20047_v58  ;;  %v20370_v28 = vpop.f32.mrf.mxu0  ;;  %v15540_v9 = vpop.f32.mrf.mxu1 }
 0x2a1   : > { %16073 = vmatprep.subr.mxu1 %v19809_v45  ;;  %8462 = vrot.lane.b32.xlu0 %v19794_v51, %s17232_s25  ;;  %24158 = vst [vmem:[#allocation91_spill] sm:$0xff] %v20370_v28  ;;  %v20377_v54 = vadd.f32 %v15540_v9, %v15512_v10  ;;  %v13151_v9 = vld [vmem:[%s23953_s1 + $0x70] sm:$0xff]  ;;  %v21688_v28 = vld [vmem:[%s17294_s24 + $0x1e8] sm:$0xff] }
 0x2a2   : > { %8460 = vrot.lane.b32.xlu1 %v19803_v22, %s17232_s25  ;;  %16009 = vmatmul.mubr.msk.f32.gmra.mxu0 %vm264_vm0, %v13148_v40  ;;  %v20361_v3 = vpop.permute.xlu0 %7120  ;;  %v20363_v15 = vpop.permute.xlu1 %6947  ;;  %v6305_v40 = vld [vmem:[%s23953_s1 + $0x10] sm:$0xff] }
 0x2a3   : > { %16034 = vmatmul.mubr.msk.f32.vlgmr.msra.gmra.mxu1 %vm264_vm0, %v6304_v8  ;;  %16050 = vmatpush3.msra.mxu0 %v20047_v58  ;;  %v6306_v58 = vld [vmem:[%s23953_s1 + $0x18] sm:$0xff]  ;;  %v15559_v10 = vpop.f32.mrf.mxu0  ;;  %v20391_v8 = vpop.f32.mrf.mxu1 }
 0x2a4   : > { %16074 = vmatpush3.msra.mxu1 %v19809_v45  ;;  %16051 = vmatprep.subr.mxu0 %v20054_v6  ;;  %v13150_v45 = vld [vmem:[%s23953_s1 + $0x68] sm:$0xff]  ;;  %24159 = vst [vmem:[#allocation92_spill] sm:$0xff] %v20391_v8 }
 0x2a5   : > { %16075 = vmatprep.subr.mxu1 %v19834_v30  ;;  %16052 = vmatpush3.msra.mxu0 %v20054_v6 }
 0x2a6   : > { %16076 = vmatpush3.msra.mxu1 %v19834_v30  ;;  %16011 = vmatprep.mubr.msk.f32.mxu0 %vm264_vm0, %v13149_v55  ;;  %v3753_v30 = vadd.f32 %v15559_v10, %v20285_v47  ;;  %v15587_v47 = vpop.f32.mrf.mxu1 }
 0x2a7   : > { %16036 = vmatprep.mubr.msk.f32.mxu1 %vm264_vm0, %v6305_v40  ;;  %16053 = vmatprep.subr.mxu0 %v20075_v37  ;;  %v20409_v40 = vpop.f32.mrf.mxu0 }
 0x2a8   : > { %16077 = vmatprep.subr.mxu1 %v19857_v19  ;;  %8458 = vrot.lane.b32.xlu0 %v19839_v52, %s17232_s25  ;;  %v20400_v6 = vpop.permute.xlu0 %7118  ;;  %24160 = vst [vmem:[#allocation93_spill] sm:$0xff] %v20409_v40  ;;  %v20416_v10 = vadd.f32 %v15587_v47, %v3753_v30  ;;  %v20430_v30 = vpop.f32.mrf.mxu1  ;;  %v6309_v47 = vld [vmem:[%s23953_s1 + $0x30] sm:$0xff] }
 0x2a9   : > { %8456 = vrot.lane.b32.xlu1 %v19847_v63, %s17232_s25  ;;  %16012 = vmatmul.mubr.msk.f32.gmra.mxu0 %vm264_vm0, %v13150_v45  ;;  %v20402_v55 = vpop.permute.xlu1 %7116  ;;  %v6307_v45 = vld [vmem:[%s23953_s1 + $0x20] sm:$0xff]  ;;  %24161 = vst [vmem:[#allocation94_spill] sm:$0xff] %v20430_v30 }
 0x2aa   : > { %16037 = vmatmul.mubr.msk.f32.gmra.mxu1 %vm264_vm0, %v6306_v58  ;;  %16054 = vmatpush3.msra.mxu0 %v20075_v37  ;;  %v13152_v37 = vld [vmem:[%s23953_s1 + $0x78] sm:$0xff]  ;;  %v15562_v58 = vpop.f32.mrf.mxu0 }
 0x2ab   : > { %16078 = vmatpush3.msra.mxu1 %v19857_v19  ;;  %16055 = vmatprep.subr.mxu0 %v20086_v12  ;;  %v6308_v19 = vld [vmem:[%s23953_s1 + $0x28] sm:$0xff] }
 0x2ac   : > { %16079 = vmatprep.subr.mxu1 %v19881_v13  ;;  %16056 = vmatpush3.msra.mxu0 %v20086_v12 }
 0x2ad   : > { %16080 = vmatpush3.msra.mxu1 %v19881_v13  ;;  %16014 = vmatprep.mubr.msk.f32.mxu0 %vm264_vm0, %v13151_v9  ;;  %v3755_v13 = vadd.f32 %v15562_v58, %v20307_v26  ;;  %v15590_v26 = vpop.f32.mrf.mxu1 }
 0x2ae   : > { %16039 = vmatprep.mubr.msk.f32.mxu1 %vm264_vm0, %v6307_v45  ;;  %16057 = vmatprep.subr.mxu0 %v20116_v56 }
 0x2af   : > { %16081 = vmatprep.subr.mxu1 %v19897_v50  ;;  %8639 = vrot.lane.b32.xlu0 %v19725_v20, %s17233_s30  ;;  %v20439_v12 = vpop.permute.xlu0 %7463  ;;  %v20448_v20 = vpop.f32.mrf.mxu0  ;;  %v20455_v45 = vadd.f32 %v15590_v26, %v3755_v13 }
 0x2b0   : > { %8637 = vrot.lane.b32.xlu1 %v19735_v39, %s17233_s30  ;;  %16015 = vmatmul.mubr.msk.f32.gmra.mxu0 %vm264_vm0, %v13152_v37  ;;  %v20441_v9 = vpop.permute.xlu1 %7461  ;;  %24162 = vst [vmem:[#allocation95_spill] sm:$0xff] %v20448_v20  ;;  %v13169_v39 = vld [vmem:[%s23953_s1 + $0x80] sm:$0xff] }
 0x2b1   : > { %16040 = vmatmul.mubr.msk.f32.gmra.mxu1 %vm264_vm0, %v6308_v19  ;;  %16058 = vmatpush3.msra.mxu0 %v20116_v56  ;;  %v13170_v56 = vld [vmem:[%s23953_s1 + $0x88] sm:$0xff]  ;;  %v15565_v37 = vpop.f32.mrf.mxu0  ;;  %v20469_v19 = vpop.f32.mrf.mxu1 }
 0x2b2   : > { %16082 = vmatpush3.msra.mxu1 %v19897_v50  ;;  %16059 = vmatprep.subr.mxu0 %v20126_v23  ;;  %v6310_v50 = vld [vmem:[%s23953_s1 + $0x38] sm:$0xff]  ;;  %24163 = vst [vmem:[#allocation96_spill] sm:$0xff] %v20469_v19  ;;  %v3757_v58 = vadd.f32 %v15565_v37, %v20341_v32  ;;  %v17116_v32 = vld [vmem:[%s17294_s24 + $0x140] sm:$0xff] }
 0x2b3   : > { %16083 = vmatprep.subr.mxu1 %v19922_v34  ;;  %16060 = vmatpush3.msra.mxu0 %v20126_v23  ;;  %v20482_v13 = vpop.f32.mrf.mxu0 }
 0x2b4   : > { %16084 = vmatpush3.msra.mxu1 %v19922_v34  ;;  %16042 = vmatprep.mubr.msk.f32.mxu1 %vm264_vm0, %v6309_v47  ;;  %24164 = vst [vmem:[#allocation97_spill] sm:$0xff] %v20482_v13  ;;  %v15593_v47 = vpop.f32.mrf.mxu1 }
 0x2b5   : > { %16061 = vmatprep.mubr.msk.f32.mxu0 %vm264_vm0, %v13169_v39  ;;  %16085 = vmatprep.subr.mxu1 %v19960_v36  ;;  %v20489_v26 = vadd.f32 %v15593_v47, %v3757_v58  ;;  %v20558_v58 = vld [vmem:[%s17294_s24 + $0x1e8] sm:$0xff] }
 0x2b6   : > { %16101 = vmatprep.subr.mxu0 %v20158_v49  ;;  %8635 = vrot.lane.b32.xlu0 %v19763_v17, %s17233_s30  ;;  %v20474_v34 = vpop.permute.xlu0 %7459  ;;  %v20476_v23 = vpop.permute.xlu1 %7457  ;;  %v13193_v17 = vld [vmem:[%s23953_s1 + $0xc0] sm:$0xff] }
 0x2b7   : > { %8633 = vrot.lane.b32.xlu1 %v19766_v21, %s17233_s30  ;;  %16043 = vmatmul.mubr.msk.f32.gmra.mxu1 %vm264_vm0, %v6310_v50  ;;  %v13194_v21 = vld [vmem:[%s23953_s1 + $0xc8] sm:$0xff]  ;;  %v20503_v39 = vpop.f32.mrf.mxu1 }
 0x2b8   : > { %16062 = vmatmul.mubr.msk.f32.vlgmr.msra.gmra.mxu0 %vm264_vm0, %v13170_v56  ;;  %16086 = vmatpush3.msra.mxu1 %v19960_v36  ;;  %v15568_v36 = vpop.f32.mrf.mxu0  ;;  %24165 = vst [vmem:[#allocation98_spill] sm:$0xff] %v20503_v39  ;;  %v20826_v39 = vld [vmem:[%s17294_s24 + $0x188] sm:$0xff] }
 0x2b9   : > { %16102 = vmatpush3.msra.mxu0 %v20158_v49  ;;  %16087 = vmatprep.subr.mxu1 %v17116_v32  ;;  %v3759_v49 = vadd.f32 %v15568_v36, %v20377_v54  ;;  %v15596_v54 = vpop.f32.mrf.mxu1 }
 0x2ba   : > { %16103 = vmatprep.subr.mxu0 %v20170_v41  ;;  %16088 = vmatpush3.msra.mxu1 %v17116_v32  ;;  %v13196_v32 = vld [vmem:[%s23953_s1 + $0xd8] sm:$0xff] }
 0x2bb   : > { %16104 = vmatpush3.msra.mxu0 %v20170_v41  ;;  %16089 = vmatprep.mubr.msk.f32.mxu1 %vm264_vm0, %v13193_v17  ;;  %v20508_v50 = vpop.permute.xlu0 %7455  ;;  %v20518_v56 = vadd.f32 %v15596_v54, %v3759_v49  ;;  %v20537_v37 = vpop.f32.mrf.mxu1  ;;  %v13172_v17 = vld [vmem:[%s23953_s1 + $0x98] sm:$0xff] }
 0x2bc   : > { %16129 = vmatprep.subr.mxu1 %v20199_v11  ;;  %8631 = vrot.lane.b32.xlu0 %v19794_v51, %s17233_s30  ;;  %v20510_v41 = vpop.permute.xlu1 %7453  ;;  %v20514_v51 = vpop.f32.mrf.mxu0  ;;  %24167 = vst [vmem:[#allocation100_spill] sm:$0xff] %v20537_v37  ;;  %v24182_v37 = vld [vmem:[#allocation65_spill] sm:$0xff] }
 0x2bd   : > { %8629 = vrot.lane.b32.xlu1 %v19803_v22, %s17233_s30  ;;  %16090 = vmatmul.mubr.msk.f32.vlgmr.msra.gmra.mxu1 %vm264_vm0, %v13194_v21  ;;  %24166 = vst [vmem:[#allocation99_spill] sm:$0xff] %v20514_v51  ;;  %v20527_v22 = vld [vmem:[%s17294_s24 + $0x1f8] sm:$0xff]  ;;  %v13173_v21 = vld [vmem:[%s23953_s1 + $0xa0] sm:$0xff] }
 0x2be   : > { %16105 = vmatprep.subr.mxu0 %v20205_v29  ;;  %16130 = vmatpush3.msra.mxu1 %v20199_v11  ;;  %v20532_v11 = vld [vmem:[%s17294_s24 + $0x1f0] sm:$0xff] }
 0x2bf   : > { %16106 = vmatpush3.msra.mxu0 %v20205_v29  ;;  %16131 = vmatprep.subr.mxu1 %v20231_v53  ;;  %v15615_v29 = vpop.f32.mrf.mxu0 }
 0x2c0   : > { %8627 = vrot.lane.b32.xlu0 %v19839_v52, %s17233_s30  ;;  %16107 = vmatprep.subr.mxu0 %v20239_v18  ;;  %v4083_v52 = vadd.f32 %v15615_v29, %v20416_v10  ;;  %v13197_v29 = vld [vmem:[%s23953_s1 + $0xe0] sm:$0xff] }
 0x2c1   : > { %8625 = vrot.lane.b32.xlu1 %v19847_v63, %s17233_s30  ;;  %16132 = vmatpush3.msra.mxu1 %v20231_v53  ;;  %v13171_v63 = vld [vmem:[%s23953_s1 + $0x90] sm:$0xff]  ;;  %v20555_v10 = vpop.f32.mrf.mxu0 }
 0x2c2   : > { %16108 = vmatpush3.msra.mxu0 %v20239_v18  ;;  %16133 = vmatprep.subr.mxu1 %v20263_v48  ;;  %v20545_v53 = vpop.permute.xlu0 %7451  ;;  %24168 = vst [vmem:[#allocation101_spill] sm:$0xff] %v20555_v10 }
 0x2c3   : > { %16109 = vmatprep.subr.mxu0 %v20269_v44  ;;  %16134 = vmatpush3.msra.mxu1 %v20263_v48  ;;  %v20547_v18 = vpop.permute.xlu1 %7449  ;;  %v13195_v48 = vld [vmem:[%s23953_s1 + $0xd0] sm:$0xff] }
 0x2c4   : > { %8972 = vrot.lane.b32.xlu0 %v20527_v22, %s17232_s25  ;;  %16110 = vmatpush3.msra.mxu0 %v20269_v44  ;;  %v15643_v44 = vpop.f32.mrf.mxu1 }
 0x2c5   : > { %8970 = vrot.lane.b32.xlu1 %v20532_v11, %s17232_s25  ;;  %16135 = vmatprep.subr.mxu1 %v20295_v61  ;;  %v20562_v47 = vadd.f32 %v15643_v44, %v4083_v52 }
 0x2c6   : > { %16111 = vmatprep.subr.mxu0 %v20303_v24  ;;  %16136 = vmatpush3.msra.mxu1 %v20295_v61  ;;  %v15618_v61 = vpop.f32.mrf.mxu0  ;;  %v20589_v54 = vpop.f32.mrf.mxu1 }
 0x2c7   : > { %16112 = vmatpush3.msra.mxu0 %v20303_v24  ;;  %16064 = vmatprep.mubr.msk.f32.mxu0 %vm264_vm0, %v13171_v63  ;;  %v20579_v24 = vld [vmem:[%s17294_s24 + $0x1e0] sm:$0xff]  ;;  %v4085_v49 = vadd.f32 %v15618_v61, %v20455_v45  ;;  %24169 = vst [vmem:[#allocation102_spill] sm:$0xff] %v20589_v54  ;;  %v13174_v45 = vld [vmem:[%s23953_s1 + $0xa8] sm:$0xff] }
 0x2c8   : > { %9141 = vrot.lane.b32.xlu0 %v20527_v22, %s17233_s30  ;;  %16092 = vmatprep.mubr.msk.f32.mxu1 %vm264_vm0, %v13195_v48  ;;  %v20598_v63 = vpop.f32.mrf.mxu0  ;;  %v15646_v48 = vpop.f32.mrf.mxu1  ;;  %v24178_v54 = vld [vmem:[#allocation30_spill] sm:$0xff] }
 0x2c9   : > { %8968 = vrot.lane.b32.xlu1 %v20558_v58, %s17232_s25  ;;  %16137 = vmatprep.subr.mxu1 %v20325_v25  ;;  %v20586_v36 = vpop.permute.xlu0 %7632  ;;  %24170 = vst [vmem:[#allocation103_spill] sm:$0xff] %v20598_v63  ;;  %v20612_v44 = vadd.f32 %v15646_v48, %v4085_v49 }
 0x2ca   : > { %16065 = vmatmul.mubr.msk.f32.gmra.mxu0 %vm264_vm0, %v13172_v17  ;;  %16093 = vmatmul.mubr.msk.f32.gmra.mxu1 %vm264_vm0, %v13196_v32  ;;  %v20596_v52 = vpop.permute.xlu1 %7630  ;;  %v13175_v17 = vld [vmem:[%s23953_s1 + $0xb0] sm:$0xff]  ;;  %v15621_v32 = vpop.f32.mrf.mxu0 }
 0x2cb   : > { %16113 = vmatprep.subr.mxu0 %v20331_v62  ;;  %16138 = vmatpush3.msra.mxu1 %v20325_v25  ;;  %v13198_v25 = vld [vmem:[%s23953_s1 + $0xe8] sm:$0xff]  ;;  %v20624_v61 = vpop.f32.mrf.mxu1 }
 0x2cc   : > { %9139 = vrot.lane.b32.xlu0 %v20532_v11, %s17233_s30  ;;  %16114 = vmatpush3.msra.mxu0 %v20331_v62  ;;  %v20617_v62 = vld [vmem:[%s17294_s24 + $0x1d8] sm:$0xff]  ;;  %24171 = vst [vmem:[#allocation104_spill] sm:$0xff] %v20624_v61  ;;  %v20643_v48 = vpop.f32.mrf.mxu0 }
 0x2cd   : > { %8966 = vrot.lane.b32.xlu1 %v20579_v24, %s17232_s25  ;;  %16067 = vmatprep.mubr.msk.f32.mxu0 %vm264_vm0, %v13173_v21  ;;  %v13199_v21 = vld [vmem:[%s23953_s1 + $0xf0] sm:$0xff]  ;;  %24172 = vst [vmem:[#allocation105_spill] sm:$0xff] %v20643_v48 }
 0x2ce   : > { %16095 = vmatprep.mubr.msk.f32.mxu1 %vm264_vm0, %v13197_v29  ;;  %16139 = vmatprep.subr.mxu1 %v20361_v3  ;;  %v4087_v29 = vadd.f32 %v15621_v32, %v20489_v26  ;;  %v13200_v26 = vld [vmem:[%s23953_s1 + $0xf8] sm:$0xff]  ;;  %v15649_v32 = vpop.f32.mrf.mxu1 }
 0x2cf   : > { %16068 = vmatmul.mubr.msk.f32.gmra.mxu0 %vm264_vm0, %v13174_v45  ;;  %16096 = vmatmul.mubr.msk.f32.gmra.mxu1 %vm264_vm0, %v13198_v25  ;;  %v13176_v45 = vld [vmem:[%s23953_s1 + $0xb8] sm:$0xff] }
 0x2d0   : > { %9137 = vrot.lane.b32.xlu0 %v20558_v58, %s17233_s30  ;;  %16115 = vmatprep.subr.mxu0 %v20363_v15  ;;  %v20632_v49 = vpop.permute.xlu0 %7850  ;;  %v20658_v4 = vadd.f32 %v15649_v32, %v4087_v29  ;;  %v20679_v32 = vld [vmem:[%s17294_s24 + $0x1c8] sm:$0xff] }
 0x2d1   : > { %8964 = vrot.lane.b32.xlu1 %v20617_v62, %s17232_s25  ;;  %16140 = vmatpush3.msra.mxu1 %v20361_v3  ;;  %v20641_v25 = vpop.permute.xlu1 %7628  ;;  %v13209_v3 = vld [vmem:[%s23953_s1 + $0x100] sm:$0xff] }
 0x2d2   : > { %16116 = vmatpush3.msra.mxu0 %v20363_v15  ;;  %16070 = vmatprep.mubr.msk.f32.mxu0 %vm264_vm0, %v13175_v17  ;;  %v13225_v15 = vld [vmem:[%s23953_s1 + $0x140] sm:$0xff]  ;;  %v15624_v17 = vpop.f32.mrf.mxu0 }
 0x2d3   : > { %16098 = vmatprep.mubr.msk.f32.mxu1 %vm264_vm0, %v13199_v21  ;;  %16141 = vmatprep.subr.mxu1 %v20400_v6  ;;  %v20669_v21 = vpop.f32.mrf.mxu1 }
 0x2d4   : > { %9135 = vrot.lane.b32.xlu0 %v20579_v24, %s17233_s30  ;;  %16071 = vmatmul.mubr.msk.f32.gmra.mxu0 %vm264_vm0, %v13176_v45  ;;  %24173 = vst [vmem:[#allocation106_spill] sm:$0xff] %v20669_v21  ;;  %v4089_v45 = vadd.f32 %v15624_v17, %v20518_v56  ;;  %v13226_v56 = vld [vmem:[%s23953_s1 + $0x148] sm:$0xff] }
 0x2d5   : > { %8962 = vrot.lane.b32.xlu1 %v20648_v59, %s17232_s25  ;;  %16099 = vmatmul.mubr.msk.f32.gmra.mxu1 %vm264_vm0, %v13200_v26  ;;  %v13210_v26 = vld [vmem:[%s23953_s1 + $0x108] sm:$0xff] }
 0x2d6   : > { %16142 = vmatpush3.msra.mxu1 %v20400_v6  ;;  %16117 = vmatprep.mubr.msk.f32.mxu0 %vm264_vm0, %v13209_v3  ;;  %v20673_v29 = vpop.permute.xlu0 %7848  ;;  %v20688_v6 = vld [vmem:[%s17294_s24 + $0x1b8] sm:$0xff]  ;;  %v20694_v3 = vpop.f32.mrf.mxu0 }
 0x2d7   : > { %16143 = vmatprep.subr.mxu1 %v20402_v55  ;;  %16145 = vmatprep.mubr.msk.f32.mxu1 %vm264_vm0, %v13225_v15  ;;  %v20684_v33 = vpop.permute.xlu1 %7626  ;;  %24174 = vst [vmem:[#allocation107_spill] sm:$0xff] %v20694_v3  ;;  %v15652_v15 = vpop.f32.mrf.mxu1 }
 0x2d8   : > { %16144 = vmatpush3.msra.mxu1 %v20402_v55  ;;  %16157 = vmatprep.subr.mxu0 %v20688_v6  ;;  %v20699_v17 = vadd.f32 %v15652_v15, %v4089_v45  ;;  %v20715_v45 = vld [vmem:[%s17294_s24 + $0x1b0] sm:$0xff] }
 0x2d9   : > { %16185 = vmatprep.subr.mxu1 %v20439_v12  ;;  %9133 = vrot.lane.b32.xlu0 %v20617_v62, %s17233_s30  ;;  %v20718_v15 = vpop.f32.mrf.mxu1 }
 0x2da   : > { %8960 = vrot.lane.b32.xlu1 %v20679_v32, %s17232_s25  ;;  %16118 = vmatmul.mubr.msk.f32.vlgmr.msra.gmra.mxu0 %vm264_vm0, %v13210_v26  ;;  %v20704_v55 = vpop.permute.xlu0 %7846  ;;  %v15671_v26 = vpop.f32.mrf.mxu0  ;;  %24175 = vst [vmem:[#allocation108_spill] sm:$0xff] %v20718_v15  ;;  %v20734_v15 = vld [vmem:[%s17294_s24 + $0x1a8] sm:$0xff] }
 0x2db   : > { %16146 = vmatmul.mubr.msk.f32.vlgmr.msra.gmra.mxu1 %vm264_vm0, %v13226_v56  ;;  %16158 = vmatpush3.msra.mxu0 %v20688_v6  ;;  %v20711_v5 = vpop.permute.xlu1 %7624  ;;  %v20723_v56 = vld [vmem:[%s17294_s24 + $0x1c0] sm:$0xff]  ;;  %v4408_v60 = vadd.f32 %v15671_v26, %v20562_v47 }
 0x2dc   : > { %16186 = vmatpush3.msra.mxu1 %v20439_v12  ;;  %16159 = vmatprep.subr.mxu0 %v20715_v45  ;;  %v13212_v12 = vld [vmem:[%s23953_s1 + $0x118] sm:$0xff]  ;;  %v20740_v47 = vpop.f32.mrf.mxu0 }
 0x2dd   : > { %16187 = vmatprep.subr.mxu1 %v20441_v9  ;;  %16160 = vmatpush3.msra.mxu0 %v20715_v45  ;;  %24176 = vst [vmem:[#allocation109_spill] sm:$0xff] %v20740_v47 }
 0x2de   : > { %16188 = vmatpush3.msra.mxu1 %v20441_v9  ;;  %16120 = vmatprep.mubr.msk.f32.mxu0 %vm264_vm0, %v13211_v1  ;;  %v20731_v21 = vpop.permute.xlu0 %7844  ;;  %v15699_v1 = vpop.f32.mrf.mxu1  ;;  %v13213_v9 = vld [vmem:[%s23953_s1 + $0x120] sm:$0xff] }
 0x2df   : > { %16161 = vmatprep.subr.mxu0 %v20734_v15  ;;  %16189 = vmatprep.subr.mxu1 %v20474_v34  ;;  %v20738_v46 = vpop.permute.xlu1 %7622  ;;  %v20751_v26 = vadd.f32 %v15699_v1, %v4408_v60  ;;  %v13214_v60 = vld [vmem:[%s23953_s1 + $0x128] sm:$0xff] }
 0x2e0   : > { %9131 = vrot.lane.b32.xlu0 %v20648_v59, %s17233_s30  ;;  %8958 = vrot.lane.b32.xlu1 %v20723_v56, %s17232_s25  ;;  %v20770_v61 = vpop.f32.mrf.mxu1 }
 0x2e1   : > { %16121 = vmatmul.mubr.msk.f32.gmra.mxu0 %vm264_vm0, %v13212_v12  ;;  %16190 = vmatpush3.msra.mxu1 %v20474_v34  ;;  %v15674_v12 = vpop.f32.mrf.mxu0  ;;  %24177 = vst [vmem:[#allocation110_spill] sm:$0xff] %v20770_v61  ;;  %v13215_v61 = vld [vmem:[%s23953_s1 + $0x130] sm:$0xff] }
 0x2e2   : > { %16162 = vmatpush3.msra.mxu0 %v20734_v15  ;;  %16191 = vmatprep.subr.mxu1 %v20476_v23  ;;  %v20755_v47 = vpop.permute.xlu0 %7842  ;;  %v4410_v1 = vadd.f32 %v15674_v12, %v20612_v44  ;;  %v15702_v44 = vpop.f32.mrf.mxu1  ;;  %v24180_v12 = vld [vmem:[#allocation64_spill] sm:$0xff] }
 0x2e3   : > { %16163 = vmatprep.subr.mxu0 %v20758_v38  ;;  %16192 = vmatpush3.msra.mxu1 %v20476_v23  ;;  %v20762_v34 = vpop.permute.xlu1 %7620  ;;  %v20775_v23 = vld [vmem:[%s17294_s24 + $0x198] sm:$0xff]  ;;  %v20783_v3 = vpop.f32.mrf.mxu0 }
 0x2e4   : > { %16164 = vmatpush3.msra.mxu0 %v20758_v38  ;;  %16123 = vmatprep.mubr.msk.f32.mxu0 %vm264_vm0, %v13213_v9  ;;  %24179 = vst [vmem:[#allocation30_spill] sm:$0xff] %v20783_v3  ;;  %v20796_v48 = vadd.f32 %v15702_v44, %v4410_v1  ;;  %v20800_v3 = vld [vmem:[%s17294_s24 + $0x190] sm:$0xff]  ;;  %v20821_v10 = vpop.f32.mrf.mxu1 }
 0x2e5   : > { %16148 = vmatprep.mubr.msk.f32.mxu1 %vm264_vm0, %v24178_v54  ;;  %16165 = vmatprep.subr.mxu0 %v20775_v23  ;;  %v15677_v7 = vpop.f32.mrf.mxu0  ;;  %v20813_v1 = vld [vmem:[%s17294_s24 + $0x1b0] sm:$0xff]  ;;  %24181 = vst [vmem:[#allocation64_spill] sm:$0xff] %v20821_v10  ;;  %v20842_v10 = vld [vmem:[%s17294_s24 + $0x180] sm:$0xff] }
 0x2e6   : > { %16193 = vmatprep.subr.mxu1 %v20508_v50  ;;  %9129 = vrot.lane.b32.xlu0 %v20679_v32, %s17233_s30  ;;  %v20781_v9 = vpop.permute.xlu0 %7840  ;;  %v4412_v63 = vadd.f32 %v15677_v7, %v20658_v4  ;;  %v24184_v4 = vld [vmem:[#allocation67_spill] sm:$0xff] }
 0x2e7   : > { %9127 = vrot.lane.b32.xlu1 %v20723_v56, %s17233_s30  ;;  %16124 = vmatmul.mubr.msk.f32.gmra.mxu0 %vm264_vm0, %v13214_v60  ;;  %v20788_v54 = vpop.permute.xlu1 %7618  ;;  %v20806_v60 = vld [vmem:[%s17294_s24 + $0x1b8] sm:$0xff] }
 0x2e8   : > { %16149 = vmatmul.mubr.msk.f32.gmra.mxu1 %vm264_vm0, %v24180_v12  ;;  %16166 = vmatpush3.msra.mxu0 %v20775_v23 }
 0x2e9   : > { %16194 = vmatpush3.msra.mxu1 %v20508_v50  ;;  %16167 = vmatprep.subr.mxu0 %v20800_v3  ;;  %v13216_v50 = vld [vmem:[%s23953_s1 + $0x138] sm:$0xff] }
 0x2ea   : > { %16195 = vmatprep.subr.mxu1 %v20510_v41  ;;  %16168 = vmatpush3.msra.mxu0 %v20800_v3  ;;  %v20808_v12 = vpop.permute.xlu0 %7838 }
 0x2eb   : > { %16196 = vmatpush3.msra.mxu1 %v20510_v41  ;;  %16126 = vmatprep.mubr.msk.f32.mxu0 %vm264_vm0, %v13215_v61  ;;  %v20818_v44 = vpop.permute.xlu1 %7836  ;;  %v20829_v41 = vpop.f32.mrf.mxu0 }
 0x2ec   : > { %16151 = vmatprep.mubr.msk.f32.mxu1 %vm264_vm0, %v24182_v37  ;;  %16169 = vmatprep.subr.mxu0 %v20826_v39  ;;  %24183 = vst [vmem:[#allocation65_spill] sm:$0xff] %v20829_v41  ;;  %v15705_v61 = vpop.f32.mrf.mxu1  ;;  %v13251_v41 = vld [vmem:[%s23953_s1 + $0x180] sm:$0xff] }
 0x2ed   : > { %16197 = vmatprep.subr.mxu1 %v20545_v53  ;;  %9359 = vrot.lane.b32.xlu0 %v20806_v60, %s17232_s25  ;;  %v4589_v7 = vadd.f32 %v15705_v61, %v4412_v63  ;;  %v15680_v37 = vpop.f32.mrf.mxu0  ;;  %v20856_v61 = vld [vmem:[%s17294_s24 + $0x1a8] sm:$0xff] }
 0x2ee   : > { %9357 = vrot.lane.b32.xlu1 %v20813_v1, %s17232_s25  ;;  %16127 = vmatmul.mubr.msk.f32.gmra.mxu0 %vm264_vm0, %v13216_v50  ;;  %v20848_v19 = vpop.permute.xlu0 %8140  ;;  %v4414_v63 = vadd.f32 %v15680_v37, %v20699_v17  ;;  %v20851_v50 = vpop.f32.mrf.mxu1  ;;  %v13252_v17 = vld [vmem:[%s23953_s1 + $0x188] sm:$0xff] }
 0x2ef   : > { %16152 = vmatmul.mubr.msk.f32.gmra.mxu1 %vm264_vm0, %v24184_v4  ;;  %16170 = vmatpush3.msra.mxu0 %v20826_v39  ;;  %24185 = vst [vmem:[#allocation67_spill] sm:$0xff] %v20851_v50  ;;  %v20861_v4 = vpop.permute.xlu1 %8138  ;;  %v20863_v30 = vpop.f32.mrf.mxu0 }
 0x2f0   : > { %16198 = vmatpush3.msra.mxu1 %v20545_v53  ;;  %16171 = vmatprep.subr.mxu0 %v20842_v10  ;;  %v20859_v53 = vld [vmem:[%s17294_s24 + $0x1a0] sm:$0xff]  ;;  %24186 = vst [vmem:[#allocation111_spill] sm:$0xff] %v20863_v30  ;;  %v15708_v37 = vpop.f32.mrf.mxu1 }
 0x2f1   : > { %16199 = vmatprep.subr.mxu1 %v20547_v18  ;;  %16172 = vmatpush3.msra.mxu0 %v20842_v10  ;;  %v4591_v50 = vadd.f32 %v15708_v37, %v4414_v63  ;;  %v15727_v51 = vpop.f32.mrf.mxu0  ;;  %v20894_v37 = vld [vmem:[%s17294_s24 + $0x190] sm:$0xff] }
 0x2f2   : > { %16200 = vmatpush3.msra.mxu1 %v20547_v18  ;;  %16154 = vmatprep.mubr.msk.f32.mxu1 %vm264_vm0, %v20112_v2  ;;  %v20878_v2 = vadd.f32 %v15727_v51, %v20751_v26  ;;  %v20880_v18 = vpop.f32.mrf.mxu1  ;;  %v20896_v51 = vpop.permute.xlu0 %8136 }
 0x2f3   : > { %16173 = vmatprep.mubr.msk.f32.mxu0 %vm264_vm0, %v13251_v41  ;;  %16213 = vmatprep.subr.mxu0 %v20586_v36  ;;  %24188 = vst [vmem:[#allocation113_spill] sm:$0xff] %v20880_v18  ;;  %v20886_v41 = vld [vmem:[%s17294_s24 + $0x198] sm:$0xff]  ;;  %v20888_v63 = vpop.f32.mrf.mxu0 }
 0x2f4   : > { %9355 = vrot.lane.b32.xlu0 %v20856_v61, %s17232_s25  ;;  %9353 = vrot.lane.b32.xlu1 %v20859_v53, %s17232_s25  ;;  %24187 = vst [vmem:[#allocation112_spill] sm:$0xff] %v20878_v2  ;;  %24189 = vst [vmem:[#allocation114_spill] sm:$0xff] %v20888_v63  ;;  %v15755_v26 = vpop.f32.mrf.mxu1  ;;  %v20915_v2 = vld [vmem:[%s17294_s24 + $0x188] sm:$0xff] }
 0x2f5   : > { %16155 = vmatmul.mubr.msk.f32.gmra.mxu1 %vm264_vm0, %v20124_v35  ;;  %16174 = vmatmul.mubr.msk.f32.vlgmr.msra.gmra.mxu0 %vm264_vm0, %v13252_v17  ;;  %v20900_v35 = vpop.permute.xlu1 %8134  ;;  %v15730_v17 = vpop.f32.mrf.mxu0 }
 0x2f6   : > { %16214 = vmatpush3.msra.mxu0 %v20586_v36  ;;  %16201 = vmatprep.mubr.msk.f32.mxu1 %vm264_vm0, %v20150_v0  ;;  %v20906_v0 = vadd.f32 %v15730_v17, %v20796_v48  ;;  %v20908_v36 = vpop.f32.mrf.mxu1 }
 0x2f7   : > { %16215 = vmatprep.subr.mxu0 %v20596_v52  ;;  %16241 = vmatprep.subr.mxu1 %v20632_v49  ;;  %24191 = vst [vmem:[#allocation116_spill] sm:$0xff] %v20908_v36  ;;  %v20917_v63 = vpop.f32.mrf.mxu0 }
 0x2f8   : > { %16216 = vmatpush3.msra.mxu0 %v20596_v52  ;;  %9351 = vrot.lane.b32.xlu0 %v20886_v41, %s17232_s25  ;;  %24190 = vst [vmem:[#allocation115_spill] sm:$0xff] %v20906_v0  ;;  %24192 = vst [vmem:[#allocation117_spill] sm:$0xff] %v20917_v63  ;;  %v20922_v52 = vld [vmem:[%s17294_s24 + $0x180] sm:$0xff]  ;;  %v15758_v48 = vpop.f32.mrf.mxu1 }
 0x2f9   : > { %9349 = vrot.lane.b32.xlu1 %v20894_v37, %s17232_s25  ;;  %16202 = vmatmul.mubr.msk.f32.vlgmr.msra.gmra.mxu1 %vm264_vm0, %v20168_v57  ;;  %v15733_v17 = vpop.f32.mrf.mxu0  ;;  %v20929_v57 = vpop.permute.xlu0 %8132 }
 0x2fa   : > { %16217 = vmatprep.subr.mxu0 %v20641_v25  ;;  %16242 = vmatpush3.msra.mxu1 %v20632_v49  ;;  %v20931_v0 = vadd.f32 %v15733_v17, %v4589_v7  ;;  %v20933_v63 = vpop.f32.mrf.mxu1  ;;  %v20938_v49 = vpop.permute.xlu1 %8130 }
 0x2fb   : > { %16218 = vmatpush3.msra.mxu0 %v20641_v25  ;;  %16243 = vmatprep.subr.mxu1 %v20673_v29  ;;  %24194 = vst [vmem:[#allocation119_spill] sm:$0xff] %v20933_v63  ;;  %v20940_v25 = vpop.f32.mrf.mxu0 }
 0x2fc   : > { %9347 = vrot.lane.b32.xlu0 %v20915_v2, %s17232_s25  ;;  %16219 = vmatprep.subr.mxu0 %v20684_v33  ;;  %24193 = vst [vmem:[#allocation118_spill] sm:$0xff] %v20931_v0  ;;  %24195 = vst [vmem:[#allocation120_spill] sm:$0xff] %v20940_v25  ;;  %v20944_v18 = vpop.f32.mrf.mxu1 }
 0x2fd   : > { %9345 = vrot.lane.b32.xlu1 %v20922_v52, %s17232_s25  ;;  %16244 = vmatpush3.msra.mxu1 %v20673_v29  ;;  %v15736_v7 = vpop.f32.mrf.mxu0  ;;  %v13253_v29 = vld [vmem:[%s23953_s1 + $0x190] sm:$0xff] }
 0x2fe   : > { %16220 = vmatpush3.msra.mxu0 %v20684_v33  ;;  %16245 = vmatprep.subr.mxu1 %v20704_v55  ;;  %v20954_v17 = vadd.f32 %v15736_v7, %v4591_v50  ;;  %v20956_v33 = vpop.f32.mrf.mxu1  ;;  %v13270_v7 = vld [vmem:[%s23953_s1 + $0x1d8] sm:$0xff] }
 0x2ff   : > { %16221 = vmatprep.subr.mxu0 %v20711_v5  ;;  %16246 = vmatpush3.msra.mxu1 %v20704_v55  ;;  %24197 = vst [vmem:[#allocation122_spill] sm:$0xff] %v20956_v33  ;;  %v13269_v55 = vld [vmem:[%s23953_s1 + $0x1d0] sm:$0xff]  ;;  %v13386_v33 = vld [vmem:[%s23953_s1 + $0x138] sm:$0xff] }
 0x300   : > { %9649 = vrot.lane.b32.xlu0 %v20806_v60, %s17233_s30  ;;  %16222 = vmatpush3.msra.mxu0 %v20711_v5  ;;  %24196 = vst [vmem:[#allocation121_spill] sm:$0xff] %v20954_v17  ;;  %v20964_v60 = vpop.f32.mrf.mxu0  ;;  %v20968_v5 = vpop.permute.xlu0 %8128 }
 0x301   : > { %9647 = vrot.lane.b32.xlu1 %v20813_v1, %s17233_s30  ;;  %16247 = vmatprep.subr.mxu1 %v20731_v21  ;;  %24198 = vst [vmem:[#allocation123_spill] sm:$0xff] %v20964_v60  ;;  %v20970_v50 = vpop.f32.mrf.mxu1  ;;  %v20977_v1 = vld [vmem:[%s23953_s1 + $0x198] sm:$0xff]  ;;  %v20982_v17 = vpop.permute.xlu1 %8126 }
 0x302   : > { %16223 = vmatprep.subr.mxu0 %v20738_v46  ;;  %16248 = vmatpush3.msra.mxu1 %v20731_v21  ;;  %v15783_v21 = vpop.f32.mrf.mxu0 }
 0x303   : > { %16224 = vmatpush3.msra.mxu0 %v20738_v46  ;;  %16176 = vmatprep.mubr.msk.f32.mxu0 %vm264_vm0, %v13253_v29  ;;  %v5067_v46 = vadd.f32 %v15783_v21, %v15755_v26  ;;  %v20987_v0 = vpop.f32.mrf.mxu1  ;;  %v20998_v29 = vld [vmem:[%s23953_s1 + $0x1a0] sm:$0xff] }
 0x304   : > { %9645 = vrot.lane.b32.xlu0 %v20856_v61, %s17233_s30  ;;  %16204 = vmatprep.mubr.msk.f32.mxu1 %vm264_vm0, %v13269_v55  ;;  %24199 = vst [vmem:[#allocation124_spill] sm:$0xff] %v20987_v0  ;;  %v21000_v61 = vpop.f32.mrf.mxu0  ;;  %v21013_v55 = vld [vmem:[%s23953_s1 + $0x1a8] sm:$0xff] }
 0x305   : > { %9643 = vrot.lane.b32.xlu1 %v20859_v53, %s17233_s30  ;;  %16249 = vmatprep.subr.mxu1 %v20755_v47  ;;  %24200 = vst [vmem:[#allocation125_spill] sm:$0xff] %v21000_v61  ;;  %v13271_v53 = vld [vmem:[%s23953_s1 + $0x1e0] sm:$0xff]  ;;  %v15811_v26 = vpop.f32.mrf.mxu1 }
 0x306   : > { %16177 = vmatmul.mubr.msk.f32.gmra.mxu0 %vm264_vm0, %v20977_v1  ;;  %16205 = vmatmul.mubr.msk.f32.gmra.mxu1 %vm264_vm0, %v13270_v7  ;;  %v13272_v7 = vld [vmem:[%s23953_s1 + $0x1e8] sm:$0xff]  ;;  %v21020_v21 = vadd.f32 %v15811_v26, %v5067_v46  ;;  %v15786_v60 = vpop.f32.mrf.mxu0  ;;  %v21662_v61 = vld [vmem:[%s17294_s24 + $0x1c0] sm:$0xff] }
 0x307   : > { %16225 = vmatprep.subr.mxu0 %v20762_v34  ;;  %16250 = vmatpush3.msra.mxu1 %v20755_v47  ;;  %v21018_v47 = vpop.permute.xlu0 %8470  ;;  %v21028_v25 = vpop.f32.mrf.mxu1 }
 0x308   : > { %9641 = vrot.lane.b32.xlu0 %v20886_v41, %s17233_s30  ;;  %16226 = vmatpush3.msra.mxu0 %v20762_v34  ;;  %v21026_v34 = vpop.permute.xlu1 %8468  ;;  %v5077_v41 = vadd.f32 %v15786_v60, %v15758_v48  ;;  %24201 = vst [vmem:[#allocation126_spill] sm:$0xff] %v21028_v25  ;;  %v21032_v30 = vpop.f32.mrf.mxu0  ;;  %v13273_v48 = vld [vmem:[%s23953_s1 + $0x1f0] sm:$0xff]  ;;  %v17125_v25 = vld [vmem:[%s17294_s24 + $0x178] sm:$0xff] }
 0x309   : > { %9639 = vrot.lane.b32.xlu1 %v20894_v37, %s17233_s30  ;;  %16179 = vmatprep.mubr.msk.f32.mxu0 %vm264_vm0, %v20998_v29  ;;  %24202 = vst [vmem:[#allocation127_spill] sm:$0xff] %v21032_v30  ;;  %v13257_v37 = vld [vmem:[%s23953_s1 + $0x1b0] sm:$0xff]  ;;  %v15814_v46 = vpop.f32.mrf.mxu1 }
 0x30a   : > { %16207 = vmatprep.mubr.msk.f32.mxu1 %vm264_vm0, %v13271_v53  ;;  %16251 = vmatprep.subr.mxu1 %v20781_v9  ;;  %v21046_v60 = vadd.f32 %v15814_v46, %v5077_v41  ;;  %v21054_v53 = vld [vmem:[%s23953_s1 + $0x1b8] sm:$0xff]  ;;  %v15789_v26 = vpop.f32.mrf.mxu0 }
 0x30b   : > { %16180 = vmatmul.mubr.msk.f32.gmra.mxu0 %vm264_vm0, %v21013_v55  ;;  %16208 = vmatmul.mubr.msk.f32.gmra.mxu1 %vm264_vm0, %v13272_v7  ;;  %v5087_v7 = vadd.f32 %v15789_v26, %v20944_v18  ;;  %v21062_v41 = vpop.f32.mrf.mxu1  ;;  %v13315_v18 = vld [vmem:[%s23953_s1 + $0x40] sm:$0xff]  ;;  %v21094_v26 = vld [vmem:[%s23953_s1 + $0x208] sm:$0xff] }
 0x30c   : > { %9637 = vrot.lane.b32.xlu0 %v20915_v2, %s17233_s30  ;;  %16227 = vmatprep.subr.mxu0 %v20788_v54  ;;  %v13274_v2 = vld [vmem:[%s23953_s1 + $0x1f8] sm:$0xff]  ;;  %24203 = vst [vmem:[#allocation128_spill] sm:$0xff] %v21062_v41 }
 0x30d   : > { %9635 = vrot.lane.b32.xlu1 %v20922_v52, %s17233_s30  ;;  %16252 = vmatpush3.msra.mxu1 %v20781_v9  ;;  %v13283_v9 = vld [vmem:[%s23953_s1 + $0x200] sm:$0xff]  ;;  %v21069_v52 = vpop.permute.xlu0 %8466  ;;  %v15817_v46 = vpop.f32.mrf.mxu1 }
 0x30e   : > { %16228 = vmatpush3.msra.mxu0 %v20788_v54  ;;  %16182 = vmatprep.mubr.msk.f32.mxu0 %vm264_vm0, %v13257_v37  ;;  %v21071_v54 = vpop.permute.xlu1 %8464  ;;  %v21080_v37 = vpop.f32.mrf.mxu0 }
 0x30f   : > { %16210 = vmatprep.mubr.msk.f32.mxu1 %vm264_vm0, %v13273_v48  ;;  %16253 = vmatprep.subr.mxu1 %v20808_v12  ;;  %24204 = vst [vmem:[#allocation129_spill] sm:$0xff] %v21080_v37  ;;  %v21085_v48 = vadd.f32 %v15817_v46, %v5087_v7  ;;  %v21102_v7 = vpop.f32.mrf.mxu1  ;;  %v13317_v46 = vld [vmem:[%s23953_s1 + $0x50] sm:$0xff] }
 0x310   : > { %9979 = vrot.lane.b32.xlu0 %v20527_v22, %s17232_s25  ;;  %16183 = vmatmul.mubr.msk.f32.gmra.mxu0 %vm264_vm0, %v21054_v53  ;;  %v15792_v41 = vpop.f32.mrf.mxu0  ;;  %24205 = vst [vmem:[#allocation130_spill] sm:$0xff] %v21102_v7 }
 0x311   : > { %9977 = vrot.lane.b32.xlu1 %v20532_v11, %s17232_s25  ;;  %16211 = vmatmul.mubr.msk.f32.gmra.mxu1 %vm264_vm0, %v13274_v2  ;;  %v5097_v2 = vadd.f32 %v15792_v41, %v20970_v50  ;;  %v21119_v50 = vld [vmem:[%s23953_s1 + $0x210] sm:$0xff]  ;;  %v15820_v41 = vpop.f32.mrf.mxu1 }
 0x312   : > { %16254 = vmatpush3.msra.mxu1 %v20808_v12  ;;  %16229 = vmatprep.mubr.msk.f32.mxu0 %vm264_vm0, %v13283_v9  ;;  %v13316_v12 = vld [vmem:[%s23953_s1 + $0x48] sm:$0xff] }
 0x313   : > { %16255 = vmatprep.subr.mxu1 %v20818_v44  ;;  %16257 = vmatprep.mubr.msk.f32.mxu1 %vm264_vm0, %v13315_v18  ;;  %v17126_v18 = vld [vmem:[%s17294_s24 + $0x170] sm:$0xff]  ;;  %v21128_v7 = vadd.f32 %v15820_v41, %v5097_v2  ;;  %v13318_v2 = vld [vmem:[%s23953_s1 + $0x58] sm:$0xff]  ;;  %v21145_v41 = vpop.f32.mrf.mxu1 }
 0x314   : > { %16256 = vmatpush3.msra.mxu1 %v20818_v44  ;;  %16269 = vmatprep.subr.mxu0 %v17125_v25  ;;  %v21111_v44 = vpop.permute.xlu0 %8462  ;;  %v21113_v9 = vpop.permute.xlu1 %8460  ;;  %24207 = vst [vmem:[#allocation132_spill] sm:$0xff] %v21145_v41  ;;  %v17128_v41 = vld [vmem:[%s17294_s24 + $0x160] sm:$0xff] }
 0x315   : > { %16297 = vmatprep.subr.mxu1 %v20848_v19  ;;  %10148 = vrot.lane.b32.xlu0 %v20527_v22, %s17233_s30  ;;  %v21121_v22 = vpop.f32.mrf.mxu0 }
 0x316   : > { %9975 = vrot.lane.b32.xlu1 %v20558_v58, %s17232_s25  ;;  %16230 = vmatmul.mubr.msk.f32.vlgmr.msra.gmra.mxu0 %vm264_vm0, %v21094_v26  ;;  %24206 = vst [vmem:[#allocation131_spill] sm:$0xff] %v21121_v22 }
 0x317   : > { %16258 = vmatmul.mubr.msk.f32.vlgmr.msra.gmra.mxu1 %vm264_vm0, %v13316_v12  ;;  %16270 = vmatpush3.msra.mxu0 %v17125_v25  ;;  %v15839_v25 = vpop.f32.mrf.mxu0  ;;  %v17127_v12 = vld [vmem:[%s17294_s24 + $0x168] sm:$0xff] }
 0x318   : > { %16298 = vmatpush3.msra.mxu1 %v20848_v19  ;;  %16271 = vmatprep.subr.mxu0 %v17126_v18  ;;  %v21137_v19 = vld [vmem:[%s23953_s1 + $0x218] sm:$0xff] }
 0x319   : > { %16299 = vmatprep.subr.mxu1 %v20861_v4  ;;  %16272 = vmatpush3.msra.mxu0 %v17126_v18 }
 0x31a   : > { %16300 = vmatpush3.msra.mxu1 %v20861_v4  ;;  %16232 = vmatprep.mubr.msk.f32.mxu0 %vm264_vm0, %v21119_v50  ;;  %v5415_v4 = vadd.f32 %v15839_v25, %v21020_v21  ;;  %v21150_v18 = vpop.permute.xlu0 %8458  ;;  %v15867_v21 = vpop.f32.mrf.mxu1 }
 0x31b   : > { %16260 = vmatprep.mubr.msk.f32.mxu1 %vm264_vm0, %v13317_v46  ;;  %16273 = vmatprep.subr.mxu0 %v17127_v12  ;;  %v21152_v13 = vpop.permute.xlu1 %8456  ;;  %v21158_v46 = vpop.f32.mrf.mxu0 }
 0x31c   : > { %16301 = vmatprep.subr.mxu1 %v20896_v51  ;;  %10146 = vrot.lane.b32.xlu0 %v20532_v11, %s17233_s30  ;;  %24208 = vst [vmem:[#allocation133_spill] sm:$0xff] %v21158_v46  ;;  %v21164_v11 = vld [vmem:[%s23953_s1 + $0x220] sm:$0xff]  ;;  %v21166_v25 = vadd.f32 %v15867_v21, %v5415_v4  ;;  %v17129_v21 = vld [vmem:[%s17294_s24 + $0x158] sm:$0xff] }
 0x31d   : > { %9973 = vrot.lane.b32.xlu1 %v20579_v24, %s17232_s25  ;;  %16233 = vmatmul.mubr.msk.f32.gmra.mxu0 %vm264_vm0, %v21137_v19  ;;  %v13319_v46 = vld [vmem:[%s23953_s1 + $0x60] sm:$0xff] }
 0x31e   : > { %16261 = vmatmul.mubr.msk.f32.gmra.mxu1 %vm264_vm0, %v13318_v2  ;;  %16274 = vmatpush3.msra.mxu0 %v17127_v12  ;;  %v15842_v12 = vpop.f32.mrf.mxu0  ;;  %v21174_v2 = vpop.f32.mrf.mxu1 }
 0x31f   : > { %16302 = vmatpush3.msra.mxu1 %v20896_v51  ;;  %16275 = vmatprep.subr.mxu0 %v17128_v41  ;;  %24209 = vst [vmem:[#allocation134_spill] sm:$0xff] %v21174_v2  ;;  %v21182_v51 = vld [vmem:[%s23953_s1 + $0x228] sm:$0xff]  ;;  %v5417_v4 = vadd.f32 %v15842_v12, %v21046_v60  ;;  %v21209_v12 = vld [vmem:[%s23953_s1 + $0x230] sm:$0xff] }
 0x320   : > { %16303 = vmatprep.subr.mxu1 %v20900_v35  ;;  %16276 = vmatpush3.msra.mxu0 %v17128_v41  ;;  %v13320_v41 = vld [vmem:[%s23953_s1 + $0x68] sm:$0xff]  ;;  %v21192_v2 = vpop.f32.mrf.mxu0  ;;  %v15870_v60 = vpop.f32.mrf.mxu1 }
 0x321   : > { %16304 = vmatpush3.msra.mxu1 %v20900_v35  ;;  %16235 = vmatprep.mubr.msk.f32.mxu0 %vm264_vm0, %v21164_v11  ;;  %v21190_v35 = vpop.permute.xlu0 %8639  ;;  %24210 = vst [vmem:[#allocation135_spill] sm:$0xff] %v21192_v2  ;;  %v13321_v2 = vld [vmem:[%s23953_s1 + $0x70] sm:$0xff] }
 0x322   : > { %16263 = vmatprep.mubr.msk.f32.mxu1 %vm264_vm0, %v13319_v46  ;;  %16277 = vmatprep.subr.mxu0 %v17129_v21  ;;  %v21197_v20 = vpop.permute.xlu1 %8637  ;;  %v21203_v46 = vadd.f32 %v15870_v60, %v5417_v4  ;;  %v15845_v22 = vpop.f32.mrf.mxu0  ;;  %v17131_v60 = vld [vmem:[%s17294_s24 + $0x148] sm:$0xff] }
 0x323   : > { %16305 = vmatprep.subr.mxu1 %v20929_v57  ;;  %10144 = vrot.lane.b32.xlu0 %v20558_v58, %s17233_s30  ;;  %v17130_v58 = vld [vmem:[%s17294_s24 + $0x150] sm:$0xff]  ;;  %v21216_v4 = vpop.f32.mrf.mxu1 }
 0x324   : > { %9971 = vrot.lane.b32.xlu1 %v20617_v62, %s17232_s25  ;;  %16236 = vmatmul.mubr.msk.f32.gmra.mxu0 %vm264_vm0, %v21182_v51  ;;  %24211 = vst [vmem:[#allocation136_spill] sm:$0xff] %v21216_v4  ;;  %v7812_v4 = vld [vmem:[%s23953_s1] sm:$0xff] }
 0x325   : > { %16264 = vmatmul.mubr.msk.f32.gmra.mxu1 %vm264_vm0, %v13320_v41  ;;  %16278 = vmatpush3.msra.mxu0 %v17129_v21  ;;  %v5419_v21 = vadd.f32 %v15845_v22, %v21085_v48  ;;  %v13322_v48 = vld [vmem:[%s23953_s1 + $0x78] sm:$0xff]  ;;  %v21237_v22 = vpop.f32.mrf.mxu0 }
 0x326   : > { %16306 = vmatpush3.msra.mxu1 %v20929_v57  ;;  %16279 = vmatprep.subr.mxu0 %v17130_v58  ;;  %v21226_v57 = vld [vmem:[%s23953_s1 + $0x238] sm:$0xff]  ;;  %24212 = vst [vmem:[#allocation137_spill] sm:$0xff] %v21237_v22  ;;  %v17132_v22 = vld [vmem:[%s17294_s24 + $0x140] sm:$0xff] }
 0x327   : > { %16307 = vmatprep.subr.mxu1 %v20938_v49  ;;  %16280 = vmatpush3.msra.mxu0 %v17130_v58  ;;  %v15873_v58 = vpop.f32.mrf.mxu1  ;;  %v15848_v0 = vpop.f32.mrf.mxu0 }
 0x328   : > { %16308 = vmatpush3.msra.mxu1 %v20938_v49  ;;  %16238 = vmatprep.mubr.msk.f32.mxu0 %vm264_vm0, %v21209_v12  ;;  %v21228_v41 = vpop.permute.xlu0 %8635 }
 0x329   : > { %16266 = vmatprep.mubr.msk.f32.mxu1 %vm264_vm0, %v13321_v2  ;;  %16281 = vmatprep.subr.mxu0 %v17131_v60  ;;  %v21235_v49 = vpop.permute.xlu1 %8633  ;;  %v21246_v2 = vadd.f32 %v15873_v58, %v5419_v21  ;;  %v21257_v37 = vpop.f32.mrf.mxu1 }
 0x32a   : > { %16309 = vmatprep.subr.mxu1 %v20968_v5  ;;  %10142 = vrot.lane.b32.xlu0 %v20579_v24, %s17233_s30  ;;  %v13339_v24 = vld [vmem:[%s23953_s1 + $0x80] sm:$0xff]  ;;  %24213 = vst [vmem:[#allocation138_spill] sm:$0xff] %v21257_v37  ;;  %v21275_v58 = vpop.f32.mrf.mxu0 }
 0x32b   : > { %9969 = vrot.lane.b32.xlu1 %v20648_v59, %s17232_s25  ;;  %16239 = vmatmul.mubr.msk.f32.gmra.mxu0 %vm264_vm0, %v21226_v57  ;;  %24214 = vst [vmem:[#allocation139_spill] sm:$0xff] %v21275_v58 }
 0x32c   : > { %16267 = vmatmul.mubr.msk.f32.gmra.mxu1 %vm264_vm0, %v13322_v48  ;;  %16282 = vmatpush3.msra.mxu0 %v17131_v60  ;;  %v5421_v60 = vadd.f32 %v15848_v0, %v21128_v7  ;;  %v15876_v0 = vpop.f32.mrf.mxu1 }
 0x32d   : > { %16310 = vmatpush3.msra.mxu1 %v20968_v5  ;;  %16283 = vmatprep.subr.mxu0 %v17132_v22  ;;  %v7813_v5 = vld [vmem:[%s23953_s1 + $0x8] sm:$0xff] }
 0x32e   : > { %16311 = vmatprep.subr.mxu1 %v20982_v17  ;;  %16284 = vmatpush3.msra.mxu0 %v17132_v22  ;;  %v21260_v21 = vpop.permute.xlu0 %8631  ;;  %v13340_v22 = vld [vmem:[%s23953_s1 + $0x88] sm:$0xff] }
 0x32f   : > { %16312 = vmatpush3.msra.mxu1 %v20982_v17  ;;  %16285 = vmatprep.mubr.msk.f32.mxu0 %vm264_vm0, %v7812_v4  ;;  %v21268_v48 = vpop.permute.xlu1 %8629  ;;  %v21280_v17 = vadd.f32 %v15876_v0, %v5421_v60  ;;  %v7814_v4 = vld [vmem:[%s23953_s1 + $0x10] sm:$0xff]  ;;  %v21296_v60 = vpop.f32.mrf.mxu1 }
 0x330   : > { %16313 = vmatprep.mubr.msk.f32.mxu1 %vm264_vm0, %v13339_v24  ;;  %16325 = vmatprep.subr.mxu0 %v20688_v6  ;;  %24215 = vst [vmem:[#allocation140_spill] sm:$0xff] %v21296_v60 }
 0x331   : > { %16353 = vmatprep.subr.mxu1 %v21018_v47  ;;  %10140 = vrot.lane.b32.xlu0 %v20617_v62, %s17233_s30  ;;  %v15895_v62 = vpop.f32.mrf.mxu0 }
 0x332   : > { %9967 = vrot.lane.b32.xlu1 %v20679_v32, %s17232_s25  ;;  %16286 = vmatmul.mubr.msk.f32.vlgmr.msra.gmra.mxu0 %vm264_vm0, %v7813_v5  ;;  %v21285_v7 = vpop.permute.xlu0 %8627  ;;  %v5761_v5 = vadd.f32 %v15895_v62, %v21166_v25 }
 0x333   : > { %16314 = vmatmul.mubr.msk.f32.vlgmr.msra.gmra.mxu1 %vm264_vm0, %v13340_v22  ;;  %16326 = vmatpush3.msra.mxu0 %v20688_v6  ;;  %v21292_v24 = vpop.permute.xlu1 %8625  ;;  %v7815_v6 = vld [vmem:[%s23953_s1 + $0x18] sm:$0xff]  ;;  %v21312_v0 = vpop.f32.mrf.mxu0 }
 0x334   : > { %16354 = vmatpush3.msra.mxu1 %v21018_v47  ;;  %16327 = vmatprep.subr.mxu0 %v20715_v45  ;;  %24216 = vst [vmem:[#allocation141_spill] sm:$0xff] %v21312_v0 }
 0x335   : > { %16355 = vmatprep.subr.mxu1 %v21026_v34  ;;  %16328 = vmatpush3.msra.mxu0 %v20715_v45  ;;  %v15923_v45 = vpop.f32.mrf.mxu1  ;;  %v15898_v62 = vpop.f32.mrf.mxu0 }
 0x336   : > { %16356 = vmatpush3.msra.mxu1 %v21026_v34  ;;  %16288 = vmatprep.mubr.msk.f32.mxu0 %vm264_vm0, %v7814_v4  ;;  %v21306_v47 = vpop.permute.xlu0 %8972  ;;  %v7816_v34 = vld [vmem:[%s23953_s1 + $0x20] sm:$0xff]  ;;  %v21323_v25 = vadd.f32 %v15923_v45, %v5761_v5  ;;  %v5763_v5 = vadd.f32 %v15898_v62, %v21203_v46  ;;  %v21376_v62 = vld [vmem:[%s17294_s24 + $0x238] sm:$0xff] }
 0x337   : > { %16329 = vmatprep.subr.mxu0 %v20734_v15  ;;  %16357 = vmatprep.subr.mxu1 %v21069_v52  ;;  %v21310_v22 = vpop.permute.xlu1 %8970  ;;  %v21354_v45 = vpop.f32.mrf.mxu0 }
 0x338   : > { %10138 = vrot.lane.b32.xlu0 %v20648_v59, %s17233_s30  ;;  %9965 = vrot.lane.b32.xlu1 %v20723_v56, %s17232_s25  ;;  %v13341_v59 = vld [vmem:[%s23953_s1 + $0x90] sm:$0xff]  ;;  %24218 = vst [vmem:[#allocation143_spill] sm:$0xff] %v21354_v45 }
 0x339   : > { %16289 = vmatmul.mubr.msk.f32.gmra.mxu0 %vm264_vm0, %v7815_v6  ;;  %16358 = vmatpush3.msra.mxu1 %v21069_v52  ;;  %v21342_v6 = vpop.f32.mrf.mxu1 }
 0x33a   : > { %16330 = vmatpush3.msra.mxu0 %v20734_v15  ;;  %16359 = vmatprep.subr.mxu1 %v21071_v54  ;;  %v21330_v4 = vpop.permute.xlu0 %9141  ;;  %v7817_v15 = vld [vmem:[%s23953_s1 + $0x28] sm:$0xff]  ;;  %24217 = vst [vmem:[#allocation142_spill] sm:$0xff] %v21342_v6 }
 0x33b   : > { %16331 = vmatprep.subr.mxu0 %v20758_v38  ;;  %16360 = vmatpush3.msra.mxu1 %v21071_v54  ;;  %v21334_v52 = vpop.permute.xlu1 %8968  ;;  %v13342_v54 = vld [vmem:[%s23953_s1 + $0x98] sm:$0xff] }
 0x33c   : > { %16332 = vmatpush3.msra.mxu0 %v20758_v38  ;;  %16291 = vmatprep.mubr.msk.f32.mxu0 %vm264_vm0, %v7816_v34  ;;  %v15926_v34 = vpop.f32.mrf.mxu1 }
 0x33d   : > { %16316 = vmatprep.mubr.msk.f32.mxu1 %vm264_vm0, %v13341_v59  ;;  %16333 = vmatprep.subr.mxu0 %v20775_v23  ;;  %v21366_v59 = vadd.f32 %v15926_v34, %v5763_v5  ;;  %v7819_v5 = vld [vmem:[%s23953_s1 + $0x38] sm:$0xff] }
 0x33e   : > { %16361 = vmatprep.subr.mxu1 %v21111_v44  ;;  %10136 = vrot.lane.b32.xlu0 %v20679_v32, %s17233_s30  ;;  %v21352_v38 = vpop.permute.xlu0 %9139  ;;  %v7818_v32 = vld [vmem:[%s23953_s1 + $0x30] sm:$0xff] }
 0x33f   : > { %10134 = vrot.lane.b32.xlu1 %v20723_v56, %s17233_s30  ;;  %16292 = vmatmul.mubr.msk.f32.gmra.mxu0 %vm264_vm0, %v7817_v15  ;;  %v21359_v46 = vpop.permute.xlu1 %8966  ;;  %v13343_v56 = vld [vmem:[%s23953_s1 + $0xa0] sm:$0xff]  ;;  %v15901_v15 = vpop.f32.mrf.mxu0 }
 0x340   : > { %16317 = vmatmul.mubr.msk.f32.gmra.mxu1 %vm264_vm0, %v13342_v54  ;;  %16334 = vmatpush3.msra.mxu0 %v20775_v23  ;;  %v5765_v34 = vadd.f32 %v15901_v15, %v21246_v2  ;;  %v13345_v15 = vld [vmem:[%s23953_s1 + $0xb0] sm:$0xff] }
 0x341   : > { %16362 = vmatpush3.msra.mxu1 %v21111_v44  ;;  %16335 = vmatprep.subr.mxu0 %v20800_v3  ;;  %v21383_v44 = vld [vmem:[%s17294_s24 + $0x230] sm:$0xff] }
 0x342   : > { %16363 = vmatprep.subr.mxu1 %v21113_v9  ;;  %16336 = vmatpush3.msra.mxu0 %v20800_v3  ;;  %v21378_v23 = vpop.permute.xlu0 %9137  ;;  %v21391_v3 = vpop.f32.mrf.mxu1 }
 0x343   : > { %16364 = vmatpush3.msra.mxu1 %v21113_v9  ;;  %16294 = vmatprep.mubr.msk.f32.mxu0 %vm264_vm0, %v7818_v32  ;;  %v21388_v54 = vpop.permute.xlu1 %8964  ;;  %24219 = vst [vmem:[#allocation144_spill] sm:$0xff] %v21391_v3  ;;  %v13344_v9 = vld [vmem:[%s23953_s1 + $0xa8] sm:$0xff]  ;;  %v21398_v32 = vpop.f32.mrf.mxu0 }
 0x344   : > { %16319 = vmatprep.mubr.msk.f32.mxu1 %vm264_vm0, %v13343_v56  ;;  %16337 = vmatprep.subr.mxu0 %v20826_v39  ;;  %24220 = vst [vmem:[#allocation145_spill] sm:$0xff] %v21398_v32  ;;  %v15929_v6 = vpop.f32.mrf.mxu1 }
 0x345   : > { %16365 = vmatprep.subr.mxu1 %v21150_v18  ;;  %10481 = vrot.lane.b32.xlu0 %v21376_v62, %s17232_s25  ;;  %v21408_v56 = vadd.f32 %v15929_v6, %v5765_v34  ;;  %v15904_v3 = vpop.f32.mrf.mxu0 }
 0x346   : > { %10479 = vrot.lane.b32.xlu1 %v21383_v44, %s17232_s25  ;;  %16295 = vmatmul.mubr.msk.f32.gmra.mxu0 %vm264_vm0, %v7819_v5  ;;  %v21406_v2 = vpop.permute.xlu0 %9135  ;;  %v13363_v5 = vld [vmem:[%s23953_s1 + $0xc0] sm:$0xff]  ;;  %v5767_v6 = vadd.f32 %v15904_v3, %v21280_v17  ;;  %v21423_v34 = vpop.f32.mrf.mxu1  ;;  %v13346_v17 = vld [vmem:[%s23953_s1 + $0xb8] sm:$0xff]  ;;  %v13364_v3 = vld [vmem:[%s23953_s1 + $0xc8] sm:$0xff] }
 0x347   : > { %16320 = vmatmul.mubr.msk.f32.gmra.mxu1 %vm264_vm0, %v13344_v9  ;;  %16338 = vmatpush3.msra.mxu0 %v20826_v39  ;;  %v21420_v32 = vpop.permute.xlu1 %8962  ;;  %24221 = vst [vmem:[#allocation146_spill] sm:$0xff] %v21423_v34  ;;  %v21428_v39 = vld [vmem:[%s17294_s24 + $0x228] sm:$0xff]  ;;  %v21431_v9 = vld [vmem:[%s17294_s24 + $0x220] sm:$0xff] }
 0x348   : > { %16366 = vmatpush3.msra.mxu1 %v21150_v18  ;;  %16339 = vmatprep.subr.mxu0 %v20842_v10  ;;  %v21433_v18 = vpop.f32.mrf.mxu0  ;;  %v15932_v34 = vpop.f32.mrf.mxu1 }
 0x349   : > { %16367 = vmatprep.subr.mxu1 %v21152_v13  ;;  %16340 = vmatpush3.msra.mxu0 %v20842_v10  ;;  %24222 = vst [vmem:[#allocation147_spill] sm:$0xff] %v21433_v18  ;;  %v21448_v10 = vadd.f32 %v15932_v34, %v5767_v6  ;;  %v21469_v34 = vld [vmem:[%s17294_s24 + $0x218] sm:$0xff] }
 0x34a   : > { %16368 = vmatpush3.msra.mxu1 %v21152_v13  ;;  %16322 = vmatprep.mubr.msk.f32.mxu1 %vm264_vm0, %v13345_v15  ;;  %v13365_v13 = vld [vmem:[%s23953_s1 + $0xd0] sm:$0xff]  ;;  %v15951_v15 = vpop.f32.mrf.mxu0  ;;  %v21460_v0 = vpop.f32.mrf.mxu1 }
 0x34b   : > { %16341 = vmatprep.mubr.msk.f32.mxu0 %vm264_vm0, %v13363_v5  ;;  %16381 = vmatprep.subr.mxu0 %v21190_v35  ;;  %v13379_v5 = vld [vmem:[%s23953_s1 + $0x100] sm:$0xff]  ;;  %v21457_v18 = vpop.permute.xlu0 %9133  ;;  %v6094_v45 = vadd.f32 %v15951_v15, %v21323_v25  ;;  %24223 = vst [vmem:[#allocation148_spill] sm:$0xff] %v21460_v0  ;;  %v21476_v25 = vld [vmem:[%s17294_s24 + $0x210] sm:$0xff]  ;;  %v13380_v15 = vld [vmem:[%s23953_s1 + $0x108] sm:$0xff] }
 0x34c   : > { %10477 = vrot.lane.b32.xlu0 %v21428_v39, %s17232_s25  ;;  %10475 = vrot.lane.b32.xlu1 %v21431_v9, %s17232_s25  ;;  %v21464_v6 = vpop.f32.mrf.mxu0  ;;  %v21471_v60 = vpop.permute.xlu1 %8960 }
 0x34d   : > { %16323 = vmatmul.mubr.msk.f32.gmra.mxu1 %vm264_vm0, %v13346_v17  ;;  %16342 = vmatmul.mubr.msk.f32.vlgmr.msra.gmra.mxu0 %vm264_vm0, %v13364_v3  ;;  %24224 = vst [vmem:[#allocation149_spill] sm:$0xff] %v21464_v6  ;;  %v15979_v37 = vpop.f32.mrf.mxu1  ;;  %v13366_v17 = vld [vmem:[%s23953_s1 + $0xd8] sm:$0xff] }
 0x34e   : > { %16382 = vmatpush3.msra.mxu0 %v21190_v35  ;;  %16344 = vmatprep.mubr.msk.f32.mxu0 %vm264_vm0, %v13365_v13  ;;  %v21481_v3 = vadd.f32 %v15979_v37, %v6094_v45  ;;  %v15954_v35 = vpop.f32.mrf.mxu0  ;;  %v21485_v13 = vld [vmem:[%s17294_s24 + $0x1f8] sm:$0xff]  ;;  %v13367_v45 = vld [vmem:[%s23953_s1 + $0xe0] sm:$0xff] }
 0x34f   : > { %16383 = vmatprep.subr.mxu0 %v21197_v20  ;;  %16369 = vmatprep.mubr.msk.f32.mxu1 %vm264_vm0, %v13379_v5  ;;  %v6096_v5 = vadd.f32 %v15954_v35, %v21366_v59  ;;  %v21492_v6 = vpop.f32.mrf.mxu1 }
 0x350   : > { %24225 = vst [vmem:[#allocation150_spill] sm:$0xff] %v21481_v3  ;;  %16384 = vmatpush3.msra.mxu0 %v21197_v20  ;;  %16409 = vmatprep.subr.mxu1 %v21485_v13  ;;  %24226 = vst [vmem:[#allocation151_spill] sm:$0xff] %v21492_v6  ;;  %v21497_v37 = vpop.f32.mrf.mxu0  ;;  %v21520_v6 = vld [vmem:[%s17294_s24 + $0x1f0] sm:$0xff] }
 0x351   : > { %16385 = vmatprep.subr.mxu0 %v21228_v41  ;;  %10473 = vrot.lane.b32.xlu0 %v21469_v34, %s17232_s25  ;;  %24227 = vst [vmem:[#allocation152_spill] sm:$0xff] %v21497_v37  ;;  %v15982_v59 = vpop.f32.mrf.mxu1  ;;  %v21525_v37 = vld [vmem:[%s17294_s24 + $0x208] sm:$0xff] }
 0x352   : > { %10471 = vrot.lane.b32.xlu1 %v21476_v25, %s17232_s25  ;;  %16345 = vmatmul.mubr.msk.f32.gmra.mxu0 %vm264_vm0, %v13366_v17  ;;  %v21502_v20 = vpop.permute.xlu0 %9131  ;;  %v15957_v35 = vpop.f32.mrf.mxu0  ;;  %v13381_v17 = vld [vmem:[%s23953_s1 + $0x110] sm:$0xff] }
 0x353   : > { %16370 = vmatmul.mubr.msk.f32.vlgmr.msra.gmra.mxu1 %vm264_vm0, %v13380_v15  ;;  %16386 = vmatpush3.msra.mxu0 %v21228_v41  ;;  %v21514_v3 = vpop.permute.xlu1 %8958  ;;  %v21516_v15 = vadd.f32 %v15982_v59, %v6096_v5  ;;  %v6098_v41 = vadd.f32 %v15957_v35, %v21408_v56  ;;  %v21527_v0 = vpop.f32.mrf.mxu1  ;;  %v21534_v5 = vld [vmem:[%s17294_s24 + $0x200] sm:$0xff]  ;;  %v13368_v56 = vld [vmem:[%s23953_s1 + $0xe8] sm:$0xff] }
 0x354   : > { %16410 = vmatpush3.msra.mxu1 %v21485_v13  ;;  %16387 = vmatprep.subr.mxu0 %v21235_v49  ;;  %24229 = vst [vmem:[#allocation154_spill] sm:$0xff] %v21527_v0  ;;  %v21529_v58 = vpop.f32.mrf.mxu0 }
 0x355   : > { %24228 = vst [vmem:[#allocation153_spill] sm:$0xff] %v21516_v15  ;;  %16411 = vmatprep.subr.mxu1 %v21520_v6  ;;  %16388 = vmatpush3.msra.mxu0 %v21235_v49  ;;  %24230 = vst [vmem:[#allocation155_spill] sm:$0xff] %v21529_v58  ;;  %v13382_v49 = vld [vmem:[%s23953_s1 + $0x118] sm:$0xff]  ;;  %v15985_v59 = vpop.f32.mrf.mxu1  ;;  %v21545_v15 = vld [vmem:[%s17294_s24 + $0x1e8] sm:$0xff] }
 0x356   : > { %16412 = vmatpush3.msra.mxu1 %v21520_v6  ;;  %16347 = vmatprep.mubr.msk.f32.mxu0 %vm264_vm0, %v13367_v45  ;;  %v15960_v35 = vpop.f32.mrf.mxu0  ;;  %v21550_v45 = vadd.f32 %v15985_v59, %v6098_v41  ;;  %v13369_v41 = vld [vmem:[%s23953_s1 + $0xf0] sm:$0xff] }
 0x357   : > { %16372 = vmatprep.mubr.msk.f32.mxu1 %vm264_vm0, %v13381_v17  ;;  %16389 = vmatprep.subr.mxu0 %v21260_v21  ;;  %v6100_v17 = vadd.f32 %v15960_v35, %v21448_v10  ;;  %v21558_v58 = vpop.f32.mrf.mxu1  ;;  %v21575_v35 = vld [vmem:[%s17294_s24 + $0x1e0] sm:$0xff] }
 0x358   : > { %16413 = vmatprep.subr.mxu1 %v21545_v15  ;;  %10469 = vrot.lane.b32.xlu0 %v21525_v37, %s17232_s25  ;;  %24231 = vst [vmem:[#allocation156_spill] sm:$0xff] %v21550_v45  ;;  %v21556_v0 = vpop.permute.xlu0 %9129  ;;  %24232 = vst [vmem:[#allocation157_spill] sm:$0xff] %v21558_v58  ;;  %v21567_v10 = vpop.f32.mrf.mxu0  ;;  %v13370_v58 = vld [vmem:[%s23953_s1 + $0xf8] sm:$0xff] }
 0x359   : > { %10467 = vrot.lane.b32.xlu1 %v21534_v5, %s17232_s25  ;;  %16348 = vmatmul.mubr.msk.f32.gmra.mxu0 %vm264_vm0, %v13368_v56  ;;  %v21565_v59 = vpop.permute.xlu1 %9127  ;;  %24233 = vst [vmem:[#allocation158_spill] sm:$0xff] %v21567_v10  ;;  %v13383_v56 = vld [vmem:[%s23953_s1 + $0x120] sm:$0xff]  ;;  %v13384_v10 = vld [vmem:[%s23953_s1 + $0x128] sm:$0xff] }
 0x35a   : > { %16373 = vmatmul.mubr.msk.f32.gmra.mxu1 %vm264_vm0, %v13382_v49  ;;  %16390 = vmatpush3.msra.mxu0 %v21260_v21 }
 0x35b   : > { %16414 = vmatpush3.msra.mxu1 %v21545_v15  ;;  %16391 = vmatprep.subr.mxu0 %v21268_v48  ;;  %v15988_v49 = vpop.f32.mrf.mxu1 }
 0x35c   : > { %16415 = vmatprep.subr.mxu1 %v21575_v35  ;;  %16392 = vmatpush3.msra.mxu0 %v21268_v48  ;;  %v21579_v21 = vadd.f32 %v15988_v49, %v6100_v17  ;;  %v16007_v45 = vpop.f32.mrf.mxu0  ;;  %v21592_v48 = vld [vmem:[%s17294_s24 + $0x1d8] sm:$0xff]  ;;  %v13385_v49 = vld [vmem:[%s23953_s1 + $0x130] sm:$0xff] }
 0x35d   : > { %16416 = vmatpush3.msra.mxu1 %v21575_v35  ;;  %16350 = vmatprep.mubr.msk.f32.mxu0 %vm264_vm0, %v13369_v41 }
 0x35e   : > { %24234 = vst [vmem:[#allocation159_spill] sm:$0xff] %v21579_v21  ;;  %16375 = vmatprep.mubr.msk.f32.mxu1 %vm264_vm0, %v13383_v56  ;;  %16393 = vmatprep.subr.mxu0 %v21285_v7  ;;  %v21597_v17 = vpop.f32.mrf.mxu0  ;;  %v21616_v21 = vpop.f32.mrf.mxu1 }
 0x35f   : > { %16417 = vmatprep.subr.mxu1 %v21592_v48  ;;  %10650 = vrot.lane.b32.xlu0 %v21376_v62, %s17233_s30  ;;  %24235 = vst [vmem:[#allocation160_spill] sm:$0xff] %v21597_v17  ;;  %v21602_v41 = vpop.permute.xlu0 %9359  ;;  %24236 = vst [vmem:[#allocation161_spill] sm:$0xff] %v21616_v21  ;;  %v21619_v17 = vld [vmem:[%s17294_s24 + $0x1d0] sm:$0xff]  ;;  %v21633_v21 = vld [vmem:[%s17294_s24 + $0x1c8] sm:$0xff] }
 0x360   : > { %10648 = vrot.lane.b32.xlu1 %v21383_v44, %s17233_s30  ;;  %16351 = vmatmul.mubr.msk.f32.gmra.mxu0 %vm264_vm0, %v13370_v58  ;;  %v21604_v56 = vpop.permute.xlu1 %9357  ;;  %v13395_v58 = vld [vmem:[%s23953_s1 + $0x140] sm:$0xff] }
 0x361   : > { %16376 = vmatmul.mubr.msk.f32.gmra.mxu1 %vm264_vm0, %v13384_v10  ;;  %16394 = vmatpush3.msra.mxu0 %v21285_v7  ;;  %v21624_v7 = vld [vmem:[%s17294_s24 + $0x1f8] sm:$0xff] }
 0x362   : > { %16418 = vmatpush3.msra.mxu1 %v21592_v48  ;;  %16395 = vmatprep.subr.mxu0 %v21292_v24  ;;  %v16010_v10 = vpop.f32.mrf.mxu0 }
 0x363   : > { %16419 = vmatprep.subr.mxu1 %v21619_v17  ;;  %16396 = vmatpush3.msra.mxu0 %v21292_v24  ;;  %v16035_v40 = vpop.f32.mrf.mxu1  ;;  %v13396_v24 = vld [vmem:[%s23953_s1 + $0x148] sm:$0xff] }
 0x364   : > { %16420 = vmatpush3.msra.mxu1 %v21619_v17  ;;  %16378 = vmatprep.mubr.msk.f32.mxu1 %vm264_vm0, %v13385_v49  ;;  %v21639_v30 = vadd.f32 %v16035_v40, %v16007_v45  ;;  %v21651_v63 = vpop.f32.mrf.mxu0  ;;  %v13421_v40 = vld [vmem:[%s23953_s1 + $0x180] sm:$0xff] }
 0x365   : > { %16397 = vmatprep.mubr.msk.f32.mxu0 %vm264_vm0, %v13395_v58  ;;  %16421 = vmatprep.subr.mxu1 %v21633_v21  ;;  %24237 = vst [vmem:[#allocation162_spill] sm:$0xff] %v21651_v63  ;;  %v21658_v45 = vpop.f32.mrf.mxu1 }
 0x366   : > { %16437 = vmatprep.subr.mxu0 %v21306_v47  ;;  %10868 = vrot.lane.b32.xlu0 %v21624_v7, %s17232_s25  ;;  %v21644_v49 = vpop.permute.xlu0 %9355  ;;  %v21646_v58 = vpop.permute.xlu1 %9353  ;;  %24238 = vst [vmem:[#allocation163_spill] sm:$0xff] %v21658_v45 }
 0x367   : > { %10646 = vrot.lane.b32.xlu1 %v21428_v39, %s17233_s30  ;;  %16379 = vmatmul.mubr.msk.f32.gmra.mxu1 %vm264_vm0, %v13386_v33  ;;  %v21666_v33 = vld [vmem:[%s17294_s24 + $0x1f0] sm:$0xff] }
 0x368   : > { %16398 = vmatmul.mubr.msk.f32.vlgmr.msra.gmra.mxu0 %vm264_vm0, %v13396_v24  ;;  %16422 = vmatpush3.msra.mxu1 %v21633_v21  ;;  %v13422_v24 = vld [vmem:[%s23953_s1 + $0x188] sm:$0xff] }
 0x369   : > { %16438 = vmatpush3.msra.mxu0 %v21306_v47  ;;  %16423 = vmatprep.subr.mxu1 %v21662_v61  ;;  %v16013_v45 = vpop.f32.mrf.mxu0 }
 0x36a   : > { %16439 = vmatprep.subr.mxu0 %v21310_v22  ;;  %16424 = vmatpush3.msra.mxu1 %v21662_v61  ;;  %v21673_v63 = vpop.permute.xlu0 %9351  ;;  %v16038_v36 = vpop.f32.mrf.mxu1 }
 0x36b   : > { %16440 = vmatpush3.msra.mxu0 %v21310_v22  ;;  %16425 = vmatprep.mubr.msk.f32.mxu1 %vm264_vm0, %v13421_v40  ;;  %v21677_v47 = vpop.permute.xlu1 %9349  ;;  %v21682_v8 = vadd.f32 %v16038_v36, %v16010_v10  ;;  %v21690_v22 = vpop.f32.mrf.mxu0 }
 0x36c   : > { %16465 = vmatprep.subr.mxu1 %v21330_v4  ;;  %10866 = vrot.lane.b32.xlu0 %v21666_v33, %s17232_s25  ;;  %24239 = vst [vmem:[#allocation164_spill] sm:$0xff] %v21690_v22  ;;  %v21700_v10 = vpop.f32.mrf.mxu1 }
 0x36d   : > { %10644 = vrot.lane.b32.xlu1 %v21431_v9, %s17233_s30  ;;  %16426 = vmatmul.mubr.msk.f32.vlgmr.msra.gmra.mxu1 %vm264_vm0, %v13422_v24  ;;  %24240 = vst [vmem:[#allocation165_spill] sm:$0xff] %v21700_v10 }
 0x36e   : > { %16441 = vmatprep.subr.mxu0 %v21334_v52  ;;  %16466 = vmatpush3.msra.mxu1 %v21330_v4  ;;  %v21694_v40 = vpop.permute.xlu0 %9347  ;;  %v21709_v4 = vld [vmem:[%s17294_s24 + $0x1e0] sm:$0xff] }
 0x36f   : > { %16442 = vmatpush3.msra.mxu0 %v21334_v52  ;;  %16467 = vmatprep.subr.mxu1 %v21352_v38  ;;  %v21698_v36 = vpop.permute.xlu1 %9345  ;;  %v13397_v52 = vld [vmem:[%s23953_s1 + $0x150] sm:$0xff] }
 0x370   : > { %10864 = vrot.lane.b32.xlu0 %v21688_v28, %s17232_s25  ;;  %16443 = vmatprep.subr.mxu0 %v21359_v46  ;;  %v16016_v24 = vpop.f32.mrf.mxu0 }
 0x371   : > { %10642 = vrot.lane.b32.xlu1 %v21469_v34, %s17233_s30  ;;  %16468 = vmatpush3.msra.mxu1 %v21352_v38  ;;  %v16041_v10 = vpop.f32.mrf.mxu1  ;;  %v13398_v38 = vld [vmem:[%s23953_s1 + $0x158] sm:$0xff] }
 0x372   : > { %16444 = vmatpush3.msra.mxu0 %v21359_v46  ;;  %16469 = vmatprep.subr.mxu1 %v21378_v23  ;;  %v21716_v22 = vpop.permute.xlu0 %9649  ;;  %v21725_v43 = vadd.f32 %v16041_v10, %v16013_v45  ;;  %v21730_v46 = vpop.f32.mrf.mxu0  ;;  %v13399_v45 = vld [vmem:[%s23953_s1 + $0x160] sm:$0xff] }
 0x373   : > { %16445 = vmatprep.subr.mxu0 %v21388_v54  ;;  %16470 = vmatpush3.msra.mxu1 %v21378_v23  ;;  %v21723_v16 = vpop.permute.xlu1 %9647  ;;  %24241 = vst [vmem:[#allocation166_spill] sm:$0xff] %v21730_v46  ;;  %v21736_v23 = vld [vmem:[%s17294_s24 + $0x1d8] sm:$0xff]  ;;  %v21743_v10 = vpop.f32.mrf.mxu1 }
 0x374   : > { %10862 = vrot.lane.b32.xlu0 %v21709_v4, %s17232_s25  ;;  %16400 = vmatprep.mubr.msk.f32.mxu0 %vm264_vm0, %v13397_v52  ;;  %24242 = vst [vmem:[#allocation167_spill] sm:$0xff] %v21743_v10  ;;  %v13423_v52 = vld [vmem:[%s23953_s1 + $0x190] sm:$0xff] }
 0x375   : > { %10640 = vrot.lane.b32.xlu1 %v21476_v25, %s17233_s30  ;;  %16446 = vmatpush3.msra.mxu0 %v21388_v54  ;;  %v13400_v54 = vld [vmem:[%s23953_s1 + $0x168] sm:$0xff] }
 0x376   : > { %16401 = vmatmul.mubr.msk.f32.gmra.mxu0 %vm264_vm0, %v13398_v38  ;;  %16471 = vmatprep.subr.mxu1 %v21406_v2  ;;  %v21753_v46 = vpop.permute.xlu0 %9645 }
 0x377   : > { %16447 = vmatprep.subr.mxu0 %v21420_v32  ;;  %16472 = vmatpush3.msra.mxu1 %v21406_v2  ;;  %v21755_v31 = vpop.permute.xlu1 %9643  ;;  %v21764_v2 = vld [vmem:[%s17294_s24 + $0x1d0] sm:$0xff]  ;;  %v16044_v27 = vpop.f32.mrf.mxu1 }
 0x378   : > { %10860 = vrot.lane.b32.xlu0 %v21736_v23, %s17232_s25  ;;  %16403 = vmatprep.mubr.msk.f32.mxu0 %vm264_vm0, %v13399_v45  ;;  %v16063_v38 = vpop.f32.mrf.mxu0  ;;  %v21769_v14 = vadd.f32 %v16044_v27, %v16016_v24  ;;  %v21795_v45 = vld [vmem:[%s17294_s24 + $0x1c8] sm:$0xff] }
 0x379   : > { %10638 = vrot.lane.b32.xlu1 %v21525_v37, %s17233_s30  ;;  %16448 = vmatpush3.msra.mxu0 %v21420_v32  ;;  %v6771_v10 = vadd.f32 %v16063_v38, %v21639_v30  ;;  %v13401_v32 = vld [vmem:[%s23953_s1 + $0x170] sm:$0xff]  ;;  %v13402_v30 = vld [vmem:[%s23953_s1 + $0x178] sm:$0xff]  ;;  %v21783_v27 = vpop.f32.mrf.mxu1 }
 0x37a   : > { %16404 = vmatmul.mubr.msk.f32.gmra.mxu0 %vm264_vm0, %v13400_v54  ;;  %16428 = vmatprep.mubr.msk.f32.mxu1 %vm264_vm0, %v13423_v52  ;;  %v21798_v54 = vld [vmem:[%s17294_s24 + $0x1c0] sm:$0xff] }
 0x37b   : > { %16429 = vmatmul.mubr.msk.f32.gmra.mxu1 %vm264_vm0, %v20977_v1  ;;  %16473 = vmatprep.subr.mxu1 %v21457_v18  ;;  %v21788_v1 = vpop.permute.xlu0 %9641  ;;  %v21790_v24 = vpop.permute.xlu1 %9639 }
 0x37c   : > { %10858 = vrot.lane.b32.xlu0 %v21764_v2, %s17232_s25  ;;  %16449 = vmatprep.subr.mxu0 %v21471_v60 }
 0x37d   : > { %10636 = vrot.lane.b32.xlu1 %v21534_v5, %s17233_s30  ;;  %16474 = vmatpush3.msra.mxu1 %v21457_v18  ;;  %v16091_v52 = vpop.f32.mrf.mxu1 }
 0x37e   : > { %16406 = vmatprep.mubr.msk.f32.mxu0 %vm264_vm0, %v13401_v32  ;;  %16450 = vmatpush3.msra.mxu0 %v21471_v60  ;;  %v21803_v38 = vadd.f32 %v16091_v52, %v6771_v10  ;;  %v13437_v60 = vld [vmem:[%s23953_s1 + $0x1c0] sm:$0xff]  ;;  %v13439_v32 = vld [vmem:[%s23953_s1 + $0x1d0] sm:$0xff] }
 0x37f   : > { %16407 = vmatmul.mubr.msk.f32.gmra.mxu0 %vm264_vm0, %v13402_v30  ;;  %16431 = vmatprep.mubr.msk.f32.mxu1 %vm264_vm0, %v20998_v29  ;;  %v13438_v29 = vld [vmem:[%s23953_s1 + $0x1c8] sm:$0xff]  ;;  %v21825_v18 = vpop.permute.xlu0 %9637  ;;  %v21827_v10 = vpop.permute.xlu1 %9635 }
 0x380   : > { %16432 = vmatmul.mubr.msk.f32.gmra.mxu1 %vm264_vm0, %v21013_v55  ;;  %16475 = vmatprep.subr.mxu1 %v21502_v20  ;;  %v13427_v55 = vld [vmem:[%s23953_s1 + $0x1b0] sm:$0xff]  ;;  %v21847_v30 = vpop.f32.mrf.mxu0  ;;  %v21849_v52 = vpop.f32.mrf.mxu1 }
 0x381   : > { %10856 = vrot.lane.b32.xlu0 %v21795_v45, %s17232_s25  ;;  %10854 = vrot.lane.b32.xlu1 %v21798_v54, %s17232_s25 }
 0x382   : > { %16451 = vmatprep.subr.mxu0 %v21514_v3  ;;  %16476 = vmatpush3.msra.mxu1 %v21502_v20  ;;  %v13453_v20 = vld [vmem:[%s23953_s1 + $0x200] sm:$0xff] }
 0x383   : > { %16452 = vmatpush3.msra.mxu0 %v21514_v3  ;;  %16453 = vmatprep.mubr.msk.f32.mxu0 %vm264_vm0, %v13437_v60  ;;  %v13440_v3 = vld [vmem:[%s23953_s1 + $0x1d8] sm:$0xff] }
 0x384   : > { %16454 = vmatmul.mubr.msk.f32.vlgmr.msra.gmra.mxu0 %vm264_vm0, %v13438_v29  ;;  %16434 = vmatprep.mubr.msk.f32.mxu1 %vm264_vm0, %v13427_v55 }
 0x385   : > { %16435 = vmatmul.mubr.msk.f32.gmra.mxu1 %vm264_vm0, %v21054_v53  ;;  %16477 = vmatprep.subr.mxu1 %v21556_v0  ;;  %v13441_v53 = vld [vmem:[%s23953_s1 + $0x1e0] sm:$0xff] }
 0x386   : > { %11158 = vrot.lane.b32.xlu0 %v21624_v7, %s17233_s30  ;;  %11156 = vrot.lane.b32.xlu1 %v21666_v33, %s17233_s30  ;;  %v21860_v7 = vpop.permute.xlu0 %9979  ;;  %v21862_v33 = vpop.permute.xlu1 %9977 }
 0x387   : > { %16478 = vmatpush3.msra.mxu1 %v21556_v0  ;;  %16456 = vmatprep.mubr.msk.f32.mxu0 %vm264_vm0, %v13439_v32  ;;  %v13442_v0 = vld [vmem:[%s23953_s1 + $0x1e8] sm:$0xff] }
 0x388   : > { %16479 = vmatprep.subr.mxu1 %v21565_v59  ;;  %16457 = vmatmul.mubr.msk.f32.gmra.mxu0 %vm264_vm0, %v13440_v3  ;;  %v13444_v3 = vld [vmem:[%s23953_s1 + $0x1f8] sm:$0xff] }
 0x389   : > { %16480 = vmatpush3.msra.mxu1 %v21565_v59  ;;  %16481 = vmatprep.mubr.msk.f32.mxu1 %vm264_vm0, %v13453_v20 }
 0x38a   : > { %16482 = vmatmul.mubr.msk.f32.vlgmr.msra.gmra.mxu1 %vm264_vm0, %v21094_v26  ;;  %16493 = vmatprep.subr.mxu0 %v21602_v41  ;;  %v16066_v59 = vpop.f32.mrf.mxu0  ;;  %v16094_v60 = vpop.f32.mrf.mxu1 }
 0x38b   : > { %11154 = vrot.lane.b32.xlu0 %v21688_v28, %s17233_s30  ;;  %11152 = vrot.lane.b32.xlu1 %v21709_v4, %s17233_s30  ;;  %v6773_v29 = vadd.f32 %v16066_v59, %v21682_v8  ;;  %v13443_v28 = vld [vmem:[%s23953_s1 + $0x1f0] sm:$0xff]  ;;  %v21894_v8 = vpop.permute.xlu0 %10148  ;;  %v17141_v4 = vld [vmem:[%s17294_s24 + $0x1b8] sm:$0xff] }
 0x38c   : > { %16494 = vmatpush3.msra.mxu0 %v21602_v41  ;;  %16459 = vmatprep.mubr.msk.f32.mxu0 %vm264_vm0, %v13441_v53  ;;  %v21877_v26 = vpop.f32.mrf.mxu0  ;;  %v21879_v55 = vpop.f32.mrf.mxu1 }
 0x38d   : > { %24243 = vst [vmem:[#allocation168_spill] sm:$0xff] %v21879_v55  ;;  %16495 = vmatprep.subr.mxu0 %v21604_v56  ;;  %16460 = vmatmul.mubr.msk.f32.gmra.mxu0 %vm264_vm0, %v13442_v0  ;;  %v21883_v32 = vadd.f32 %v16094_v60, %v6773_v29  ;;  %v13598_v55 = vld [vmem:[%s23953_s1 + $0x1b8] sm:$0xff] }
 0x38e   : > { %16496 = vmatpush3.msra.mxu0 %v21604_v56  ;;  %16484 = vmatprep.mubr.msk.f32.mxu1 %vm264_vm0, %v21119_v50  ;;  %v21899_v56 = vpop.permute.xlu1 %9975 }
 0x38f   : > { %16485 = vmatmul.mubr.msk.f32.gmra.mxu1 %vm264_vm0, %v21137_v19  ;;  %16497 = vmatprep.subr.mxu0 %v21644_v49  ;;  %v16069_v41 = vpop.f32.mrf.mxu0  ;;  %v16097_v19 = vpop.f32.mrf.mxu1 }
 0x390   : > { %16521 = vmatprep.subr.mxu1 %v17141_v4  ;;  %11150 = vrot.lane.b32.xlu0 %v21736_v23, %s17233_s30  ;;  %v6775_v50 = vadd.f32 %v16069_v41, %v21725_v43  ;;  %v17142_v43 = vld [vmem:[%s17294_s24 + $0x1b0] sm:$0xff] }
 0x391   : > { %11148 = vrot.lane.b32.xlu1 %v21764_v2, %s17233_s30  ;;  %16498 = vmatpush3.msra.mxu0 %v21644_v49  ;;  %v21908_v20 = vpop.f32.mrf.mxu0  ;;  %v21913_v53 = vpop.f32.mrf.mxu1 }
 0x392   : > { %16522 = vmatpush3.msra.mxu1 %v17141_v4  ;;  %16462 = vmatprep.mubr.msk.f32.mxu0 %vm264_vm0, %v13443_v28  ;;  %v21911_v23 = vadd.f32 %v16097_v19, %v6775_v50  ;;  %24244 = vst [vmem:[#allocation169_spill] sm:$0xff] %v21913_v53  ;;  %v21921_v2 = vpop.permute.xlu0 %10146  ;;  %v21927_v60 = vpop.permute.xlu1 %9973  ;;  %v17145_v4 = vld [vmem:[%s17294_s24 + $0x198] sm:$0xff]  ;;  %v13486_v50 = vld [vmem:[%s23953_s1 + $0x48] sm:$0xff] }
 0x393   : > { %16499 = vmatprep.subr.mxu0 %v21646_v58  ;;  %16523 = vmatprep.subr.mxu1 %v17142_v43 }
 0x394   : > { %16463 = vmatmul.mubr.msk.f32.gmra.mxu0 %vm264_vm0, %v13444_v3  ;;  %16487 = vmatprep.mubr.msk.f32.mxu1 %vm264_vm0, %v21164_v11  ;;  %v16072_v49 = vpop.f32.mrf.mxu0  ;;  %v17143_v11 = vld [vmem:[%s17294_s24 + $0x1a8] sm:$0xff] }
 0x395   : > { %16500 = vmatpush3.msra.mxu0 %v21646_v58  ;;  %16524 = vmatpush3.msra.mxu1 %v17142_v43  ;;  %v6777_v0 = vadd.f32 %v16072_v49, %v21769_v14  ;;  %v16100_v59 = vpop.f32.mrf.mxu1  ;;  %v17147_v3 = vld [vmem:[%s17294_s24 + $0x188] sm:$0xff] }
 0x396   : > { %16488 = vmatmul.mubr.msk.f32.gmra.mxu1 %vm264_vm0, %v21182_v51  ;;  %16501 = vmatprep.subr.mxu0 %v21673_v63  ;;  %v21929_v29 = vpop.f32.mrf.mxu0  ;;  %v17144_v51 = vld [vmem:[%s17294_s24 + $0x1a0] sm:$0xff] }
 0x397   : > { %16525 = vmatprep.subr.mxu1 %v17143_v11  ;;  %11146 = vrot.lane.b32.xlu0 %v21795_v45, %s17233_s30  ;;  %v21934_v58 = vadd.f32 %v16100_v59, %v6777_v0  ;;  %v21939_v14 = vpop.f32.mrf.mxu1  ;;  %v21946_v45 = vpop.permute.xlu0 %10144  ;;  %v13487_v0 = vld [vmem:[%s23953_s1 + $0x50] sm:$0xff] }
 0x398   : > { %11144 = vrot.lane.b32.xlu1 %v21798_v54, %s17233_s30  ;;  %16502 = vmatpush3.msra.mxu0 %v21673_v63  ;;  %24245 = vst [vmem:[#allocation170_spill] sm:$0xff] %v21939_v14  ;;  %v21952_v54 = vpop.permute.xlu1 %9971 }
 0x399   : > { %16526 = vmatpush3.msra.mxu1 %v17143_v11  ;;  %16503 = vmatprep.subr.mxu0 %v21677_v47  ;;  %v9321_v11 = vld [vmem:[%s23953_s1] sm:$0xff] }
 0x39a   : > { %16527 = vmatprep.subr.mxu1 %v17144_v51  ;;  %16504 = vmatpush3.msra.mxu0 %v21677_v47  ;;  %v16119_v28 = vpop.f32.mrf.mxu0 }
 0x39b   : > { %16490 = vmatprep.mubr.msk.f32.mxu1 %vm264_vm0, %v21209_v12  ;;  %16528 = vmatpush3.msra.mxu1 %v17144_v51  ;;  %v7101_v63 = vadd.f32 %v16119_v28, %v21803_v38  ;;  %v16147_v41 = vpop.f32.mrf.mxu1  ;;  %v17146_v38 = vld [vmem:[%s17294_s24 + $0x190] sm:$0xff]  ;;  %v13488_v51 = vld [vmem:[%s23953_s1 + $0x58] sm:$0xff] }
 0x39c   : > { %16491 = vmatmul.mubr.msk.f32.gmra.mxu1 %vm264_vm0, %v21226_v57  ;;  %16505 = vmatprep.subr.mxu0 %v21694_v40  ;;  %v21957_v12 = vpop.f32.mrf.mxu0  ;;  %v13485_v57 = vld [vmem:[%s23953_s1 + $0x40] sm:$0xff] }
 0x39d   : > { %16529 = vmatprep.subr.mxu1 %v17145_v4  ;;  %11488 = vrot.lane.b32.xlu0 %v21376_v62, %s17232_s25  ;;  %24246 = vst [vmem:[#allocation171_spill] sm:$0xff] %v21957_v12  ;;  %v21959_v47 = vadd.f32 %v16147_v41, %v7101_v63  ;;  %v21978_v43 = vpop.permute.xlu1 %9969  ;;  %v21991_v59 = vpop.f32.mrf.mxu1  ;;  %v9322_v63 = vld [vmem:[%s23953_s1 + $0x8] sm:$0xff] }
 0x39e   : > { %11486 = vrot.lane.b32.xlu1 %v21383_v44, %s17232_s25  ;;  %16506 = vmatpush3.msra.mxu0 %v21694_v40  ;;  %v21974_v40 = vpop.permute.xlu0 %10142  ;;  %24248 = vst [vmem:[#allocation173_spill] sm:$0xff] %v21991_v59 }
 0x39f   : > { %16530 = vmatpush3.msra.mxu1 %v17145_v4  ;;  %16507 = vmatprep.subr.mxu0 %v21698_v36 }
 0x3a0   : > { %16531 = vmatprep.subr.mxu1 %v17146_v38  ;;  %16508 = vmatpush3.msra.mxu0 %v21698_v36 }
 0x3a1   : > { %16532 = vmatpush3.msra.mxu1 %v17146_v38  ;;  %16509 = vmatprep.mubr.msk.f32.mxu0 %vm264_vm0, %v13485_v57  ;;  %v16122_v19 = vpop.f32.mrf.mxu0 }
 0x3a2   : > { %16533 = vmatprep.subr.mxu1 %v17147_v3  ;;  %16549 = vmatprep.subr.mxu0 %v21716_v22  ;;  %v7103_v49 = vadd.f32 %v16122_v19, %v21883_v32  ;;  %v17148_v32 = vld [vmem:[%s17294_s24 + $0x180] sm:$0xff]  ;;  %v9323_v19 = vld [vmem:[%s23953_s1 + $0x10] sm:$0xff] }
 0x3a3   : > { %11484 = vrot.lane.b32.xlu0 %v21428_v39, %s17232_s25  ;;  %11482 = vrot.lane.b32.xlu1 %v21431_v9, %s17232_s25  ;;  %v21985_v36 = vpop.f32.mrf.mxu0  ;;  %v22004_v28 = vpop.permute.xlu0 %10140 }
 0x3a4   : > { %24247 = vst [vmem:[#allocation172_spill] sm:$0xff] %v21985_v36  ;;  %16510 = vmatmul.mubr.msk.f32.vlgmr.msra.gmra.mxu0 %vm264_vm0, %v13486_v50  ;;  %16534 = vmatpush3.msra.mxu1 %v17147_v3  ;;  %v22011_v41 = vpop.permute.xlu1 %9967 }
 0x3a5   : > { %16550 = vmatpush3.msra.mxu0 %v21716_v22  ;;  %16535 = vmatprep.subr.mxu1 %v17148_v32 }
 0x3a6   : > { %16551 = vmatprep.subr.mxu0 %v21723_v16  ;;  %16536 = vmatpush3.msra.mxu1 %v17148_v32 }
 0x3a7   : > { %16552 = vmatpush3.msra.mxu0 %v21723_v16  ;;  %16512 = vmatprep.mubr.msk.f32.mxu0 %vm264_vm0, %v13487_v0  ;;  %v16125_v22 = vpop.f32.mrf.mxu0 }
 0x3a8   : > { %16537 = vmatprep.mubr.msk.f32.mxu1 %vm264_vm0, %v9321_v11  ;;  %16553 = vmatprep.subr.mxu0 %v21753_v46  ;;  %v7105_v16 = vadd.f32 %v16125_v22, %v21911_v23  ;;  %v16150_v4 = vpop.f32.mrf.mxu1  ;;  %v13489_v23 = vld [vmem:[%s23953_s1 + $0x60] sm:$0xff] }
 0x3a9   : > { %16577 = vmatprep.subr.mxu1 %v21485_v13  ;;  %11480 = vrot.lane.b32.xlu0 %v21469_v34, %s17232_s25  ;;  %v22017_v57 = vadd.f32 %v16150_v4, %v7103_v49  ;;  %v22022_v38 = vpop.f32.mrf.mxu0  ;;  %v9325_v22 = vld [vmem:[%s23953_s1 + $0x20] sm:$0xff] }
 0x3aa   : > { %11478 = vrot.lane.b32.xlu1 %v21476_v25, %s17232_s25  ;;  %16513 = vmatmul.mubr.msk.f32.gmra.mxu0 %vm264_vm0, %v13488_v51  ;;  %24249 = vst [vmem:[#allocation174_spill] sm:$0xff] %v22022_v38  ;;  %v22029_v50 = vpop.f32.mrf.mxu1  ;;  %v22038_v3 = vpop.permute.xlu0 %10138  ;;  %v13593_v38 = vld [vmem:[%s23953_s1 + $0x190] sm:$0xff] }
 0x3ab   : > { %16538 = vmatmul.mubr.msk.f32.vlgmr.msra.gmra.mxu1 %vm264_vm0, %v9322_v63  ;;  %16554 = vmatpush3.msra.mxu0 %v21753_v46  ;;  %24250 = vst [vmem:[#allocation175_spill] sm:$0xff] %v22029_v50  ;;  %v22045_v46 = vpop.permute.xlu1 %9965 }
 0x3ac   : > { %16578 = vmatpush3.msra.mxu1 %v21485_v13  ;;  %16555 = vmatprep.subr.mxu0 %v21755_v31  ;;  %v13490_v13 = vld [vmem:[%s23953_s1 + $0x68] sm:$0xff] }
 0x3ad   : > { %16579 = vmatprep.subr.mxu1 %v21520_v6  ;;  %16556 = vmatpush3.msra.mxu0 %v21755_v31  ;;  %v9324_v31 = vld [vmem:[%s23953_s1 + $0x18] sm:$0xff] }
 0x3ae   : > { %16580 = vmatpush3.msra.mxu1 %v21520_v6  ;;  %16515 = vmatprep.mubr.msk.f32.mxu0 %vm264_vm0, %v13489_v23  ;;  %v16128_v49 = vpop.f32.mrf.mxu0 }
 0x3af   : > { %16540 = vmatprep.mubr.msk.f32.mxu1 %vm264_vm0, %v9323_v19  ;;  %16557 = vmatprep.subr.mxu0 %v21788_v1  ;;  %v7107_v0 = vadd.f32 %v16128_v49, %v21934_v58  ;;  %v16153_v6 = vpop.f32.mrf.mxu1  ;;  %v13491_v58 = vld [vmem:[%s23953_s1 + $0x70] sm:$0xff] }
 0x3b0   : > { %16581 = vmatprep.subr.mxu1 %v21545_v15  ;;  %11476 = vrot.lane.b32.xlu0 %v21525_v37, %s17232_s25  ;;  %v22056_v32 = vadd.f32 %v16153_v6, %v7105_v16  ;;  %v22061_v11 = vpop.f32.mrf.mxu0  ;;  %v22075_v63 = vpop.permute.xlu0 %10136 }
 0x3b1   : > { %11474 = vrot.lane.b32.xlu1 %v21534_v5, %s17232_s25  ;;  %16516 = vmatmul.mubr.msk.f32.gmra.mxu0 %vm264_vm0, %v13490_v13  ;;  %24251 = vst [vmem:[#allocation176_spill] sm:$0xff] %v22061_v11  ;;  %v22063_v51 = vpop.f32.mrf.mxu1  ;;  %v22079_v16 = vpop.permute.xlu1 %10134 }
 0x3b2   : > { %24252 = vst [vmem:[#allocation177_spill] sm:$0xff] %v22063_v51  ;;  %16541 = vmatmul.mubr.msk.f32.gmra.mxu1 %vm264_vm0, %v9324_v31  ;;  %16558 = vmatpush3.msra.mxu0 %v21788_v1  ;;  %v13533_v31 = vld [vmem:[%s23953_s1 + $0xc0] sm:$0xff] }
 0x3b3   : > { %16582 = vmatpush3.msra.mxu1 %v21545_v15  ;;  %16559 = vmatprep.subr.mxu0 %v21790_v24  ;;  %v13492_v15 = vld [vmem:[%s23953_s1 + $0x78] sm:$0xff] }
 0x3b4   : > { %16583 = vmatprep.subr.mxu1 %v21575_v35  ;;  %16560 = vmatpush3.msra.mxu0 %v21790_v24  ;;  %v9326_v24 = vld [vmem:[%s23953_s1 + $0x28] sm:$0xff] }
 0x3b5   : > { %16584 = vmatpush3.msra.mxu1 %v21575_v35  ;;  %16518 = vmatprep.mubr.msk.f32.mxu0 %vm264_vm0, %v13491_v58  ;;  %v16175_v1 = vpop.f32.mrf.mxu0  ;;  %v16156_v4 = vpop.f32.mrf.mxu1 }
 0x3b6   : > { %16543 = vmatprep.mubr.msk.f32.mxu1 %vm264_vm0, %v9325_v22  ;;  %16561 = vmatprep.subr.mxu0 %v21825_v18  ;;  %v7426_v23 = vadd.f32 %v16175_v1, %v21959_v47  ;;  %v22092_v19 = vadd.f32 %v16156_v4, %v7107_v0  ;;  %v9327_v47 = vld [vmem:[%s23953_s1 + $0x30] sm:$0xff]  ;;  %v22197_v22 = vld [vmem:[%s23953_s1 + $0x98] sm:$0xff] }
 0x3b7   : > { %16585 = vmatprep.subr.mxu1 %v21592_v48  ;;  %11657 = vrot.lane.b32.xlu0 %v21376_v62, %s17233_s30  ;;  %v22100_v35 = vpop.f32.mrf.mxu1  ;;  %v22107_v13 = vpop.permute.xlu0 %10481  ;;  %v13509_v62 = vld [vmem:[%s23953_s1 + $0x80] sm:$0xff] }
 0x3b8   : > { %11655 = vrot.lane.b32.xlu1 %v21383_v44, %s17233_s30  ;;  %16519 = vmatmul.mubr.msk.f32.gmra.mxu0 %vm264_vm0, %v13492_v15  ;;  %24253 = vst [vmem:[#allocation178_spill] sm:$0xff] %v22100_v35  ;;  %v22152_v0 = vpop.f32.mrf.mxu0  ;;  %v22443_v35 = vld [vmem:[%s17294_s24 + $0x210] sm:$0xff] }
 0x3b9   : > { %16544 = vmatmul.mubr.msk.f32.gmra.mxu1 %vm264_vm0, %v9326_v24  ;;  %16562 = vmatpush3.msra.mxu0 %v21825_v18  ;;  %v16203_v44 = vpop.f32.mrf.mxu1  ;;  %v22116_v18 = vpop.permute.xlu1 %10479  ;;  %24254 = vst [vmem:[#allocation179_spill] sm:$0xff] %v22152_v0 }
 0x3ba   : > { %16586 = vmatpush3.msra.mxu1 %v21592_v48  ;;  %16563 = vmatprep.subr.mxu0 %v21827_v10  ;;  %v22118_v49 = vadd.f32 %v16203_v44, %v7426_v23  ;;  %v9328_v48 = vld [vmem:[%s23953_s1 + $0x38] sm:$0xff]  ;;  %v22225_v23 = vld [vmem:[%s23953_s1 + $0xa8] sm:$0xff] }
 0x3bb   : > { %16587 = vmatprep.subr.mxu1 %v21619_v17  ;;  %16564 = vmatpush3.msra.mxu0 %v21827_v10  ;;  %v13510_v10 = vld [vmem:[%s23953_s1 + $0x88] sm:$0xff] }
 0x3bc   : > { %16588 = vmatpush3.msra.mxu1 %v21619_v17  ;;  %16546 = vmatprep.mubr.msk.f32.mxu1 %vm264_vm0, %v9327_v47 }
 0x3bd   : > { %16565 = vmatprep.mubr.msk.f32.mxu0 %vm264_vm0, %v13509_v62  ;;  %16589 = vmatprep.subr.mxu1 %v21633_v21  ;;  %v13536_v62 = vld [vmem:[%s23953_s1 + $0xd8] sm:$0xff] }
 0x3be   : > { %16605 = vmatprep.subr.mxu0 %v21860_v7  ;;  %11653 = vrot.lane.b32.xlu0 %v21428_v39, %s17233_s30  ;;  %v22136_v17 = vpop.permute.xlu0 %10477  ;;  %v22145_v39 = vpop.permute.xlu1 %10475 }
 0x3bf   : > { %11651 = vrot.lane.b32.xlu1 %v21431_v9, %s17233_s30  ;;  %16547 = vmatmul.mubr.msk.f32.gmra.mxu1 %vm264_vm0, %v9328_v48  ;;  %v13534_v9 = vld [vmem:[%s23953_s1 + $0xc8] sm:$0xff]  ;;  %v22248_v48 = vld [vmem:[%s23953_s1 + $0xb0] sm:$0xff] }
 0x3c0   : > { %16566 = vmatmul.mubr.msk.f32.vlgmr.msra.gmra.mxu0 %vm264_vm0, %v13510_v10  ;;  %16590 = vmatpush3.msra.mxu1 %v21633_v21  ;;  %v22154_v21 = vpop.f32.mrf.mxu1 }
 0x3c1   : > { %16606 = vmatpush3.msra.mxu0 %v21860_v7  ;;  %16591 = vmatprep.subr.mxu1 %v21662_v61  ;;  %24255 = vst [vmem:[#allocation180_spill] sm:$0xff] %v22154_v21 }
 0x3c2   : > { %16607 = vmatprep.subr.mxu0 %v21862_v33  ;;  %16592 = vmatpush3.msra.mxu1 %v21662_v61 }
 0x3c3   : > { %16608 = vmatpush3.msra.mxu0 %v21862_v33  ;;  %16593 = vmatprep.mubr.msk.f32.mxu1 %vm264_vm0, %v13533_v31  ;;  %v22164_v61 = vpop.permute.xlu0 %10473 }
 0x3c4   : > { %16633 = vmatprep.subr.mxu1 %v21894_v8  ;;  %11649 = vrot.lane.b32.xlu0 %v21469_v34, %s17233_s30  ;;  %v22170_v34 = vpop.permute.xlu1 %10471 }
 0x3c5   : > { %11647 = vrot.lane.b32.xlu1 %v21476_v25, %s17233_s30  ;;  %16594 = vmatmul.mubr.msk.f32.vlgmr.msra.gmra.mxu1 %vm264_vm0, %v13534_v9 }
 0x3c6   : > { %16609 = vmatprep.subr.mxu0 %v21899_v56  ;;  %16634 = vmatpush3.msra.mxu1 %v21894_v8  ;;  %v16178_v7 = vpop.f32.mrf.mxu0  ;;  %v16206_v33 = vpop.f32.mrf.mxu1  ;;  %v22179_v8 = vld [vmem:[%s23953_s1 + $0x90] sm:$0xff] }
 0x3c7   : > { %16610 = vmatpush3.msra.mxu0 %v21899_v56  ;;  %16635 = vmatprep.subr.mxu1 %v21921_v2  ;;  %v7428_v25 = vadd.f32 %v16178_v7, %v22017_v57  ;;  %v13760_v56 = vld [vmem:[%s17294_s24 + $0x278] sm:$0xff] }
 0x3c8   : > { %11645 = vrot.lane.b32.xlu0 %v21525_v37, %s17233_s30  ;;  %16611 = vmatprep.subr.mxu0 %v21927_v60  ;;  %v22181_v6 = vpop.f32.mrf.mxu0  ;;  %v22183_v58 = vpop.f32.mrf.mxu1  ;;  %v13759_v37 = vld [vmem:[%s17294_s24 + $0x270] sm:$0xff] }
 0x3c9   : > { %24256 = vst [vmem:[#allocation181_spill] sm:$0xff] %v22181_v6  ;;  %24257 = vst [vmem:[#allocation182_spill] sm:$0xff] %v22183_v58  ;;  %11643 = vrot.lane.b32.xlu1 %v21534_v5, %s17233_s30  ;;  %16636 = vmatpush3.msra.mxu1 %v21921_v2  ;;  %v22189_v57 = vadd.f32 %v16206_v33, %v7428_v25  ;;  %v22207_v2 = vld [vmem:[%s23953_s1 + $0xa0] sm:$0xff]  ;;  %v22263_v33 = vld [vmem:[%s23953_s1 + $0xb8] sm:$0xff] }
 0x3ca   : > { %16612 = vmatpush3.msra.mxu0 %v21927_v60  ;;  %16637 = vmatprep.subr.mxu1 %v21946_v45  ;;  %v22209_v60 = vpop.permute.xlu0 %10469  ;;  %v13553_v58 = vld [vmem:[%s23953_s1 + $0x120] sm:$0xff] }
 0x3cb   : > { %16568 = vmatprep.mubr.msk.f32.mxu0 %vm264_vm0, %v22179_v8  ;;  %16613 = vmatprep.subr.mxu0 %v21952_v54  ;;  %v16181_v5 = vpop.f32.mrf.mxu0  ;;  %v16209_v1 = vpop.f32.mrf.mxu1 }
 0x3cc   : > { %11990 = vrot.lane.b32.xlu0 %v13760_v56, %s17232_s25  ;;  %16638 = vmatpush3.msra.mxu1 %v21946_v45  ;;  %v7430_v15 = vadd.f32 %v16181_v5, %v22056_v32  ;;  %v22215_v4 = vpop.permute.xlu1 %10467  ;;  %v13758_v45 = vld [vmem:[%s17294_s24 + $0x268] sm:$0xff] }
 0x3cd   : > { %11988 = vrot.lane.b32.xlu1 %v13759_v37, %s17232_s25  ;;  %16569 = vmatmul.mubr.msk.f32.gmra.mxu0 %vm264_vm0, %v22197_v22  ;;  %v22217_v24 = vpop.f32.mrf.mxu0  ;;  %v22229_v47 = vpop.f32.mrf.mxu1  ;;  %v13538_v5 = vld [vmem:[%s23953_s1 + $0xe8] sm:$0xff] }
 0x3ce   : > { %24258 = vst [vmem:[#allocation183_spill] sm:$0xff] %v22217_v24  ;;  %16614 = vmatpush3.msra.mxu0 %v21952_v54  ;;  %16639 = vmatprep.subr.mxu1 %v21974_v40  ;;  %v22227_v32 = vadd.f32 %v16209_v1, %v7430_v15  ;;  %24259 = vst [vmem:[#allocation184_spill] sm:$0xff] %v22229_v47  ;;  %v13535_v54 = vld [vmem:[%s23953_s1 + $0xd0] sm:$0xff]  ;;  %v13756_v15 = vld [vmem:[%s17294_s24 + $0x258] sm:$0xff] }
 0x3cf   : > { %16571 = vmatprep.mubr.msk.f32.mxu0 %vm264_vm0, %v22207_v2  ;;  %16615 = vmatprep.subr.mxu0 %v21978_v43  ;;  %v13754_v47 = vld [vmem:[%s17294_s24 + $0x248] sm:$0xff]  ;;  %v22399_v24 = vld [vmem:[%s17294_s24 + $0x220] sm:$0xff] }
 0x3d0   : > { %12159 = vrot.lane.b32.xlu0 %v13760_v56, %s17233_s30  ;;  %16640 = vmatpush3.msra.mxu1 %v21974_v40  ;;  %v16184_v44 = vpop.f32.mrf.mxu0  ;;  %v13757_v40 = vld [vmem:[%s17294_s24 + $0x260] sm:$0xff] }
 0x3d1   : > { %11986 = vrot.lane.b32.xlu1 %v13758_v45, %s17232_s25  ;;  %16572 = vmatmul.mubr.msk.f32.gmra.mxu0 %vm264_vm0, %v22225_v23  ;;  %v7432_v10 = vadd.f32 %v16184_v44, %v22092_v19  ;;  %v16212_v31 = vpop.f32.mrf.mxu1  ;;  %v22254_v9 = vpop.permute.xlu0 %10650  ;;  %v13537_v56 = vld [vmem:[%s23953_s1 + $0xe0] sm:$0xff] }
 0x3d2   : > { %16616 = vmatpush3.msra.mxu0 %v21978_v43  ;;  %16596 = vmatprep.mubr.msk.f32.mxu1 %vm264_vm0, %v13535_v54  ;;  %v22256_v7 = vpop.f32.mrf.mxu0  ;;  %v22265_v19 = vpop.permute.xlu1 %10648 }
 0x3d3   : > { %24260 = vst [vmem:[#allocation185_spill] sm:$0xff] %v22256_v7  ;;  %16597 = vmatmul.mubr.msk.f32.gmra.mxu1 %vm264_vm0, %v13536_v62  ;;  %16641 = vmatprep.subr.mxu1 %v22004_v28  ;;  %v22267_v43 = vadd.f32 %v16212_v31, %v7432_v10  ;;  %v22269_v25 = vpop.f32.mrf.mxu1  ;;  %v13539_v10 = vld [vmem:[%s23953_s1 + $0xf0] sm:$0xff] }
 0x3d4   : > { %24261 = vst [vmem:[#allocation186_spill] sm:$0xff] %v22269_v25  ;;  %12157 = vrot.lane.b32.xlu0 %v13759_v37, %s17233_s30  ;;  %16574 = vmatprep.mubr.msk.f32.mxu0 %vm264_vm0, %v22248_v48  ;;  %v22350_v25 = vld [vmem:[%s17294_s24 + $0x230] sm:$0xff] }
 0x3d5   : > { %11984 = vrot.lane.b32.xlu1 %v13757_v40, %s17232_s25  ;;  %16617 = vmatprep.subr.mxu0 %v22011_v41 }
 0x3d6   : > { %16642 = vmatpush3.msra.mxu1 %v22004_v28  ;;  %16575 = vmatmul.mubr.msk.f32.gmra.mxu0 %vm264_vm0, %v22263_v33  ;;  %v16231_v37 = vpop.f32.mrf.mxu0  ;;  %v22298_v28 = vld [vmem:[%s23953_s1 + $0x100] sm:$0xff] }
 0x3d7   : > { %16618 = vmatpush3.msra.mxu0 %v22011_v41  ;;  %16599 = vmatprep.mubr.msk.f32.mxu1 %vm264_vm0, %v13537_v56  ;;  %v22289_v1 = vadd.f32 %v16231_v37, %v22118_v49  ;;  %v22291_v54 = vpop.f32.mrf.mxu1  ;;  %v22307_v41 = vld [vmem:[%s23953_s1 + $0x108] sm:$0xff]  ;;  %v22335_v56 = vld [vmem:[%s17294_s24 + $0x250] sm:$0xff] }
 0x3d8   : > { %16600 = vmatmul.mubr.msk.f32.gmra.mxu1 %vm264_vm0, %v13538_v5  ;;  %16619 = vmatprep.subr.mxu0 %v22045_v46  ;;  %v22300_v62 = vpop.permute.xlu0 %10868  ;;  %v22311_v44 = vpop.f32.mrf.mxu0 }
 0x3d9   : > { %24262 = vst [vmem:[#allocation187_spill] sm:$0xff] %v22289_v1  ;;  %16643 = vmatprep.subr.mxu1 %v22038_v3  ;;  %12155 = vrot.lane.b32.xlu0 %v13758_v45, %s17233_s30  ;;  %v22309_v49 = vpop.permute.xlu1 %10646  ;;  %24263 = vst [vmem:[#allocation188_spill] sm:$0xff] %v22311_v44  ;;  %v13540_v45 = vld [vmem:[%s23953_s1 + $0xf8] sm:$0xff]  ;;  %v22324_v31 = vpop.f32.mrf.mxu1 }
 0x3da   : > { %11982 = vrot.lane.b32.xlu1 %v13756_v15, %s17232_s25  ;;  %16620 = vmatpush3.msra.mxu0 %v22045_v46  ;;  %v22329_v46 = vld [vmem:[%s17294_s24 + $0x238] sm:$0xff] }
 0x3db   : > { %16621 = vmatprep.mubr.msk.f32.mxu0 %vm264_vm0, %v22298_v28  ;;  %16644 = vmatpush3.msra.mxu1 %v22038_v3  ;;  %v22340_v3 = vld [vmem:[%s23953_s1 + $0x110] sm:$0xff] }
 0x3dc   : > { %16622 = vmatmul.mubr.msk.f32.vlgmr.msra.gmra.mxu0 %vm264_vm0, %v22307_v41  ;;  %16661 = vmatprep.subr.mxu0 %v22329_v46 }
 0x3dd   : > { %16662 = vmatpush3.msra.mxu0 %v22329_v46  ;;  %16602 = vmatprep.mubr.msk.f32.mxu1 %vm264_vm0, %v13539_v10  ;;  %v16234_v5 = vpop.f32.mrf.mxu0  ;;  %v22357_v10 = vld [vmem:[%s23953_s1 + $0x118] sm:$0xff] }
 0x3de   : > { %16603 = vmatmul.mubr.msk.f32.gmra.mxu1 %vm264_vm0, %v13540_v45  ;;  %16645 = vmatprep.subr.mxu1 %v22075_v63  ;;  %v22344_v37 = vpop.permute.xlu0 %10866  ;;  %v22347_v1 = vadd.f32 %v16234_v5, %v22189_v57  ;;  %v22361_v44 = vpop.f32.mrf.mxu1  ;;  %v13566_v5 = vld [vmem:[%s23953_s1 + $0x148] sm:$0xff] }
 0x3df   : > { %16663 = vmatprep.subr.mxu0 %v22350_v25  ;;  %12153 = vrot.lane.b32.xlu0 %v13757_v40, %s17233_s30  ;;  %v22359_v45 = vpop.permute.xlu1 %10644  ;;  %v22367_v57 = vpop.f32.mrf.mxu0  ;;  %v13565_v40 = vld [vmem:[%s23953_s1 + $0x140] sm:$0xff] }
 0x3e0   : > { %24264 = vst [vmem:[#allocation189_spill] sm:$0xff] %v22347_v1  ;;  %11980 = vrot.lane.b32.xlu1 %v22335_v56, %s17232_s25  ;;  %16624 = vmatprep.mubr.msk.f32.mxu0 %vm264_vm0, %v22340_v3  ;;  %24265 = vst [vmem:[#allocation190_spill] sm:$0xff] %v22367_v57  ;;  %v22383_v57 = vld [vmem:[%s17294_s24 + $0x228] sm:$0xff] }
 0x3e1   : > { %16646 = vmatpush3.msra.mxu1 %v22075_v63  ;;  %16664 = vmatpush3.msra.mxu0 %v22350_v25  ;;  %v22387_v63 = vpop.f32.mrf.mxu1 }
 0x3e2   : > { %16625 = vmatmul.mubr.msk.f32.gmra.mxu0 %vm264_vm0, %v22357_v10  ;;  %16647 = vmatprep.subr.mxu1 %v22079_v16  ;;  %v22380_v1 = vpop.permute.xlu0 %10864 }
 0x3e3   : > { %16665 = vmatprep.subr.mxu0 %v22383_v57  ;;  %16648 = vmatpush3.msra.mxu1 %v22079_v16  ;;  %v22395_v7 = vpop.permute.xlu1 %10642 }
 0x3e4   : > { %16666 = vmatpush3.msra.mxu0 %v22383_v57  ;;  %16649 = vmatprep.mubr.msk.f32.mxu1 %vm264_vm0, %v13565_v40  ;;  %v16237_v21 = vpop.f32.mrf.mxu0  ;;  %v13554_v40 = vld [vmem:[%s23953_s1 + $0x128] sm:$0xff] }
 0x3e5   : > { %16650 = vmatmul.mubr.msk.f32.vlgmr.msra.gmra.mxu1 %vm264_vm0, %v13566_v5  ;;  %16667 = vmatprep.subr.mxu0 %v22399_v24  ;;  %v22403_v16 = vadd.f32 %v16237_v21, %v22227_v32  ;;  %v13567_v21 = vld [vmem:[%s23953_s1 + $0x150] sm:$0xff] }
 0x3e6   : > { %16689 = vmatprep.subr.mxu1 %v22107_v13  ;;  %12151 = vrot.lane.b32.xlu0 %v13756_v15, %s17233_s30  ;;  %v22412_v5 = vpop.f32.mrf.mxu0  ;;  %v22419_v32 = vpop.permute.xlu0 %10862 }
 0x3e7   : > { %24266 = vst [vmem:[#allocation191_spill] sm:$0xff] %v22403_v16  ;;  %11978 = vrot.lane.b32.xlu1 %v13754_v47, %s17232_s25  ;;  %16627 = vmatprep.mubr.msk.f32.mxu0 %vm264_vm0, %v13553_v58  ;;  %24267 = vst [vmem:[#allocation192_spill] sm:$0xff] %v22412_v5  ;;  %v22421_v15 = vpop.f32.mrf.mxu1  ;;  %v22425_v16 = vld [vmem:[%s17294_s24 + $0x218] sm:$0xff]  ;;  %v13753_v5 = vld [vmem:[%s17294_s24 + $0x240] sm:$0xff] }
 0x3e8   : > { %16668 = vmatpush3.msra.mxu0 %v22399_v24  ;;  %16690 = vmatpush3.msra.mxu1 %v22107_v13  ;;  %v13568_v58 = vld [vmem:[%s23953_s1 + $0x158] sm:$0xff]  ;;  %v22433_v13 = vpop.permute.xlu1 %10640 }
 0x3e9   : > { %16628 = vmatmul.mubr.msk.f32.gmra.mxu0 %vm264_vm0, %v13554_v40  ;;  %16669 = vmatprep.subr.mxu0 %v22425_v16  ;;  %v13555_v40 = vld [vmem:[%s23953_s1 + $0x130] sm:$0xff]  ;;  %v22449_v51 = vpop.f32.mrf.mxu1 }
 0x3ea   : > { %16691 = vmatprep.subr.mxu1 %v22116_v18  ;;  %16670 = vmatpush3.msra.mxu0 %v22425_v16  ;;  %24269 = vst [vmem:[#allocation194_spill] sm:$0xff] %v22449_v51  ;;  %v24380_v51 = vld [vmem:[#allocation95_spill] sm:$0xff] }
 0x3eb   : > { %16652 = vmatprep.mubr.msk.f32.mxu1 %vm264_vm0, %v13567_v21  ;;  %16692 = vmatpush3.msra.mxu1 %v22116_v18  ;;  %v16240_v6 = vpop.f32.mrf.mxu0  ;;  %v13556_v18 = vld [vmem:[%s23953_s1 + $0x138] sm:$0xff]  ;;  %v22459_v21 = vpop.permute.xlu0 %10860 }
 0x3ec   : > { %16653 = vmatmul.mubr.msk.f32.gmra.mxu1 %vm264_vm0, %v13568_v58  ;;  %16671 = vmatprep.subr.mxu0 %v22443_v35  ;;  %v22447_v0 = vadd.f32 %v16240_v6, %v22267_v43  ;;  %v13569_v6 = vld [vmem:[%s23953_s1 + $0x160] sm:$0xff]  ;;  %v22470_v43 = vld [vmem:[%s17294_s24 + $0x208] sm:$0xff] }
 0x3ed   : > { %16693 = vmatprep.subr.mxu1 %v22136_v17  ;;  %12149 = vrot.lane.b32.xlu0 %v22335_v56, %s17233_s30  ;;  %v22461_v58 = vpop.f32.mrf.mxu0  ;;  %v13570_v56 = vld [vmem:[%s23953_s1 + $0x168] sm:$0xff] }
 0x3ee   : > { %24268 = vst [vmem:[#allocation193_spill] sm:$0xff] %v22447_v0  ;;  %11976 = vrot.lane.b32.xlu1 %v13753_v5, %s17232_s25  ;;  %16630 = vmatprep.mubr.msk.f32.mxu0 %vm264_vm0, %v13555_v40  ;;  %24270 = vst [vmem:[#allocation195_spill] sm:$0xff] %v22461_v58  ;;  %v22476_v40 = vpop.permute.xlu1 %10638  ;;  %v22478_v0 = vpop.f32.mrf.mxu1  ;;  %v13591_v58 = vld [vmem:[%s23953_s1 + $0x180] sm:$0xff] }
 0x3ef   : > { %16672 = vmatpush3.msra.mxu0 %v22443_v35  ;;  %16694 = vmatpush3.msra.mxu1 %v22136_v17  ;;  %24271 = vst [vmem:[#allocation196_spill] sm:$0xff] %v22478_v0 }
 0x3f0   : > { %16631 = vmatmul.mubr.msk.f32.gmra.mxu0 %vm264_vm0, %v13556_v18  ;;  %16673 = vmatprep.subr.mxu0 %v22470_v43  ;;  %v22488_v18 = vld [vmem:[%s17294_s24 + $0x200] sm:$0xff]  ;;  %v22501_v50 = vpop.f32.mrf.mxu1 }
 0x3f1   : > { %16695 = vmatprep.subr.mxu1 %v22145_v39  ;;  %16674 = vmatpush3.msra.mxu0 %v22470_v43  ;;  %24272 = vst [vmem:[#allocation197_spill] sm:$0xff] %v22501_v50 }
 0x3f2   : > { %16655 = vmatprep.mubr.msk.f32.mxu1 %vm264_vm0, %v13569_v6  ;;  %16696 = vmatpush3.msra.mxu1 %v22145_v39  ;;  %v22484_v17 = vpop.f32.mrf.mxu0  ;;  %v13592_v39 = vld [vmem:[%s23953_s1 + $0x188] sm:$0xff]  ;;  %v22499_v6 = vpop.permute.xlu0 %10858 }
 0x3f3   : > { %16656 = vmatmul.mubr.msk.f32.gmra.mxu1 %vm264_vm0, %v13570_v56  ;;  %16675 = vmatprep.subr.mxu0 %v22488_v18  ;;  %v13571_v56 = vld [vmem:[%s23953_s1 + $0x170] sm:$0xff]  ;;  %v22527_v59 = vpop.f32.mrf.mxu1 }
 0x3f4   : > { %16697 = vmatprep.subr.mxu1 %v22164_v61  ;;  %12147 = vrot.lane.b32.xlu0 %v13754_v47, %s17233_s30  ;;  %v22508_v11 = vpop.f32.mrf.mxu0  ;;  %v22512_v47 = vpop.permute.xlu1 %10636  ;;  %24273 = vst [vmem:[#allocation198_spill] sm:$0xff] %v22527_v59  ;;  %v24299_v59 = vld [vmem:[#allocation7_spill] sm:$0xff] }
 0x3f5   : > { %12145 = vrot.lane.b32.xlu1 %v13753_v5, %s17233_s30  ;;  %16676 = vmatpush3.msra.mxu0 %v22488_v18  ;;  %v13572_v5 = vld [vmem:[%s23953_s1 + $0x178] sm:$0xff]  ;;  %v22553_v53 = vpop.f32.mrf.mxu1  ;;  %s12466_s30 = sshll.u32 %s24610_s8, 3 }
 0x3f6   : > { %16677 = vmatprep.mubr.msk.f32.mxu0 %vm264_vm0, %v13591_v58  ;;  %16698 = vmatpush3.msra.mxu1 %v22164_v61  ;;  %v197_v58 = vld [vmem:[%s23954_s2] sm:$0xff]  ;;  %v198_v61 = vld [vmem:[%s23954_s2 + $0x8] sm:$0xff]  ;;  %v22539_v36 = vpop.permute.xlu0 %10856  ;;  %24274 = vst [vmem:[#allocation199_spill] sm:$0xff] %v22553_v53  ;;  %s23489_s10 = sadd.s32 %s12467_s9, %s12466_s30 }
 0x3f7   : > { %16678 = vmatmul.mubr.msk.f32.vlgmr.msra.gmra.mxu0 %vm264_vm0, %v13592_v39  ;;  %16699 = vmatprep.subr.mxu1 %v22170_v34  ;;  %v17234_v39 = vmov 0   ;;  %s12468_s22 = sshll.u32 %s23489_s10, 3 }
 0x3f8   : > { %16658 = vmatprep.mubr.msk.f32.mxu1 %vm264_vm0, %v13571_v56  ;;  %16700 = vmatpush3.msra.mxu1 %v22170_v34  ;;  %v13594_v34 = vld [vmem:[%s23953_s1 + $0x198] sm:$0xff]  ;;  %v22551_v12 = vpop.permute.xlu1 %10854  ;;  %s23555_s12 = scalar_lea.vmem %s23955_s3, %s12468_s22 }
 0x3f9   : > { %17042 = vset.pattern.permute.xlu1 %v17234_v39  ;;  %17041 = vset.pattern.permute.xlu0 %v17234_v39  ;;  %v22532_v56 = vpop.f32.mrf.mxu0  ;;  %v13607_v39 = vld [vmem:[%s23953_s1 + $0x1c0] sm:$0xff] }
 0x3fa   : > { %16659 = vmatmul.mubr.msk.f32.gmra.mxu1 %vm264_vm0, %v13572_v5  ;;  %16701 = vmatprep.subr.mxu1 %v22209_v60  ;;  %v13608_v5 = vld [vmem:[%s23953_s1 + $0x1c8] sm:$0xff] }
 0x3fb   : > { %1705 = vperm.xlu0 %17041, %v197_v58   ;;  %1710 = vperm.xlu1 %17042, %v198_v61   ;;  %v22544_v14 = vpop.f32.mrf.mxu0  ;;  %v200_v58 = vld [vmem:[%s23954_s2 + $0x18] sm:$0xff]  ;;  %v13596_v61 = vld [vmem:[%s23953_s1 + $0x1a8] sm:$0xff] }
 0x3fc   : > { %16680 = vmatprep.mubr.msk.f32.mxu0 %vm264_vm0, %v13593_v38  ;;  %16702 = vmatpush3.msra.mxu1 %v22209_v60  ;;  %v199_v38 = vld [vmem:[%s23954_s2 + $0x10] sm:$0xff]  ;;  %v13595_v60 = vld [vmem:[%s23953_s1 + $0x1a0] sm:$0xff] }
 0x3fd   : > { %16681 = vmatmul.mubr.msk.f32.gmra.mxu0 %vm264_vm0, %v13594_v34  ;;  %16703 = vmatprep.subr.mxu1 %v22215_v4 }
 0x3fe   : > { %16704 = vmatpush3.msra.mxu1 %v22215_v4  ;;  %16705 = vmatprep.mubr.msk.f32.mxu1 %vm264_vm0, %v13607_v39  ;;  %v13609_v4 = vld [vmem:[%s23953_s1 + $0x1d0] sm:$0xff]  ;;  %v22578_v39 = vpop.permute.xlu0 %11158 }
 0x3ff   : > { %16706 = vmatmul.mubr.msk.f32.vlgmr.msra.gmra.mxu1 %vm264_vm0, %v13608_v5  ;;  %16717 = vmatprep.subr.mxu0 %v22254_v9  ;;  %v22573_v34 = vpop.f32.mrf.mxu0  ;;  %v13610_v5 = vld [vmem:[%s23953_s1 + $0x1d8] sm:$0xff] }
 0x400   : > { %24275 = vst [vmem:[#allocation200_spill] sm:$0xff] %v22573_v34  ;;  %1720 = vperm.xlu0 %17041, %v200_v58   ;;  %1715 = vperm.xlu1 %17042, %v199_v38   ;;  %v22580_v53 = vpop.f32.mrf.mxu1  ;;  %v202_v58 = vld [vmem:[%s23954_s2 + $0x28] sm:$0xff]  ;;  %v201_v38 = vld [vmem:[%s23954_s2 + $0x20] sm:$0xff] }
 0x401   : > { %24276 = vst [vmem:[#allocation201_spill] sm:$0xff] %v22580_v53  ;;  %16683 = vmatprep.mubr.msk.f32.mxu0 %vm264_vm0, %v13595_v60  ;;  %16718 = vmatpush3.msra.mxu0 %v22254_v9  ;;  %v22595_v53 = vpop.permute.xlu1 %11156  ;;  %v22597_v60 = vpop.f32.mrf.mxu0  ;;  %v13597_v9 = vld [vmem:[%s23953_s1 + $0x1b0] sm:$0xff] }
 0x402   : > { %16684 = vmatmul.mubr.msk.f32.gmra.mxu0 %vm264_vm0, %v13596_v61  ;;  %16719 = vmatprep.subr.mxu0 %v22265_v19  ;;  %24277 = vst [vmem:[#allocation202_spill] sm:$0xff] %v22597_v60  ;;  %v22604_v61 = vpop.f32.mrf.mxu1 }
 0x403   : > { %16720 = vmatpush3.msra.mxu0 %v22265_v19  ;;  %16708 = vmatprep.mubr.msk.f32.mxu1 %vm264_vm0, %v13609_v4  ;;  %24278 = vst [vmem:[#allocation203_spill] sm:$0xff] %v22604_v61  ;;  %v13611_v19 = vld [vmem:[%s23953_s1 + $0x1e0] sm:$0xff]  ;;  %v13612_v4 = vld [vmem:[%s23953_s1 + $0x1e8] sm:$0xff] }
 0x404   : > { %16709 = vmatmul.mubr.msk.f32.gmra.mxu1 %vm264_vm0, %v13610_v5  ;;  %16745 = vmatprep.subr.mxu1 %v22300_v62  ;;  %v22619_v5 = vpop.permute.xlu0 %11154 }
 0x405   : > { %1730 = vperm.xlu0 %17041, %v202_v58   ;;  %1725 = vperm.xlu1 %17042, %v201_v38   ;;  %v204_v58 = vld [vmem:[%s23954_s2 + $0x38] sm:$0xff]  ;;  %v203_v38 = vld [vmem:[%s23954_s2 + $0x30] sm:$0xff]  ;;  %v22635_v50 = vpop.permute.xlu1 %11152 }
 0x406   : > { %16686 = vmatprep.mubr.msk.f32.mxu0 %vm264_vm0, %v13597_v9  ;;  %16721 = vmatprep.subr.mxu0 %v22309_v49  ;;  %v22621_v61 = vpop.f32.mrf.mxu0 }
 0x407   : > { %24279 = vst [vmem:[#allocation204_spill] sm:$0xff] %v22621_v61  ;;  %16746 = vmatpush3.msra.mxu1 %v22300_v62  ;;  %16687 = vmatmul.mubr.msk.f32.gmra.mxu0 %vm264_vm0, %v13598_v55  ;;  %v22631_v9 = vpop.f32.mrf.mxu1  ;;  %v13613_v55 = vld [vmem:[%s23953_s1 + $0x1f0] sm:$0xff]  ;;  %v24297_v61 = vld [vmem:[#allocation13_spill] sm:$0xff] }
 0x408   : > { %24280 = vst [vmem:[#allocation205_spill] sm:$0xff] %v22631_v9  ;;  %16722 = vmatpush3.msra.mxu0 %v22309_v49  ;;  %16711 = vmatprep.mubr.msk.f32.mxu1 %vm264_vm0, %v13611_v19  ;;  %v13614_v49 = vld [vmem:[%s23953_s1 + $0x1f8] sm:$0xff]  ;;  %v22647_v9 = vpop.f32.mrf.mxu0  ;;  %v22653_v19 = vpop.permute.xlu0 %11150 }
 0x409   : > { %16712 = vmatmul.mubr.msk.f32.gmra.mxu1 %vm264_vm0, %v13612_v4  ;;  %16747 = vmatprep.subr.mxu1 %v22344_v37  ;;  %v22642_v62 = vpop.f32.mrf.mxu1  ;;  %24282 = vst [vmem:[#allocation207_spill] sm:$0xff] %v22647_v9  ;;  %v24296_v9 = vld [vmem:[#allocation4_spill] sm:$0xff] }
 0x40a   : > { %24281 = vst [vmem:[#allocation206_spill] sm:$0xff] %v22642_v62  ;;  %1740 = vperm.xlu0 %17041, %v204_v58   ;;  %1735 = vperm.xlu1 %17042, %v203_v38   ;;  %v22661_v58 = vpop.permute.xlu1 %11148  ;;  %v505_v0 = vadd.f32 %v24297_v61, %v24296_v9 }
 0x40b   : > { %16723 = vmatprep.subr.mxu0 %v22359_v45  ;;  %16748 = vmatpush3.msra.mxu1 %v22344_v37 }
 0x40c   : > { %16724 = vmatpush3.msra.mxu0 %v22359_v45  ;;  %16714 = vmatprep.mubr.msk.f32.mxu1 %vm264_vm0, %v13613_v55  ;;  %v17157_v55 = vld [vmem:[%s17294_s24 + $0x1f8] sm:$0xff] }
 0x40d   : > { %16715 = vmatmul.mubr.msk.f32.gmra.mxu1 %vm264_vm0, %v13614_v49  ;;  %16749 = vmatprep.subr.mxu1 %v22380_v1  ;;  %v22657_v4 = vpop.f32.mrf.mxu1  ;;  %v22663_v38 = vpop.f32.mrf.mxu0 }
 0x40e   : > { %24283 = vst [vmem:[#allocation208_spill] sm:$0xff] %v22657_v4  ;;  %16725 = vmatprep.subr.mxu0 %v22395_v7  ;;  %16750 = vmatpush3.msra.mxu1 %v22380_v1  ;;  %24284 = vst [vmem:[#allocation209_spill] sm:$0xff] %v22663_v38  ;;  %v13623_v1 = vld [vmem:[%s23953_s1 + $0x200] sm:$0xff]  ;;  %v17159_v38 = vld [vmem:[%s17294_s24 + $0x1e8] sm:$0xff] }
 0x40f   : > { %16726 = vmatpush3.msra.mxu0 %v22395_v7  ;;  %16751 = vmatprep.subr.mxu1 %v22419_v32  ;;  %v22669_v37 = vpop.f32.mrf.mxu1  ;;  %v22678_v7 = vpop.permute.xlu0 %11146 }
 0x410   : > { %16727 = vmatprep.subr.mxu0 %v22433_v13  ;;  %16752 = vmatpush3.msra.mxu1 %v22419_v32  ;;  %24285 = vst [vmem:[#allocation210_spill] sm:$0xff] %v22669_v37  ;;  %v22680_v45 = vpop.f32.mrf.mxu0  ;;  %v13624_v32 = vld [vmem:[%s23953_s1 + $0x208] sm:$0xff] }
 0x411   : > { %16728 = vmatpush3.msra.mxu0 %v22433_v13  ;;  %16753 = vmatprep.subr.mxu1 %v22459_v21  ;;  %24286 = vst [vmem:[#allocation211_spill] sm:$0xff] %v22680_v45  ;;  %v24293_v45 = vld [vmem:[#allocation3_spill] sm:$0xff] }
 0x412   : > { %16729 = vmatprep.subr.mxu0 %v22476_v40  ;;  %16754 = vmatpush3.msra.mxu1 %v22459_v21  ;;  %v22691_v21 = vpop.permute.xlu1 %11144  ;;  %v22700_v49 = vpop.f32.mrf.mxu0  ;;  %v24294_v37 = vld [vmem:[#allocation11_spill] sm:$0xff] }
 0x413   : > { %16730 = vmatpush3.msra.mxu0 %v22476_v40  ;;  %16755 = vmatprep.subr.mxu1 %v22499_v6  ;;  %v22687_v13 = vpop.f32.mrf.mxu1  ;;  %v13625_v40 = vld [vmem:[%s23953_s1 + $0x210] sm:$0xff]  ;;  %24288 = vst [vmem:[#allocation213_spill] sm:$0xff] %v22700_v49  ;;  %v24291_v49 = vld [vmem:[#allocation2_spill] sm:$0xff]  ;;  %v495_v4 = vadd.f32 %v24294_v37, %v24293_v45 }
 0x414   : > { %24287 = vst [vmem:[#allocation212_spill] sm:$0xff] %v22687_v13  ;;  %16731 = vmatprep.subr.mxu0 %v22512_v47  ;;  %16733 = vmatprep.mubr.msk.f32.mxu0 %vm264_vm0, %v13623_v1  ;;  %v13626_v1 = vld [vmem:[%s23953_s1 + $0x218] sm:$0xff]  ;;  %v22710_v13 = vpop.permute.xlu0 %11488  ;;  %v17160_v37 = vld [vmem:[%s17294_s24 + $0x1e0] sm:$0xff]  ;;  %v24302_v45 = vld [vmem:[#allocation8_spill] sm:$0xff] }
 0x415   : > { %16732 = vmatpush3.msra.mxu0 %v22512_v47  ;;  %16756 = vmatpush3.msra.mxu1 %v22499_v6  ;;  %v22706_v47 = vpop.f32.mrf.mxu1  ;;  %v17158_v6 = vld [vmem:[%s17294_s24 + $0x1f0] sm:$0xff] }
 0x416   : > { %16734 = vmatmul.mubr.msk.f32.vlgmr.msra.gmra.mxu0 %vm264_vm0, %v13624_v32  ;;  %16773 = vmatprep.subr.mxu0 %v17157_v55  ;;  %24289 = vst [vmem:[#allocation214_spill] sm:$0xff] %v22706_v47  ;;  %v13655_v32 = vld [vmem:[%s23953_s1 + $0x40] sm:$0xff]  ;;  %v22721_v47 = vpop.permute.xlu1 %11486 }
 0x417   : > { %16774 = vmatpush3.msra.mxu0 %v17157_v55  ;;  %16757 = vmatprep.subr.mxu1 %v22539_v36  ;;  %v13656_v55 = vld [vmem:[%s23953_s1 + $0x48] sm:$0xff] }
 0x418   : > { %16775 = vmatprep.subr.mxu0 %v17158_v6  ;;  %16736 = vmatprep.mubr.msk.f32.mxu0 %vm264_vm0, %v13625_v40  ;;  %v22723_v40 = vpop.f32.mrf.mxu0  ;;  %v22748_v61 = vpop.permute.xlu0 %11484 }
 0x419   : > { %16758 = vmatpush3.msra.mxu1 %v22539_v36  ;;  %16776 = vmatpush3.msra.mxu0 %v17158_v6  ;;  %24290 = vst [vmem:[#allocation215_spill] sm:$0xff] %v22723_v40  ;;  %v24292_v36 = vld [vmem:[#allocation9_spill] sm:$0xff] }
 0x41a   : > { %16737 = vmatmul.mubr.msk.f32.gmra.mxu0 %vm264_vm0, %v13626_v1  ;;  %16759 = vmatprep.subr.mxu1 %v22551_v12  ;;  %v485_v6 = vadd.f32 %v24292_v36, %v24291_v49  ;;  %v13627_v1 = vld [vmem:[%s23953_s1 + $0x220] sm:$0xff]  ;;  %v22734_v62 = vpop.f32.mrf.mxu1  ;;  %v24298_v40 = vld [vmem:[#allocation5_spill] sm:$0xff]  ;;  %v22750_v9 = vpop.f32.mrf.mxu0  ;;  %v687_v49 = vadd.f32 %v24302_v45, %v495_v4  ;;  %v17162_v45 = vld [vmem:[%s17294_s24 + $0x1d0] sm:$0xff] }
 0x41b   : > { %16777 = vmatprep.subr.mxu0 %v17159_v38  ;;  %16760 = vmatpush3.msra.mxu1 %v22551_v12  ;;  %24295 = vst [vmem:[#allocation2_spill] sm:$0xff] %v22734_v62  ;;  %v515_v60 = vadd.f32 %v24299_v59, %v24298_v40  ;;  %v13628_v12 = vld [vmem:[%s23953_s1 + $0x228] sm:$0xff]  ;;  %24300 = vst [vmem:[#allocation9_spill] sm:$0xff] %v22750_v9  ;;  %v24301_v59 = vld [vmem:[#allocation17_spill] sm:$0xff] }
 0x41c   : > { %16778 = vmatpush3.msra.mxu0 %v17159_v38  ;;  %16761 = vmatprep.mubr.msk.f32.mxu1 %vm264_vm0, %v13655_v32  ;;  %v685_v38 = vadd.f32 %v24301_v59, %v485_v6  ;;  %v13657_v32 = vld [vmem:[%s23953_s1 + $0x50] sm:$0xff]  ;;  %v17161_v9 = vld [vmem:[%s17294_s24 + $0x1d8] sm:$0xff] }
 0x41d   : > { %16762 = vmatmul.mubr.msk.f32.vlgmr.msra.gmra.mxu1 %vm264_vm0, %v13656_v55  ;;  %16779 = vmatprep.subr.mxu0 %v17160_v37  ;;  %v22758_v55 = vpop.f32.mrf.mxu1  ;;  %v24304_v40 = vld [vmem:[#allocation16_spill] sm:$0xff]  ;;  %v13658_v4 = vld [vmem:[%s23953_s1 + $0x58] sm:$0xff] }
 0x41e   : > { %16801 = vmatprep.subr.mxu1 %v22578_v39  ;;  %16739 = vmatprep.mubr.msk.f32.mxu0 %vm264_vm0, %v13627_v1  ;;  %24303 = vst [vmem:[#allocation3_spill] sm:$0xff] %v22758_v55  ;;  %v689_v36 = vadd.f32 %v24304_v40, %v505_v0  ;;  %v24305_v1 = vld [vmem:[#allocation22_spill] sm:$0xff]  ;;  %v13629_v0 = vld [vmem:[%s23953_s1 + $0x230] sm:$0xff] }
 0x41f   : > { %16780 = vmatpush3.msra.mxu0 %v17160_v37  ;;  %16802 = vmatpush3.msra.mxu1 %v22578_v39  ;;  %v691_v62 = vadd.f32 %v24305_v1, %v515_v60  ;;  %v22767_v39 = vpop.permute.xlu1 %11482  ;;  %v22775_v60 = vpop.f32.mrf.mxu0  ;;  %v24307_v6 = vld [vmem:[#allocation12_spill] sm:$0xff] }
 0x420   : > { %16740 = vmatmul.mubr.msk.f32.gmra.mxu0 %vm264_vm0, %v13628_v12  ;;  %16781 = vmatprep.subr.mxu0 %v17161_v9  ;;  %24306 = vst [vmem:[#allocation11_spill] sm:$0xff] %v22775_v60  ;;  %v842_v37 = vadd.f32 %v24307_v6, %v685_v38  ;;  %v24308_v12 = vld [vmem:[#allocation18_spill] sm:$0xff]  ;;  %v22790_v38 = vpop.permute.xlu0 %11480  ;;  %v24313_v6 = vld [vmem:[#allocation31_spill] sm:$0xff] }
 0x421   : > { %16803 = vmatprep.subr.mxu1 %v22595_v53  ;;  %16782 = vmatpush3.msra.mxu0 %v17161_v9  ;;  %v844_v59 = vadd.f32 %v24308_v12, %v687_v49  ;;  %v13630_v9 = vld [vmem:[%s23953_s1 + $0x238] sm:$0xff]  ;;  %v22784_v40 = vpop.f32.mrf.mxu1  ;;  %v13659_v49 = vld [vmem:[%s23953_s1 + $0x60] sm:$0xff] }
 0x422   : > { %16764 = vmatprep.mubr.msk.f32.mxu1 %vm264_vm0, %v13657_v32  ;;  %16804 = vmatpush3.msra.mxu1 %v22595_v53  ;;  %24309 = vst [vmem:[#allocation4_spill] sm:$0xff] %v22784_v40  ;;  %v24310_v32 = vld [vmem:[#allocation23_spill] sm:$0xff]  ;;  %v24311_v53 = vld [vmem:[#allocation26_spill] sm:$0xff]  ;;  %v1020_v12 = vadd.f32 %v24313_v6, %v842_v37  ;;  %v24317_v40 = vld [vmem:[#allocation36_spill] sm:$0xff] }
 0x423   : > { %16765 = vmatmul.mubr.msk.f32.gmra.mxu1 %vm264_vm0, %v13658_v4  ;;  %16783 = vmatprep.subr.mxu0 %v17162_v45  ;;  %v846_v1 = vadd.f32 %v24310_v32, %v689_v36  ;;  %v848_v55 = vadd.f32 %v24311_v53, %v691_v62  ;;  %v17163_v4 = vld [vmem:[%s17294_s24 + $0x1c8] sm:$0xff]  ;;  %v22801_v36 = vpop.permute.xlu1 %11478  ;;  %v22808_v32 = vpop.f32.mrf.mxu1  ;;  %v17164_v37 = vld [vmem:[%s17294_s24 + $0x1c0] sm:$0xff] }
 0x424   : > { %16805 = vmatprep.subr.mxu1 %v22619_v5  ;;  %16742 = vmatprep.mubr.msk.f32.mxu0 %vm264_vm0, %v13629_v0  ;;  %v13660_v62 = vld [vmem:[%s23953_s1 + $0x68] sm:$0xff]  ;;  %v22803_v0 = vpop.f32.mrf.mxu0  ;;  %24315 = vst [vmem:[#allocation5_spill] sm:$0xff] %v22808_v32 }
 0x425   : > { %16784 = vmatpush3.msra.mxu0 %v17162_v45  ;;  %16806 = vmatpush3.msra.mxu1 %v22619_v5  ;;  %24312 = vst [vmem:[#allocation13_spill] sm:$0xff] %v22803_v0  ;;  %v24314_v5 = vld [vmem:[#allocation33_spill] sm:$0xff]  ;;  %v1026_v60 = vadd.f32 %v24317_v40, %v848_v55  ;;  %v10830_v0 = vld [vmem:[%s23953_s1] sm:$0xff]  ;;  %v13661_v55 = vld [vmem:[%s23953_s1 + $0x70] sm:$0xff] }
 0x426   : > { %16743 = vmatmul.mubr.msk.f32.gmra.mxu0 %vm264_vm0, %v13630_v9  ;;  %16785 = vmatprep.subr.mxu0 %v17163_v4  ;;  %v1022_v45 = vadd.f32 %v24314_v5, %v844_v59  ;;  %v24316_v9 = vld [vmem:[#allocation34_spill] sm:$0xff]  ;;  %v10831_v59 = vld [vmem:[%s23953_s1 + $0x8] sm:$0xff]  ;;  %v22828_v40 = vpop.f32.mrf.mxu0  ;;  %v24322_v5 = vld [vmem:[#allocation37_spill] sm:$0xff] }
 0x427   : > { %16807 = vmatprep.subr.mxu1 %v22635_v50  ;;  %16786 = vmatpush3.msra.mxu0 %v17163_v4  ;;  %v1024_v53 = vadd.f32 %v24316_v9, %v846_v1  ;;  %24318 = vst [vmem:[#allocation7_spill] sm:$0xff] %v22828_v40  ;;  %v24319_v1 = vld [vmem:[#allocation32_spill] sm:$0xff]  ;;  %v24320_v4 = vld [vmem:[#allocation35_spill] sm:$0xff]  ;;  %v22834_v6 = vpop.f32.mrf.mxu1 }
 0x428   : > { %16767 = vmatprep.mubr.msk.f32.mxu1 %vm264_vm0, %v13659_v49  ;;  %16808 = vmatpush3.msra.mxu1 %v22635_v50  ;;  %v22826_v50 = vpop.permute.xlu0 %11476  ;;  %v1190_v49 = vadd.f32 %v24319_v1, %v1020_v12  ;;  %24321 = vst [vmem:[#allocation17_spill] sm:$0xff] %v22834_v6  ;;  %v13662_v12 = vld [vmem:[%s23953_s1 + $0x78] sm:$0xff]  ;;  %v22843_v1 = vpop.permute.xlu1 %11474  ;;  %v24337_v6 = vld [vmem:[#allocation48_spill] sm:$0xff] }
 0x429   : > { %16768 = vmatmul.mubr.msk.f32.gmra.mxu1 %vm264_vm0, %v13660_v62  ;;  %16787 = vmatprep.subr.mxu0 %v17164_v37  ;;  %v1192_v62 = vadd.f32 %v24320_v4, %v1022_v45  ;;  %v1194_v9 = vadd.f32 %v24322_v5, %v1024_v53  ;;  %v24326_v53 = vld [vmem:[#allocation40_spill] sm:$0xff]  ;;  %v22861_v4 = vpop.f32.mrf.mxu1  ;;  %v24328_v5 = vld [vmem:[#allocation42_spill] sm:$0xff] }
 0x42a   : > { %16809 = vmatprep.subr.mxu1 %v22653_v19  ;;  %16788 = vmatpush3.msra.mxu0 %v17164_v37  ;;  %v24323_v37 = vld [vmem:[#allocation39_spill] sm:$0xff]  ;;  %24327 = vst [vmem:[#allocation16_spill] sm:$0xff] %v22861_v4 }
 0x42b   : > { %16789 = vmatprep.mubr.msk.f32.mxu0 %vm264_vm0, %v10830_v0  ;;  %16810 = vmatpush3.msra.mxu1 %v22653_v19  ;;  %v1196_v32 = vadd.f32 %v24323_v37, %v1026_v60  ;;  %v10832_v19 = vld [vmem:[%s23953_s1 + $0x10] sm:$0xff]  ;;  %v22852_v60 = vpop.f32.mrf.mxu0  ;;  %v24325_v0 = vld [vmem:[#allocation38_spill] sm:$0xff] }
 0x42c   : > { %16790 = vmatmul.mubr.msk.f32.vlgmr.msra.gmra.mxu0 %vm264_vm0, %v10831_v59  ;;  %16811 = vmatprep.subr.mxu1 %v22661_v58  ;;  %24324 = vst [vmem:[#allocation8_spill] sm:$0xff] %v22852_v60  ;;  %v1347_v45 = vadd.f32 %v24325_v0, %v1190_v49  ;;  %v1349_v59 = vadd.f32 %v24326_v53, %v1192_v62  ;;  %v24329_v37 = vld [vmem:[#allocation44_spill] sm:$0xff]  ;;  %v22867_v49 = vpop.permute.xlu0 %11657  ;;  %v13679_v62 = vld [vmem:[%s23953_s1 + $0x80] sm:$0xff]  ;;  %v24331_v0 = vld [vmem:[#allocation59_spill] sm:$0xff] }
 0x42d   : > { %16829 = vmatprep.subr.mxu0 %v22329_v46  ;;  %16770 = vmatprep.mubr.msk.f32.mxu1 %vm264_vm0, %v13661_v55  ;;  %v10833_v55 = vld [vmem:[%s23953_s1 + $0x18] sm:$0xff] }
 0x42e   : > { %16830 = vmatpush3.msra.mxu0 %v22329_v46  ;;  %16812 = vmatpush3.msra.mxu1 %v22661_v58  ;;  %v1351_v46 = vadd.f32 %v24328_v5, %v1194_v9  ;;  %v1353_v58 = vadd.f32 %v24329_v37, %v1196_v32  ;;  %v13680_v32 = vld [vmem:[%s23953_s1 + $0x88] sm:$0xff]  ;;  %v22881_v9 = vpop.permute.xlu1 %11655 }
 0x42f   : > { %16771 = vmatmul.mubr.msk.f32.gmra.mxu1 %vm264_vm0, %v13662_v12  ;;  %16813 = vmatprep.subr.mxu1 %v22678_v7  ;;  %v24330_v12 = vld [vmem:[#allocation51_spill] sm:$0xff] }
 0x430   : > { %16831 = vmatprep.subr.mxu0 %v22350_v25  ;;  %16792 = vmatprep.mubr.msk.f32.mxu0 %vm264_vm0, %v10832_v19  ;;  %v2044_v53 = vadd.f32 %v24331_v0, %v24330_v12  ;;  %v24334_v5 = vld [vmem:[#allocation43_spill] sm:$0xff]  ;;  %v22892_v12 = vpop.f32.mrf.mxu1  ;;  %v24336_v0 = vld [vmem:[#allocation45_spill] sm:$0xff]  ;;  %v1531_v60 = vadd.f32 %v24337_v6, %v1353_v58  ;;  %v24343_v58 = vld [vmem:[#allocation58_spill] sm:$0xff] }
 0x431   : > { %16814 = vmatpush3.msra.mxu1 %v22678_v7  ;;  %16832 = vmatpush3.msra.mxu0 %v22350_v25  ;;  %v22883_v7 = vpop.f32.mrf.mxu0  ;;  %v24333_v25 = vld [vmem:[#allocation41_spill] sm:$0xff]  ;;  %v1527_v37 = vadd.f32 %v24334_v5, %v1349_v59  ;;  %24335 = vst [vmem:[#allocation12_spill] sm:$0xff] %v22892_v12  ;;  %v1529_v4 = vadd.f32 %v24336_v0, %v1351_v46  ;;  %v10835_v46 = vld [vmem:[%s23953_s1 + $0x28] sm:$0xff]  ;;  %v24342_v0 = vld [vmem:[#allocation60_spill] sm:$0xff] }
 0x432   : > { %16793 = vmatmul.mubr.msk.f32.gmra.mxu0 %vm264_vm0, %v10833_v55  ;;  %16815 = vmatprep.subr.mxu1 %v22691_v21  ;;  %24332 = vst [vmem:[#allocation22_spill] sm:$0xff] %v22883_v7  ;;  %v1525_v19 = vadd.f32 %v24333_v25, %v1347_v45  ;;  %v10834_v55 = vld [vmem:[%s23953_s1 + $0x20] sm:$0xff]  ;;  %v24339_v59 = vld [vmem:[#allocation61_spill] sm:$0xff]  ;;  %v2243_v6 = vadd.f32 %v24342_v0, %v2044_v53  ;;  %v22924_v53 = vpop.f32.mrf.mxu1 }
 0x433   : > { %16833 = vmatprep.subr.mxu0 %v22383_v57  ;;  %16816 = vmatpush3.msra.mxu1 %v22691_v21  ;;  %v24338_v45 = vld [vmem:[#allocation54_spill] sm:$0xff]  ;;  %v24340_v5 = vld [vmem:[#allocation57_spill] sm:$0xff]  ;;  %24350 = vst [vmem:[#allocation31_spill] sm:$0xff] %v22924_v53  ;;  %v24370_v53 = vld [vmem:[#allocation119_spill] sm:$0xff] }
 0x434   : > { %16834 = vmatpush3.msra.mxu0 %v22383_v57  ;;  %16817 = vmatprep.mubr.msk.f32.mxu1 %vm264_vm0, %v13679_v62  ;;  %v2054_v25 = vadd.f32 %v24339_v59, %v24338_v45  ;;  %v24341_v7 = vld [vmem:[#allocation62_spill] sm:$0xff]  ;;  %v24344_v57 = vld [vmem:[#allocation20_spill] sm:$0xff]  ;;  %v22912_v62 = vpop.permute.xlu0 %11653  ;;  %v24351_v0 = vld [vmem:[#allocation53_spill] sm:$0xff] }
 0x435   : > { %v2064_v21 = vadd.f32 %v24341_v7, %v24340_v5  ;;  %16818 = vmatmul.mubr.msk.f32.vlgmr.msra.gmra.mxu1 %vm264_vm0, %v13680_v32  ;;  %16835 = vmatprep.subr.mxu0 %v22399_v24  ;;  %v2074_v12 = vadd.f32 %v24344_v57, %v24343_v58  ;;  %v24346_v32 = vld [vmem:[#allocation47_spill] sm:$0xff]  ;;  %v24348_v59 = vld [vmem:[#allocation50_spill] sm:$0xff]  ;;  %v22927_v58 = vadd.f32 %v24351_v0, %v1529_v4  ;;  %v24360_v0 = vld [vmem:[#allocation88_spill] sm:$0xff] }
 0x436   : > { %16857 = vmatprep.subr.mxu1 %v22710_v13  ;;  %16795 = vmatprep.mubr.msk.f32.mxu0 %vm264_vm0, %v10834_v55  ;;  %v22914_v7 = vpop.f32.mrf.mxu0  ;;  %v22917_v45 = vadd.f32 %v24346_v32, %v1525_v19  ;;  %v22920_v5 = vadd.f32 %v24348_v59, %v1527_v37  ;;  %v24353_v55 = vld [vmem:[#allocation56_spill] sm:$0xff]  ;;  %v22936_v19 = vpop.permute.xlu1 %11651  ;;  %v24358_v32 = vld [vmem:[#allocation6_spill] sm:$0xff]  ;;  %v24359_v4 = vld [vmem:[#allocation87_spill] sm:$0xff] }
 0x437   : > { %24345 = vst [vmem:[#allocation18_spill] sm:$0xff] %v22914_v7  ;;  %16836 = vmatpush3.msra.mxu0 %v22399_v24  ;;  %16858 = vmatpush3.msra.mxu1 %v22710_v13  ;;  %24352 = vst [vmem:[#allocation33_spill] sm:$0xff] %v22927_v58  ;;  %v22930_v57 = vadd.f32 %v24353_v55, %v1531_v60  ;;  %v24355_v7 = vld [vmem:[#allocation86_spill] sm:$0xff]  ;;  %v2247_v59 = vadd.f32 %v24358_v32, %v2064_v21  ;;  %v24361_v60 = vld [vmem:[#allocation15_spill] sm:$0xff] }
 0x438   : > { %24347 = vst [vmem:[#allocation23_spill] sm:$0xff] %v22917_v45  ;;  %24349 = vst [vmem:[#allocation26_spill] sm:$0xff] %v22920_v5  ;;  %v3553_v40 = vadd.f32 %v24355_v7, %v20277_v42  ;;  %16796 = vmatmul.mubr.msk.f32.gmra.mxu0 %vm264_vm0, %v10835_v46  ;;  %16837 = vmatprep.subr.mxu0 %v22425_v16  ;;  %v22938_v24 = vpop.f32.mrf.mxu0  ;;  %v24357_v13 = vld [vmem:[#allocation14_spill] sm:$0xff]  ;;  %v3563_v58 = vadd.f32 %v24360_v0, %v24359_v4  ;;  %v10836_v42 = vld [vmem:[%s23953_s1 + $0x30] sm:$0xff] }
 0x439   : > { %24354 = vst [vmem:[#allocation34_spill] sm:$0xff] %v22930_v57  ;;  %24356 = vst [vmem:[#allocation36_spill] sm:$0xff] %v22938_v24  ;;  %v2245_v37 = vadd.f32 %v24357_v13, %v2054_v25  ;;  %16859 = vmatprep.subr.mxu1 %v22721_v47  ;;  %16838 = vmatpush3.msra.mxu0 %v22425_v16  ;;  %v2249_v46 = vadd.f32 %v24361_v60, %v2074_v12  ;;  %v24362_v7 = vld [vmem:[#allocation21_spill] sm:$0xff]  ;;  %v24364_v5 = vld [vmem:[#allocation90_spill] sm:$0xff] }
 0x43a   : > { %v2396_v55 = vadd.f32 %v24362_v7, %v2243_v6  ;;  %v24363_v57 = vld [vmem:[#allocation89_spill] sm:$0xff]  ;;  %16820 = vmatprep.mubr.msk.f32.mxu1 %vm264_vm0, %v22179_v8  ;;  %16860 = vmatpush3.msra.mxu1 %v22721_v47  ;;  %v22956_v21 = vpop.f32.mrf.mxu0  ;;  %v24366_v13 = vld [vmem:[#allocation91_spill] sm:$0xff]  ;;  %v24367_v16 = vld [vmem:[#allocation92_spill] sm:$0xff] }
 0x43b   : > { %v3573_v25 = vadd.f32 %v24364_v5, %v24363_v57  ;;  %24365 = vst [vmem:[#allocation32_spill] sm:$0xff] %v22956_v21  ;;  %v3583_v32 = vadd.f32 %v24367_v16, %v24366_v13  ;;  %v24368_v4 = vld [vmem:[#allocation116_spill] sm:$0xff]  ;;  %v24369_v0 = vld [vmem:[#allocation125_spill] sm:$0xff]  ;;  %v24371_v12 = vld [vmem:[#allocation127_spill] sm:$0xff]  ;;  %16821 = vmatmul.mubr.msk.f32.gmra.mxu1 %vm264_vm0, %v22197_v22  ;;  %16839 = vmatprep.subr.mxu0 %v22443_v35  ;;  %v22970_v47 = vpop.f32.mrf.mxu1  ;;  %v22979_v22 = vpop.permute.xlu0 %11649 }
 0x43c   : > { %v5062_v45 = vadd.f32 %v24369_v0, %v24368_v4  ;;  %v5072_v60 = vadd.f32 %v24371_v12, %v24370_v53  ;;  %v10837_v8 = vld [vmem:[%s23953_s1 + $0x38] sm:$0xff]  ;;  %24372 = vst [vmem:[#allocation35_spill] sm:$0xff] %v22970_v47  ;;  %v24374_v57 = vld [vmem:[#allocation122_spill] sm:$0xff]  ;;  %v24376_v16 = vld [vmem:[#allocation124_spill] sm:$0xff]  ;;  %16861 = vmatprep.subr.mxu1 %v22748_v61  ;;  %16798 = vmatprep.mubr.msk.f32.mxu0 %vm264_vm0, %v10836_v42  ;;  %v22981_v53 = vpop.f32.mrf.mxu0 }
 0x43d   : > { %v24373_v6 = vld [vmem:[#allocation93_spill] sm:$0xff]  ;;  %v24377_v4 = vld [vmem:[#allocation131_spill] sm:$0xff]  ;;  %v24378_v12 = vld [vmem:[#allocation24_spill] sm:$0xff]  ;;  %16840 = vmatpush3.msra.mxu0 %v22443_v35  ;;  %16862 = vmatpush3.msra.mxu1 %v22748_v61 }
 0x43e   : > { %v3752_v5 = vadd.f32 %v24373_v6, %v3553_v40  ;;  %v24375_v7 = vld [vmem:[#allocation129_spill] sm:$0xff]  ;;  %v5092_v0 = vadd.f32 %v24377_v4, %v24376_v16  ;;  %v2398_v21 = vadd.f32 %v24378_v12, %v2245_v37  ;;  %v3754_v40 = vadd.f32 %v24380_v51, %v3563_v58  ;;  %v22988_v6 = vpop.f32.mrf.mxu1  ;;  %v24382_v16 = vld [vmem:[#allocation28_spill] sm:$0xff]  ;;  %16799 = vmatmul.mubr.msk.f32.gmra.mxu0 %vm264_vm0, %v10837_v8  ;;  %v22995_v37 = vpop.permute.xlu1 %11647  ;;  %v24385_v58 = vld [vmem:[#allocation126_spill] sm:$0xff] }
 0x43f   : > { %v5082_v13 = vadd.f32 %v24375_v7, %v24374_v57  ;;  %v24379_v24 = vld [vmem:[#allocation25_spill] sm:$0xff]  ;;  %v24381_v57 = vld [vmem:[#allocation19_spill] sm:$0xff]  ;;  %v2402_v42 = vadd.f32 %v24382_v16, %v2249_v46  ;;  %16841 = vmatprep.subr.mxu0 %v22470_v43  ;;  %v5261_v35 = vadd.f32 %v24385_v58, %v5062_v45  ;;  %16863 = vmatprep.subr.mxu1 %v22767_v39  ;;  %v24387_v46 = vld [vmem:[#allocation94_spill] sm:$0xff] }
 0x440   : > { %v2400_v47 = vadd.f32 %v24379_v24, %v2247_v59  ;;  %v2573_v7 = vadd.f32 %v24381_v57, %v2396_v55  ;;  %v24383_v4 = vld [vmem:[#allocation97_spill] sm:$0xff]  ;;  %v24384_v24 = vld [vmem:[#allocation99_spill] sm:$0xff]  ;;  %v24386_v59 = vld [vmem:[#allocation128_spill] sm:$0xff]  ;;  %16842 = vmatpush3.msra.mxu0 %v22470_v43  ;;  %v23002_v55 = vpop.f32.mrf.mxu0  ;;  %16823 = vmatprep.mubr.msk.f32.mxu1 %vm264_vm0, %v22207_v2 }
 0x441   : > { %v3756_v34 = vadd.f32 %v24383_v4, %v3573_v25  ;;  %v3758_v51 = vadd.f32 %v24384_v24, %v3583_v32  ;;  %v5263_v61 = vadd.f32 %v24386_v59, %v5072_v60  ;;  %v3905_v25 = vadd.f32 %v24387_v46, %v3752_v5  ;;  %v24388_v12 = vld [vmem:[#allocation130_spill] sm:$0xff]  ;;  %v24389_v57 = vld [vmem:[#allocation132_spill] sm:$0xff]  ;;  %16864 = vmatpush3.msra.mxu1 %v22767_v39  ;;  %v23013_v32 = vpop.f32.mrf.mxu1  ;;  %v24391_v4 = vld [vmem:[#allocation27_spill] sm:$0xff] }
 0x442   : > { %v5265_v8 = vadd.f32 %v24388_v12, %v5082_v13  ;;  %v5267_v16 = vadd.f32 %v24389_v57, %v5092_v0  ;;  %v13703_v45 = vld [vmem:[%s23953_s1 + $0xc0] sm:$0xff]  ;;  %v2577_v24 = vadd.f32 %v24391_v4, %v2400_v47  ;;  %v24392_v5 = vld [vmem:[#allocation96_spill] sm:$0xff]  ;;  %16824 = vmatmul.mubr.msk.f32.gmra.mxu1 %vm264_vm0, %v22225_v23  ;;  %16843 = vmatprep.subr.mxu0 %v22488_v18  ;;  %v13704_v2 = vld [vmem:[%s23953_s1 + $0xc8] sm:$0xff] }
 0x443   : > { %v24390_v43 = vld [vmem:[#allocation10_spill] sm:$0xff]  ;;  %v3907_v58 = vadd.f32 %v24392_v5, %v3754_v40  ;;  %v24393_v39 = vld [vmem:[#allocation29_spill] sm:$0xff]  ;;  %v24394_v0 = vld [vmem:[#allocation63_spill] sm:$0xff]  ;;  %16865 = vmatprep.subr.mxu1 %v22790_v38  ;;  %16844 = vmatpush3.msra.mxu0 %v22488_v18  ;;  %v23031_v47 = vpop.f32.mrf.mxu1 }
 0x444   : > { %v2575_v60 = vadd.f32 %v24390_v43, %v2398_v21  ;;  %v2579_v13 = vadd.f32 %v24393_v39, %v2402_v42  ;;  %v2742_v59 = vadd.f32 %v24394_v0, %v2573_v7  ;;  %v24395_v46 = vld [vmem:[#allocation98_spill] sm:$0xff]  ;;  %v23029_v21 = vpop.permute.xlu0 %11645  ;;  %v24396_v23 = vld [vmem:[#allocation100_spill] sm:$0xff]  ;;  %v24397_v57 = vld [vmem:[#allocation133_spill] sm:$0xff]  ;;  %16845 = vmatprep.mubr.msk.f32.mxu0 %vm264_vm0, %v13703_v45  ;;  %16866 = vmatpush3.msra.mxu1 %v22790_v38  ;;  %v23038_v7 = vpop.f32.mrf.mxu0 }
 0x445   : > { %v3909_v12 = vadd.f32 %v24395_v46, %v3756_v34  ;;  %v3911_v40 = vadd.f32 %v24396_v23, %v3758_v51  ;;  %v5414_v43 = vadd.f32 %v24397_v57, %v5261_v35  ;;  %v24398_v4 = vld [vmem:[#allocation135_spill] sm:$0xff]  ;;  %v24399_v34 = vld [vmem:[#allocation101_spill] sm:$0xff]  ;;  %16846 = vmatmul.mubr.msk.f32.vlgmr.msra.gmra.mxu0 %vm264_vm0, %v13704_v2  ;;  %16867 = vmatprep.subr.mxu1 %v22801_v36  ;;  %v13705_v51 = vld [vmem:[%s23953_s1 + $0xd0] sm:$0xff]  ;;  %v23048_v35 = vpop.permute.xlu1 %11643 }
 0x446   : > { %v5416_v5 = vadd.f32 %v24398_v4, %v5263_v61  ;;  %v4082_v42 = vadd.f32 %v24399_v34, %v3905_v25  ;;  %v24400_v39 = vld [vmem:[#allocation137_spill] sm:$0xff]  ;;  %v24401_v0 = vld [vmem:[#allocation139_spill] sm:$0xff]  ;;  %v24402_v61 = vld [vmem:[#allocation68_spill] sm:$0xff]  ;;  %16826 = vmatprep.mubr.msk.f32.mxu1 %vm264_vm0, %v22248_v48  ;;  %16868 = vmatpush3.msra.mxu1 %v22801_v36 }
 0x447   : > { %v5418_v18 = vadd.f32 %v24400_v39, %v5265_v8  ;;  %v5420_v46 = vadd.f32 %v24401_v0, %v5267_v16  ;;  %v2744_v38 = vadd.f32 %v24402_v61, %v2575_v60  ;;  %v24403_v45 = vld [vmem:[#allocation70_spill] sm:$0xff]  ;;  %v24404_v57 = vld [vmem:[#allocation103_spill] sm:$0xff]  ;;  %v13706_v8 = vld [vmem:[%s23953_s1 + $0xd8] sm:$0xff]  ;;  %v23059_v16 = vpop.f32.mrf.mxu1  ;;  %16827 = vmatmul.mubr.msk.f32.gmra.mxu1 %vm264_vm0, %v22263_v33  ;;  %16869 = vmatprep.subr.mxu1 %v22826_v50 }
 0x448   : > { %v2746_v23 = vadd.f32 %v24403_v45, %v2577_v24  ;;  %v4084_v25 = vadd.f32 %v24404_v57, %v3907_v58  ;;  %v24405_v2 = vld [vmem:[#allocation66_spill] sm:$0xff]  ;;  %v24406_v34 = vld [vmem:[#allocation72_spill] sm:$0xff]  ;;  %v24407_v60 = vld [vmem:[#allocation105_spill] sm:$0xff]  ;;  %16848 = vmatprep.mubr.msk.f32.mxu0 %vm264_vm0, %v13705_v51  ;;  %16870 = vmatpush3.msra.mxu1 %v22826_v50 }
 0x449   : > { %v2898_v4 = vadd.f32 %v24405_v2, %v2742_v59  ;;  %v2748_v39 = vadd.f32 %v24406_v34, %v2579_v13  ;;  %v4086_v0 = vadd.f32 %v24407_v60, %v3909_v12  ;;  %v24408_v48 = vld [vmem:[#allocation107_spill] sm:$0xff]  ;;  %v24409_v36 = vld [vmem:[#allocation134_spill] sm:$0xff]  ;;  %v24410_v61 = vld [vmem:[#allocation136_spill] sm:$0xff]  ;;  %v23072_v59 = vpop.f32.mrf.mxu0  ;;  %16849 = vmatmul.mubr.msk.f32.gmra.mxu0 %vm264_vm0, %v13706_v8  ;;  %16871 = vmatprep.subr.mxu1 %v22843_v1 }
 0x44a   : > { %v4088_v24 = vadd.f32 %v24408_v48, %v3911_v40  ;;  %v5591_v58 = vadd.f32 %v24409_v36, %v5414_v43  ;;  %v5593_v45 = vadd.f32 %v24410_v61, %v5416_v5  ;;  %v24411_v13 = vld [vmem:[#allocation102_spill] sm:$0xff]  ;;  %v24413_v34 = vld [vmem:[#allocation140_spill] sm:$0xff]  ;;  %v23082_v43 = vpop.permute.xlu0 %11990  ;;  %v24414_v5 = vld [vmem:[#allocation69_spill] sm:$0xff]  ;;  %16872 = vmatpush3.msra.mxu1 %v22843_v1  ;;  %16873 = vmatprep.mubr.msk.f32.mxu1 %vm264_vm0, %v22298_v28  ;;  %v23101_v1 = vpop.permute.xlu1 %11988 }
 0x44b   : > { %v4251_v57 = vadd.f32 %v24411_v13, %v4082_v42  ;;  %v24412_v12 = vld [vmem:[#allocation138_spill] sm:$0xff]  ;;  %v5597_v33 = vadd.f32 %v24413_v34, %v5420_v46  ;;  %v2900_v50 = vadd.f32 %v24414_v5, %v2744_v38  ;;  %v24415_v51 = vld [vmem:[#allocation71_spill] sm:$0xff]  ;;  %v24416_v48 = vld [vmem:[#allocation104_spill] sm:$0xff]  ;;  %v23093_v46 = vpop.f32.mrf.mxu1  ;;  %16874 = vmatmul.mubr.msk.f32.vlgmr.msra.gmra.mxu1 %vm264_vm0, %v22307_v41  ;;  %16885 = vmatprep.subr.mxu0 %v22867_v49 }
 0x44c   : > { %v5595_v2 = vadd.f32 %v24412_v12, %v5418_v18  ;;  %v13707_v40 = vld [vmem:[%s23953_s1 + $0xe0] sm:$0xff]  ;;  %v2902_v60 = vadd.f32 %v24415_v51, %v2746_v23  ;;  %v4253_v42 = vadd.f32 %v24416_v48, %v4084_v25  ;;  %v13708_v18 = vld [vmem:[%s23953_s1 + $0xe8] sm:$0xff]  ;;  %v24417_v8 = vld [vmem:[#allocation73_spill] sm:$0xff]  ;;  %16886 = vmatpush3.msra.mxu0 %v22867_v49  ;;  %16876 = vmatprep.mubr.msk.f32.mxu1 %vm264_vm0, %v22340_v3 }
 0x44d   : > { %v2904_v36 = vadd.f32 %v24417_v8, %v2748_v39  ;;  %v24418_v61 = vld [vmem:[#allocation74_spill] sm:$0xff]  ;;  %v24420_v28 = vld [vmem:[#allocation108_spill] sm:$0xff]  ;;  %v24421_v25 = vld [vmem:[#allocation141_spill] sm:$0xff]  ;;  %16851 = vmatprep.mubr.msk.f32.mxu0 %vm264_vm0, %v13707_v40  ;;  %16887 = vmatprep.subr.mxu0 %v22881_v9 }
 0x44e   : > { %v3075_v13 = vadd.f32 %v24418_v61, %v2898_v4  ;;  %v24419_v38 = vld [vmem:[#allocation106_spill] sm:$0xff]  ;;  %v4257_v23 = vadd.f32 %v24420_v28, %v4088_v24  ;;  %v5760_v34 = vadd.f32 %v24421_v25, %v5591_v58  ;;  %v24422_v5 = vld [vmem:[#allocation143_spill] sm:$0xff]  ;;  %v23108_v4 = vpop.f32.mrf.mxu0  ;;  %v24423_v39 = vld [vmem:[#allocation109_spill] sm:$0xff]  ;;  %16852 = vmatmul.mubr.msk.f32.gmra.mxu0 %vm264_vm0, %v13708_v18 }
 0x44f   : > { %v4255_v12 = vadd.f32 %v24419_v38, %v4086_v0  ;;  %v5762_v51 = vadd.f32 %v24422_v5, %v5593_v45  ;;  %v4407_v0 = vadd.f32 %v24423_v39, %v4251_v57  ;;  %v24424_v41 = vld [vmem:[#allocation145_spill] sm:$0xff]  ;;  %v24425_v8 = vld [vmem:[#allocation147_spill] sm:$0xff]  ;;  %v24427_v38 = vld [vmem:[#allocation80_spill] sm:$0xff]  ;;  %16888 = vmatpush3.msra.mxu0 %v22881_v9  ;;  %v23123_v57 = vpop.f32.mrf.mxu1  ;;  %16877 = vmatmul.mubr.msk.f32.gmra.mxu1 %vm264_vm0, %v22357_v10  ;;  %v23150_v10 = vpop.permute.xlu1 %11986 }
 0x450   : > { %v5764_v48 = vadd.f32 %v24424_v41, %v5595_v2  ;;  %v5766_v61 = vadd.f32 %v24425_v8, %v5597_v33  ;;  %v24426_v24 = vld [vmem:[#allocation77_spill] sm:$0xff]  ;;  %v3079_v45 = vadd.f32 %v24427_v38, %v2902_v60  ;;  %v24428_v28 = vld [vmem:[#allocation30_spill] sm:$0xff]  ;;  %v13709_v49 = vld [vmem:[%s23953_s1 + $0xf0] sm:$0xff]  ;;  %16889 = vmatprep.subr.mxu0 %v22912_v62 }
 0x451   : > { %v3077_v58 = vadd.f32 %v24426_v24, %v2900_v50  ;;  %v4409_v40 = vadd.f32 %v24428_v28, %v4253_v42  ;;  %v17165_v25 = vld [vmem:[%s17294_s24 + $0x278] sm:$0xff]  ;;  %v24429_v2 = vld [vmem:[#allocation76_spill] sm:$0xff]  ;;  %v24431_v18 = vld [vmem:[#allocation83_spill] sm:$0xff]  ;;  %v23132_v42 = vpop.permute.xlu0 %12159  ;;  %16854 = vmatprep.mubr.msk.f32.mxu0 %vm264_vm0, %v13709_v49  ;;  %16890 = vmatpush3.msra.mxu0 %v22912_v62 }
 0x452   : > { %16913 = vmatprep.subr.mxu1 %v17165_v25  ;;  %v23126_v33 = vadd.f32 %v24429_v2, %v3075_v13  ;;  %v3081_v50 = vadd.f32 %v24431_v18, %v2904_v36  ;;  %v24432_v5 = vld [vmem:[#allocation65_spill] sm:$0xff]  ;;  %v24433_v9 = vld [vmem:[#allocation111_spill] sm:$0xff]  ;;  %v24434_v41 = vld [vmem:[#allocation142_spill] sm:$0xff]  ;;  %v23143_v13 = vpop.f32.mrf.mxu0  ;;  %16891 = vmatprep.subr.mxu0 %v22936_v19 }
 0x453   : > { %v4411_v60 = vadd.f32 %v24432_v5, %v4255_v12  ;;  %16914 = vmatpush3.msra.mxu1 %v17165_v25  ;;  %v4413_v39 = vadd.f32 %v24433_v9, %v4257_v23  ;;  %v5916_v8 = vadd.f32 %v24434_v41, %v5760_v34  ;;  %v24435_v24 = vld [vmem:[#allocation144_spill] sm:$0xff]  ;;  %v13710_v36 = vld [vmem:[%s23953_s1 + $0xf8] sm:$0xff]  ;;  %v24436_v3 = vld [vmem:[#allocation110_spill] sm:$0xff]  ;;  %16892 = vmatpush3.msra.mxu0 %v22936_v19 }
 0x454   : > { %24430 = vst [vmem:[#allocation37_spill] sm:$0xff] %v23126_v33  ;;  %v5918_v38 = vadd.f32 %v24435_v24, %v5762_v51  ;;  %v4584_v12 = vadd.f32 %v24436_v3, %v4407_v0  ;;  %v24437_v28 = vld [vmem:[#allocation146_spill] sm:$0xff]  ;;  %v24438_v23 = vld [vmem:[#allocation148_spill] sm:$0xff]  ;;  %v24439_v51 = vld [vmem:[#allocation79_spill] sm:$0xff]  ;;  %v23160_v0 = vpop.f32.mrf.mxu1  ;;  %16855 = vmatmul.mubr.msk.f32.gmra.mxu0 %vm264_vm0, %v13710_v36  ;;  %16893 = vmatprep.subr.mxu0 %v22979_v22 }
 0x455   : > { %v5920_v25 = vadd.f32 %v24437_v28, %v5764_v48  ;;  %v5922_v2 = vadd.f32 %v24438_v23, %v5766_v61  ;;  %v17166_v34 = vld [vmem:[%s17294_s24 + $0x270] sm:$0xff]  ;;  %v23153_v18 = vadd.f32 %v24439_v51, %v3077_v58  ;;  %v24440_v5 = vld [vmem:[#allocation82_spill] sm:$0xff]  ;;  %v24442_v48 = vld [vmem:[#allocation85_spill] sm:$0xff]  ;;  %16894 = vmatpush3.msra.mxu0 %v22979_v22 }
 0x456   : > { %16915 = vmatprep.subr.mxu1 %v17166_v34  ;;  %v23156_v9 = vadd.f32 %v24440_v5, %v3079_v45  ;;  %v24441_v41 = vld [vmem:[#allocation64_spill] sm:$0xff]  ;;  %v23163_v61 = vadd.f32 %v24442_v48, %v3081_v50  ;;  %v24444_v49 = vld [vmem:[#allocation67_spill] sm:$0xff]  ;;  %v24447_v58 = vld [vmem:[#allocation113_spill] sm:$0xff]  ;;  %v23175_v50 = vpop.f32.mrf.mxu0  ;;  %16895 = vmatprep.subr.mxu0 %v22995_v37 }
 0x457   : > { %v4586_v24 = vadd.f32 %v24441_v41, %v4409_v40  ;;  %16916 = vmatpush3.msra.mxu1 %v17166_v34  ;;  %v4588_v3 = vadd.f32 %v24444_v49, %v4411_v60  ;;  %v24445_v28 = vld [vmem:[#allocation160_spill] sm:$0xff]  ;;  %v24446_v23 = vld [vmem:[#allocation163_spill] sm:$0xff]  ;;  %v4590_v45 = vadd.f32 %v24447_v58, %v4413_v39  ;;  %v24448_v40 = vld [vmem:[#allocation149_spill] sm:$0xff]  ;;  %16896 = vmatpush3.msra.mxu0 %v22995_v37 }
 0x458   : > { %24443 = vst [vmem:[#allocation39_spill] sm:$0xff] %v23163_v61  ;;  %v6571_v33 = vadd.f32 %v24446_v23, %v24445_v28  ;;  %v6093_v51 = vadd.f32 %v24448_v40, %v5916_v8  ;;  %v24449_v62 = vld [vmem:[#allocation152_spill] sm:$0xff]  ;;  %v17167_v5 = vld [vmem:[%s17294_s24 + $0x268] sm:$0xff]  ;;  %v24450_v60 = vld [vmem:[#allocation114_spill] sm:$0xff]  ;;  %v23186_v8 = vpop.permute.xlu0 %12157  ;;  %16897 = vmatprep.subr.mxu0 %v23029_v21 }
 0x459   : > { %v6095_v34 = vadd.f32 %v24449_v62, %v5918_v38  ;;  %16917 = vmatprep.subr.mxu1 %v17167_v5  ;;  %v23178_v41 = vadd.f32 %v24450_v60, %v4584_v12  ;;  %v24451_v48 = vld [vmem:[#allocation155_spill] sm:$0xff]  ;;  %v24452_v36 = vld [vmem:[#allocation158_spill] sm:$0xff]  ;;  %v24453_v19 = vld [vmem:[#allocation117_spill] sm:$0xff]  ;;  %16898 = vmatpush3.msra.mxu0 %v23029_v21 }
 0x45a   : > { %v6097_v49 = vadd.f32 %v24451_v48, %v5920_v25  ;;  %v6099_v28 = vadd.f32 %v24452_v36, %v5922_v2  ;;  %v17168_v39 = vld [vmem:[%s23953_s1 + $0x120] sm:$0xff]  ;;  %16918 = vmatpush3.msra.mxu1 %v17167_v5  ;;  %v23189_v38 = vadd.f32 %v24453_v19, %v4586_v24  ;;  %v24455_v12 = vld [vmem:[#allocation165_spill] sm:$0xff]  ;;  %v24456_v40 = vld [vmem:[#allocation164_spill] sm:$0xff]  ;;  %v23200_v5 = vpop.f32.mrf.mxu1  ;;  %v6770_v24 = vadd.f32 %v21847_v30, %v6571_v33  ;;  %v23222_v30 = vpop.f32.mrf.mxu0 }
 0x45b   : > { %16879 = vmatprep.mubr.msk.f32.mxu1 %vm264_vm0, %v17168_v39  ;;  %v24454_v23 = vld [vmem:[#allocation162_spill] sm:$0xff]  ;;  %v24457_v25 = vld [vmem:[#allocation167_spill] sm:$0xff]  ;;  %v24458_v60 = vld [vmem:[#allocation120_spill] sm:$0xff]  ;;  %16899 = vmatprep.subr.mxu0 %v23048_v35 }
 0x45c   : > { %v6581_v58 = vadd.f32 %v24455_v12, %v24454_v23  ;;  %v6591_v62 = vadd.f32 %v24457_v25, %v24456_v40  ;;  %v17169_v2 = vld [vmem:[%s23953_s1 + $0x128] sm:$0xff]  ;;  %v23203_v48 = vadd.f32 %v24458_v60, %v4588_v3  ;;  %v24459_v36 = vld [vmem:[#allocation166_spill] sm:$0xff]  ;;  %v23210_v23 = vpop.permute.xlu1 %11984  ;;  %v24465_v22 = vld [vmem:[#allocation161_spill] sm:$0xff]  ;;  %16900 = vmatpush3.msra.mxu0 %v23048_v35 }
 0x45d   : > { %16880 = vmatmul.mubr.msk.f32.gmra.mxu1 %vm264_vm0, %v17169_v2  ;;  %v6601_v39 = vadd.f32 %v21783_v27, %v24459_v36  ;;  %v17170_v19 = vld [vmem:[%s17294_s24 + $0x260] sm:$0xff]  ;;  %v24460_v12 = vld [vmem:[#allocation123_spill] sm:$0xff]  ;;  %v24464_v27 = vld [vmem:[#allocation157_spill] sm:$0xff]  ;;  %v23228_v36 = vadd.f32 %v24465_v22, %v6099_v28  ;;  %16941 = vmatprep.subr.mxu0 %v23082_v43 }
 0x45e   : > { %16919 = vmatprep.subr.mxu1 %v17170_v19  ;;  %v23213_v40 = vadd.f32 %v24460_v12, %v4590_v45  ;;  %v24462_v25 = vld [vmem:[#allocation151_spill] sm:$0xff]  ;;  %v24463_v3 = vld [vmem:[#allocation154_spill] sm:$0xff]  ;;  %v23225_v33 = vadd.f32 %v24464_v27, %v6097_v49  ;;  %v8085_v45 = vadd.f32 %v22484_v17, %v22291_v54  ;;  %v17171_v12 = vld [vmem:[%s17294_s24 + $0x258] sm:$0xff]  ;;  %v23242_v54 = vpop.f32.mrf.mxu1  ;;  %v6923_v17 = vadd.f32 %v21849_v52, %v6770_v24  ;;  %v23266_v24 = vpop.f32.mrf.mxu0 }
 0x45f   : > { %v23216_v2 = vadd.f32 %v24462_v25, %v6093_v51  ;;  %v23219_v60 = vadd.f32 %v24463_v3, %v6095_v34  ;;  %16920 = vmatpush3.msra.mxu1 %v17170_v19  ;;  %24466 = vst [vmem:[#allocation40_spill] sm:$0xff] %v23228_v36  ;;  %v6772_v51 = vadd.f32 %v21877_v26, %v6581_v58  ;;  %v17172_v49 = vld [vmem:[%s23953_s1 + $0x130] sm:$0xff]  ;;  %v24469_v58 = vld [vmem:[#allocation202_spill] sm:$0xff]  ;;  %v24474_v27 = vld [vmem:[#allocation207_spill] sm:$0xff] }
 0x460   : > { %24461 = vst [vmem:[#allocation38_spill] sm:$0xff] %v23213_v40  ;;  %16921 = vmatprep.subr.mxu1 %v17171_v12  ;;  %v6774_v34 = vadd.f32 %v21908_v20, %v6591_v62  ;;  %v8080_v19 = vadd.f32 %v22508_v11, %v22324_v31  ;;  %16882 = vmatprep.mubr.msk.f32.mxu1 %vm264_vm0, %v17172_v49  ;;  %v17173_v20 = vld [vmem:[%s23953_s1 + $0x138] sm:$0xff]  ;;  %v23253_v11 = vpop.permute.xlu0 %12155  ;;  %v24467_v52 = vld [vmem:[#allocation200_spill] sm:$0xff]  ;;  %v13736_v21 = vld [vmem:[%s23953_s1 + $0x148] sm:$0xff]  ;;  %v23295_v61 = vpop.f32.mrf.mxu0 }
 0x461   : > { %16922 = vmatpush3.msra.mxu1 %v17171_v12  ;;  %v6776_v37 = vadd.f32 %v21929_v29, %v6601_v39  ;;  %v8095_v26 = vadd.f32 %v22532_v56, %v22361_v44  ;;  %v8090_v31 = vadd.f32 %v22544_v14, %v22387_v63  ;;  %v8105_v28 = vadd.f32 %v24467_v52, %v22421_v15  ;;  %v24468_v29 = vld [vmem:[#allocation194_spill] sm:$0xff]  ;;  %v17174_v44 = vld [vmem:[%s17294_s24 + $0x250] sm:$0xff]  ;;  %v24473_v15 = vld [vmem:[#allocation197_spill] sm:$0xff]  ;;  %v23277_v12 = vpop.permute.xlu1 %11982 }
 0x462   : > { %16883 = vmatmul.mubr.msk.f32.gmra.mxu1 %vm264_vm0, %v17173_v20  ;;  %v8100_v62 = vadd.f32 %v24469_v58, %v24468_v29  ;;  %16923 = vmatprep.subr.mxu1 %v17174_v44  ;;  %v13735_v56 = vld [vmem:[%s23953_s1 + $0x140] sm:$0xff]  ;;  %v24471_v14 = vld [vmem:[#allocation196_spill] sm:$0xff]  ;;  %v8110_v22 = vadd.f32 %v24474_v27, %v24473_v15  ;;  %v24476_v52 = vld [vmem:[#allocation169_spill] sm:$0xff] }
 0x463   : > { %v24470_v39 = vld [vmem:[#allocation198_spill] sm:$0xff]  ;;  %v24472_v63 = vld [vmem:[#allocation204_spill] sm:$0xff]  ;;  %16924 = vmatpush3.msra.mxu1 %v17174_v44  ;;  %v24477_v29 = vld [vmem:[#allocation199_spill] sm:$0xff]  ;;  %v23284_v44 = vpop.f32.mrf.mxu1  ;;  %16901 = vmatprep.mubr.msk.f32.mxu0 %vm264_vm0, %v13735_v56 }
 0x464   : > { %v8280_v25 = vadd.f32 %v24470_v39, %v8085_v45  ;;  %v8115_v3 = vadd.f32 %v24472_v63, %v24471_v14  ;;  %v24475_v49 = vld [vmem:[#allocation168_spill] sm:$0xff]  ;;  %v6927_v45 = vadd.f32 %v24476_v52, %v6774_v34  ;;  %v8279_v58 = vadd.f32 %v24477_v29, %v8080_v19  ;;  %v17175_v39 = vld [vmem:[%s17294_s24 + $0x248] sm:$0xff]  ;;  %v24479_v15 = vld [vmem:[#allocation170_spill] sm:$0xff]  ;;  %16902 = vmatmul.mubr.msk.f32.vlgmr.msra.gmra.mxu0 %vm264_vm0, %v13736_v21 }
 0x465   : > { %v6925_v20 = vadd.f32 %v24475_v49, %v6772_v51  ;;  %16925 = vmatprep.subr.mxu1 %v17175_v39  ;;  %v24478_v14 = vld [vmem:[#allocation171_spill] sm:$0xff]  ;;  %v6929_v27 = vadd.f32 %v24479_v15, %v6776_v37  ;;  %v24480_v36 = vld [vmem:[#allocation201_spill] sm:$0xff]  ;;  %v24483_v19 = vld [vmem:[#allocation206_spill] sm:$0xff]  ;;  %16942 = vmatpush3.msra.mxu0 %v23082_v43  ;;  %v23327_v43 = vpop.permute.xlu1 %11980 }
 0x466   : > { %v7100_v63 = vadd.f32 %v24478_v14, %v6923_v17  ;;  %v8282_v40 = vadd.f32 %v24480_v36, %v8095_v26  ;;  %16926 = vmatpush3.msra.mxu1 %v17175_v39  ;;  %v24481_v51 = vld [vmem:[#allocation203_spill] sm:$0xff]  ;;  %v24482_v34 = vld [vmem:[#allocation205_spill] sm:$0xff]  ;;  %v8283_v29 = vadd.f32 %v24483_v19, %v8100_v62  ;;  %v17176_v35 = vld [vmem:[%s17294_s24 + $0x240] sm:$0xff]  ;;  %16943 = vmatprep.subr.mxu0 %v23101_v1 }
 0x467   : > { %v8281_v49 = vadd.f32 %v24481_v51, %v8090_v31  ;;  %v8284_v52 = vadd.f32 %v24482_v34, %v8105_v28  ;;  %16927 = vmatprep.subr.mxu1 %v17176_v35  ;;  %v24484_v17 = vld [vmem:[#allocation209_spill] sm:$0xff]  ;;  %v24485_v37 = vld [vmem:[#allocation208_spill] sm:$0xff]  ;;  %v24486_v36 = vld [vmem:[#allocation210_spill] sm:$0xff]  ;;  %v23304_v28 = vpop.permute.xlu0 %12153  ;;  %16944 = vmatpush3.msra.mxu0 %v23101_v1 }
 0x468   : > { %v8433_v14 = vadd.f32 %v24484_v17, %v8280_v25  ;;  %v8286_v15 = vadd.f32 %v24485_v37, %v8115_v3  ;;  %v8285_v26 = vadd.f32 %v24486_v36, %v8110_v22  ;;  %16928 = vmatpush3.msra.mxu1 %v17176_v35  ;;  %v13737_v31 = vld [vmem:[%s23953_s1 + $0x150] sm:$0xff]  ;;  %v24488_v21 = vld [vmem:[#allocation174_spill] sm:$0xff]  ;;  %v24489_v51 = vld [vmem:[#allocation211_spill] sm:$0xff]  ;;  %v23317_v22 = vpop.f32.mrf.mxu1  ;;  %16945 = vmatprep.subr.mxu0 %v23150_v10 }
 0x469   : > { %v24487_v62 = vld [vmem:[#allocation172_spill] sm:$0xff]  ;;  %v7104_v39 = vadd.f32 %v24488_v21, %v6927_v45  ;;  %v8432_v34 = vadd.f32 %v24489_v51, %v8279_v58  ;;  %v17177_v25 = vld [vmem:[%s23953_s1 + $0x180] sm:$0xff]  ;;  %v13738_v3 = vld [vmem:[%s23953_s1 + $0x158] sm:$0xff]  ;;  %16904 = vmatprep.mubr.msk.f32.mxu0 %vm264_vm0, %v13737_v31  ;;  %16969 = vmatprep.subr.mxu1 %v23132_v42 }
 0x46a   : > { %v7102_v56 = vadd.f32 %v24487_v62, %v6925_v20  ;;  %16929 = vmatprep.mubr.msk.f32.mxu1 %vm264_vm0, %v17177_v25  ;;  %v24490_v19 = vld [vmem:[#allocation173_spill] sm:$0xff]  ;;  %v24491_v35 = vld [vmem:[#allocation176_spill] sm:$0xff]  ;;  %v17178_v37 = vld [vmem:[%s23953_s1 + $0x188] sm:$0xff]  ;;  %16905 = vmatmul.mubr.msk.f32.gmra.mxu0 %vm264_vm0, %v13738_v3 }
 0x46b   : > { %v7269_v20 = vadd.f32 %v24490_v19, %v7100_v63  ;;  %v7106_v45 = vadd.f32 %v24491_v35, %v6929_v27  ;;  %v24492_v17 = vld [vmem:[#allocation213_spill] sm:$0xff]  ;;  %16930 = vmatmul.mubr.msk.f32.vlgmr.msra.gmra.mxu1 %vm264_vm0, %v17178_v37  ;;  %v24493_v36 = vld [vmem:[#allocation215_spill] sm:$0xff]  ;;  %v23334_v27 = vpop.f32.mrf.mxu0  ;;  %v24496_v25 = vld [vmem:[#allocation212_spill] sm:$0xff]  ;;  %16946 = vmatpush3.msra.mxu0 %v23150_v10 }
 0x46c   : > { %v8435_v58 = vadd.f32 %v24492_v17, %v8282_v40  ;;  %v8434_v62 = vadd.f32 %v24493_v36, %v8281_v49  ;;  %v24494_v21 = vld [vmem:[#allocation9_spill] sm:$0xff]  ;;  %v24495_v40 = vld [vmem:[#allocation11_spill] sm:$0xff]  ;;  %v8610_v19 = vadd.f32 %v24496_v25, %v8433_v14  ;;  %v13739_v49 = vld [vmem:[%s23953_s1 + $0x160] sm:$0xff]  ;;  %16970 = vmatpush3.msra.mxu1 %v23132_v42  ;;  %16947 = vmatprep.subr.mxu0 %v23210_v23 }
 0x46d   : > { %v8437_v51 = vadd.f32 %v24494_v21, %v8284_v52  ;;  %v8436_v63 = vadd.f32 %v24495_v40, %v8283_v29  ;;  %v24497_v35 = vld [vmem:[#allocation13_spill] sm:$0xff]  ;;  %v24498_v52 = vld [vmem:[#allocation7_spill] sm:$0xff]  ;;  %v24501_v21 = vld [vmem:[#allocation214_spill] sm:$0xff]  ;;  %16907 = vmatprep.mubr.msk.f32.mxu0 %vm264_vm0, %v13739_v49  ;;  %16971 = vmatprep.subr.mxu1 %v23186_v8 }
 0x46e   : > { %v8439_v17 = vadd.f32 %v24497_v35, %v8286_v15  ;;  %v8438_v31 = vadd.f32 %v24498_v52, %v8285_v26  ;;  %v24499_v1 = vld [vmem:[#allocation175_spill] sm:$0xff]  ;;  %v24500_v29 = vld [vmem:[#allocation177_spill] sm:$0xff]  ;;  %v8609_v40 = vadd.f32 %v24501_v21, %v8432_v34  ;;  %v17179_v14 = vld [vmem:[%s23953_s1 + $0x190] sm:$0xff]  ;;  %v23356_v26 = vpop.f32.mrf.mxu1  ;;  %16972 = vmatpush3.msra.mxu1 %v23186_v8  ;;  %16948 = vmatpush3.msra.mxu0 %v23210_v23 }
 0x46f   : > { %v7271_v37 = vadd.f32 %v24499_v1, %v7102_v56  ;;  %v7273_v36 = vadd.f32 %v24500_v29, %v7104_v39  ;;  %16932 = vmatprep.mubr.msk.f32.mxu1 %vm264_vm0, %v17179_v14  ;;  %v13740_v15 = vld [vmem:[%s23953_s1 + $0x168] sm:$0xff]  ;;  %v23358_v56 = vpop.f32.mrf.mxu0  ;;  %v24504_v34 = vld [vmem:[#allocation178_spill] sm:$0xff]  ;;  %v23365_v1 = vpop.permute.xlu0 %12151  ;;  %v17180_v14 = vld [vmem:[%s23953_s1 + $0x198] sm:$0xff]  ;;  %16973 = vmatprep.subr.mxu1 %v23253_v11 }
 0x470   : > { %24502 = vst [vmem:[#allocation42_spill] sm:$0xff] %v23358_v56  ;;  %v24503_v39 = vld [vmem:[#allocation179_spill] sm:$0xff]  ;;  %v7275_v25 = vadd.f32 %v24504_v34, %v7106_v45  ;;  %v24505_v35 = vld [vmem:[#allocation2_spill] sm:$0xff]  ;;  %16933 = vmatmul.mubr.msk.f32.gmra.mxu1 %vm264_vm0, %v17180_v14  ;;  %16908 = vmatmul.mubr.msk.f32.gmra.mxu0 %vm264_vm0, %v13740_v15  ;;  %v24510_v42 = vld [vmem:[#allocation8_spill] sm:$0xff] }
 0x471   : > { %v7425_v3 = vadd.f32 %v24503_v39, %v7269_v20  ;;  %v8612_v52 = vadd.f32 %v24505_v35, %v8435_v58  ;;  %v24506_v29 = vld [vmem:[#allocation3_spill] sm:$0xff]  ;;  %v24507_v20 = vld [vmem:[#allocation4_spill] sm:$0xff]  ;;  %v24508_v39 = vld [vmem:[#allocation5_spill] sm:$0xff]  ;;  %v8779_v10 = vadd.f32 %v24510_v42, %v8610_v19  ;;  %v23402_v42 = vpop.f32.mrf.mxu1  ;;  %16949 = vmatprep.subr.mxu0 %v23277_v12  ;;  %16974 = vmatpush3.msra.mxu1 %v23253_v11 }
 0x472   : > { %v8611_v21 = vadd.f32 %v24506_v29, %v8434_v62  ;;  %v8614_v45 = vadd.f32 %v24507_v20, %v8437_v51  ;;  %v8613_v58 = vadd.f32 %v24508_v39, %v8436_v63  ;;  %v13741_v62 = vld [vmem:[%s23953_s1 + $0x170] sm:$0xff]  ;;  %v24511_v49 = vld [vmem:[#allocation17_spill] sm:$0xff]  ;;  %v23389_v63 = vpop.permute.xlu1 %11978  ;;  %v24514_v20 = vld [vmem:[#allocation183_spill] sm:$0xff]  ;;  %16950 = vmatpush3.msra.mxu0 %v23277_v12  ;;  %16975 = vmatprep.subr.mxu1 %v23304_v28 }
 0x473   : > { %v8616_v34 = vadd.f32 %v24511_v49, %v8439_v17  ;;  %v24512_v51 = vld [vmem:[#allocation16_spill] sm:$0xff]  ;;  %v24513_v29 = vld [vmem:[#allocation181_spill] sm:$0xff]  ;;  %v7429_v39 = vadd.f32 %v24514_v20, %v7273_v36  ;;  %v17181_v15 = vld [vmem:[%s23953_s1 + $0x1a0] sm:$0xff]  ;;  %16910 = vmatprep.mubr.msk.f32.mxu0 %vm264_vm0, %v13741_v62  ;;  %v23425_v8 = vpop.f32.mrf.mxu1  ;;  %16951 = vmatprep.subr.mxu0 %v23327_v43 }
 0x474   : > { %v8615_v35 = vadd.f32 %v24512_v51, %v8438_v31  ;;  %v7427_v14 = vadd.f32 %v24513_v29, %v7271_v37  ;;  %16935 = vmatprep.mubr.msk.f32.mxu1 %vm264_vm0, %v17181_v15  ;;  %v13742_v19 = vld [vmem:[%s23953_s1 + $0x178] sm:$0xff]  ;;  %v24515_v17 = vld [vmem:[#allocation22_spill] sm:$0xff]  ;;  %v23404_v37 = vpop.f32.mrf.mxu0  ;;  %v24517_v36 = vld [vmem:[#allocation180_spill] sm:$0xff]  ;;  %16976 = vmatpush3.msra.mxu1 %v23304_v28 }
 0x475   : > { %v8778_v31 = vadd.f32 %v24515_v17, %v8609_v40  ;;  %24516 = vst [vmem:[#allocation44_spill] sm:$0xff] %v23404_v37  ;;  %v7602_v49 = vadd.f32 %v24517_v36, %v7425_v3  ;;  %v24518_v51 = vld [vmem:[#allocation185_spill] sm:$0xff]  ;;  %v24519_v20 = vld [vmem:[#allocation18_spill] sm:$0xff]  ;;  %v17182_v56 = vld [vmem:[%s23953_s1 + $0x1a8] sm:$0xff]  ;;  %16911 = vmatmul.mubr.msk.f32.gmra.mxu0 %vm264_vm0, %v13742_v19  ;;  %v8785_v62 = vadd.f32 %v23002_v55, %v8616_v34  ;;  %v23459_v11 = vpop.f32.mrf.mxu1 }
 0x476   : > { %v7431_v29 = vadd.f32 %v24518_v51, %v7275_v25  ;;  %v8781_v15 = vadd.f32 %v24519_v20, %v8612_v52  ;;  %16936 = vmatmul.mubr.msk.f32.gmra.mxu1 %vm264_vm0, %v17182_v56  ;;  %v24520_v40 = vld [vmem:[#allocation36_spill] sm:$0xff]  ;;  %v8782_v25 = vadd.f32 %v22981_v53, %v8613_v58  ;;  %v12150_v52 = vpop.permute.xlu0 %12149  ;;  %v24525_v19 = vld [vmem:[#allocation31_spill] sm:$0xff]  ;;  %v23440_v51 = vpop.f32.mrf.mxu0  ;;  %v24527_v34 = vld [vmem:[#allocation186_spill] sm:$0xff]  ;;  %16952 = vmatpush3.msra.mxu0 %v23327_v43 }
 0x477   : > { %v8780_v17 = vadd.f32 %v24520_v40, %v8611_v21  ;;  %v24521_v37 = vld [vmem:[#allocation32_spill] sm:$0xff]  ;;  %v8784_v21 = vadd.f32 %v23038_v7, %v8615_v35  ;;  %v11977_v20 = vpop.permute.xlu1 %11976  ;;  %v17184_v40 = vld [vmem:[%s23953_s1 + $0x1b8] sm:$0xff]  ;;  %16977 = vmatprep.subr.mxu1 %v23365_v1  ;;  %16953 = vmatprep.subr.mxu0 %v23389_v63 }
 0x478   : > { %v8783_v3 = vadd.f32 %v24521_v37, %v8614_v45  ;;  %v24522_v23 = vld [vmem:[#allocation12_spill] sm:$0xff]  ;;  %v24523_v45 = vld [vmem:[#allocation182_spill] sm:$0xff]  ;;  %v7608_v35 = vadd.f32 %v24527_v34, %v7431_v29  ;;  %v8938_v29 = vadd.f32 %v23031_v47, %v8782_v25  ;;  %v23478_v28 = vpop.f32.mrf.mxu0  ;;  %16978 = vmatpush3.msra.mxu1 %v23365_v1  ;;  %16954 = vmatpush3.msra.mxu0 %v23389_v63 }
 0x479   : > { %v8935_v56 = vadd.f32 %v24522_v23, %v8779_v10  ;;  %v7604_v37 = vadd.f32 %v24523_v45, %v7427_v14  ;;  %v24524_v53 = vld [vmem:[#allocation184_spill] sm:$0xff]  ;;  %v8934_v10 = vadd.f32 %v24525_v19, %v8778_v31  ;;  %v24528_v14 = vld [vmem:[#allocation35_spill] sm:$0xff]  ;;  %v8936_v31 = vadd.f32 %v22988_v6, %v8780_v17  ;;  %v24529_v45 = vld [vmem:[#allocation190_spill] sm:$0xff]  ;;  %16979 = vmatprep.subr.mxu1 %v12150_v52 }
 0x47a   : > { %v7606_v58 = vadd.f32 %v24524_v53, %v7429_v39  ;;  %v17183_v36 = vld [vmem:[%s23953_s1 + $0x1b0] sm:$0xff]  ;;  %v8937_v39 = vadd.f32 %v24528_v14, %v8781_v15  ;;  %v8941_v15 = vadd.f32 %v23059_v16, %v8785_v62  ;;  %v8940_v23 = vadd.f32 %v23093_v46, %v8784_v21  ;;  %v13777_v47 = vld [vmem:[%s23953_s1 + $0x1c0] sm:$0xff]  ;;  %v24531_v16 = vld [vmem:[#allocation195_spill] sm:$0xff]  ;;  %16955 = vmatprep.subr.mxu0 %v11977_v20 }
 0x47b   : > { %16938 = vmatprep.mubr.msk.f32.mxu1 %vm264_vm0, %v17183_v36  ;;  %v24526_v55 = vld [vmem:[#allocation188_spill] sm:$0xff]  ;;  %v9112_v12 = vadd.f32 %v23072_v59, %v8935_v56  ;;  %v23467_v6 = vadd.f32 %v24529_v45, %v7604_v37  ;;  %v9111_v59 = vadd.f32 %v23108_v4, %v8934_v10  ;;  %v23481_v46 = vadd.f32 %v24531_v16, %v7608_v35  ;;  %v12146_v25 = vpop.permute.xlu1 %12145  ;;  %v13778_v4 = vld [vmem:[%s23953_s1 + $0x1c8] sm:$0xff]  ;;  %v24535_v19 = vld [vmem:[#allocation37_spill] sm:$0xff] }
 0x47c   : > { %v23443_v7 = vadd.f32 %v24526_v55, %v7602_v49  ;;  %16939 = vmatmul.mubr.msk.f32.gmra.mxu1 %vm264_vm0, %v17184_v40  ;;  %v8939_v49 = vadd.f32 %v23013_v32, %v8783_v3  ;;  %v24530_v32 = vld [vmem:[#allocation192_spill] sm:$0xff]  ;;  %v12148_v3 = vpop.permute.xlu0 %12147  ;;  %v9114_v43 = vadd.f32 %v23143_v13, %v8937_v39  ;;  %v9113_v62 = vadd.f32 %v23175_v50, %v8936_v31  ;;  %v23498_v13 = vpop.f32.mrf.mxu1  ;;  %v13781_v55 = vld [vmem:[%s23953_s1 + $0x1e0] sm:$0xff]  ;;  %v13782_v45 = vld [vmem:[%s23953_s1 + $0x1e8] sm:$0xff] }
 0x47d   : > { %v23470_v17 = vadd.f32 %v24530_v32, %v7606_v58  ;;  %v23487_v56 = vadd.f32 %v23123_v57, %v9112_v12  ;;  %v9280_v1 = vadd.f32 %v23160_v0, %v9111_v59  ;;  %16957 = vmatprep.mubr.msk.f32.mxu0 %vm264_vm0, %v13777_v47  ;;  %v13779_v57 = vld [vmem:[%s23953_s1 + $0x1d0] sm:$0xff]  ;;  %v9115_v63 = vadd.f32 %v23266_v24, %v8938_v29  ;;  %v23517_v58 = vpop.f32.mrf.mxu0  ;;  %v24536_v40 = vld [vmem:[#allocation46_spill] sm:$0xff] }
 0x47e   : > { %v9116_v21 = vadd.f32 %v23222_v30, %v8939_v49  ;;  %v9118_v37 = vadd.f32 %v23295_v61, %v8941_v15  ;;  %v9117_v53 = vadd.f32 %v23334_v27, %v8940_v23  ;;  %16956 = vmatpush3.msra.mxu0 %v11977_v20  ;;  %16980 = vmatpush3.msra.mxu1 %v12150_v52  ;;  %v24534_v52 = vld [vmem:[#allocation23_spill] sm:$0xff]  ;;  %v23543_v10 = vpop.f32.mrf.mxu1  ;;  %v17187_v32 = vld [vmem:[%s23953_s1 + $0x210] sm:$0xff] }
 0x47f   : > { %v23508_v0 = vadd.f32 %v23200_v5, %v9114_v43  ;;  %v23511_v50 = vadd.f32 %v23242_v54, %v9113_v62  ;;  %16958 = vmatmul.mubr.msk.f32.vlgmr.msra.gmra.mxu0 %vm264_vm0, %v13778_v4  ;;  %16981 = vmatprep.subr.mxu1 %v12148_v3  ;;  %v23522_v24 = vpop.permute.xlu1 %1710  ;;  %v23525_v27 = vadd.f32 %v23317_v22, %v9115_v63  ;;  %v23564_v49 = vpop.f32.mrf.mxu0  ;;  %v24537_v15 = vld [vmem:[#allocation75_spill] sm:$0xff]  ;;  %v24538_v59 = vld [vmem:[#allocation112_spill] sm:$0xff] }
 0x480   : > { %v23515_v30 = vadd.f32 %v23284_v44, %v9116_v21  ;;  %v23520_v61 = vpop.permute.xlu0 %1705  ;;  %24533 = vst [vmem:[#allocation59_spill] sm:$0xff] %v23522_v24  ;;  %v23528_v5 = vadd.f32 %v23356_v26, %v9118_v37  ;;  %v23531_v54 = vadd.f32 %v23402_v42, %v9117_v53  ;;  %16960 = vmatprep.mubr.msk.f32.mxu0 %vm264_vm0, %v13779_v57  ;;  %v13780_v44 = vld [vmem:[%s23953_s1 + $0x1d8] sm:$0xff]  ;;  %v17185_v42 = vld [vmem:[%s23953_s1 + $0x200] sm:$0xff]  ;;  %v24540_v43 = vld [vmem:[#allocation187_spill] sm:$0xff] }
 0x481   : > { %24532 = vst [vmem:[#allocation51_spill] sm:$0xff] %v23520_v61  ;;  %16982 = vmatpush3.msra.mxu1 %v12148_v3  ;;  %v1743_v36 = vadd.f32 %v23520_v61, %v24534_v52  ;;  %v3252_v22 = vadd.f32 %v24535_v19, %v23520_v61  ;;  %v4761_v26 = vadd.f32 %v23178_v41, %v23520_v61  ;;  %v24539_v3 = vld [vmem:[#allocation150_spill] sm:$0xff]  ;;  %v13783_v21 = vld [vmem:[%s23953_s1 + $0x1f0] sm:$0xff]  ;;  %v24542_v37 = vld [vmem:[#allocation49_spill] sm:$0xff] }
 0x482   : > { %16983 = vmatprep.subr.mxu1 %v12146_v25  ;;  %16985 = vmatprep.mubr.msk.f32.mxu1 %vm264_vm0, %v17185_v42  ;;  %v6270_v41 = vadd.f32 %v23216_v2, %v23520_v61  ;;  %v7779_v34 = vadd.f32 %v23443_v7, %v23520_v61  ;;  %v9288_v35 = vadd.f32 %v9280_v1, %v23520_v61  ;;  %v17186_v2 = vld [vmem:[%s23953_s1 + $0x208] sm:$0xff]  ;;  %v23595_v1 = vpop.f32.mrf.mxu1 }
 0x483   : > { %16984 = vmatpush3.msra.mxu1 %v12146_v25  ;;  %v1751_v14 = vmax.f32 %v1743_v36, 0.0  ;;  %v3260_v39 = vmax.f32 %v3252_v22, 0.0  ;;  %v4769_v20 = vmax.f32 %v4761_v26, 0.0  ;;  %v1744_v31 = vadd.f32 %v23522_v24, %v24536_v40  ;;  %16961 = vmatmul.mubr.msk.f32.gmra.mxu0 %vm264_vm0, %v13780_v44  ;;  %v24543_v44 = vld [vmem:[#allocation78_spill] sm:$0xff]  ;;  %v23612_v36 = vpop.permute.xlu1 %1715  ;;  %v24545_v42 = vld [vmem:[#allocation115_spill] sm:$0xff]  ;;  %v13784_v40 = vld [vmem:[%s23953_s1 + $0x1f8] sm:$0xff] }
 0x484   : > { %16986 = vmatmul.mubr.msk.f32.vlgmr.msra.gmra.mxu1 %vm264_vm0, %v17186_v2  ;;  %v6278_v7 = vmax.f32 %v6270_v41, 0.0  ;;  %v7787_v29 = vmax.f32 %v7779_v34, 0.0  ;;  %v9296_v12 = vmax.f32 %v9288_v35, 0.0  ;;  %v3253_v23 = vadd.f32 %v24537_v15, %v23522_v24  ;;  %16963 = vmatprep.mubr.msk.f32.mxu0 %vm264_vm0, %v13781_v55  ;;  %v23593_v62 = vpop.permute.xlu0 %1720  ;;  %24544 = vst [vmem:[#allocation43_spill] sm:$0xff] %v23612_v36  ;;  %v17188_v41 = vld [vmem:[%s23953_s1 + $0x218] sm:$0xff]  ;;  %v24548_v15 = vld [vmem:[#allocation26_spill] sm:$0xff] }
 0x485   : > { %16988 = vmatprep.mubr.msk.f32.mxu1 %vm264_vm0, %v17187_v32  ;;  %1760 = vst.msk [vmem:[%s23555_s12] sm:$0xff] %vm1759_vm1, %v1751_v14  ;;  %12789 = vst.msk [vmem:[%s23555_s12 + $0x40] sm:$0xff] %vm1759_vm1, %v3260_v39  ;;  %v1752_v47 = vmax.f32 %v1744_v31, 0.0  ;;  %v4762_v16 = vadd.f32 %v24538_v59, %v23522_v24  ;;  %v6271_v25 = vadd.f32 %v24539_v3, %v23522_v24  ;;  %v24546_v39 = vld [vmem:[#allocation153_spill] sm:$0xff]  ;;  %v17189_v31 = vld [vmem:[%s23953_s1 + $0x220] sm:$0xff] }
 0x486   : > { %12959 = vst.msk [vmem:[%s23555_s12 + $0x80] sm:$0xff] %vm1759_vm1, %v4769_v20  ;;  %v7780_v4 = vadd.f32 %v24540_v43, %v23522_v24  ;;  %24541 = vst [vmem:[#allocation41_spill] sm:$0xff] %v23593_v62  ;;  %v3261_v57 = vmax.f32 %v3253_v23, 0.0  ;;  %v9289_v63 = vadd.f32 %v23487_v56, %v23522_v24  ;;  %v1746_v53 = vadd.f32 %v23593_v62, %v24542_v37  ;;  %v23618_v56 = vpop.f32.mrf.mxu0  ;;  %v17191_v37 = vld [vmem:[%s23953_s1 + $0x230] sm:$0xff] }
 0x487   : > { %13129 = vst.msk [vmem:[%s23555_s12 + $0xc0] sm:$0xff] %vm1759_vm1, %v6278_v7  ;;  %13299 = vst.msk [vmem:[%s23555_s12 + $0x100] sm:$0xff] %vm1759_vm1, %v7787_v29  ;;  %v3255_v52 = vadd.f32 %v24543_v44, %v23593_v62  ;;  %v4770_v19 = vmax.f32 %v4762_v16, 0.0  ;;  %v6279_v22 = vmax.f32 %v6271_v25, 0.0  ;;  %v4764_v55 = vadd.f32 %v24545_v42, %v23593_v62  ;;  %16964 = vmatmul.mubr.msk.f32.gmra.mxu0 %vm264_vm0, %v13782_v45  ;;  %v24547_v7 = vld [vmem:[#allocation189_spill] sm:$0xff]  ;;  %v23649_v45 = vpop.f32.mrf.mxu1  ;;  %v24551_v44 = vld [vmem:[#allocation52_spill] sm:$0xff] }
 0x488   : > { %13469 = vst.msk [vmem:[%s23555_s12 + $0x140] sm:$0xff] %vm1759_vm1, %v9296_v12  ;;  %1761 = vst.msk [vmem:[%s23555_s12 + $0x8] sm:$0xff] %vm1759_vm1, %v1752_v47  ;;  %v7788_v26 = vmax.f32 %v7780_v4, 0.0  ;;  %16989 = vmatmul.mubr.msk.f32.gmra.mxu1 %vm264_vm0, %v17188_v41  ;;  %v9297_v34 = vmax.f32 %v9289_v63, 0.0  ;;  %v1754_v35 = vmax.f32 %v1746_v53, 0.0  ;;  %v6273_v20 = vadd.f32 %v24546_v39, %v23593_v62  ;;  %16966 = vmatprep.mubr.msk.f32.mxu0 %vm264_vm0, %v13783_v21  ;;  %v23663_v16 = vpop.permute.xlu0 %1730  ;;  %v23680_v63 = vpop.permute.xlu1 %1725 }
 0x489   : > { %12790 = vst.msk [vmem:[%s23555_s12 + $0x48] sm:$0xff] %vm1759_vm1, %v3261_v57  ;;  %v3263_v14 = vmax.f32 %v3255_v52, 0.0  ;;  %16991 = vmatprep.mubr.msk.f32.mxu1 %vm264_vm0, %v17189_v31  ;;  %12960 = vst.msk [vmem:[%s23555_s12 + $0x88] sm:$0xff] %vm1759_vm1, %v4770_v19  ;;  %v4772_v2 = vmax.f32 %v4764_v55, 0.0  ;;  %v7782_v29 = vadd.f32 %v24547_v7, %v23593_v62  ;;  %v9291_v12 = vadd.f32 %v23508_v0, %v23593_v62  ;;  %v24552_v19 = vld [vmem:[#allocation81_spill] sm:$0xff]  ;;  %v23701_v55 = vpop.f32.mrf.mxu1 }
 0x48a   : > { %13130 = vst.msk [vmem:[%s23555_s12 + $0xc8] sm:$0xff] %vm1759_vm1, %v6279_v22  ;;  %13300 = vst.msk [vmem:[%s23555_s12 + $0x108] sm:$0xff] %vm1759_vm1, %v7788_v26  ;;  %v1745_v23 = vadd.f32 %v23612_v36, %v24548_v15  ;;  %v6281_v32 = vmax.f32 %v6273_v20, 0.0  ;;  %v3254_v47 = vadd.f32 %v23153_v18, %v23612_v36  ;;  %v4763_v59 = vadd.f32 %v23189_v38, %v23612_v36  ;;  %v23669_v18 = vpop.f32.mrf.mxu0  ;;  %v17190_v38 = vld [vmem:[%s23953_s1 + $0x228] sm:$0xff]  ;;  %v24553_v26 = vld [vmem:[#allocation118_spill] sm:$0xff] }
 0x48b   : > { %13470 = vst.msk [vmem:[%s23555_s12 + $0x148] sm:$0xff] %vm1759_vm1, %v9297_v34  ;;  %1763 = vst.msk [vmem:[%s23555_s12 + $0x18] sm:$0xff] %vm1759_vm1, %v1754_v35  ;;  %v6272_v0 = vadd.f32 %v23219_v60, %v23612_v36  ;;  %v7790_v3 = vmax.f32 %v7782_v29, 0.0  ;;  %v9299_v25 = vmax.f32 %v9291_v12, 0.0  ;;  %v7781_v4 = vadd.f32 %v23467_v6, %v23612_v36  ;;  %16967 = vmatmul.mubr.msk.f32.gmra.mxu0 %vm264_vm0, %v13784_v40  ;;  %v24554_v34 = vld [vmem:[#allocation156_spill] sm:$0xff]  ;;  %v24556_v7 = vld [vmem:[#allocation33_spill] sm:$0xff] }
 0x48c   : > { %12792 = vst.msk [vmem:[%s23555_s12 + $0x58] sm:$0xff] %vm1759_vm1, %v3263_v14  ;;  %24549 = vst [vmem:[#allocation45_spill] sm:$0xff] %v23663_v16  ;;  %v1753_v43 = vmax.f32 %v1745_v23, 0.0  ;;  %16992 = vmatmul.mubr.msk.f32.gmra.mxu1 %vm264_vm0, %v17190_v38  ;;  %v3262_v60 = vmax.f32 %v3254_v47, 0.0  ;;  %v4771_v21 = vmax.f32 %v4763_v59, 0.0  ;;  %v9290_v6 = vadd.f32 %v23511_v50, %v23612_v36  ;;  %v13800_v50 = vld [vmem:[%s23953_s1 + $0x238] sm:$0xff]  ;;  %v23719_v12 = vpop.permute.xlu0 %1740  ;;  %v23721_v15 = vpop.f32.mrf.mxu0 }
 0x48d   : > { %12962 = vst.msk [vmem:[%s23555_s12 + $0x98] sm:$0xff] %vm1759_vm1, %v4772_v2  ;;  %13132 = vst.msk [vmem:[%s23555_s12 + $0xd8] sm:$0xff] %vm1759_vm1, %v6281_v32  ;;  %v6280_v57 = vmax.f32 %v6272_v0, 0.0  ;;  %16994 = vmatprep.mubr.msk.f32.mxu1 %vm264_vm0, %v17191_v37  ;;  %v7789_v53 = vmax.f32 %v7781_v4, 0.0  ;;  %v1748_v52 = vadd.f32 %v23663_v16, %v24551_v44  ;;  %v3257_v22 = vadd.f32 %v24552_v19, %v23663_v16  ;;  %v24555_v14 = vld [vmem:[#allocation191_spill] sm:$0xff]  ;;  %v24561_v37 = vld [vmem:[#allocation121_spill] sm:$0xff] }
 0x48e   : > { %24550 = vst [vmem:[#allocation48_spill] sm:$0xff] %v23680_v63  ;;  %13302 = vst.msk [vmem:[%s23555_s12 + $0x118] sm:$0xff] %vm1759_vm1, %v7790_v3  ;;  %v4766_v42 = vadd.f32 %v24553_v26, %v23663_v16  ;;  %v9298_v41 = vmax.f32 %v9290_v6, 0.0  ;;  %v6275_v35 = vadd.f32 %v24554_v34, %v23663_v16  ;;  %v7784_v39 = vadd.f32 %v24555_v14, %v23663_v16  ;;  %v24558_v4 = vld [vmem:[#allocation55_spill] sm:$0xff] }
 0x48f   : > { %13472 = vst.msk [vmem:[%s23555_s12 + $0x158] sm:$0xff] %vm1759_vm1, %v9299_v25  ;;  %1762 = vst.msk [vmem:[%s23555_s12 + $0x10] sm:$0xff] %vm1759_vm1, %v1753_v43  ;;  %v9293_v20 = vadd.f32 %v23515_v30, %v23663_v16  ;;  %v1756_v40 = vmax.f32 %v1748_v52, 0.0  ;;  %v3265_v31 = vmax.f32 %v3257_v22, 0.0  ;;  %v1747_v29 = vadd.f32 %v23680_v63, %v24556_v7  ;;  %v23740_v43 = vpop.f32.mrf.mxu1  ;;  %v24562_v19 = vld [vmem:[#allocation159_spill] sm:$0xff]  ;;  %v24567_v7 = vld [vmem:[#allocation40_spill] sm:$0xff] }
 0x490   : > { %12791 = vst.msk [vmem:[%s23555_s12 + $0x50] sm:$0xff] %vm1759_vm1, %v3262_v60  ;;  %12961 = vst.msk [vmem:[%s23555_s12 + $0x90] sm:$0xff] %vm1759_vm1, %v4771_v21  ;;  %v4774_v2 = vmax.f32 %v4766_v42, 0.0  ;;  %16995 = vmatmul.mubr.msk.f32.gmra.mxu1 %vm264_vm0, %v13800_v50  ;;  %v6283_v30 = vmax.f32 %v6275_v35, 0.0  ;;  %v7792_v23 = vmax.f32 %v7784_v39, 0.0  ;;  %v3256_v47 = vadd.f32 %v23156_v9, %v23680_v63  ;;  %v23754_v60 = vpop.permute.xlu1 %1735  ;;  %v24563_v42 = vld [vmem:[#allocation193_spill] sm:$0xff] }
 0x491   : > { %13131 = vst.msk [vmem:[%s23555_s12 + $0xd0] sm:$0xff] %vm1759_vm1, %v6280_v57  ;;  %13301 = vst.msk [vmem:[%s23555_s12 + $0x110] sm:$0xff] %vm1759_vm1, %v7789_v53  ;;  %v9301_v32 = vmax.f32 %v9293_v20, 0.0  ;;  %v1755_v59 = vmax.f32 %v1747_v29, 0.0  ;;  %v4765_v0 = vadd.f32 %v23203_v48, %v23680_v63  ;;  %v6274_v3 = vadd.f32 %v23225_v33, %v23680_v63  ;;  %v24564_v35 = vld [vmem:[#allocation34_spill] sm:$0xff]  ;;  %v23778_v39 = vpop.f32.mrf.mxu1 }
 0x492   : > { %24557 = vst [vmem:[#allocation54_spill] sm:$0xff] %v23719_v12  ;;  %13471 = vst.msk [vmem:[%s23555_s12 + $0x150] sm:$0xff] %vm1759_vm1, %v9298_v41  ;;  %v7783_v25 = vadd.f32 %v23470_v17, %v23680_v63  ;;  %v3264_v9 = vmax.f32 %v3256_v47, 0.0  ;;  %v9292_v48 = vadd.f32 %v23525_v27, %v23680_v63  ;;  %v1750_v33 = vadd.f32 %v23719_v12, %v24558_v4  ;;  %v24559_v17 = vld [vmem:[#allocation84_spill] sm:$0xff]  ;;  %v23760_v27 = vpop.f32.mrf.mxu0 }
 0x493   : > { %1765 = vst.msk [vmem:[%s23555_s12 + $0x28] sm:$0xff] %vm1759_vm1, %v1756_v40  ;;  %12794 = vst.msk [vmem:[%s23555_s12 + $0x68] sm:$0xff] %vm1759_vm1, %v3265_v31  ;;  %v3259_v38 = vadd.f32 %v24559_v17, %v23719_v12  ;;  %v4773_v21 = vmax.f32 %v4765_v0, 0.0  ;;  %v6282_v57 = vmax.f32 %v6274_v3, 0.0  ;;  %v4768_v53 = vadd.f32 %v24561_v37, %v23719_v12  ;;  %v24565_v40 = vld [vmem:[#allocation39_spill] sm:$0xff] }
 0x494   : > { %12964 = vst.msk [vmem:[%s23555_s12 + $0xa8] sm:$0xff] %vm1759_vm1, %v4774_v2  ;;  %13134 = vst.msk [vmem:[%s23555_s12 + $0xe8] sm:$0xff] %vm1759_vm1, %v6283_v30  ;;  %v7791_v6 = vmax.f32 %v7783_v25, 0.0  ;;  %v9300_v50 = vmax.f32 %v9292_v48, 0.0  ;;  %v1758_v44 = vmax.f32 %v1750_v33, 0.0  ;;  %v6277_v22 = vadd.f32 %v24562_v19, %v23719_v12 }
 0x495   : > { %13304 = vst.msk [vmem:[%s23555_s12 + $0x128] sm:$0xff] %vm1759_vm1, %v7792_v23  ;;  %13474 = vst.msk [vmem:[%s23555_s12 + $0x168] sm:$0xff] %vm1759_vm1, %v9301_v32  ;;  %v3267_v52 = vmax.f32 %v3259_v38, 0.0  ;;  %v4776_v26 = vmax.f32 %v4768_v53, 0.0  ;;  %v7786_v41 = vadd.f32 %v24563_v42, %v23719_v12  ;;  %v9295_v34 = vadd.f32 %v23528_v5, %v23719_v12  ;;  %v24566_v5 = vld [vmem:[#allocation38_spill] sm:$0xff] }
 0x496   : > { %24560 = vst [vmem:[#allocation61_spill] sm:$0xff] %v23754_v60  ;;  %1764 = vst.msk [vmem:[%s23555_s12 + $0x20] sm:$0xff] %vm1759_vm1, %v1755_v59  ;;  %v1749_v14 = vadd.f32 %v23754_v60, %v24564_v35  ;;  %v6285_v20 = vmax.f32 %v6277_v22, 0.0  ;;  %v3258_v31 = vadd.f32 %v24565_v40, %v23754_v60  ;;  %v4767_v2 = vadd.f32 %v24566_v5, %v23754_v60  ;;  %v16570_v59 = vpop.f32.mrf.mxu0 }
 0x497   : > { %12793 = vst.msk [vmem:[%s23555_s12 + $0x60] sm:$0xff] %vm1759_vm1, %v3264_v9  ;;  %12963 = vst.msk [vmem:[%s23555_s12 + $0xa0] sm:$0xff] %vm1759_vm1, %v4773_v21  ;;  %v6276_v29 = vadd.f32 %v24567_v7, %v23754_v60  ;;  %v7794_v30 = vmax.f32 %v7786_v41, 0.0  ;;  %v9303_v23 = vmax.f32 %v9295_v34, 0.0  ;;  %v7785_v47 = vadd.f32 %v23481_v46, %v23754_v60  ;;  %v9902_v46 = vpop.f32.mrf.mxu1 }
 0x498   : > { %13133 = vst.msk [vmem:[%s23555_s12 + $0xe0] sm:$0xff] %vm1759_vm1, %v6282_v57  ;;  %13303 = vst.msk [vmem:[%s23555_s12 + $0x120] sm:$0xff] %vm1759_vm1, %v7791_v6  ;;  %v1757_v32 = vmax.f32 %v1749_v14, 0.0  ;;  %v3266_v0 = vmax.f32 %v3258_v31, 0.0  ;;  %v4775_v3 = vmax.f32 %v4767_v2, 0.0  ;;  %v9294_v9 = vadd.f32 %v23531_v54, %v23754_v60  ;;  %v9759_v4 = vpop.f32.mrf.mxu0 }
 0x499   : > { %13473 = vst.msk [vmem:[%s23555_s12 + $0x160] sm:$0xff] %vm1759_vm1, %v9300_v50  ;;  %1767 = vst.msk [vmem:[%s23555_s12 + $0x38] sm:$0xff] %vm1759_vm1, %v1758_v44  ;;  %v6284_v25 = vmax.f32 %v6276_v29, 0.0  ;;  %v7793_v48 = vmax.f32 %v7785_v47, 0.0  ;;  %v16598_v38 = vpop.f32.mrf.mxu1  ;;  %v9604_v60 = vadd.f32 %v23498_v13, %v23440_v51  ;;  %v9599_v63 = vadd.f32 %v23543_v10, %v23478_v28 }
 0x49a   : > { %12796 = vst.msk [vmem:[%s23555_s12 + $0x78] sm:$0xff] %vm1759_vm1, %v3267_v52  ;;  %12966 = vst.msk [vmem:[%s23555_s12 + $0xb8] sm:$0xff] %vm1759_vm1, %v4776_v26  ;;  %v9302_v33 = vmax.f32 %v9294_v9, 0.0  ;;  %v16573_v17 = vpop.f32.mrf.mxu0  ;;  %v9609_v51 = vadd.f32 %v23649_v45, %v23564_v49 }
 0x49b   : > { %13136 = vst.msk [vmem:[%s23555_s12 + $0xf8] sm:$0xff] %vm1759_vm1, %v6285_v20  ;;  %13306 = vst.msk [vmem:[%s23555_s12 + $0x138] sm:$0xff] %vm1759_vm1, %v7794_v30  ;;  %v9912_v21 = vpop.f32.mrf.mxu1  ;;  %v9791_v36 = vadd.f32 %v16570_v59, %v9604_v60  ;;  %v9624_v60 = vadd.f32 %v23701_v55, %v23618_v56 }
 0x49c   : > { %13476 = vst.msk [vmem:[%s23555_s12 + $0x178] sm:$0xff] %vm1759_vm1, %v9303_v23  ;;  %1766 = vst.msk [vmem:[%s23555_s12 + $0x30] sm:$0xff] %vm1759_vm1, %v1757_v32  ;;  %v9769_v54 = vpop.f32.mrf.mxu0 }
 0x49d   : > { %12795 = vst.msk [vmem:[%s23555_s12 + $0x70] sm:$0xff] %vm1759_vm1, %v3266_v0  ;;  %12965 = vst.msk [vmem:[%s23555_s12 + $0xb0] sm:$0xff] %vm1759_vm1, %v4775_v3  ;;  %v16601_v37 = vpop.f32.mrf.mxu1  ;;  %v24571_v0 = vld [vmem:[#allocation42_spill] sm:$0xff] }
 0x49e   : > { %13135 = vst.msk [vmem:[%s23555_s12 + $0xf0] sm:$0xff] %vm1759_vm1, %v6284_v25  ;;  %13305 = vst.msk [vmem:[%s23555_s12 + $0x130] sm:$0xff] %vm1759_vm1, %v7793_v48  ;;  %v16576_v57 = vpop.f32.mrf.mxu0  ;;  %v9594_v3 = vadd.f32 %v23425_v8, %v24571_v0  ;;  %v24572_v25 = vld [vmem:[#allocation44_spill] sm:$0xff]  ;;  %v9790_v0 = vadd.f32 %v9759_v4, %v9599_v63 }
 0x49f   : > { %13475 = vst.msk [vmem:[%s23555_s12 + $0x170] sm:$0xff] %vm1759_vm1, %v9302_v33  ;;  %v9922_v53 = vpop.f32.mrf.mxu1  ;;  %v9589_v9 = vadd.f32 %v23459_v11, %v24572_v25  ;;  %v9614_v11 = vadd.f32 %v23595_v1, %v23517_v58  ;;  %v9619_v1 = vadd.f32 %v23740_v43, %v23669_v18  ;;  %v9795_v4 = vadd.f32 %v16576_v57, %v9624_v60 }
 0x4a0   : > { %v23816_v6 = vpop.f32.mrf.mxu0  ;;  %v9789_v12 = vadd.f32 %v23721_v15, %v9594_v3  ;;  %v9944_v15 = vadd.f32 %v16598_v38, %v9791_v36  ;;  %v9943_v10 = vadd.f32 %v9912_v21, %v9790_v0 }
 0x4a1   : > { %v23818_v44 = vpop.f32.mrf.mxu1  ;;  %v9788_v16 = vadd.f32 %v23760_v27, %v9589_v9  ;;  %v9793_v28 = vadd.f32 %v16573_v17, %v9614_v11  ;;  %v9794_v56 = vadd.f32 %v23816_v6, %v9619_v1 }
 0x4a2   : > { %v16623_v50 = vpop.f32.mrf.mxu0  ;;  %v9942_v8 = vadd.f32 %v23778_v39, %v9789_v12  ;;  %v9792_v12 = vadd.f32 %v9769_v54, %v9609_v51  ;;  %v9948_v43 = vadd.f32 %v23818_v44, %v9795_v4 }
 0x4a3   : > { %v23820_v19 = vpop.f32.mrf.mxu1  ;;  %v9941_v25 = vadd.f32 %v9902_v46, %v9788_v16  ;;  %v9946_v16 = vadd.f32 %v16601_v37, %v9793_v28 }
 0x4a4   : > { %v10079_v52 = vpop.f32.mrf.mxu0  ;;  %v10119_v3 = vadd.f32 %v16623_v50, %v9942_v8  ;;  %v9945_v46 = vadd.f32 %v9922_v53, %v9792_v12  ;;  %v9947_v6 = vadd.f32 %v23820_v19, %v9794_v56 }
 0x4a5   : > { %v16651_v42 = vpop.f32.mrf.mxu1  ;;  %v10118_v27 = vadd.f32 %v10079_v52, %v9941_v25 }
 0x4a6   : > { %v16626_v22 = vpop.f32.mrf.mxu0  ;;  %v10288_v58 = vadd.f32 %v16651_v42, %v10119_v3 }
 0x4a7   : > { %v10248_v41 = vpop.f32.mrf.mxu1  ;;  %v10121_v59 = vadd.f32 %v16626_v22, %v9944_v15 }
 0x4a8   : > { %v10089_v26 = vpop.f32.mrf.mxu0  ;;  %v10287_v49 = vadd.f32 %v10248_v41, %v10118_v27 }
 0x4a9   : > { %v10120_v63 = vadd.f32 %v10089_v26, %v9943_v10 }
 0x4aa   : > { %v16629_v34 = vpop.f32.mrf.mxu0 }
 0x4ab   : > { %v10123_v55 = vadd.f32 %v16629_v34, %v9946_v16  ;;  %v24577_v16 = vld [vmem:[#allocation45_spill] sm:$0xff] }
 0x4ac   : > { %v23822_v35 = vpop.f32.mrf.mxu0  ;;  %v16654_v14 = vpop.f32.mrf.mxu1 }
 0x4ad   : > { %v10290_v38 = vadd.f32 %v16654_v14, %v10121_v59  ;;  %v10122_v37 = vadd.f32 %v23822_v35, %v9945_v46 }
 0x4ae   : > { %v10258_v20 = vpop.f32.mrf.mxu1 }
 0x4af   : > { %v10289_v52 = vadd.f32 %v10258_v20, %v10120_v63 }
 0x4b0   : > { %v23824_v40 = vpop.f32.mrf.mxu0 }
 0x4b1   : > { %v10125_v35 = vadd.f32 %v23824_v40, %v9948_v43  ;;  %v24580_v43 = vld [vmem:[#allocation61_spill] sm:$0xff] }
 0x4b2   : > { %v23828_v5 = vpop.f32.mrf.mxu0 }
 0x4b3   : > { %v23826_v31 = vpop.f32.mrf.mxu1  ;;  %24568 = vst [vmem:[#allocation57_spill] sm:$0xff] %v23828_v5 }
 0x4b4   : > { %v10292_v34 = vadd.f32 %v23826_v31, %v10123_v55 }
 0x4b5   : > { %v23830_v2 = vpop.f32.mrf.mxu1 }
 0x4b7   : > { %v16679_v7 = vpop.f32.mrf.mxu0 }
 0x4b8   : > { %v10444_v45 = vadd.f32 %v16679_v7, %v10288_v58 }
 0x4b9   : > { %v10404_v30 = vpop.f32.mrf.mxu0 }
 0x4ba   : > { %v23832_v29 = vpop.f32.mrf.mxu1  ;;  %v10443_v21 = vadd.f32 %v10404_v30, %v10287_v49  ;;  %v24573_v0 = vld [vmem:[#allocation57_spill] sm:$0xff] }
 0x4bb   : > { %24569 = vst [vmem:[#allocation62_spill] sm:$0xff] %v23832_v29  ;;  %v10124_v25 = vadd.f32 %v24573_v0, %v9947_v6 }
 0x4bc   : > { %v23834_v23 = vpop.f32.mrf.mxu1 }
 0x4bd   : > { %24570 = vst [vmem:[#allocation60_spill] sm:$0xff] %v23834_v23  ;;  %v16682_v47 = vpop.f32.mrf.mxu0 }
 0x4be   : > { %v10446_v22 = vadd.f32 %v16682_v47, %v10290_v38  ;;  %v24578_v38 = vld [vmem:[#allocation48_spill] sm:$0xff] }
 0x4bf   : > { %v16707_v32 = vpop.f32.mrf.mxu1  ;;  %v10414_v33 = vpop.f32.mrf.mxu0 }
 0x4c0   : > { %v10621_v50 = vadd.f32 %v16707_v32, %v10444_v45  ;;  %v10445_v57 = vadd.f32 %v10414_v33, %v10289_v52 }
 0x4c1   : > { %v10581_v48 = vpop.f32.mrf.mxu1 }
 0x4c2   : > { %v16685_v29 = vpop.f32.mrf.mxu0  ;;  %v10620_v42 = vadd.f32 %v10581_v48, %v10443_v21  ;;  %v10291_v48 = vadd.f32 %v23830_v2, %v10122_v37  ;;  %v24574_v2 = vld [vmem:[#allocation43_spill] sm:$0xff]  ;;  %v24575_v10 = vld [vmem:[#allocation62_spill] sm:$0xff] }
 0x4c3   : > { %v10448_v33 = vadd.f32 %v16685_v29, %v10292_v34  ;;  %v10294_v27 = vadd.f32 %v24575_v10, %v10125_v35 }
 0x4c4   : > { %v16710_v23 = vpop.f32.mrf.mxu1  ;;  %v10424_v13 = vpop.f32.mrf.mxu0  ;;  %v24576_v1 = vld [vmem:[#allocation60_spill] sm:$0xff] }
 0x4c5   : > { %v10623_v53 = vadd.f32 %v16710_v23, %v10446_v22  ;;  %v10447_v51 = vadd.f32 %v10424_v13, %v10291_v48  ;;  %v10293_v13 = vadd.f32 %v24576_v1, %v10124_v25  ;;  %v24579_v22 = vld [vmem:[#allocation54_spill] sm:$0xff] }
 0x4c6   : > { %v10591_v5 = vpop.f32.mrf.mxu1 }
 0x4c7   : > { %v16688_v39 = vpop.f32.mrf.mxu0  ;;  %v10622_v7 = vadd.f32 %v10591_v5, %v10445_v57 }
 0x4c9   : > { %v16713_v9 = vpop.f32.mrf.mxu1  ;;  %v10434_v17 = vpop.f32.mrf.mxu0 }
 0x4ca   : > { %v10625_v15 = vadd.f32 %v16713_v9, %v10448_v33  ;;  %v10450_v9 = vadd.f32 %v16688_v39, %v10294_v27  ;;  %v10449_v4 = vadd.f32 %v10434_v17, %v10293_v13 }
 0x4cb   : > { %v10601_v36 = vpop.f32.mrf.mxu1 }
 0x4cc   : > { %v10624_v60 = vadd.f32 %v10601_v36, %v10447_v51 }
 0x4cd   : > { %v16716_v8 = vpop.f32.mrf.mxu1 }
 0x4ce   : > { %v10627_v46 = vadd.f32 %v16716_v8, %v10450_v9 }
 0x4cf   : > { %v10611_v30 = vpop.f32.mrf.mxu1 }
 0x4d0   : > { %v10626_v55 = vadd.f32 %v10611_v30, %v10449_v4 }
 0x4d6   : > { %v16735_v54 = vpop.f32.mrf.mxu0 }
 0x4d7   : > { %v10790_v18 = vadd.f32 %v16735_v54, %v10621_v50 }
 0x4d8   : > { %v10750_v26 = vpop.f32.mrf.mxu0 }
 0x4d9   : > { %v10798_v41 = vadd.f32 %v10790_v18, %v23522_v24  ;;  %v10789_v14 = vadd.f32 %v10750_v26, %v10620_v42 }
 0x4da   : > { %v16738_v20 = vpop.f32.mrf.mxu0 }
 0x4db   : > { %v10806_v32 = vmax.f32 %v10798_v41, 0.0  ;;  %v10797_v44 = vadd.f32 %v10789_v14, %v23520_v61  ;;  %v10792_v47 = vadd.f32 %v16738_v20, %v10623_v53 }
 0x4dc   : > { %v10760_v23 = vpop.f32.mrf.mxu0 }
 0x4dd   : > { %13640 = vst.msk [vmem:[%s23555_s12 + $0x188] sm:$0xff] %vm1759_vm1, %v10806_v32  ;;  %v10805_v19 = vmax.f32 %v10797_v44, 0.0  ;;  %v10800_v31 = vadd.f32 %v10792_v47, %v23593_v62  ;;  %v10791_v11 = vadd.f32 %v10760_v23, %v10622_v7  ;;  %v23867_v5 = vpop.f32.mrf.mxu1 }
 0x4df   : > { %13639 = vst.msk [vmem:[%s23555_s12 + $0x180] sm:$0xff] %vm1759_vm1, %v10805_v19  ;;  %v10808_v40 = vmax.f32 %v10800_v31, 0.0  ;;  %v10799_v3 = vadd.f32 %v10791_v11, %v24574_v2  ;;  %v23873_v29 = vpop.f32.mrf.mxu1 }
 0x4e0   : > { %v16741_v28 = vpop.f32.mrf.mxu0 }
 0x4e1   : > { %13642 = vst.msk [vmem:[%s23555_s12 + $0x198] sm:$0xff] %vm1759_vm1, %v10808_v40  ;;  %v10807_v12 = vmax.f32 %v10799_v3, 0.0  ;;  %v10794_v59 = vadd.f32 %v16741_v28, %v10625_v15 }
 0x4e2   : > { %v10770_v58 = vpop.f32.mrf.mxu0 }
 0x4e3   : > { %13641 = vst.msk [vmem:[%s23555_s12 + $0x190] sm:$0xff] %vm1759_vm1, %v10807_v12  ;;  %v10802_v63 = vadd.f32 %v10794_v59, %v24577_v16  ;;  %v10793_v49 = vadd.f32 %v10770_v58, %v10624_v60  ;;  %v23882_v45 = vpop.f32.mrf.mxu1 }
 0x4e5   : > { %v10810_v36 = vmax.f32 %v10802_v63, 0.0  ;;  %v10801_v21 = vadd.f32 %v10793_v49, %v24578_v38  ;;  %v23885_v50 = vpop.f32.mrf.mxu1 }
 0x4e6   : > { %v16744_v56 = vpop.f32.mrf.mxu0 }
 0x4e7   : > { %13644 = vst.msk [vmem:[%s23555_s12 + $0x1a8] sm:$0xff] %vm1759_vm1, %v10810_v36  ;;  %v10809_v39 = vmax.f32 %v10801_v21, 0.0  ;;  %v10796_v54 = vadd.f32 %v16744_v56, %v10627_v46 }
 0x4e8   : > { %v10780_v52 = vpop.f32.mrf.mxu0 }
 0x4e9   : > { %13643 = vst.msk [vmem:[%s23555_s12 + $0x1a0] sm:$0xff] %vm1759_vm1, %v10809_v39  ;;  %v10804_v42 = vadd.f32 %v10796_v54, %v24579_v22  ;;  %v10795_v17 = vadd.f32 %v10780_v52, %v10626_v55  ;;  %v16769_v8 = vpop.f32.mrf.mxu1 }
 0x4eb   : > { %v10812_v18 = vmax.f32 %v10804_v42, 0.0  ;;  %v10803_v37 = vadd.f32 %v10795_v17, %v24580_v43  ;;  %v10988_v26 = vpop.f32.mrf.mxu1 }
 0x4ec   : > { %v16791_v57 = vpop.f32.mrf.mxu0 }
 0x4ed   : > { %13646 = vst.msk [vmem:[%s23555_s12 + $0x1b8] sm:$0xff] %vm1759_vm1, %v10812_v18  ;;  %v10811_v53 = vmax.f32 %v10803_v37, 0.0  ;;  %v11103_v39 = vadd.f32 %v16791_v57, %v23867_v5 }
 0x4ee   : > { %v11097_v41 = vpop.f32.mrf.mxu0 }
 0x4ef   : > { %13645 = vst.msk [vmem:[%s23555_s12 + $0x1b0] sm:$0xff] %vm1759_vm1, %v10811_v53  ;;  %v16772_v14 = vpop.f32.mrf.mxu1  ;;  %v11098_v52 = vadd.f32 %v11097_v41, %v23873_v29 }
 0x4f1   : > { %v23897_v6 = vpop.f32.mrf.mxu1 }
 0x4f2   : > { %24581 = vst [vmem:[#allocation58_spill] sm:$0xff] %v23897_v6  ;;  %v16794_v34 = vpop.f32.mrf.mxu0 }
 0x4f3   : > { %v11113_v18 = vadd.f32 %v16794_v34, %v23882_v45 }
 0x4f4   : > { %v11107_v20 = vpop.f32.mrf.mxu0 }
 0x4f5   : > { %v16819_v7 = vpop.f32.mrf.mxu1  ;;  %v11108_v53 = vadd.f32 %v11107_v20, %v23885_v50 }
 0x4f6   : > { %v11298_v37 = vadd.f32 %v16819_v7, %v11103_v39  ;;  %v24590_v39 = vld [vmem:[#allocation51_spill] sm:$0xff] }
 0x4f7   : > { %v11258_v30 = vpop.f32.mrf.mxu1 }
 0x4f8   : > { %v16797_v32 = vpop.f32.mrf.mxu0  ;;  %v11297_v43 = vadd.f32 %v11258_v30, %v11098_v52 }
 0x4f9   : > { %v11123_v38 = vadd.f32 %v16797_v32, %v16769_v8  ;;  %v24585_v20 = vld [vmem:[#allocation58_spill] sm:$0xff] }
 0x4fa   : > { %v11117_v44 = vpop.f32.mrf.mxu0 }
 0x4fb   : > { %v16822_v47 = vpop.f32.mrf.mxu1  ;;  %v11118_v24 = vadd.f32 %v11117_v44, %v10988_v26 }
 0x4fc   : > { %v11300_v62 = vadd.f32 %v16822_v47, %v11113_v18 }
 0x4fd   : > { %v11268_v35 = vpop.f32.mrf.mxu1 }
 0x4fe   : > { %v16800_v48 = vpop.f32.mrf.mxu0  ;;  %v11299_v5 = vadd.f32 %v11268_v35, %v11108_v53 }
 0x4ff   : > { %v11133_v41 = vadd.f32 %v16800_v48, %v16772_v14 }
 0x500   : > { %v11127_v23 = vpop.f32.mrf.mxu0 }
 0x501   : > { %v11128_v30 = vadd.f32 %v11127_v23, %v24585_v20 }
 0x502   : > { %v16825_v33 = vpop.f32.mrf.mxu1 }
 0x504   : > { %v11278_v19 = vpop.f32.mrf.mxu1 }
 0x505   : > { %v16847_v31 = vpop.f32.mrf.mxu0  ;;  %v11301_v8 = vadd.f32 %v11278_v19, %v11118_v24 }
 0x506   : > { %v11451_v22 = vadd.f32 %v16847_v31, %v11298_v37 }
 0x507   : > { %v16828_v11 = vpop.f32.mrf.mxu1  ;;  %v11411_v0 = vpop.f32.mrf.mxu0 }
 0x508   : > { %v11450_v61 = vadd.f32 %v11411_v0, %v11297_v43  ;;  %v11304_v26 = vadd.f32 %v16828_v11, %v11133_v41 }
 0x509   : > { %v23899_v25 = vpop.f32.mrf.mxu1  ;;  %v16850_v51 = vpop.f32.mrf.mxu0 }
 0x50a   : > { %24582 = vst [vmem:[#allocation20_spill] sm:$0xff] %v23899_v25  ;;  %v11453_v57 = vadd.f32 %v16850_v51, %v11300_v62  ;;  %v11302_v25 = vadd.f32 %v16825_v33, %v11123_v38 }
 0x50b   : > { %v16875_v15 = vpop.f32.mrf.mxu1  ;;  %v11421_v3 = vpop.f32.mrf.mxu0 }
 0x50c   : > { %v11452_v34 = vadd.f32 %v11421_v3, %v11299_v5 }
 0x50d   : > { %v11588_v40 = vpop.f32.mrf.mxu1 }
 0x50e   : > { %v16853_v10 = vpop.f32.mrf.mxu0 }
 0x50f   : > { %v16878_v28 = vpop.f32.mrf.mxu1  ;;  %v11455_v32 = vadd.f32 %v16853_v10, %v11302_v25 }
 0x510   : > { %v11431_v60 = vpop.f32.mrf.mxu0  ;;  %v11630_v7 = vadd.f32 %v16878_v28, %v11453_v57 }
 0x511   : > { %v11598_v27 = vpop.f32.mrf.mxu1  ;;  %v11454_v44 = vadd.f32 %v11431_v60, %v11301_v8  ;;  %v24586_v33 = vld [vmem:[#allocation20_spill] sm:$0xff] }
 0x512   : > { %v11629_v47 = vadd.f32 %v11598_v27, %v11452_v34  ;;  %v11303_v0 = vadd.f32 %v24586_v33, %v11128_v30 }
 0x514   : > { %v16856_v58 = vpop.f32.mrf.mxu0 }
 0x515   : > { %v11457_v51 = vadd.f32 %v16856_v58, %v11304_v26 }
 0x516   : > { %v11441_v13 = vpop.f32.mrf.mxu0 }
 0x517   : > { %v11456_v28 = vadd.f32 %v11441_v13, %v11303_v0  ;;  %v24595_v0 = vld [vmem:[#allocation54_spill] sm:$0xff] }
 0x51d   : > { %v16881_v12 = vpop.f32.mrf.mxu1 }
 0x51e   : > { %v11632_v62 = vadd.f32 %v16881_v12, %v11455_v32 }
 0x51f   : > { %v11608_v59 = vpop.f32.mrf.mxu1 }
 0x522   : > { %v23901_v1 = vpop.f32.mrf.mxu1 }
 0x523   : > { %24583 = vst [vmem:[#allocation47_spill] sm:$0xff] %v23901_v1  ;;  %v11627_v1 = vadd.f32 %v11588_v40, %v11450_v61 }
 0x524   : > { %v16903_v9 = vpop.f32.mrf.mxu0  ;;  %v23903_v63 = vpop.f32.mrf.mxu1 }
 0x525   : > { %24584 = vst [vmem:[#allocation50_spill] sm:$0xff] %v23903_v63  ;;  %v11628_v63 = vadd.f32 %v16875_v15, %v11451_v22  ;;  %v11631_v15 = vadd.f32 %v11608_v59, %v11454_v44 }
 0x526   : > { %v11757_v49 = vpop.f32.mrf.mxu0 }
 0x527   : > { %v11797_v29 = vadd.f32 %v16903_v9, %v11628_v63  ;;  %v11796_v50 = vadd.f32 %v11757_v49, %v11627_v1  ;;  %v24588_v63 = vld [vmem:[#allocation59_spill] sm:$0xff] }
 0x52a   : > { %v16906_v46 = vpop.f32.mrf.mxu0  ;;  %v24587_v10 = vld [vmem:[#allocation47_spill] sm:$0xff] }
 0x52b   : > { %v16931_v4 = vpop.f32.mrf.mxu1  ;;  %v11799_v22 = vadd.f32 %v16906_v46, %v11630_v7  ;;  %v11634_v11 = vadd.f32 %v24587_v10, %v11457_v51 }
 0x52c   : > { %v11767_v21 = vpop.f32.mrf.mxu0  ;;  %v11953_v43 = vadd.f32 %v16931_v4, %v11797_v29  ;;  %v24589_v58 = vld [vmem:[#allocation50_spill] sm:$0xff]  ;;  %v24591_v29 = vld [vmem:[#allocation41_spill] sm:$0xff] }
 0x52d   : > { %v11913_v36 = vpop.f32.mrf.mxu1  ;;  %v11798_v38 = vadd.f32 %v11767_v21, %v11629_v47  ;;  %v11633_v59 = vadd.f32 %v24589_v58, %v11456_v28 }
 0x52e   : > { %v11952_v14 = vadd.f32 %v11913_v36, %v11796_v50 }
 0x530   : > { %v16934_v56 = vpop.f32.mrf.mxu1  ;;  %v16909_v55 = vpop.f32.mrf.mxu0 }
 0x531   : > { %v11801_v40 = vadd.f32 %v16909_v55, %v11632_v62  ;;  %v11955_v19 = vadd.f32 %v16934_v56, %v11799_v22 }
 0x532   : > { %v11923_v54 = vpop.f32.mrf.mxu1  ;;  %v11777_v42 = vpop.f32.mrf.mxu0 }
 0x533   : > { %v11800_v27 = vadd.f32 %v11777_v42, %v11631_v15  ;;  %v11954_v1 = vadd.f32 %v11923_v54, %v11798_v38 }
 0x535   : > { %v16912_v16 = vpop.f32.mrf.mxu0 }
 0x536   : > { %v16937_v17 = vpop.f32.mrf.mxu1  ;;  %v11803_v36 = vadd.f32 %v16912_v16, %v11634_v11 }
 0x537   : > { %v11787_v6 = vpop.f32.mrf.mxu0  ;;  %v11957_v46 = vadd.f32 %v16937_v17, %v11801_v40 }
 0x538   : > { %v11933_v2 = vpop.f32.mrf.mxu1  ;;  %v11802_v37 = vadd.f32 %v11787_v6, %v11633_v59 }
 0x539   : > { %v11956_v18 = vadd.f32 %v11933_v2, %v11800_v27  ;;  %v24592_v2 = vld [vmem:[#allocation43_spill] sm:$0xff] }
 0x53c   : > { %v16940_v45 = vpop.f32.mrf.mxu1 }
 0x53d   : > { %v11959_v41 = vadd.f32 %v16940_v45, %v11803_v36  ;;  %v24593_v45 = vld [vmem:[#allocation45_spill] sm:$0xff] }
 0x53e   : > { %v11943_v61 = vpop.f32.mrf.mxu1 }
 0x53f   : > { %v16959_v31 = vpop.f32.mrf.mxu0  ;;  %v11958_v8 = vadd.f32 %v11943_v61, %v11802_v37 }
 0x540   : > { %v12130_v48 = vadd.f32 %v16959_v31, %v11953_v43 }
 0x541   : > { %v12090_v35 = vpop.f32.mrf.mxu0 }
 0x542   : > { %v12129_v25 = vadd.f32 %v12090_v35, %v11952_v14  ;;  %v24594_v14 = vld [vmem:[#allocation48_spill] sm:$0xff] }
 0x543   : > { %v16962_v23 = vpop.f32.mrf.mxu0 }
 0x544   : > { %v16987_v24 = vpop.f32.mrf.mxu1  ;;  %v12132_v9 = vadd.f32 %v16962_v23, %v11955_v19  ;;  %v24596_v23 = vld [vmem:[#allocation61_spill] sm:$0xff] }
 0x545   : > { %v12299_v3 = vadd.f32 %v16987_v24, %v12130_v48  ;;  %v12100_v60 = vpop.f32.mrf.mxu0 }
 0x546   : > { %v12259_v12 = vpop.f32.mrf.mxu1  ;;  %v12131_v55 = vadd.f32 %v12100_v60, %v11954_v1 }
 0x547   : > { %v12307_v49 = vadd.f32 %v12299_v3, %v24588_v63  ;;  %v12298_v4 = vadd.f32 %v12259_v12, %v12129_v25  ;;  %v16965_v21 = vpop.f32.mrf.mxu0 }
 0x548   : > { %v16990_v56 = vpop.f32.mrf.mxu1  ;;  %v12134_v5 = vadd.f32 %v16965_v21, %v11957_v46 }
 0x549   : > { %v12315_v13 = vmax.f32 %v12307_v49, 0.0  ;;  %v12306_v52 = vadd.f32 %v12298_v4, %v24590_v39  ;;  %v12301_v42 = vadd.f32 %v16990_v56, %v12132_v9  ;;  %v12110_v54 = vpop.f32.mrf.mxu0 }
 0x54a   : > { %v12269_v53 = vpop.f32.mrf.mxu1  ;;  %v12133_v50 = vadd.f32 %v12110_v54, %v11956_v18 }
 0x54b   : > { %13810 = vst.msk [vmem:[%s23555_s12 + $0x1c8] sm:$0xff] %vm1759_vm1, %v12315_v13  ;;  %v12314_v57 = vmax.f32 %v12306_v52, 0.0  ;;  %v12309_v17 = vadd.f32 %v12301_v42, %v24591_v29  ;;  %v12300_v16 = vadd.f32 %v12269_v53, %v12131_v55  ;;  %v16968_v34 = vpop.f32.mrf.mxu0 }
 0x54c   : > { %v16993_v7 = vpop.f32.mrf.mxu1  ;;  %v12136_v47 = vadd.f32 %v16968_v34, %v11959_v41 }
 0x54d   : > { %13809 = vst.msk [vmem:[%s23555_s12 + $0x1c0] sm:$0xff] %vm1759_vm1, %v12314_v57  ;;  %v12317_v20 = vmax.f32 %v12309_v17, 0.0  ;;  %v12308_v6 = vadd.f32 %v12300_v16, %v24592_v2  ;;  %v12303_v30 = vadd.f32 %v16993_v7, %v12134_v5  ;;  %v12120_v32 = vpop.f32.mrf.mxu0 }
 0x54e   : > { %v12279_v31 = vpop.f32.mrf.mxu1  ;;  %v12135_v62 = vadd.f32 %v12120_v32, %v11958_v8 }
 0x54f   : > { %13812 = vst.msk [vmem:[%s23555_s12 + $0x1d8] sm:$0xff] %vm1759_vm1, %v12317_v20  ;;  %v12316_v43 = vmax.f32 %v12308_v6, 0.0  ;;  %v12311_v22 = vadd.f32 %v12303_v30, %v24593_v45  ;;  %v12302_v26 = vadd.f32 %v12279_v31, %v12133_v50 }
 0x550   : > { %v16996_v44 = vpop.f32.mrf.mxu1 }
 0x551   : > { %13811 = vst.msk [vmem:[%s23555_s12 + $0x1d0] sm:$0xff] %vm1759_vm1, %v12316_v43  ;;  %v12319_v35 = vmax.f32 %v12311_v22, 0.0  ;;  %v12310_v38 = vadd.f32 %v12302_v26, %v24594_v14  ;;  %v12305_v61 = vadd.f32 %v16996_v44, %v12136_v47 }
 0x552   : > { %v12289_v48 = vpop.f32.mrf.mxu1 }
 0x553   : > { %13814 = vst.msk [vmem:[%s23555_s12 + $0x1e8] sm:$0xff] %vm1759_vm1, %v12319_v35  ;;  %v12318_v33 = vmax.f32 %v12310_v38, 0.0  ;;  %v12313_v51 = vadd.f32 %v12305_v61, %v24595_v0  ;;  %v12304_v15 = vadd.f32 %v12289_v48, %v12135_v62 }
 0x555   : > { %13813 = vst.msk [vmem:[%s23555_s12 + $0x1e0] sm:$0xff] %vm1759_vm1, %v12318_v33  ;;  %v12321_v40 = vmax.f32 %v12313_v51, 0.0  ;;  %v12312_v24 = vadd.f32 %v12304_v15, %v24596_v23 }
 0x557   : > { %13816 = vst.msk [vmem:[%s23555_s12 + $0x1f8] sm:$0xff] %vm1759_vm1, %v12321_v40  ;;  %v12320_v19 = vmax.f32 %v12312_v24, 0.0 }
 0x559   : > { %13815 = vst.msk [vmem:[%s23555_s12 + $0x1f0] sm:$0xff] %vm1759_vm1, %v12320_v19 }
 0x55a PF: > { %s13_s16 = sadd.s32 1, %s17230_s16   ;;  %s24597_s12 = smov %s17222_s14 }
 0x55b   : > { %p10_p7 = scmp.ge.s32.totalorder %s13_s16, 6   ;;  %s24598_s13 = smov %s17226_s15 }
 0x55c   : > { %s24599_s14 = smov %s24602_s17  ;;  %s24600_s15 = smov %s24606_s18 }
 0x55d   :  { %12 = sbr.rel (!%p10_p7) target bundleno = 3 (0x3), region = 87 }

</bundles_post_ra>
